<compile_context>
chip_gen: v7x
topology: tpu7x:2x2x1
jax: 0.10.0
libtpu: 0.0.40
codegen_flags: <defaults>
</compile_context>

<pallas_src>
import numpy as np
import jax
import jax.numpy as jnp
from jax.experimental import pallas as pl
from jax.experimental.pallas import tpu as pltpu


def _round_up(x, m):
    return (x + m - 1) // m * m


# ----------------------------------------------------------------------------
# Static architecture description
# ----------------------------------------------------------------------------
_WIDE = {
    "b0": dict(K=11, dil=1, pad=5, c_in=64, c_out=64),
    "b1": dict(K=13, dil=1, pad=5, c_in=128, c_out=128),
    "b2": dict(K=15, dil=1, pad=7, c_in=64, c_out=64),
    "b3": dict(K=17, dil=1, pad=8, c_in=64, c_out=64),
    "b4": dict(K=29, dil=2, pad=28, c_in=64, c_out=64),
}
_NUM_CLASSES = 35


def _n_pairs(K):
    return (K + 1) // 2


def _make_layout():
    """Row offsets of every weight chunk inside the packed slabs."""
    lay64, lay128 = {}, {}
    off = 0

    def add64(name, rows):
        nonlocal off
        lay64[name] = (off, rows)
        off += rows

    add64("pre", 40)
    add64("b0_wide", _n_pairs(11) * 128)
    add64("b1_pw", 128)
    add64("b1_res", 128)
    add64("b2_wide", _n_pairs(15) * 128)
    add64("b2_pw", 64)
    add64("b2_res", 64)
    add64("b3_wide", _n_pairs(17) * 128)
    add64("b3_pw", 64)
    add64("b3_res", 64)
    add64("b4_wide", _n_pairs(29) * 128)
    rows64 = off

    off = 0

    def add128(name, rows):
        nonlocal off
        lay128[name] = (off, rows)
        off += rows

    add128("b0_pw", 64)
    add128("b1_wide", 13 * 128)
    add128("b4_pw", 64)
    add128("b5_pw", 128)
    add128("cls", 128)
    rows128 = off

    layaux = {"b0_sh": 0, "b1_sh": 1, "b1_rsh": 2, "b2_sh": 3, "b2_rsh": 4,
              "b3_sh": 5, "b3_rsh": 6, "b4_sh": 7, "b5_sh": 8, "cls_b": 9}
    return lay64, rows64, lay128, rows128, layaux, 16


# ----------------------------------------------------------------------------
# Fused forward kernel (built per (T, batch_block))
# ----------------------------------------------------------------------------
def _build_kernel(T, b_blk, out_rows):
    lay64, _, lay128, _, layaux, _ = _make_layout()

    cfg = {}
    for name, c in _WIDE.items():
        K, dil, pad = c["K"], c["dil"], c["pad"]
        c_in, c_out = c["c_in"], c["c_out"]
        paired = c_in == 64
        t_conv = T + 2 * pad - dil * (K - 1)        # conv output length
        doff = _round_up(pad, 8)                    # 8-aligned data start
        seg = _round_up(T + 2 * pad, 8)             # per-batch segment stride
        m_tot = (b_blk - 1) * seg + T               # rows per tap matmul
        if paired:                                  # tap pairs that touch data
            steps = [p for p in range(_n_pairs(K))
                     if 2 * p * dil < pad + T and 2 * p * dil + t_conv > pad - dil]
        else:
            steps = [k for k in range(K)
                     if k * dil < pad + T and k * dil + t_conv > pad]
        cfg[name] = dict(dil=dil, pad=pad, c_in=c_in, c_out=c_out, paired=paired,
                         t_conv=t_conv, doff=doff, seg=seg, m=m_tot, steps=steps)

    # staging-buffer rows needed (max read / write extent over all wide convs)
    buf_rows = 8
    for c in cfg.values():
        mul = 2 if c["paired"] else 1
        last = max(c["steps"], default=0)
        read_end = (c["doff"] - c["pad"]) + mul * last * c["dil"] + c["m"]
        write_end = (b_blk - 1) * c["seg"] + c["doff"] + T + c["pad"]
        buf_rows = max(buf_rows, read_end, write_end)
    buf_rows = _round_up(buf_rows, 8)

    def kernel(x_ref, w64_ref, w128_ref, aux_ref, o_ref, buf):
        # Fresh zero staging buffer once per step: every row a tap may read is
        # either re-written below or defined-zero.
        buf[...] = jnp.zeros(buf.shape, jnp.bfloat16)

        def mm(lhs, rhs):
            return jnp.dot(lhs.astype(jnp.bfloat16), rhs,
                           preferred_element_type=jnp.float32)

        def shift(row, lanes):
            return aux_ref[row:row + 1, 0:lanes]

        def conv_wide(name, h, w_ref, w_off):
            """Wide conv1d over the whole batch block via per-batch padded
            segments of the bf16 staging buffer; one matmul per tap pair."""
            c = cfg[name]
            dil, pad, doff, seg = c["dil"], c["pad"], c["doff"], c["seg"]
            c_in, c_out, m, paired = c["c_in"], c["c_out"], c["m"], c["paired"]
            tail = dil if paired else 0
            for b in range(b_blk):
                base = b * seg
                hb = h[b * T:(b + 1) * T, :].astype(jnp.bfloat16)
                # zero only the pad rows the taps actually read
                buf[base + doff - pad:base + doff, :] = (
                    jnp.zeros((pad, 128), jnp.bfloat16))
                buf[base + doff + T - tail:base + doff + T + pad, :] = (
                    jnp.zeros((pad + tail, 128), jnp.bfloat16))
                buf[base + doff:base + doff + T, 0:c_in] = hb
                if paired:   # dil-shifted copy -> two taps share one matmul
                    buf[base + doff - dil:base + doff - dil + T, 64:128] = hb
            k_lanes = 128 if paired else c_in
            w_rows = 128 if paired else c_in
            acc = [jnp.zeros((m, c_out), jnp.float32) for _ in range(2)]
            for i, s in enumerate(c["steps"]):
                lo = (doff - pad) + (2 * s if paired else s) * dil
                w = w_ref[w_off + s * w_rows:w_off + (s + 1) * w_rows, :]
                acc[i % 2] = acc[i % 2] + jnp.dot(
                    buf[lo:lo + m, 0:k_lanes], w,
                    preferred_element_type=jnp.float32)
            return acc[0] + acc[1]            # (m, c_out) f32, segmented

        def extract(seg_val, name, valid=None):
            """Segmented -> dense (b_blk*T, C); rows >= `valid` are zeroed
            in-vreg (the reference F.pad for the residual add)."""
            c = cfg[name]
            pieces = []
            for b in range(b_blk):
                blk = seg_val[b * c["seg"]:b * c["seg"] + T, :]
                if valid is not None and valid < T:
                    rid = jax.lax.broadcasted_iota(jnp.int32, blk.shape, 0)
                    blk = jnp.where(rid < valid, blk, 0.0)
                pieces.append(blk)
            return pieces[0] if b_blk == 1 else jnp.concatenate(pieces, axis=0)

        # --------------------------- network ---------------------------
        x = x_ref[...]                                       # (b_blk*T, 40) f32

        # preprocessing_cnn: QConv(40->64, k=1)
        woff, _ = lay64["pre"]
        h = mm(x, w64_ref[woff:woff + 40, :])                # (BT, 64)

        # JasperBlock0: QConv(64->64,k=11,p=5) -> QConv(64->128,k=1) -> BN -> ReLU
        y = extract(conv_wide("b0", h, w64_ref, lay64["b0_wide"][0]), "b0")
        woff, _ = lay128["b0_pw"]
        h = jnp.maximum(mm(y, w128_ref[woff:woff + 64, :])
                        + shift(layaux["b0_sh"], 128), 0.0)  # (BT, 128)

        # JasperBlocks 1-3 (residual)
        def res_block(h, name, w_wide_ref, wide_off, pw_name, res_name,
                      sh_row, rsh_row):
            c = cfg[name]
            ro, _ = lay64[res_name]
            res = mm(h, w64_ref[ro:ro + c["c_in"], :]) + shift(rsh_row, 64)
            acc = conv_wide(name, h, w_wide_ref, wide_off)   # segmented
            po, _ = lay64[pw_name]
            y = mm(acc, w64_ref[po:po + c["c_out"], :]) + shift(sh_row, 64)
            y = extract(y, name, valid=c["t_conv"])          # (BT,64) padded
            return jnp.maximum(res + y, 0.0)

        h = res_block(h, "b1", w128_ref, lay128["b1_wide"][0], "b1_pw",
                      "b1_res", layaux["b1_sh"], layaux["b1_rsh"])
        h = res_block(h, "b2", w64_ref, lay64["b2_wide"][0], "b2_pw",
                      "b2_res", layaux["b2_sh"], layaux["b2_rsh"])
        h = res_block(h, "b3", w64_ref, lay64["b3_wide"][0], "b3_pw",
                      "b3_res", layaux["b3_sh"], layaux["b3_rsh"])

        # JasperBlock4: dilated QConv(64->64,k=29,p=28,d=2) -> QConv(64->128) -> BN -> ReLU
        y = extract(conv_wide("b4", h, w64_ref, lay64["b4_wide"][0]), "b4")
        woff, _ = lay128["b4_pw"]
        h = jnp.maximum(mm(y, w128_ref[woff:woff + 64, :])
                        + shift(layaux["b4_sh"], 128), 0.0)

        # JasperBlock5: QConv(128->128,k=1) -> BN -> ReLU
        woff, _ = lay128["b5_pw"]
        h = jnp.maximum(mm(h, w128_ref[woff:woff + 128, :])
                        + shift(layaux["b5_sh"], 128), 0.0)  # (BT, 128)

        # AdaptiveAvgPool1d(1) -> Linear(128->35, padded to 128 lanes) -> log_softmax
        if b_blk == 1:
            pooled = jnp.mean(h, axis=0, keepdims=True)
        else:
            pooled = jnp.concatenate(
                [jnp.mean(h[b * T:(b + 1) * T, :], axis=0, keepdims=True)
                 for b in range(b_blk)], axis=0)             # (b_blk, 128)
        woff, _ = lay128["cls"]
        logits = mm(pooled, w128_ref[woff:woff + 128, :]) + shift(layaux["cls_b"], 128)
        lane = jax.lax.broadcasted_iota(jnp.int32, logits.shape, 1)
        in_range = lane < _NUM_CLASSES
        row_max = jnp.max(jnp.where(in_range, logits, -jnp.inf),
                          axis=1, keepdims=True)
        z = logits - row_max
        lse = jnp.log(jnp.sum(jnp.where(in_range, jnp.exp(z), 0.0),
                              axis=1, keepdims=True))
        o_ref[0:b_blk, :] = z - lse

    return kernel, buf_rows


# ----------------------------------------------------------------------------
# Wrapper
# ----------------------------------------------------------------------------
def qmatchboxnet_forward(x, params, batch_block=None):
    """x: (B, 1, 40, T) float32 -> (B, 35) log-probabilities."""
    B, one, C0, T = x.shape
    assert one == 1 and C0 == 40
    if batch_block is None:
        batch_block = next(d for d in range(min(B, 8), 0, -1) if B % d == 0)
    assert B % batch_block == 0
    steps = B // batch_block
    out_rows = 8
    assert batch_block <= out_rows
    assert (batch_block * T) % 8 == 0 or steps == 1

    kernel, buf_rows = _build_kernel(T, batch_block, out_rows)

    # channel-last, batch folded into the row axis: (B*T, 40)
    xt = jnp.transpose(x[:, 0, :, :], (0, 2, 1)).reshape(B * T, C0)

    w64, w128, aux = params["w64"], params["w128"], params["aux"]
    out = pl.pallas_call(
        kernel,
        out_shape=jax.ShapeDtypeStruct((steps * out_rows, 128), jnp.float32),
        grid=(steps,),
        in_specs=[
            pl.BlockSpec((batch_block * T, C0), lambda i: (i, 0)),
            pl.BlockSpec(w64.shape, lambda i: (0, 0)),
            pl.BlockSpec(w128.shape, lambda i: (0, 0)),
            pl.BlockSpec(aux.shape, lambda i: (0, 0)),
        ],
        out_specs=pl.BlockSpec((out_rows, 128), lambda i: (i, 0)),
        scratch_shapes=[pltpu.VMEM((buf_rows, 128), jnp.bfloat16)],
        compiler_params=pltpu.CompilerParams(
            dimension_semantics=("parallel",)),
    )(xt, w64, w128, aux)
    out = out.reshape(steps, out_rows, 128)[:, :batch_block, :_NUM_CLASSES]
    return out.reshape(B, _NUM_CLASSES)


# ----------------------------------------------------------------------------
# Deterministic parameter construction (synthetic weights, packed slabs)
# ----------------------------------------------------------------------------
def quaternion_conv_weight(key, c_in, c_out, K):
    """Hamilton-product assembly matching QuaternionConv -> (K, C_in, C_out)."""
    kr, ki, kj, kk = jax.random.split(key, 4)
    shp = (c_out // 4, c_in // 4, K)
    s = 1.0 / np.sqrt(c_in * K)
    r = jax.random.normal(kr, shp, jnp.float32) * s
    i = jax.random.normal(ki, shp, jnp.float32) * s
    j = jax.random.normal(kj, shp, jnp.float32) * s
    k = jax.random.normal(kk, shp, jnp.float32) * s
    row_r = jnp.concatenate([r, -i, -j, -k], axis=1)
    row_i = jnp.concatenate([i, r, -k, j], axis=1)
    row_j = jnp.concatenate([j, k, r, -i], axis=1)
    row_k = jnp.concatenate([k, -j, i, r], axis=1)
    w = jnp.concatenate([row_r, row_i, row_j, row_k], axis=0)  # (C_out, C_in, K)
    return jnp.transpose(w, (2, 1, 0))                         # (K, C_in, C_out)


def bn_fold(key, c, eps=1e-3):
    """Inference-mode BatchNorm1d as per-channel scale/shift."""
    kg, kb, km, kv = jax.random.split(key, 4)
    gamma = jax.random.uniform(kg, (c,), jnp.float32, 0.5, 1.5)
    beta = jax.random.normal(kb, (c,), jnp.float32) * 0.1
    mean = jax.random.normal(km, (c,), jnp.float32) * 0.1
    var = jax.random.uniform(kv, (c,), jnp.float32, 0.5, 1.5)
    scale = gamma / jnp.sqrt(var + eps)
    shift = beta - mean * scale
    return scale, shift


def _pack_pairs(w):
    """(K, 64, C_out) -> (ceil(K/2)*128, C_out): rows [W[2p]; W[2p+1]] per pair
    (last pair zero-padded for odd K)."""
    K, c_in, c_out = w.shape
    if K % 2:
        w = np.concatenate([w, np.zeros((1, c_in, c_out), w.dtype)], axis=0)
    return w.reshape(-1, c_out)


def init_params(key):
    lay64, r64, lay128, r128, layaux, raux = _make_layout()
    keys = list(jax.random.split(key, 26))
    kit = iter(keys)
    nxt = lambda: next(kit)

    slab64 = np.zeros((r64, 64), np.float32)
    slab128 = np.zeros((r128, 128), np.float32)
    aux = np.zeros((raux, 128), np.float32)

    def put64(name, w2d):
        off, rows = lay64[name]
        w2d = np.asarray(w2d, np.float32)
        assert w2d.shape == (rows, 64), (name, w2d.shape)
        slab64[off:off + rows, :] = w2d

    def put128(name, w2d):
        off, rows = lay128[name]
        w2d = np.asarray(w2d, np.float32)
        assert w2d.shape == (rows, 128), (name, w2d.shape)
        slab128[off:off + rows, :] = w2d

    def put_shift(name, s):
        s = np.asarray(s, np.float32).reshape(-1)
        aux[layaux[name], :s.shape[0]] = s

    # preprocessing_cnn
    put64("pre", np.asarray(quaternion_conv_weight(nxt(), 40, 64, 1)).reshape(40, 64))

    # Block 0
    put64("b0_wide", _pack_pairs(np.asarray(quaternion_conv_weight(nxt(), 64, 64, 11))))
    w = np.asarray(quaternion_conv_weight(nxt(), 64, 128, 1)).reshape(64, 128)
    sc, sh = bn_fold(nxt(), 128)
    put128("b0_pw", w * np.asarray(sc)[None, :]); put_shift("b0_sh", sh)

    # Block 1
    put128("b1_wide", np.asarray(quaternion_conv_weight(nxt(), 128, 128, 13)).reshape(13 * 128, 128))
    w = np.asarray(quaternion_conv_weight(nxt(), 128, 64, 1)).reshape(128, 64)
    sc, sh = bn_fold(nxt(), 64)
    put64("b1_pw", w * np.asarray(sc)[None, :]); put_shift("b1_sh", sh)
    w = np.asarray(quaternion_conv_weight(nxt(), 128, 64, 1)).reshape(128, 64)
    sc, sh = bn_fold(nxt(), 64)
    put64("b1_res", w * np.asarray(sc)[None, :]); put_shift("b1_rsh", sh)

    # Block 2
    put64("b2_wide", _pack_pairs(np.asarray(quaternion_conv_weight(nxt(), 64, 64, 15))))
    w = np.asarray(quaternion_conv_weight(nxt(), 64, 64, 1)).reshape(64, 64)
    sc, sh = bn_fold(nxt(), 64)
    put64("b2_pw", w * np.asarray(sc)[None, :]); put_shift("b2_sh", sh)
    w = np.asarray(quaternion_conv_weight(nxt(), 64, 64, 1)).reshape(64, 64)
    sc, sh = bn_fold(nxt(), 64)
    put64("b2_res", w * np.asarray(sc)[None, :]); put_shift("b2_rsh", sh)

    # Block 3
    put64("b3_wide", _pack_pairs(np.asarray(quaternion_conv_weight(nxt(), 64, 64, 17))))
    w = np.asarray(quaternion_conv_weight(nxt(), 64, 64, 1)).reshape(64, 64)
    sc, sh = bn_fold(nxt(), 64)
    put64("b3_pw", w * np.asarray(sc)[None, :]); put_shift("b3_sh", sh)
    w = np.asarray(quaternion_conv_weight(nxt(), 64, 64, 1)).reshape(64, 64)
    sc, sh = bn_fold(nxt(), 64)
    put64("b3_res", w * np.asarray(sc)[None, :]); put_shift("b3_rsh", sh)

    # Block 4
    put64("b4_wide", _pack_pairs(np.asarray(quaternion_conv_weight(nxt(), 64, 64, 29))))
    w = np.asarray(quaternion_conv_weight(nxt(), 64, 128, 1)).reshape(64, 128)
    sc, sh = bn_fold(nxt(), 128)
    put128("b4_pw", w * np.asarray(sc)[None, :]); put_shift("b4_sh", sh)

    # Block 5
    w = np.asarray(quaternion_conv_weight(nxt(), 128, 128, 1)).reshape(128, 128)
    sc, sh = bn_fold(nxt(), 128)
    put128("b5_pw", w * np.asarray(sc)[None, :]); put_shift("b5_sh", sh)

    # Classifier (padded to 128 output lanes)
    cls_w = np.asarray(jax.random.normal(nxt(), (128, 35), jnp.float32)) / np.sqrt(128.0)
    cls_b = np.asarray(jax.random.normal(nxt(), (35,), jnp.float32)) * 0.01
    cw = np.zeros((128, 128), np.float32)
    cw[:, :35] = cls_w
    put128("cls", cw)
    put_shift("cls_b", cls_b)

    return {"w64": jnp.asarray(slab64, jnp.bfloat16),
            "w128": jnp.asarray(slab128, jnp.bfloat16),
            "aux": jnp.asarray(aux, jnp.float32)}


if __name__ == "__main__":
    key = jax.random.PRNGKey(0)
    pkey, xkey = jax.random.split(key)
    params = init_params(pkey)

    B, T = 2, 16
    x = jax.random.normal(xkey, (B, 1, 40, T), jnp.float32)

    fwd = jax.jit(qmatchboxnet_forward)
    out = jax.block_until_ready(fwd(x, params))

    assert out.shape == (B, 35), out.shape
    assert bool(jnp.all(jnp.isfinite(out)))
    # each row of log_softmax output must sum (in prob space) to ~1
    assert bool(jnp.allclose(jnp.sum(jnp.exp(out), axis=1), 1.0, atol=1e-4))
    print("KERNEL_OK")
</pallas_src>

<mosaic_0001>
module attributes {stable_mosaic.version = 11 : i64} {
  func.func @kernel(%arg0: i32, %arg1: memref<32x40xf32, #tpu.memory_space<vmem>>, %arg2: memref<5416x64xbf16, #tpu.memory_space<vmem>>, %arg3: memref<2048x128xbf16, #tpu.memory_space<vmem>>, %arg4: memref<16x128xf32, #tpu.memory_space<vmem>>, %arg5: memref<8x128xf32, #tpu.memory_space<vmem>>, %arg6: memref<152x128xbf16, #tpu.memory_space<vmem>>) attributes {dimension_semantics = [#tpu.dimension_semantics<parallel>], iteration_bounds = array<i64: 1>, scalar_prefetch = 0 : i64, scratch_operands = 1 : i64, tpu.core_type = #tpu.core_type<tc>, window_params = [{transform_indices = @transform_0, window_bounds = array<i64: 32, 40>}, {pipeline_mode = #tpu.pipeline_mode<synchronous>, transform_indices = @transform_1, window_bounds = array<i64: 5416, 64>}, {pipeline_mode = #tpu.pipeline_mode<synchronous>, transform_indices = @transform_2, window_bounds = array<i64: 2048, 128>}, {pipeline_mode = #tpu.pipeline_mode<synchronous>, transform_indices = @transform_3, window_bounds = array<i64: 16, 128>}, {transform_indices = @transform_4, window_bounds = array<i64: 8, 128>}]} {
    %cst = arith.constant 0.000000e+00 : bf16
    %0 = vector.broadcast %cst : bf16 to vector<152x128xbf16>
    %c0 = arith.constant 0 : index
    %c0_0 = arith.constant 0 : index
    %1 = vector.load %arg6[%c0, %c0_0] : memref<152x128xbf16, #tpu.memory_space<vmem>>, vector<152x128xbf16>
    tpu.vector_store %arg6[%c0, %c0_0], %0 {strides = array<i32>} : memref<152x128xbf16, #tpu.memory_space<vmem>>, vector<152x128xbf16>,
    %c0_1 = arith.constant 0 : index
    %c0_2 = arith.constant 0 : index
    %2 = vector.load %arg1[%c0_1, %c0_2] : memref<32x40xf32, #tpu.memory_space<vmem>>, vector<32x40xf32>
    %c0_3 = arith.constant 0 : index
    %c0_4 = arith.constant 0 : index
    %3 = vector.load %arg2[%c0_3, %c0_4] : memref<5416x64xbf16, #tpu.memory_space<vmem>>, vector<40x64xbf16>
    %4 = arith.truncf %2 : vector<32x40xf32> to vector<32x40xbf16>
    %cst_5 = arith.constant dense<0.000000e+00> : vector<32x64xf32>
    %5 = tpu.matmul %4, %3, %cst_5 {dimension_numbers = #tpu.dot_dimension_numbers<[1], [0], [0], [1], [0, 0, 1, 1], [], []>} : vector<32x40xbf16>, vector<40x64xbf16>, vector<32x64xf32> -> vector<32x64xf32>
    %6 = vector.extract_strided_slice %5 {offsets = [0, 0], sizes = [16, 64], strides = [1, 1]} : vector<32x64xf32> to vector<16x64xf32>
    %7 = arith.truncf %6 : vector<16x64xf32> to vector<16x64xbf16>
    %cst_6 = arith.constant 0.000000e+00 : bf16
    %8 = vector.broadcast %cst_6 : bf16 to vector<5x128xbf16>
    %c3 = arith.constant 3 : index
    %c0_7 = arith.constant 0 : index
    %9 = vector.load %arg6[%c3, %c0_7] : memref<152x128xbf16, #tpu.memory_space<vmem>>, vector<5x128xbf16>
    tpu.vector_store %arg6[%c3, %c0_7], %8 {strides = array<i32>} : memref<152x128xbf16, #tpu.memory_space<vmem>>, vector<5x128xbf16>,
    %cst_8 = arith.constant 0.000000e+00 : bf16
    %10 = vector.broadcast %cst_8 : bf16 to vector<6x128xbf16>
    %c23 = arith.constant 23 : index
    %c0_9 = arith.constant 0 : index
    %11 = vector.load %arg6[%c23, %c0_9] : memref<152x128xbf16, #tpu.memory_space<vmem>>, vector<6x128xbf16>
    tpu.vector_store %arg6[%c23, %c0_9], %10 {strides = array<i32>} : memref<152x128xbf16, #tpu.memory_space<vmem>>, vector<6x128xbf16>,
    %c8 = arith.constant 8 : index
    %c0_10 = arith.constant 0 : index
    %12 = vector.load %arg6[%c8, %c0_10] : memref<152x128xbf16, #tpu.memory_space<vmem>>, vector<16x64xbf16>
    tpu.vector_store %arg6[%c8, %c0_10], %7 {strides = array<i32>} : memref<152x128xbf16, #tpu.memory_space<vmem>>, vector<16x64xbf16>,
    %c7 = arith.constant 7 : index
    %c64 = arith.constant 64 : index
    %13 = vector.load %arg6[%c7, %c64] : memref<152x128xbf16, #tpu.memory_space<vmem>>, vector<16x64xbf16>
    tpu.vector_store %arg6[%c7, %c64], %7 {strides = array<i32>} : memref<152x128xbf16, #tpu.memory_space<vmem>>, vector<16x64xbf16>,
    %14 = vector.extract_strided_slice %5 {offsets = [16, 0], sizes = [16, 64], strides = [1, 1]} : vector<32x64xf32> to vector<16x64xf32>
    %15 = arith.truncf %14 : vector<16x64xf32> to vector<16x64xbf16>
    %cst_11 = arith.constant 0.000000e+00 : bf16
    %16 = vector.broadcast %cst_11 : bf16 to vector<5x128xbf16>
    %c35 = arith.constant 35 : index
    %c0_12 = arith.constant 0 : index
    %17 = vector.load %arg6[%c35, %c0_12] : memref<152x128xbf16, #tpu.memory_space<vmem>>, vector<5x128xbf16>
    tpu.vector_store %arg6[%c35, %c0_12], %16 {strides = array<i32>} : memref<152x128xbf16, #tpu.memory_space<vmem>>, vector<5x128xbf16>,
    %cst_13 = arith.constant 0.000000e+00 : bf16
    %18 = vector.broadcast %cst_13 : bf16 to vector<6x128xbf16>
    %c55 = arith.constant 55 : index
    %c0_14 = arith.constant 0 : index
    %19 = vector.load %arg6[%c55, %c0_14] : memref<152x128xbf16, #tpu.memory_space<vmem>>, vector<6x128xbf16>
    tpu.vector_store %arg6[%c55, %c0_14], %18 {strides = array<i32>} : memref<152x128xbf16, #tpu.memory_space<vmem>>, vector<6x128xbf16>,
    %c40 = arith.constant 40 : index
    %c0_15 = arith.constant 0 : index
    %20 = vector.load %arg6[%c40, %c0_15] : memref<152x128xbf16, #tpu.memory_space<vmem>>, vector<16x64xbf16>
    tpu.vector_store %arg6[%c40, %c0_15], %15 {strides = array<i32>} : memref<152x128xbf16, #tpu.memory_space<vmem>>, vector<16x64xbf16>,
    %c39 = arith.constant 39 : index
    %c64_16 = arith.constant 64 : index
    %21 = vector.load %arg6[%c39, %c64_16] : memref<152x128xbf16, #tpu.memory_space<vmem>>, vector<16x64xbf16>
    tpu.vector_store %arg6[%c39, %c64_16], %15 {strides = array<i32>} : memref<152x128xbf16, #tpu.memory_space<vmem>>, vector<16x64xbf16>,
    %cst_17 = arith.constant 0.000000e+00 : f32
    %22 = vector.broadcast %cst_17 : f32 to vector<48x64xf32>
    %cst_18 = arith.constant 0.000000e+00 : f32
    %23 = vector.broadcast %cst_18 : f32 to vector<48x64xf32>
    %c40_19 = arith.constant 40 : index
    %c0_20 = arith.constant 0 : index
    %24 = vector.load %arg2[%c40_19, %c0_20] : memref<5416x64xbf16, #tpu.memory_space<vmem>>, vector<128x64xbf16>
    %c3_21 = arith.constant 3 : index
    %c0_22 = arith.constant 0 : index
    %25 = vector.load %arg6[%c3_21, %c0_22] : memref<152x128xbf16, #tpu.memory_space<vmem>>, vector<48x128xbf16>
    %cst_23 = arith.constant dense<0.000000e+00> : vector<48x64xf32>
    %26 = tpu.matmul %25, %24, %cst_23 {dimension_numbers = #tpu.dot_dimension_numbers<[1], [0], [0], [1], [0, 0, 1, 1], [], []>} : vector<48x128xbf16>, vector<128x64xbf16>, vector<48x64xf32> -> vector<48x64xf32>
    %27 = arith.addf %22, %26 : vector<48x64xf32>
    %c168 = arith.constant 168 : index
    %c0_24 = arith.constant 0 : index
    %28 = vector.load %arg2[%c168, %c0_24] : memref<5416x64xbf16, #tpu.memory_space<vmem>>, vector<128x64xbf16>
    %c5 = arith.constant 5 : index
    %c0_25 = arith.constant 0 : index
    %29 = vector.load %arg6[%c5, %c0_25] : memref<152x128xbf16, #tpu.memory_space<vmem>>, vector<48x128xbf16>
    %cst_26 = arith.constant dense<0.000000e+00> : vector<48x64xf32>
    %30 = tpu.matmul %29, %28, %cst_26 {dimension_numbers = #tpu.dot_dimension_numbers<[1], [0], [0], [1], [0, 0, 1, 1], [], []>} : vector<48x128xbf16>, vector<128x64xbf16>, vector<48x64xf32> -> vector<48x64xf32>
    %31 = arith.addf %23, %30 : vector<48x64xf32>
    %c296 = arith.constant 296 : index
    %c0_27 = arith.constant 0 : index
    %32 = vector.load %arg2[%c296, %c0_27] : memref<5416x64xbf16, #tpu.memory_space<vmem>>, vector<128x64xbf16>
    %c7_28 = arith.constant 7 : index
    %c0_29 = arith.constant 0 : index
    %33 = vector.load %arg6[%c7_28, %c0_29] : memref<152x128xbf16, #tpu.memory_space<vmem>>, vector<48x128xbf16>
    %cst_30 = arith.constant dense<0.000000e+00> : vector<48x64xf32>
    %34 = tpu.matmul %33, %32, %cst_30 {dimension_numbers = #tpu.dot_dimension_numbers<[1], [0], [0], [1], [0, 0, 1, 1], [], []>} : vector<48x128xbf16>, vector<128x64xbf16>, vector<48x64xf32> -> vector<48x64xf32>
    %35 = arith.addf %27, %34 : vector<48x64xf32>
    %c424 = arith.constant 424 : index
    %c0_31 = arith.constant 0 : index
    %36 = vector.load %arg2[%c424, %c0_31] : memref<5416x64xbf16, #tpu.memory_space<vmem>>, vector<128x64xbf16>
    %c9 = arith.constant 9 : index
    %c0_32 = arith.constant 0 : index
    %37 = vector.load %arg6[%c9, %c0_32] : memref<152x128xbf16, #tpu.memory_space<vmem>>, vector<48x128xbf16>
    %cst_33 = arith.constant dense<0.000000e+00> : vector<48x64xf32>
    %38 = tpu.matmul %37, %36, %cst_33 {dimension_numbers = #tpu.dot_dimension_numbers<[1], [0], [0], [1], [0, 0, 1, 1], [], []>} : vector<48x128xbf16>, vector<128x64xbf16>, vector<48x64xf32> -> vector<48x64xf32>
    %39 = arith.addf %31, %38 : vector<48x64xf32>
    %c552 = arith.constant 552 : index
    %c0_34 = arith.constant 0 : index
    %40 = vector.load %arg2[%c552, %c0_34] : memref<5416x64xbf16, #tpu.memory_space<vmem>>, vector<128x64xbf16>
    %c11 = arith.constant 11 : index
    %c0_35 = arith.constant 0 : index
    %41 = vector.load %arg6[%c11, %c0_35] : memref<152x128xbf16, #tpu.memory_space<vmem>>, vector<48x128xbf16>
    %cst_36 = arith.constant dense<0.000000e+00> : vector<48x64xf32>
    %42 = tpu.matmul %41, %40, %cst_36 {dimension_numbers = #tpu.dot_dimension_numbers<[1], [0], [0], [1], [0, 0, 1, 1], [], []>} : vector<48x128xbf16>, vector<128x64xbf16>, vector<48x64xf32> -> vector<48x64xf32>
    %43 = arith.addf %35, %42 : vector<48x64xf32>
    %c680 = arith.constant 680 : index
    %c0_37 = arith.constant 0 : index
    %44 = vector.load %arg2[%c680, %c0_37] : memref<5416x64xbf16, #tpu.memory_space<vmem>>, vector<128x64xbf16>
    %c13 = arith.constant 13 : index
    %c0_38 = arith.constant 0 : index
    %45 = vector.load %arg6[%c13, %c0_38] : memref<152x128xbf16, #tpu.memory_space<vmem>>, vector<48x128xbf16>
    %cst_39 = arith.constant dense<0.000000e+00> : vector<48x64xf32>
    %46 = tpu.matmul %45, %44, %cst_39 {dimension_numbers = #tpu.dot_dimension_numbers<[1], [0], [0], [1], [0, 0, 1, 1], [], []>} : vector<48x128xbf16>, vector<128x64xbf16>, vector<48x64xf32> -> vector<48x64xf32>
    %47 = arith.addf %39, %46 : vector<48x64xf32>
    %48 = arith.addf %43, %47 : vector<48x64xf32>
    %49 = vector.extract_strided_slice %48 {offsets = [0, 0], sizes = [16, 64], strides = [1, 1]} : vector<48x64xf32> to vector<16x64xf32>
    %50 = vector.extract_strided_slice %48 {offsets = [32, 0], sizes = [16, 64], strides = [1, 1]} : vector<48x64xf32> to vector<16x64xf32>
    %51 = tpu.concatenate %49, %50 in 0 : vector<16x64xf32>, vector<16x64xf32> -> vector<32x64xf32>
    %c0_40 = arith.constant 0 : index
    %c0_41 = arith.constant 0 : index
    %52 = vector.load %arg3[%c0_40, %c0_41] : memref<2048x128xbf16, #tpu.memory_space<vmem>>, vector<64x128xbf16>
    %53 = arith.truncf %51 : vector<32x64xf32> to vector<32x64xbf16>
    %cst_42 = arith.constant dense<0.000000e+00> : vector<32x128xf32>
    %54 = tpu.matmul %53, %52, %cst_42 {dimension_numbers = #tpu.dot_dimension_numbers<[1], [0], [0], [1], [0, 0, 1, 1], [], []>} : vector<32x64xbf16>, vector<64x128xbf16>, vector<32x128xf32> -> vector<32x128xf32>
    %c0_43 = arith.constant 0 : index
    %c0_44 = arith.constant 0 : index
    %55 = vector.load %arg4[%c0_43, %c0_44] : memref<16x128xf32, #tpu.memory_space<vmem>>, vector<1x128xf32>
    %56 = vector.broadcast %55 : vector<1x128xf32> to vector<32x128xf32>
    %57 = arith.addf %54, %56 : vector<32x128xf32>
    %cst_45 = arith.constant 0.000000e+00 : f32
    %58 = vector.broadcast %cst_45 : f32 to vector<32x128xf32>
    %59 = arith.maximumf %57, %58 : vector<32x128xf32>
    %c936 = arith.constant 936 : index
    %c0_46 = arith.constant 0 : index
    %60 = vector.load %arg2[%c936, %c0_46] : memref<5416x64xbf16, #tpu.memory_space<vmem>>, vector<128x64xbf16>
    %61 = arith.truncf %59 : vector<32x128xf32> to vector<32x128xbf16>
    %cst_47 = arith.constant dense<0.000000e+00> : vector<32x64xf32>
    %62 = tpu.matmul %61, %60, %cst_47 {dimension_numbers = #tpu.dot_dimension_numbers<[1], [0], [0], [1], [0, 0, 1, 1], [], []>} : vector<32x128xbf16>, vector<128x64xbf16>, vector<32x64xf32> -> vector<32x64xf32>
    %c2 = arith.constant 2 : index
    %c0_48 = arith.constant 0 : index
    %63 = vector.load %arg4[%c2, %c0_48] : memref<16x128xf32, #tpu.memory_space<vmem>>, vector<1x64xf32>
    %64 = vector.broadcast %63 : vector<1x64xf32> to vector<32x64xf32>
    %65 = arith.addf %62, %64 : vector<32x64xf32>
    %66 = vector.extract_strided_slice %59 {offsets = [0, 0], sizes = [16, 128], strides = [1, 1]} : vector<32x128xf32> to vector<16x128xf32>
    %67 = arith.truncf %66 : vector<16x128xf32> to vector<16x128xbf16>
    %cst_49 = arith.constant 0.000000e+00 : bf16
    %68 = vector.broadcast %cst_49 : bf16 to vector<5x128xbf16>
    %c3_50 = arith.constant 3 : index
    %c0_51 = arith.constant 0 : index
    %69 = vector.load %arg6[%c3_50, %c0_51] : memref<152x128xbf16, #tpu.memory_space<vmem>>, vector<5x128xbf16>
    tpu.vector_store %arg6[%c3_50, %c0_51], %68 {strides = array<i32>} : memref<152x128xbf16, #tpu.memory_space<vmem>>, vector<5x128xbf16>,
    %cst_52 = arith.constant 0.000000e+00 : bf16
    %70 = vector.broadcast %cst_52 : bf16 to vector<5x128xbf16>
    %c24 = arith.constant 24 : index
    %c0_53 = arith.constant 0 : index
    %71 = vector.load %arg6[%c24, %c0_53] : memref<152x128xbf16, #tpu.memory_space<vmem>>, vector<5x128xbf16>
    tpu.vector_store %arg6[%c24, %c0_53], %70 {strides = array<i32>} : memref<152x128xbf16, #tpu.memory_space<vmem>>, vector<5x128xbf16>,
    %c8_54 = arith.constant 8 : index
    %c0_55 = arith.constant 0 : index
    %72 = vector.load %arg6[%c8_54, %c0_55] : memref<152x128xbf16, #tpu.memory_space<vmem>>, vector<16x128xbf16>
    tpu.vector_store %arg6[%c8_54, %c0_55], %67 {strides = array<i32>} : memref<152x128xbf16, #tpu.memory_space<vmem>>, vector<16x128xbf16>,
    %73 = vector.extract_strided_slice %59 {offsets = [16, 0], sizes = [16, 128], strides = [1, 1]} : vector<32x128xf32> to vector<16x128xf32>
    %74 = arith.truncf %73 : vector<16x128xf32> to vector<16x128xbf16>
    %cst_56 = arith.constant 0.000000e+00 : bf16
    %75 = vector.broadcast %cst_56 : bf16 to vector<5x128xbf16>
    %c35_57 = arith.constant 35 : index
    %c0_58 = arith.constant 0 : index
    %76 = vector.load %arg6[%c35_57, %c0_58] : memref<152x128xbf16, #tpu.memory_space<vmem>>, vector<5x128xbf16>
    tpu.vector_store %arg6[%c35_57, %c0_58], %75 {strides = array<i32>} : memref<152x128xbf16, #tpu.memory_space<vmem>>, vector<5x128xbf16>,
    %cst_59 = arith.constant 0.000000e+00 : bf16
    %77 = vector.broadcast %cst_59 : bf16 to vector<5x128xbf16>
    %c56 = arith.constant 56 : index
    %c0_60 = arith.constant 0 : index
    %78 = vector.load %arg6[%c56, %c0_60] : memref<152x128xbf16, #tpu.memory_space<vmem>>, vector<5x128xbf16>
    tpu.vector_store %arg6[%c56, %c0_60], %77 {strides = array<i32>} : memref<152x128xbf16, #tpu.memory_space<vmem>>, vector<5x128xbf16>,
    %c40_61 = arith.constant 40 : index
    %c0_62 = arith.constant 0 : index
    %79 = vector.load %arg6[%c40_61, %c0_62] : memref<152x128xbf16, #tpu.memory_space<vmem>>, vector<16x128xbf16>
    tpu.vector_store %arg6[%c40_61, %c0_62], %74 {strides = array<i32>} : memref<152x128xbf16, #tpu.memory_space<vmem>>, vector<16x128xbf16>,
    %cst_63 = arith.constant 0.000000e+00 : f32
    %80 = vector.broadcast %cst_63 : f32 to vector<48x128xf32>
    %cst_64 = arith.constant 0.000000e+00 : f32
    %81 = vector.broadcast %cst_64 : f32 to vector<48x128xf32>
    %c64_65 = arith.constant 64 : index
    %c0_66 = arith.constant 0 : index
    %82 = vector.load %arg3[%c64_65, %c0_66] : memref<2048x128xbf16, #tpu.memory_space<vmem>>, vector<128x128xbf16>
    %c3_67 = arith.constant 3 : index
    %c0_68 = arith.constant 0 : index
    %83 = vector.load %arg6[%c3_67, %c0_68] : memref<152x128xbf16, #tpu.memory_space<vmem>>, vector<48x128xbf16>
    %cst_69 = arith.constant dense<0.000000e+00> : vector<48x128xf32>
    %84 = tpu.matmul %83, %82, %cst_69 {dimension_numbers = #tpu.dot_dimension_numbers<[1], [0], [0], [1], [0, 0, 1, 1], [], []>} : vector<48x128xbf16>, vector<128x128xbf16>, vector<48x128xf32> -> vector<48x128xf32>
    %85 = arith.addf %80, %84 : vector<48x128xf32>
    %c192 = arith.constant 192 : index
    %c0_70 = arith.constant 0 : index
    %86 = vector.load %arg3[%c192, %c0_70] : memref<2048x128xbf16, #tpu.memory_space<vmem>>, vector<128x128xbf16>
    %c4 = arith.constant 4 : index
    %c0_71 = arith.constant 0 : index
    %87 = vector.load %arg6[%c4, %c0_71] : memref<152x128xbf16, #tpu.memory_space<vmem>>, vector<48x128xbf16>
    %cst_72 = arith.constant dense<0.000000e+00> : vector<48x128xf32>
    %88 = tpu.matmul %87, %86, %cst_72 {dimension_numbers = #tpu.dot_dimension_numbers<[1], [0], [0], [1], [0, 0, 1, 1], [], []>} : vector<48x128xbf16>, vector<128x128xbf16>, vector<48x128xf32> -> vector<48x128xf32>
    %89 = arith.addf %81, %88 : vector<48x128xf32>
    %c320 = arith.constant 320 : index
    %c0_73 = arith.constant 0 : index
    %90 = vector.load %arg3[%c320, %c0_73] : memref<2048x128xbf16, #tpu.memory_space<vmem>>, vector<128x128xbf16>
    %c5_74 = arith.constant 5 : index
    %c0_75 = arith.constant 0 : index
    %91 = vector.load %arg6[%c5_74, %c0_75] : memref<152x128xbf16, #tpu.memory_space<vmem>>, vector<48x128xbf16>
    %cst_76 = arith.constant dense<0.000000e+00> : vector<48x128xf32>
    %92 = tpu.matmul %91, %90, %cst_76 {dimension_numbers = #tpu.dot_dimension_numbers<[1], [0], [0], [1], [0, 0, 1, 1], [], []>} : vector<48x128xbf16>, vector<128x128xbf16>, vector<48x128xf32> -> vector<48x128xf32>
    %93 = arith.addf %85, %92 : vector<48x128xf32>
    %c448 = arith.constant 448 : index
    %c0_77 = arith.constant 0 : index
    %94 = vector.load %arg3[%c448, %c0_77] : memref<2048x128xbf16, #tpu.memory_space<vmem>>, vector<128x128xbf16>
    %c6 = arith.constant 6 : index
    %c0_78 = arith.constant 0 : index
    %95 = vector.load %arg6[%c6, %c0_78] : memref<152x128xbf16, #tpu.memory_space<vmem>>, vector<48x128xbf16>
    %cst_79 = arith.constant dense<0.000000e+00> : vector<48x128xf32>
    %96 = tpu.matmul %95, %94, %cst_79 {dimension_numbers = #tpu.dot_dimension_numbers<[1], [0], [0], [1], [0, 0, 1, 1], [], []>} : vector<48x128xbf16>, vector<128x128xbf16>, vector<48x128xf32> -> vector<48x128xf32>
    %97 = arith.addf %89, %96 : vector<48x128xf32>
    %c576 = arith.constant 576 : index
    %c0_80 = arith.constant 0 : index
    %98 = vector.load %arg3[%c576, %c0_80] : memref<2048x128xbf16, #tpu.memory_space<vmem>>, vector<128x128xbf16>
    %c7_81 = arith.constant 7 : index
    %c0_82 = arith.constant 0 : index
    %99 = vector.load %arg6[%c7_81, %c0_82] : memref<152x128xbf16, #tpu.memory_space<vmem>>, vector<48x128xbf16>
    %cst_83 = arith.constant dense<0.000000e+00> : vector<48x128xf32>
    %100 = tpu.matmul %99, %98, %cst_83 {dimension_numbers = #tpu.dot_dimension_numbers<[1], [0], [0], [1], [0, 0, 1, 1], [], []>} : vector<48x128xbf16>, vector<128x128xbf16>, vector<48x128xf32> -> vector<48x128xf32>
    %101 = arith.addf %93, %100 : vector<48x128xf32>
    %c704 = arith.constant 704 : index
    %c0_84 = arith.constant 0 : index
    %102 = vector.load %arg3[%c704, %c0_84] : memref<2048x128xbf16, #tpu.memory_space<vmem>>, vector<128x128xbf16>
    %c8_85 = arith.constant 8 : index
    %c0_86 = arith.constant 0 : index
    %103 = vector.load %arg6[%c8_85, %c0_86] : memref<152x128xbf16, #tpu.memory_space<vmem>>, vector<48x128xbf16>
    %cst_87 = arith.constant dense<0.000000e+00> : vector<48x128xf32>
    %104 = tpu.matmul %103, %102, %cst_87 {dimension_numbers = #tpu.dot_dimension_numbers<[1], [0], [0], [1], [0, 0, 1, 1], [], []>} : vector<48x128xbf16>, vector<128x128xbf16>, vector<48x128xf32> -> vector<48x128xf32>
    %105 = arith.addf %97, %104 : vector<48x128xf32>
    %c832 = arith.constant 832 : index
    %c0_88 = arith.constant 0 : index
    %106 = vector.load %arg3[%c832, %c0_88] : memref<2048x128xbf16, #tpu.memory_space<vmem>>, vector<128x128xbf16>
    %c9_89 = arith.constant 9 : index
    %c0_90 = arith.constant 0 : index
    %107 = vector.load %arg6[%c9_89, %c0_90] : memref<152x128xbf16, #tpu.memory_space<vmem>>, vector<48x128xbf16>
    %cst_91 = arith.constant dense<0.000000e+00> : vector<48x128xf32>
    %108 = tpu.matmul %107, %106, %cst_91 {dimension_numbers = #tpu.dot_dimension_numbers<[1], [0], [0], [1], [0, 0, 1, 1], [], []>} : vector<48x128xbf16>, vector<128x128xbf16>, vector<48x128xf32> -> vector<48x128xf32>
    %109 = arith.addf %101, %108 : vector<48x128xf32>
    %c960 = arith.constant 960 : index
    %c0_92 = arith.constant 0 : index
    %110 = vector.load %arg3[%c960, %c0_92] : memref<2048x128xbf16, #tpu.memory_space<vmem>>, vector<128x128xbf16>
    %c10 = arith.constant 10 : index
    %c0_93 = arith.constant 0 : index
    %111 = vector.load %arg6[%c10, %c0_93] : memref<152x128xbf16, #tpu.memory_space<vmem>>, vector<48x128xbf16>
    %cst_94 = arith.constant dense<0.000000e+00> : vector<48x128xf32>
    %112 = tpu.matmul %111, %110, %cst_94 {dimension_numbers = #tpu.dot_dimension_numbers<[1], [0], [0], [1], [0, 0, 1, 1], [], []>} : vector<48x128xbf16>, vector<128x128xbf16>, vector<48x128xf32> -> vector<48x128xf32>
    %113 = arith.addf %105, %112 : vector<48x128xf32>
    %c1088 = arith.constant 1088 : index
    %c0_95 = arith.constant 0 : index
    %114 = vector.load %arg3[%c1088, %c0_95] : memref<2048x128xbf16, #tpu.memory_space<vmem>>, vector<128x128xbf16>
    %c11_96 = arith.constant 11 : index
    %c0_97 = arith.constant 0 : index
    %115 = vector.load %arg6[%c11_96, %c0_97] : memref<152x128xbf16, #tpu.memory_space<vmem>>, vector<48x128xbf16>
    %cst_98 = arith.constant dense<0.000000e+00> : vector<48x128xf32>
    %116 = tpu.matmul %115, %114, %cst_98 {dimension_numbers = #tpu.dot_dimension_numbers<[1], [0], [0], [1], [0, 0, 1, 1], [], []>} : vector<48x128xbf16>, vector<128x128xbf16>, vector<48x128xf32> -> vector<48x128xf32>
    %117 = arith.addf %109, %116 : vector<48x128xf32>
    %c1216 = arith.constant 1216 : index
    %c0_99 = arith.constant 0 : index
    %118 = vector.load %arg3[%c1216, %c0_99] : memref<2048x128xbf16, #tpu.memory_space<vmem>>, vector<128x128xbf16>
    %c12 = arith.constant 12 : index
    %c0_100 = arith.constant 0 : index
    %119 = vector.load %arg6[%c12, %c0_100] : memref<152x128xbf16, #tpu.memory_space<vmem>>, vector<48x128xbf16>
    %cst_101 = arith.constant dense<0.000000e+00> : vector<48x128xf32>
    %120 = tpu.matmul %119, %118, %cst_101 {dimension_numbers = #tpu.dot_dimension_numbers<[1], [0], [0], [1], [0, 0, 1, 1], [], []>} : vector<48x128xbf16>, vector<128x128xbf16>, vector<48x128xf32> -> vector<48x128xf32>
    %121 = arith.addf %113, %120 : vector<48x128xf32>
    %c1344 = arith.constant 1344 : index
    %c0_102 = arith.constant 0 : index
    %122 = vector.load %arg3[%c1344, %c0_102] : memref<2048x128xbf16, #tpu.memory_space<vmem>>, vector<128x128xbf16>
    %c13_103 = arith.constant 13 : index
    %c0_104 = arith.constant 0 : index
    %123 = vector.load %arg6[%c13_103, %c0_104] : memref<152x128xbf16, #tpu.memory_space<vmem>>, vector<48x128xbf16>
    %cst_105 = arith.constant dense<0.000000e+00> : vector<48x128xf32>
    %124 = tpu.matmul %123, %122, %cst_105 {dimension_numbers = #tpu.dot_dimension_numbers<[1], [0], [0], [1], [0, 0, 1, 1], [], []>} : vector<48x128xbf16>, vector<128x128xbf16>, vector<48x128xf32> -> vector<48x128xf32>
    %125 = arith.addf %117, %124 : vector<48x128xf32>
    %c1472 = arith.constant 1472 : index
    %c0_106 = arith.constant 0 : index
    %126 = vector.load %arg3[%c1472, %c0_106] : memref<2048x128xbf16, #tpu.memory_space<vmem>>, vector<128x128xbf16>
    %c14 = arith.constant 14 : index
    %c0_107 = arith.constant 0 : index
    %127 = vector.load %arg6[%c14, %c0_107] : memref<152x128xbf16, #tpu.memory_space<vmem>>, vector<48x128xbf16>
    %cst_108 = arith.constant dense<0.000000e+00> : vector<48x128xf32>
    %128 = tpu.matmul %127, %126, %cst_108 {dimension_numbers = #tpu.dot_dimension_numbers<[1], [0], [0], [1], [0, 0, 1, 1], [], []>} : vector<48x128xbf16>, vector<128x128xbf16>, vector<48x128xf32> -> vector<48x128xf32>
    %129 = arith.addf %121, %128 : vector<48x128xf32>
    %c1600 = arith.constant 1600 : index
    %c0_109 = arith.constant 0 : index
    %130 = vector.load %arg3[%c1600, %c0_109] : memref<2048x128xbf16, #tpu.memory_space<vmem>>, vector<128x128xbf16>
    %c15 = arith.constant 15 : index
    %c0_110 = arith.constant 0 : index
    %131 = vector.load %arg6[%c15, %c0_110] : memref<152x128xbf16, #tpu.memory_space<vmem>>, vector<48x128xbf16>
    %cst_111 = arith.constant dense<0.000000e+00> : vector<48x128xf32>
    %132 = tpu.matmul %131, %130, %cst_111 {dimension_numbers = #tpu.dot_dimension_numbers<[1], [0], [0], [1], [0, 0, 1, 1], [], []>} : vector<48x128xbf16>, vector<128x128xbf16>, vector<48x128xf32> -> vector<48x128xf32>
    %133 = arith.addf %125, %132 : vector<48x128xf32>
    %134 = arith.addf %133, %129 : vector<48x128xf32>
    %c808 = arith.constant 808 : index
    %c0_112 = arith.constant 0 : index
    %135 = vector.load %arg2[%c808, %c0_112] : memref<5416x64xbf16, #tpu.memory_space<vmem>>, vector<128x64xbf16>
    %136 = arith.truncf %134 : vector<48x128xf32> to vector<48x128xbf16>
    %cst_113 = arith.constant dense<0.000000e+00> : vector<48x64xf32>
    %137 = tpu.matmul %136, %135, %cst_113 {dimension_numbers = #tpu.dot_dimension_numbers<[1], [0], [0], [1], [0, 0, 1, 1], [], []>} : vector<48x128xbf16>, vector<128x64xbf16>, vector<48x64xf32> -> vector<48x64xf32>
    %c1 = arith.constant 1 : index
    %c0_114 = arith.constant 0 : index
    %138 = vector.load %arg4[%c1, %c0_114] : memref<16x128xf32, #tpu.memory_space<vmem>>, vector<1x64xf32>
    %139 = vector.broadcast %138 : vector<1x64xf32> to vector<48x64xf32>
    %140 = arith.addf %137, %139 : vector<48x64xf32>
    %141 = vector.extract_strided_slice %140 {offsets = [0, 0], sizes = [16, 64], strides = [1, 1]} : vector<48x64xf32> to vector<16x64xf32>
    %142 = tpu.iota {dimensions = array<i32: 0>} : vector<16x64xi32>
    %c14_i32 = arith.constant 14 : i32
    %143 = vector.broadcast %c14_i32 : i32 to vector<16x64xi32>
    %144 = arith.cmpi slt, %142, %143 : vector<16x64xi32>
    %cst_115 = arith.constant 0.000000e+00 : f32
    %145 = vector.broadcast %cst_115 : f32 to vector<16x64xf32>
    %146 = arith.select %144, %141, %145 : vector<16x64xi1>, vector<16x64xf32>
    %147 = vector.extract_strided_slice %140 {offsets = [32, 0], sizes = [16, 64], strides = [1, 1]} : vector<48x64xf32> to vector<16x64xf32>
    %148 = tpu.iota {dimensions = array<i32: 0>} : vector<16x64xi32>
    %c14_i32_116 = arith.constant 14 : i32
    %149 = vector.broadcast %c14_i32_116 : i32 to vector<16x64xi32>
    %150 = arith.cmpi slt, %148, %149 : vector<16x64xi32>
    %cst_117 = arith.constant 0.000000e+00 : f32
    %151 = vector.broadcast %cst_117 : f32 to vector<16x64xf32>
    %152 = arith.select %150, %147, %151 : vector<16x64xi1>, vector<16x64xf32>
    %153 = tpu.concatenate %146, %152 in 0 : vector<16x64xf32>, vector<16x64xf32> -> vector<32x64xf32>
    %154 = arith.addf %65, %153 : vector<32x64xf32>
    %cst_118 = arith.constant 0.000000e+00 : f32
    %155 = vector.broadcast %cst_118 : f32 to vector<32x64xf32>
    %156 = arith.maximumf %154, %155 : vector<32x64xf32>
    %c2152 = arith.constant 2152 : index
    %c0_119 = arith.constant 0 : index
    %157 = vector.load %arg2[%c2152, %c0_119] : memref<5416x64xbf16, #tpu.memory_space<vmem>>, vector<64x64xbf16>
    %158 = arith.truncf %156 : vector<32x64xf32> to vector<32x64xbf16>
    %cst_120 = arith.constant dense<0.000000e+00> : vector<32x64xf32>
    %159 = tpu.matmul %158, %157, %cst_120 {dimension_numbers = #tpu.dot_dimension_numbers<[1], [0], [0], [1], [0, 0, 1, 1], [], []>} : vector<32x64xbf16>, vector<64x64xbf16>, vector<32x64xf32> -> vector<32x64xf32>
    %c4_121 = arith.constant 4 : index
    %c0_122 = arith.constant 0 : index
    %160 = vector.load %arg4[%c4_121, %c0_122] : memref<16x128xf32, #tpu.memory_space<vmem>>, vector<1x64xf32>
    %161 = vector.broadcast %160 : vector<1x64xf32> to vector<32x64xf32>
    %162 = arith.addf %159, %161 : vector<32x64xf32>
    %163 = vector.extract_strided_slice %156 {offsets = [0, 0], sizes = [16, 64], strides = [1, 1]} : vector<32x64xf32> to vector<16x64xf32>
    %164 = arith.truncf %163 : vector<16x64xf32> to vector<16x64xbf16>
    %cst_123 = arith.constant 0.000000e+00 : bf16
    %165 = vector.broadcast %cst_123 : bf16 to vector<7x128xbf16>
    %c1_124 = arith.constant 1 : index
    %c0_125 = arith.constant 0 : index
    %166 = vector.load %arg6[%c1_124, %c0_125] : memref<152x128xbf16, #tpu.memory_space<vmem>>, vector<7x128xbf16>
    tpu.vector_store %arg6[%c1_124, %c0_125], %165 {strides = array<i32>} : memref<152x128xbf16, #tpu.memory_space<vmem>>, vector<7x128xbf16>,
    %cst_126 = arith.constant 0.000000e+00 : bf16
    %167 = vector.broadcast %cst_126 : bf16 to vector<8x128xbf16>
    %c23_127 = arith.constant 23 : index
    %c0_128 = arith.constant 0 : index
    %168 = vector.load %arg6[%c23_127, %c0_128] : memref<152x128xbf16, #tpu.memory_space<vmem>>, vector<8x128xbf16>
    tpu.vector_store %arg6[%c23_127, %c0_128], %167 {strides = array<i32>} : memref<152x128xbf16, #tpu.memory_space<vmem>>, vector<8x128xbf16>,
    %c8_129 = arith.constant 8 : index
    %c0_130 = arith.constant 0 : index
    %169 = vector.load %arg6[%c8_129, %c0_130] : memref<152x128xbf16, #tpu.memory_space<vmem>>, vector<16x64xbf16>
    tpu.vector_store %arg6[%c8_129, %c0_130], %164 {strides = array<i32>} : memref<152x128xbf16, #tpu.memory_space<vmem>>, vector<16x64xbf16>,
    %c7_131 = arith.constant 7 : index
    %c64_132 = arith.constant 64 : index
    %170 = vector.load %arg6[%c7_131, %c64_132] : memref<152x128xbf16, #tpu.memory_space<vmem>>, vector<16x64xbf16>
    tpu.vector_store %arg6[%c7_131, %c64_132], %164 {strides = array<i32>} : memref<152x128xbf16, #tpu.memory_space<vmem>>, vector<16x64xbf16>,
    %171 = vector.extract_strided_slice %156 {offsets = [16, 0], sizes = [16, 64], strides = [1, 1]} : vector<32x64xf32> to vector<16x64xf32>
    %172 = arith.truncf %171 : vector<16x64xf32> to vector<16x64xbf16>
    %cst_133 = arith.constant 0.000000e+00 : bf16
    %173 = vector.broadcast %cst_133 : bf16 to vector<7x128xbf16>
    %c33 = arith.constant 33 : index
    %c0_134 = arith.constant 0 : index
    %174 = vector.load %arg6[%c33, %c0_134] : memref<152x128xbf16, #tpu.memory_space<vmem>>, vector<7x128xbf16>
    tpu.vector_store %arg6[%c33, %c0_134], %173 {strides = array<i32>} : memref<152x128xbf16, #tpu.memory_space<vmem>>, vector<7x128xbf16>,
    %cst_135 = arith.constant 0.000000e+00 : bf16
    %175 = vector.broadcast %cst_135 : bf16 to vector<8x128xbf16>
    %c55_136 = arith.constant 55 : index
    %c0_137 = arith.constant 0 : index
    %176 = vector.load %arg6[%c55_136, %c0_137] : memref<152x128xbf16, #tpu.memory_space<vmem>>, vector<8x128xbf16>
    tpu.vector_store %arg6[%c55_136, %c0_137], %175 {strides = array<i32>} : memref<152x128xbf16, #tpu.memory_space<vmem>>, vector<8x128xbf16>,
    %c40_138 = arith.constant 40 : index
    %c0_139 = arith.constant 0 : index
    %177 = vector.load %arg6[%c40_138, %c0_139] : memref<152x128xbf16, #tpu.memory_space<vmem>>, vector<16x64xbf16>
    tpu.vector_store %arg6[%c40_138, %c0_139], %172 {strides = array<i32>} : memref<152x128xbf16, #tpu.memory_space<vmem>>, vector<16x64xbf16>,
    %c39_140 = arith.constant 39 : index
    %c64_141 = arith.constant 64 : index
    %178 = vector.load %arg6[%c39_140, %c64_141] : memref<152x128xbf16, #tpu.memory_space<vmem>>, vector<16x64xbf16>
    tpu.vector_store %arg6[%c39_140, %c64_141], %172 {strides = array<i32>} : memref<152x128xbf16, #tpu.memory_space<vmem>>, vector<16x64xbf16>,
    %cst_142 = arith.constant 0.000000e+00 : f32
    %179 = vector.broadcast %cst_142 : f32 to vector<48x64xf32>
    %cst_143 = arith.constant 0.000000e+00 : f32
    %180 = vector.broadcast %cst_143 : f32 to vector<48x64xf32>
    %c1064 = arith.constant 1064 : index
    %c0_144 = arith.constant 0 : index
    %181 = vector.load %arg2[%c1064, %c0_144] : memref<5416x64xbf16, #tpu.memory_space<vmem>>, vector<128x64xbf16>
    %c1_145 = arith.constant 1 : index
    %c0_146 = arith.constant 0 : index
    %182 = vector.load %arg6[%c1_145, %c0_146] : memref<152x128xbf16, #tpu.memory_space<vmem>>, vector<48x128xbf16>
    %cst_147 = arith.constant dense<0.000000e+00> : vector<48x64xf32>
    %183 = tpu.matmul %182, %181, %cst_147 {dimension_numbers = #tpu.dot_dimension_numbers<[1], [0], [0], [1], [0, 0, 1, 1], [], []>} : vector<48x128xbf16>, vector<128x64xbf16>, vector<48x64xf32> -> vector<48x64xf32>
    %184 = arith.addf %179, %183 : vector<48x64xf32>
    %c1192 = arith.constant 1192 : index
    %c0_148 = arith.constant 0 : index
    %185 = vector.load %arg2[%c1192, %c0_148] : memref<5416x64xbf16, #tpu.memory_space<vmem>>, vector<128x64xbf16>
    %c3_149 = arith.constant 3 : index
    %c0_150 = arith.constant 0 : index
    %186 = vector.load %arg6[%c3_149, %c0_150] : memref<152x128xbf16, #tpu.memory_space<vmem>>, vector<48x128xbf16>
    %cst_151 = arith.constant dense<0.000000e+00> : vector<48x64xf32>
    %187 = tpu.matmul %186, %185, %cst_151 {dimension_numbers = #tpu.dot_dimension_numbers<[1], [0], [0], [1], [0, 0, 1, 1], [], []>} : vector<48x128xbf16>, vector<128x64xbf16>, vector<48x64xf32> -> vector<48x64xf32>
    %188 = arith.addf %180, %187 : vector<48x64xf32>
    %c1320 = arith.constant 1320 : index
    %c0_152 = arith.constant 0 : index
    %189 = vector.load %arg2[%c1320, %c0_152] : memref<5416x64xbf16, #tpu.memory_space<vmem>>, vector<128x64xbf16>
    %c5_153 = arith.constant 5 : index
    %c0_154 = arith.constant 0 : index
    %190 = vector.load %arg6[%c5_153, %c0_154] : memref<152x128xbf16, #tpu.memory_space<vmem>>, vector<48x128xbf16>
    %cst_155 = arith.constant dense<0.000000e+00> : vector<48x64xf32>
    %191 = tpu.matmul %190, %189, %cst_155 {dimension_numbers = #tpu.dot_dimension_numbers<[1], [0], [0], [1], [0, 0, 1, 1], [], []>} : vector<48x128xbf16>, vector<128x64xbf16>, vector<48x64xf32> -> vector<48x64xf32>
    %192 = arith.addf %184, %191 : vector<48x64xf32>
    %c1448 = arith.constant 1448 : index
    %c0_156 = arith.constant 0 : index
    %193 = vector.load %arg2[%c1448, %c0_156] : memref<5416x64xbf16, #tpu.memory_space<vmem>>, vector<128x64xbf16>
    %c7_157 = arith.constant 7 : index
    %c0_158 = arith.constant 0 : index
    %194 = vector.load %arg6[%c7_157, %c0_158] : memref<152x128xbf16, #tpu.memory_space<vmem>>, vector<48x128xbf16>
    %cst_159 = arith.constant dense<0.000000e+00> : vector<48x64xf32>
    %195 = tpu.matmul %194, %193, %cst_159 {dimension_numbers = #tpu.dot_dimension_numbers<[1], [0], [0], [1], [0, 0, 1, 1], [], []>} : vector<48x128xbf16>, vector<128x64xbf16>, vector<48x64xf32> -> vector<48x64xf32>
    %196 = arith.addf %188, %195 : vector<48x64xf32>
    %c1576 = arith.constant 1576 : index
    %c0_160 = arith.constant 0 : index
    %197 = vector.load %arg2[%c1576, %c0_160] : memref<5416x64xbf16, #tpu.memory_space<vmem>>, vector<128x64xbf16>
    %c9_161 = arith.constant 9 : index
    %c0_162 = arith.constant 0 : index
    %198 = vector.load %arg6[%c9_161, %c0_162] : memref<152x128xbf16, #tpu.memory_space<vmem>>, vector<48x128xbf16>
    %cst_163 = arith.constant dense<0.000000e+00> : vector<48x64xf32>
    %199 = tpu.matmul %198, %197, %cst_163 {dimension_numbers = #tpu.dot_dimension_numbers<[1], [0], [0], [1], [0, 0, 1, 1], [], []>} : vector<48x128xbf16>, vector<128x64xbf16>, vector<48x64xf32> -> vector<48x64xf32>
    %200 = arith.addf %192, %199 : vector<48x64xf32>
    %c1704 = arith.constant 1704 : index
    %c0_164 = arith.constant 0 : index
    %201 = vector.load %arg2[%c1704, %c0_164] : memref<5416x64xbf16, #tpu.memory_space<vmem>>, vector<128x64xbf16>
    %c11_165 = arith.constant 11 : index
    %c0_166 = arith.constant 0 : index
    %202 = vector.load %arg6[%c11_165, %c0_166] : memref<152x128xbf16, #tpu.memory_space<vmem>>, vector<48x128xbf16>
    %cst_167 = arith.constant dense<0.000000e+00> : vector<48x64xf32>
    %203 = tpu.matmul %202, %201, %cst_167 {dimension_numbers = #tpu.dot_dimension_numbers<[1], [0], [0], [1], [0, 0, 1, 1], [], []>} : vector<48x128xbf16>, vector<128x64xbf16>, vector<48x64xf32> -> vector<48x64xf32>
    %204 = arith.addf %196, %203 : vector<48x64xf32>
    %c1832 = arith.constant 1832 : index
    %c0_168 = arith.constant 0 : index
    %205 = vector.load %arg2[%c1832, %c0_168] : memref<5416x64xbf16, #tpu.memory_space<vmem>>, vector<128x64xbf16>
    %c13_169 = arith.constant 13 : index
    %c0_170 = arith.constant 0 : index
    %206 = vector.load %arg6[%c13_169, %c0_170] : memref<152x128xbf16, #tpu.memory_space<vmem>>, vector<48x128xbf16>
    %cst_171 = arith.constant dense<0.000000e+00> : vector<48x64xf32>
    %207 = tpu.matmul %206, %205, %cst_171 {dimension_numbers = #tpu.dot_dimension_numbers<[1], [0], [0], [1], [0, 0, 1, 1], [], []>} : vector<48x128xbf16>, vector<128x64xbf16>, vector<48x64xf32> -> vector<48x64xf32>
    %208 = arith.addf %200, %207 : vector<48x64xf32>
    %c1960 = arith.constant 1960 : index
    %c0_172 = arith.constant 0 : index
    %209 = vector.load %arg2[%c1960, %c0_172] : memref<5416x64xbf16, #tpu.memory_space<vmem>>, vector<128x64xbf16>
    %c15_173 = arith.constant 15 : index
    %c0_174 = arith.constant 0 : index
    %210 = vector.load %arg6[%c15_173, %c0_174] : memref<152x128xbf16, #tpu.memory_space<vmem>>, vector<48x128xbf16>
    %cst_175 = arith.constant dense<0.000000e+00> : vector<48x64xf32>
    %211 = tpu.matmul %210, %209, %cst_175 {dimension_numbers = #tpu.dot_dimension_numbers<[1], [0], [0], [1], [0, 0, 1, 1], [], []>} : vector<48x128xbf16>, vector<128x64xbf16>, vector<48x64xf32> -> vector<48x64xf32>
    %212 = arith.addf %204, %211 : vector<48x64xf32>
    %213 = arith.addf %208, %212 : vector<48x64xf32>
    %c2088 = arith.constant 2088 : index
    %c0_176 = arith.constant 0 : index
    %214 = vector.load %arg2[%c2088, %c0_176] : memref<5416x64xbf16, #tpu.memory_space<vmem>>, vector<64x64xbf16>
    %215 = arith.truncf %213 : vector<48x64xf32> to vector<48x64xbf16>
    %cst_177 = arith.constant dense<0.000000e+00> : vector<48x64xf32>
    %216 = tpu.matmul %215, %214, %cst_177 {dimension_numbers = #tpu.dot_dimension_numbers<[1], [0], [0], [1], [0, 0, 1, 1], [], []>} : vector<48x64xbf16>, vector<64x64xbf16>, vector<48x64xf32> -> vector<48x64xf32>
    %c3_178 = arith.constant 3 : index
    %c0_179 = arith.constant 0 : index
    %217 = vector.load %arg4[%c3_178, %c0_179] : memref<16x128xf32, #tpu.memory_space<vmem>>, vector<1x64xf32>
    %218 = vector.broadcast %217 : vector<1x64xf32> to vector<48x64xf32>
    %219 = arith.addf %216, %218 : vector<48x64xf32>
    %220 = vector.extract_strided_slice %219 {offsets = [0, 0], sizes = [16, 64], strides = [1, 1]} : vector<48x64xf32> to vector<16x64xf32>
    %221 = vector.extract_strided_slice %219 {offsets = [32, 0], sizes = [16, 64], strides = [1, 1]} : vector<48x64xf32> to vector<16x64xf32>
    %222 = tpu.concatenate %220, %221 in 0 : vector<16x64xf32>, vector<16x64xf32> -> vector<32x64xf32>
    %223 = arith.addf %162, %222 : vector<32x64xf32>
    %cst_180 = arith.constant 0.000000e+00 : f32
    %224 = vector.broadcast %cst_180 : f32 to vector<32x64xf32>
    %225 = arith.maximumf %223, %224 : vector<32x64xf32>
    %c3432 = arith.constant 3432 : index
    %c0_181 = arith.constant 0 : index
    %226 = vector.load %arg2[%c3432, %c0_181] : memref<5416x64xbf16, #tpu.memory_space<vmem>>, vector<64x64xbf16>
    %227 = arith.truncf %225 : vector<32x64xf32> to vector<32x64xbf16>
    %cst_182 = arith.constant dense<0.000000e+00> : vector<32x64xf32>
    %228 = tpu.matmul %227, %226, %cst_182 {dimension_numbers = #tpu.dot_dimension_numbers<[1], [0], [0], [1], [0, 0, 1, 1], [], []>} : vector<32x64xbf16>, vector<64x64xbf16>, vector<32x64xf32> -> vector<32x64xf32>
    %c6_183 = arith.constant 6 : index
    %c0_184 = arith.constant 0 : index
    %229 = vector.load %arg4[%c6_183, %c0_184] : memref<16x128xf32, #tpu.memory_space<vmem>>, vector<1x64xf32>
    %230 = vector.broadcast %229 : vector<1x64xf32> to vector<32x64xf32>
    %231 = arith.addf %228, %230 : vector<32x64xf32>
    %232 = vector.extract_strided_slice %225 {offsets = [0, 0], sizes = [16, 64], strides = [1, 1]} : vector<32x64xf32> to vector<16x64xf32>
    %233 = arith.truncf %232 : vector<16x64xf32> to vector<16x64xbf16>
    %cst_185 = arith.constant 0.000000e+00 : bf16
    %234 = vector.broadcast %cst_185 : bf16 to vector<8x128xbf16>
    %c0_186 = arith.constant 0 : index
    %c0_187 = arith.constant 0 : index
    %235 = vector.load %arg6[%c0_186, %c0_187] : memref<152x128xbf16, #tpu.memory_space<vmem>>, vector<8x128xbf16>
    tpu.vector_store %arg6[%c0_186, %c0_187], %234 {strides = array<i32>} : memref<152x128xbf16, #tpu.memory_space<vmem>>, vector<8x128xbf16>,
    %cst_188 = arith.constant 0.000000e+00 : bf16
    %236 = vector.broadcast %cst_188 : bf16 to vector<9x128xbf16>
    %c23_189 = arith.constant 23 : index
    %c0_190 = arith.constant 0 : index
    %237 = vector.load %arg6[%c23_189, %c0_190] : memref<152x128xbf16, #tpu.memory_space<vmem>>, vector<9x128xbf16>
    tpu.vector_store %arg6[%c23_189, %c0_190], %236 {strides = array<i32>} : memref<152x128xbf16, #tpu.memory_space<vmem>>, vector<9x128xbf16>,
    %c8_191 = arith.constant 8 : index
    %c0_192 = arith.constant 0 : index
    %238 = vector.load %arg6[%c8_191, %c0_192] : memref<152x128xbf16, #tpu.memory_space<vmem>>, vector<16x64xbf16>
    tpu.vector_store %arg6[%c8_191, %c0_192], %233 {strides = array<i32>} : memref<152x128xbf16, #tpu.memory_space<vmem>>, vector<16x64xbf16>,
    %c7_193 = arith.constant 7 : index
    %c64_194 = arith.constant 64 : index
    %239 = vector.load %arg6[%c7_193, %c64_194] : memref<152x128xbf16, #tpu.memory_space<vmem>>, vector<16x64xbf16>
    tpu.vector_store %arg6[%c7_193, %c64_194], %233 {strides = array<i32>} : memref<152x128xbf16, #tpu.memory_space<vmem>>, vector<16x64xbf16>,
    %240 = vector.extract_strided_slice %225 {offsets = [16, 0], sizes = [16, 64], strides = [1, 1]} : vector<32x64xf32> to vector<16x64xf32>
    %241 = arith.truncf %240 : vector<16x64xf32> to vector<16x64xbf16>
    %cst_195 = arith.constant 0.000000e+00 : bf16
    %242 = vector.broadcast %cst_195 : bf16 to vector<8x128xbf16>
    %c32 = arith.constant 32 : index
    %c0_196 = arith.constant 0 : index
    %243 = vector.load %arg6[%c32, %c0_196] : memref<152x128xbf16, #tpu.memory_space<vmem>>, vector<8x128xbf16>
    tpu.vector_store %arg6[%c32, %c0_196], %242 {strides = array<i32>} : memref<152x128xbf16, #tpu.memory_space<vmem>>, vector<8x128xbf16>,
    %cst_197 = arith.constant 0.000000e+00 : bf16
    %244 = vector.broadcast %cst_197 : bf16 to vector<9x128xbf16>
    %c55_198 = arith.constant 55 : index
    %c0_199 = arith.constant 0 : index
    %245 = vector.load %arg6[%c55_198, %c0_199] : memref<152x128xbf16, #tpu.memory_space<vmem>>, vector<9x128xbf16>
    tpu.vector_store %arg6[%c55_198, %c0_199], %244 {strides = array<i32>} : memref<152x128xbf16, #tpu.memory_space<vmem>>, vector<9x128xbf16>,
    %c40_200 = arith.constant 40 : index
    %c0_201 = arith.constant 0 : index
    %246 = vector.load %arg6[%c40_200, %c0_201] : memref<152x128xbf16, #tpu.memory_space<vmem>>, vector<16x64xbf16>
    tpu.vector_store %arg6[%c40_200, %c0_201], %241 {strides = array<i32>} : memref<152x128xbf16, #tpu.memory_space<vmem>>, vector<16x64xbf16>,
    %c39_202 = arith.constant 39 : index
    %c64_203 = arith.constant 64 : index
    %247 = vector.load %arg6[%c39_202, %c64_203] : memref<152x128xbf16, #tpu.memory_space<vmem>>, vector<16x64xbf16>
    tpu.vector_store %arg6[%c39_202, %c64_203], %241 {strides = array<i32>} : memref<152x128xbf16, #tpu.memory_space<vmem>>, vector<16x64xbf16>,
    %cst_204 = arith.constant 0.000000e+00 : f32
    %248 = vector.broadcast %cst_204 : f32 to vector<48x64xf32>
    %cst_205 = arith.constant 0.000000e+00 : f32
    %249 = vector.broadcast %cst_205 : f32 to vector<48x64xf32>
    %c2216 = arith.constant 2216 : index
    %c0_206 = arith.constant 0 : index
    %250 = vector.load %arg2[%c2216, %c0_206] : memref<5416x64xbf16, #tpu.memory_space<vmem>>, vector<128x64xbf16>
    %c0_207 = arith.constant 0 : index
    %c0_208 = arith.constant 0 : index
    %251 = vector.load %arg6[%c0_207, %c0_208] : memref<152x128xbf16, #tpu.memory_space<vmem>>, vector<48x128xbf16>
    %cst_209 = arith.constant dense<0.000000e+00> : vector<48x64xf32>
    %252 = tpu.matmul %251, %250, %cst_209 {dimension_numbers = #tpu.dot_dimension_numbers<[1], [0], [0], [1], [0, 0, 1, 1], [], []>} : vector<48x128xbf16>, vector<128x64xbf16>, vector<48x64xf32> -> vector<48x64xf32>
    %253 = arith.addf %248, %252 : vector<48x64xf32>
    %c2344 = arith.constant 2344 : index
    %c0_210 = arith.constant 0 : index
    %254 = vector.load %arg2[%c2344, %c0_210] : memref<5416x64xbf16, #tpu.memory_space<vmem>>, vector<128x64xbf16>
    %c2_211 = arith.constant 2 : index
    %c0_212 = arith.constant 0 : index
    %255 = vector.load %arg6[%c2_211, %c0_212] : memref<152x128xbf16, #tpu.memory_space<vmem>>, vector<48x128xbf16>
    %cst_213 = arith.constant dense<0.000000e+00> : vector<48x64xf32>
    %256 = tpu.matmul %255, %254, %cst_213 {dimension_numbers = #tpu.dot_dimension_numbers<[1], [0], [0], [1], [0, 0, 1, 1], [], []>} : vector<48x128xbf16>, vector<128x64xbf16>, vector<48x64xf32> -> vector<48x64xf32>
    %257 = arith.addf %249, %256 : vector<48x64xf32>
    %c2472 = arith.constant 2472 : index
    %c0_214 = arith.constant 0 : index
    %258 = vector.load %arg2[%c2472, %c0_214] : memref<5416x64xbf16, #tpu.memory_space<vmem>>, vector<128x64xbf16>
    %c4_215 = arith.constant 4 : index
    %c0_216 = arith.constant 0 : index
    %259 = vector.load %arg6[%c4_215, %c0_216] : memref<152x128xbf16, #tpu.memory_space<vmem>>, vector<48x128xbf16>
    %cst_217 = arith.constant dense<0.000000e+00> : vector<48x64xf32>
    %260 = tpu.matmul %259, %258, %cst_217 {dimension_numbers = #tpu.dot_dimension_numbers<[1], [0], [0], [1], [0, 0, 1, 1], [], []>} : vector<48x128xbf16>, vector<128x64xbf16>, vector<48x64xf32> -> vector<48x64xf32>
    %261 = arith.addf %253, %260 : vector<48x64xf32>
    %c2600 = arith.constant 2600 : index
    %c0_218 = arith.constant 0 : index
    %262 = vector.load %arg2[%c2600, %c0_218] : memref<5416x64xbf16, #tpu.memory_space<vmem>>, vector<128x64xbf16>
    %c6_219 = arith.constant 6 : index
    %c0_220 = arith.constant 0 : index
    %263 = vector.load %arg6[%c6_219, %c0_220] : memref<152x128xbf16, #tpu.memory_space<vmem>>, vector<48x128xbf16>
    %cst_221 = arith.constant dense<0.000000e+00> : vector<48x64xf32>
    %264 = tpu.matmul %263, %262, %cst_221 {dimension_numbers = #tpu.dot_dimension_numbers<[1], [0], [0], [1], [0, 0, 1, 1], [], []>} : vector<48x128xbf16>, vector<128x64xbf16>, vector<48x64xf32> -> vector<48x64xf32>
    %265 = arith.addf %257, %264 : vector<48x64xf32>
    %c2728 = arith.constant 2728 : index
    %c0_222 = arith.constant 0 : index
    %266 = vector.load %arg2[%c2728, %c0_222] : memref<5416x64xbf16, #tpu.memory_space<vmem>>, vector<128x64xbf16>
    %c8_223 = arith.constant 8 : index
    %c0_224 = arith.constant 0 : index
    %267 = vector.load %arg6[%c8_223, %c0_224] : memref<152x128xbf16, #tpu.memory_space<vmem>>, vector<48x128xbf16>
    %cst_225 = arith.constant dense<0.000000e+00> : vector<48x64xf32>
    %268 = tpu.matmul %267, %266, %cst_225 {dimension_numbers = #tpu.dot_dimension_numbers<[1], [0], [0], [1], [0, 0, 1, 1], [], []>} : vector<48x128xbf16>, vector<128x64xbf16>, vector<48x64xf32> -> vector<48x64xf32>
    %269 = arith.addf %261, %268 : vector<48x64xf32>
    %c2856 = arith.constant 2856 : index
    %c0_226 = arith.constant 0 : index
    %270 = vector.load %arg2[%c2856, %c0_226] : memref<5416x64xbf16, #tpu.memory_space<vmem>>, vector<128x64xbf16>
    %c10_227 = arith.constant 10 : index
    %c0_228 = arith.constant 0 : index
    %271 = vector.load %arg6[%c10_227, %c0_228] : memref<152x128xbf16, #tpu.memory_space<vmem>>, vector<48x128xbf16>
    %cst_229 = arith.constant dense<0.000000e+00> : vector<48x64xf32>
    %272 = tpu.matmul %271, %270, %cst_229 {dimension_numbers = #tpu.dot_dimension_numbers<[1], [0], [0], [1], [0, 0, 1, 1], [], []>} : vector<48x128xbf16>, vector<128x64xbf16>, vector<48x64xf32> -> vector<48x64xf32>
    %273 = arith.addf %265, %272 : vector<48x64xf32>
    %c2984 = arith.constant 2984 : index
    %c0_230 = arith.constant 0 : index
    %274 = vector.load %arg2[%c2984, %c0_230] : memref<5416x64xbf16, #tpu.memory_space<vmem>>, vector<128x64xbf16>
    %c12_231 = arith.constant 12 : index
    %c0_232 = arith.constant 0 : index
    %275 = vector.load %arg6[%c12_231, %c0_232] : memref<152x128xbf16, #tpu.memory_space<vmem>>, vector<48x128xbf16>
    %cst_233 = arith.constant dense<0.000000e+00> : vector<48x64xf32>
    %276 = tpu.matmul %275, %274, %cst_233 {dimension_numbers = #tpu.dot_dimension_numbers<[1], [0], [0], [1], [0, 0, 1, 1], [], []>} : vector<48x128xbf16>, vector<128x64xbf16>, vector<48x64xf32> -> vector<48x64xf32>
    %277 = arith.addf %269, %276 : vector<48x64xf32>
    %c3112 = arith.constant 3112 : index
    %c0_234 = arith.constant 0 : index
    %278 = vector.load %arg2[%c3112, %c0_234] : memref<5416x64xbf16, #tpu.memory_space<vmem>>, vector<128x64xbf16>
    %c14_235 = arith.constant 14 : index
    %c0_236 = arith.constant 0 : index
    %279 = vector.load %arg6[%c14_235, %c0_236] : memref<152x128xbf16, #tpu.memory_space<vmem>>, vector<48x128xbf16>
    %cst_237 = arith.constant dense<0.000000e+00> : vector<48x64xf32>
    %280 = tpu.matmul %279, %278, %cst_237 {dimension_numbers = #tpu.dot_dimension_numbers<[1], [0], [0], [1], [0, 0, 1, 1], [], []>} : vector<48x128xbf16>, vector<128x64xbf16>, vector<48x64xf32> -> vector<48x64xf32>
    %281 = arith.addf %273, %280 : vector<48x64xf32>
    %c3240 = arith.constant 3240 : index
    %c0_238 = arith.constant 0 : index
    %282 = vector.load %arg2[%c3240, %c0_238] : memref<5416x64xbf16, #tpu.memory_space<vmem>>, vector<128x64xbf16>
    %c16 = arith.constant 16 : index
    %c0_239 = arith.constant 0 : index
    %283 = vector.load %arg6[%c16, %c0_239] : memref<152x128xbf16, #tpu.memory_space<vmem>>, vector<48x128xbf16>
    %cst_240 = arith.constant dense<0.000000e+00> : vector<48x64xf32>
    %284 = tpu.matmul %283, %282, %cst_240 {dimension_numbers = #tpu.dot_dimension_numbers<[1], [0], [0], [1], [0, 0, 1, 1], [], []>} : vector<48x128xbf16>, vector<128x64xbf16>, vector<48x64xf32> -> vector<48x64xf32>
    %285 = arith.addf %277, %284 : vector<48x64xf32>
    %286 = arith.addf %285, %281 : vector<48x64xf32>
    %c3368 = arith.constant 3368 : index
    %c0_241 = arith.constant 0 : index
    %287 = vector.load %arg2[%c3368, %c0_241] : memref<5416x64xbf16, #tpu.memory_space<vmem>>, vector<64x64xbf16>
    %288 = arith.truncf %286 : vector<48x64xf32> to vector<48x64xbf16>
    %cst_242 = arith.constant dense<0.000000e+00> : vector<48x64xf32>
    %289 = tpu.matmul %288, %287, %cst_242 {dimension_numbers = #tpu.dot_dimension_numbers<[1], [0], [0], [1], [0, 0, 1, 1], [], []>} : vector<48x64xbf16>, vector<64x64xbf16>, vector<48x64xf32> -> vector<48x64xf32>
    %c5_243 = arith.constant 5 : index
    %c0_244 = arith.constant 0 : index
    %290 = vector.load %arg4[%c5_243, %c0_244] : memref<16x128xf32, #tpu.memory_space<vmem>>, vector<1x64xf32>
    %291 = vector.broadcast %290 : vector<1x64xf32> to vector<48x64xf32>
    %292 = arith.addf %289, %291 : vector<48x64xf32>
    %293 = vector.extract_strided_slice %292 {offsets = [0, 0], sizes = [16, 64], strides = [1, 1]} : vector<48x64xf32> to vector<16x64xf32>
    %294 = vector.extract_strided_slice %292 {offsets = [32, 0], sizes = [16, 64], strides = [1, 1]} : vector<48x64xf32> to vector<16x64xf32>
    %295 = tpu.concatenate %293, %294 in 0 : vector<16x64xf32>, vector<16x64xf32> -> vector<32x64xf32>
    %296 = arith.addf %231, %295 : vector<32x64xf32>
    %cst_245 = arith.constant 0.000000e+00 : f32
    %297 = vector.broadcast %cst_245 : f32 to vector<32x64xf32>
    %298 = arith.maximumf %296, %297 : vector<32x64xf32>
    %299 = vector.extract_strided_slice %298 {offsets = [0, 0], sizes = [16, 64], strides = [1, 1]} : vector<32x64xf32> to vector<16x64xf32>
    %300 = arith.truncf %299 : vector<16x64xf32> to vector<16x64xbf16>
    %cst_246 = arith.constant 0.000000e+00 : bf16
    %301 = vector.broadcast %cst_246 : bf16 to vector<28x128xbf16>
    %c4_247 = arith.constant 4 : index
    %c0_248 = arith.constant 0 : index
    %302 = vector.load %arg6[%c4_247, %c0_248] : memref<152x128xbf16, #tpu.memory_space<vmem>>, vector<28x128xbf16>
    tpu.vector_store %arg6[%c4_247, %c0_248], %301 {strides = array<i32>} : memref<152x128xbf16, #tpu.memory_space<vmem>>, vector<28x128xbf16>,
    %cst_249 = arith.constant 0.000000e+00 : bf16
    %303 = vector.broadcast %cst_249 : bf16 to vector<30x128xbf16>
    %c46 = arith.constant 46 : index
    %c0_250 = arith.constant 0 : index
    %304 = vector.load %arg6[%c46, %c0_250] : memref<152x128xbf16, #tpu.memory_space<vmem>>, vector<30x128xbf16>
    tpu.vector_store %arg6[%c46, %c0_250], %303 {strides = array<i32>} : memref<152x128xbf16, #tpu.memory_space<vmem>>, vector<30x128xbf16>,
    %c32_251 = arith.constant 32 : index
    %c0_252 = arith.constant 0 : index
    %305 = vector.load %arg6[%c32_251, %c0_252] : memref<152x128xbf16, #tpu.memory_space<vmem>>, vector<16x64xbf16>
    tpu.vector_store %arg6[%c32_251, %c0_252], %300 {strides = array<i32>} : memref<152x128xbf16, #tpu.memory_space<vmem>>, vector<16x64xbf16>,
    %c30 = arith.constant 30 : index
    %c64_253 = arith.constant 64 : index
    %306 = vector.load %arg6[%c30, %c64_253] : memref<152x128xbf16, #tpu.memory_space<vmem>>, vector<16x64xbf16>
    tpu.vector_store %arg6[%c30, %c64_253], %300 {strides = array<i32>} : memref<152x128xbf16, #tpu.memory_space<vmem>>, vector<16x64xbf16>,
    %307 = vector.extract_strided_slice %298 {offsets = [16, 0], sizes = [16, 64], strides = [1, 1]} : vector<32x64xf32> to vector<16x64xf32>
    %308 = arith.truncf %307 : vector<16x64xf32> to vector<16x64xbf16>
    %cst_254 = arith.constant 0.000000e+00 : bf16
    %309 = vector.broadcast %cst_254 : bf16 to vector<28x128xbf16>
    %c76 = arith.constant 76 : index
    %c0_255 = arith.constant 0 : index
    %310 = vector.load %arg6[%c76, %c0_255] : memref<152x128xbf16, #tpu.memory_space<vmem>>, vector<28x128xbf16>
    tpu.vector_store %arg6[%c76, %c0_255], %309 {strides = array<i32>} : memref<152x128xbf16, #tpu.memory_space<vmem>>, vector<28x128xbf16>,
    %cst_256 = arith.constant 0.000000e+00 : bf16
    %311 = vector.broadcast %cst_256 : bf16 to vector<30x128xbf16>
    %c118 = arith.constant 118 : index
    %c0_257 = arith.constant 0 : index
    %312 = vector.load %arg6[%c118, %c0_257] : memref<152x128xbf16, #tpu.memory_space<vmem>>, vector<30x128xbf16>
    tpu.vector_store %arg6[%c118, %c0_257], %311 {strides = array<i32>} : memref<152x128xbf16, #tpu.memory_space<vmem>>, vector<30x128xbf16>,
    %c104 = arith.constant 104 : index
    %c0_258 = arith.constant 0 : index
    %313 = vector.load %arg6[%c104, %c0_258] : memref<152x128xbf16, #tpu.memory_space<vmem>>, vector<16x64xbf16>
    tpu.vector_store %arg6[%c104, %c0_258], %308 {strides = array<i32>} : memref<152x128xbf16, #tpu.memory_space<vmem>>, vector<16x64xbf16>,
    %c102 = arith.constant 102 : index
    %c64_259 = arith.constant 64 : index
    %314 = vector.load %arg6[%c102, %c64_259] : memref<152x128xbf16, #tpu.memory_space<vmem>>, vector<16x64xbf16>
    tpu.vector_store %arg6[%c102, %c64_259], %308 {strides = array<i32>} : memref<152x128xbf16, #tpu.memory_space<vmem>>, vector<16x64xbf16>,
    %cst_260 = arith.constant 0.000000e+00 : f32
    %315 = vector.broadcast %cst_260 : f32 to vector<88x64xf32>
    %cst_261 = arith.constant 0.000000e+00 : f32
    %316 = vector.broadcast %cst_261 : f32 to vector<88x64xf32>
    %c3880 = arith.constant 3880 : index
    %c0_262 = arith.constant 0 : index
    %317 = vector.load %arg2[%c3880, %c0_262] : memref<5416x64xbf16, #tpu.memory_space<vmem>>, vector<128x64xbf16>
    %c16_263 = arith.constant 16 : index
    %c0_264 = arith.constant 0 : index
    %318 = vector.load %arg6[%c16_263, %c0_264] : memref<152x128xbf16, #tpu.memory_space<vmem>>, vector<88x128xbf16>
    %cst_265 = arith.constant dense<0.000000e+00> : vector<88x64xf32>
    %319 = tpu.matmul %318, %317, %cst_265 {dimension_numbers = #tpu.dot_dimension_numbers<[1], [0], [0], [1], [0, 0, 1, 1], [], []>} : vector<88x128xbf16>, vector<128x64xbf16>, vector<88x64xf32> -> vector<88x64xf32>
    %320 = arith.addf %315, %319 : vector<88x64xf32>
    %c4008 = arith.constant 4008 : index
    %c0_266 = arith.constant 0 : index
    %321 = vector.load %arg2[%c4008, %c0_266] : memref<5416x64xbf16, #tpu.memory_space<vmem>>, vector<128x64xbf16>
    %c20 = arith.constant 20 : index
    %c0_267 = arith.constant 0 : index
    %322 = vector.load %arg6[%c20, %c0_267] : memref<152x128xbf16, #tpu.memory_space<vmem>>, vector<88x128xbf16>
    %cst_268 = arith.constant dense<0.000000e+00> : vector<88x64xf32>
    %323 = tpu.matmul %322, %321, %cst_268 {dimension_numbers = #tpu.dot_dimension_numbers<[1], [0], [0], [1], [0, 0, 1, 1], [], []>} : vector<88x128xbf16>, vector<128x64xbf16>, vector<88x64xf32> -> vector<88x64xf32>
    %324 = arith.addf %316, %323 : vector<88x64xf32>
    %c4136 = arith.constant 4136 : index
    %c0_269 = arith.constant 0 : index
    %325 = vector.load %arg2[%c4136, %c0_269] : memref<5416x64xbf16, #tpu.memory_space<vmem>>, vector<128x64xbf16>
    %c24_270 = arith.constant 24 : index
    %c0_271 = arith.constant 0 : index
    %326 = vector.load %arg6[%c24_270, %c0_271] : memref<152x128xbf16, #tpu.memory_space<vmem>>, vector<88x128xbf16>
    %cst_272 = arith.constant dense<0.000000e+00> : vector<88x64xf32>
    %327 = tpu.matmul %326, %325, %cst_272 {dimension_numbers = #tpu.dot_dimension_numbers<[1], [0], [0], [1], [0, 0, 1, 1], [], []>} : vector<88x128xbf16>, vector<128x64xbf16>, vector<88x64xf32> -> vector<88x64xf32>
    %328 = arith.addf %320, %327 : vector<88x64xf32>
    %c4264 = arith.constant 4264 : index
    %c0_273 = arith.constant 0 : index
    %329 = vector.load %arg2[%c4264, %c0_273] : memref<5416x64xbf16, #tpu.memory_space<vmem>>, vector<128x64xbf16>
    %c28 = arith.constant 28 : index
    %c0_274 = arith.constant 0 : index
    %330 = vector.load %arg6[%c28, %c0_274] : memref<152x128xbf16, #tpu.memory_space<vmem>>, vector<88x128xbf16>
    %cst_275 = arith.constant dense<0.000000e+00> : vector<88x64xf32>
    %331 = tpu.matmul %330, %329, %cst_275 {dimension_numbers = #tpu.dot_dimension_numbers<[1], [0], [0], [1], [0, 0, 1, 1], [], []>} : vector<88x128xbf16>, vector<128x64xbf16>, vector<88x64xf32> -> vector<88x64xf32>
    %332 = arith.addf %324, %331 : vector<88x64xf32>
    %c4392 = arith.constant 4392 : index
    %c0_276 = arith.constant 0 : index
    %333 = vector.load %arg2[%c4392, %c0_276] : memref<5416x64xbf16, #tpu.memory_space<vmem>>, vector<128x64xbf16>
    %c32_277 = arith.constant 32 : index
    %c0_278 = arith.constant 0 : index
    %334 = vector.load %arg6[%c32_277, %c0_278] : memref<152x128xbf16, #tpu.memory_space<vmem>>, vector<88x128xbf16>
    %cst_279 = arith.constant dense<0.000000e+00> : vector<88x64xf32>
    %335 = tpu.matmul %334, %333, %cst_279 {dimension_numbers = #tpu.dot_dimension_numbers<[1], [0], [0], [1], [0, 0, 1, 1], [], []>} : vector<88x128xbf16>, vector<128x64xbf16>, vector<88x64xf32> -> vector<88x64xf32>
    %336 = arith.addf %328, %335 : vector<88x64xf32>
    %c4520 = arith.constant 4520 : index
    %c0_280 = arith.constant 0 : index
    %337 = vector.load %arg2[%c4520, %c0_280] : memref<5416x64xbf16, #tpu.memory_space<vmem>>, vector<128x64xbf16>
    %c36 = arith.constant 36 : index
    %c0_281 = arith.constant 0 : index
    %338 = vector.load %arg6[%c36, %c0_281] : memref<152x128xbf16, #tpu.memory_space<vmem>>, vector<88x128xbf16>
    %cst_282 = arith.constant dense<0.000000e+00> : vector<88x64xf32>
    %339 = tpu.matmul %338, %337, %cst_282 {dimension_numbers = #tpu.dot_dimension_numbers<[1], [0], [0], [1], [0, 0, 1, 1], [], []>} : vector<88x128xbf16>, vector<128x64xbf16>, vector<88x64xf32> -> vector<88x64xf32>
    %340 = arith.addf %332, %339 : vector<88x64xf32>
    %c4648 = arith.constant 4648 : index
    %c0_283 = arith.constant 0 : index
    %341 = vector.load %arg2[%c4648, %c0_283] : memref<5416x64xbf16, #tpu.memory_space<vmem>>, vector<128x64xbf16>
    %c40_284 = arith.constant 40 : index
    %c0_285 = arith.constant 0 : index
    %342 = vector.load %arg6[%c40_284, %c0_285] : memref<152x128xbf16, #tpu.memory_space<vmem>>, vector<88x128xbf16>
    %cst_286 = arith.constant dense<0.000000e+00> : vector<88x64xf32>
    %343 = tpu.matmul %342, %341, %cst_286 {dimension_numbers = #tpu.dot_dimension_numbers<[1], [0], [0], [1], [0, 0, 1, 1], [], []>} : vector<88x128xbf16>, vector<128x64xbf16>, vector<88x64xf32> -> vector<88x64xf32>
    %344 = arith.addf %336, %343 : vector<88x64xf32>
    %c4776 = arith.constant 4776 : index
    %c0_287 = arith.constant 0 : index
    %345 = vector.load %arg2[%c4776, %c0_287] : memref<5416x64xbf16, #tpu.memory_space<vmem>>, vector<128x64xbf16>
    %c44 = arith.constant 44 : index
    %c0_288 = arith.constant 0 : index
    %346 = vector.load %arg6[%c44, %c0_288] : memref<152x128xbf16, #tpu.memory_space<vmem>>, vector<88x128xbf16>
    %cst_289 = arith.constant dense<0.000000e+00> : vector<88x64xf32>
    %347 = tpu.matmul %346, %345, %cst_289 {dimension_numbers = #tpu.dot_dimension_numbers<[1], [0], [0], [1], [0, 0, 1, 1], [], []>} : vector<88x128xbf16>, vector<128x64xbf16>, vector<88x64xf32> -> vector<88x64xf32>
    %348 = arith.addf %340, %347 : vector<88x64xf32>
    %349 = arith.addf %344, %348 : vector<88x64xf32>
    %350 = vector.extract_strided_slice %349 {offsets = [0, 0], sizes = [16, 64], strides = [1, 1]} : vector<88x64xf32> to vector<16x64xf32>
    %351 = vector.extract_strided_slice %349 {offsets = [72, 0], sizes = [16, 64], strides = [1, 1]} : vector<88x64xf32> to vector<16x64xf32>
    %352 = tpu.concatenate %350, %351 in 0 : vector<16x64xf32>, vector<16x64xf32> -> vector<32x64xf32>
    %c1728 = arith.constant 1728 : index
    %c0_290 = arith.constant 0 : index
    %353 = vector.load %arg3[%c1728, %c0_290] : memref<2048x128xbf16, #tpu.memory_space<vmem>>, vector<64x128xbf16>
    %354 = arith.truncf %352 : vector<32x64xf32> to vector<32x64xbf16>
    %cst_291 = arith.constant dense<0.000000e+00> : vector<32x128xf32>
    %355 = tpu.matmul %354, %353, %cst_291 {dimension_numbers = #tpu.dot_dimension_numbers<[1], [0], [0], [1], [0, 0, 1, 1], [], []>} : vector<32x64xbf16>, vector<64x128xbf16>, vector<32x128xf32> -> vector<32x128xf32>
    %c7_292 = arith.constant 7 : index
    %c0_293 = arith.constant 0 : index
    %356 = vector.load %arg4[%c7_292, %c0_293] : memref<16x128xf32, #tpu.memory_space<vmem>>, vector<1x128xf32>
    %357 = vector.broadcast %356 : vector<1x128xf32> to vector<32x128xf32>
    %358 = arith.addf %355, %357 : vector<32x128xf32>
    %cst_294 = arith.constant 0.000000e+00 : f32
    %359 = vector.broadcast %cst_294 : f32 to vector<32x128xf32>
    %360 = arith.maximumf %358, %359 : vector<32x128xf32>
    %c1792 = arith.constant 1792 : index
    %c0_295 = arith.constant 0 : index
    %361 = vector.load %arg3[%c1792, %c0_295] : memref<2048x128xbf16, #tpu.memory_space<vmem>>, vector<128x128xbf16>
    %362 = arith.truncf %360 : vector<32x128xf32> to vector<32x128xbf16>
    %cst_296 = arith.constant dense<0.000000e+00> : vector<32x128xf32>
    %363 = tpu.matmul %362, %361, %cst_296 {dimension_numbers = #tpu.dot_dimension_numbers<[1], [0], [0], [1], [0, 0, 1, 1], [], []>} : vector<32x128xbf16>, vector<128x128xbf16>, vector<32x128xf32> -> vector<32x128xf32>
    %c8_297 = arith.constant 8 : index
    %c0_298 = arith.constant 0 : index
    %364 = vector.load %arg4[%c8_297, %c0_298] : memref<16x128xf32, #tpu.memory_space<vmem>>, vector<1x128xf32>
    %365 = vector.broadcast %364 : vector<1x128xf32> to vector<32x128xf32>
    %366 = arith.addf %363, %365 : vector<32x128xf32>
    %cst_299 = arith.constant 0.000000e+00 : f32
    %367 = vector.broadcast %cst_299 : f32 to vector<32x128xf32>
    %368 = arith.maximumf %366, %367 : vector<32x128xf32>
    %369 = vector.extract_strided_slice %368 {offsets = [0, 0], sizes = [16, 128], strides = [1, 1]} : vector<32x128xf32> to vector<16x128xf32>
    %cst_300 = arith.constant dense<0.000000e+00> : vector<128xf32>
    %370 = vector.multi_reduction <add>, %369, %cst_300 [0] : vector<16x128xf32> to vector<128xf32>
    %371 = vector.shape_cast %370 : vector<128xf32> to vector<1x128xf32>
    %cst_301 = arith.constant 1.600000e+01 : f32
    %372 = vector.broadcast %cst_301 : f32 to vector<1x128xf32>
    %373 = arith.divf %371, %372 : vector<1x128xf32>
    %374 = vector.extract_strided_slice %368 {offsets = [16, 0], sizes = [16, 128], strides = [1, 1]} : vector<32x128xf32> to vector<16x128xf32>
    %cst_302 = arith.constant dense<0.000000e+00> : vector<128xf32>
    %375 = vector.multi_reduction <add>, %374, %cst_302 [0] : vector<16x128xf32> to vector<128xf32>
    %376 = vector.shape_cast %375 : vector<128xf32> to vector<1x128xf32>
    %cst_303 = arith.constant 1.600000e+01 : f32
    %377 = vector.broadcast %cst_303 : f32 to vector<1x128xf32>
    %378 = arith.divf %376, %377 : vector<1x128xf32>
    %379 = tpu.concatenate %373, %378 in 0 : vector<1x128xf32>, vector<1x128xf32> -> vector<2x128xf32>
    %c1920 = arith.constant 1920 : index
    %c0_304 = arith.constant 0 : index
    %380 = vector.load %arg3[%c1920, %c0_304] : memref<2048x128xbf16, #tpu.memory_space<vmem>>, vector<128x128xbf16>
    %381 = arith.truncf %379 : vector<2x128xf32> to vector<2x128xbf16>
    %cst_305 = arith.constant dense<0.000000e+00> : vector<2x128xf32>
    %382 = tpu.matmul %381, %380, %cst_305 {dimension_numbers = #tpu.dot_dimension_numbers<[1], [0], [0], [1], [0, 0, 1, 1], [], []>} : vector<2x128xbf16>, vector<128x128xbf16>, vector<2x128xf32> -> vector<2x128xf32>
    %c9_306 = arith.constant 9 : index
    %c0_307 = arith.constant 0 : index
    %383 = vector.load %arg4[%c9_306, %c0_307] : memref<16x128xf32, #tpu.memory_space<vmem>>, vector<1x128xf32>
    %384 = vector.broadcast %383 : vector<1x128xf32> to vector<2x128xf32>
    %385 = arith.addf %382, %384 : vector<2x128xf32>
    %386 = tpu.iota {dimensions = array<i32: 1>} : vector<2x128xi32>
    %c35_i32 = arith.constant 35 : i32
    %387 = vector.broadcast %c35_i32 : i32 to vector<2x128xi32>
    %388 = arith.cmpi slt, %386, %387 : vector<2x128xi32>
    %cst_308 = arith.constant 0xFF800000 : f32
    %389 = vector.broadcast %cst_308 : f32 to vector<2x128xf32>
    %390 = arith.select %388, %385, %389 : vector<2x128xi1>, vector<2x128xf32>
    %cst_309 = arith.constant dense<0xFF800000> : vector<2xf32>
    %391 = vector.multi_reduction <maximumf>, %390, %cst_309 [1] : vector<2x128xf32> to vector<2xf32>
    %392 = vector.shape_cast %391 : vector<2xf32> to vector<2x1xf32>
    %393 = vector.broadcast %392 : vector<2x1xf32> to vector<2x128xf32>
    %394 = arith.subf %385, %393 : vector<2x128xf32>
    %395 = math.exp %394 : vector<2x128xf32>
    %cst_310 = arith.constant 0.000000e+00 : f32
    %396 = vector.broadcast %cst_310 : f32 to vector<2x128xf32>
    %397 = arith.select %388, %395, %396 : vector<2x128xi1>, vector<2x128xf32>
    %cst_311 = arith.constant dense<0.000000e+00> : vector<2xf32>
    %398 = vector.multi_reduction <add>, %397, %cst_311 [1] : vector<2x128xf32> to vector<2xf32>
    %399 = vector.shape_cast %398 : vector<2xf32> to vector<2x1xf32>
    %400 = math.log %399 : vector<2x1xf32>
    %401 = vector.broadcast %400 : vector<2x1xf32> to vector<2x128xf32>
    %402 = arith.subf %394, %401 : vector<2x128xf32>
    %c0_312 = arith.constant 0 : index
    %c0_313 = arith.constant 0 : index
    %403 = vector.load %arg5[%c0_312, %c0_313] : memref<8x128xf32, #tpu.memory_space<vmem>>, vector<2x128xf32>
    tpu.vector_store %arg5[%c0_312, %c0_313], %402 {strides = array<i32>} : memref<8x128xf32, #tpu.memory_space<vmem>>, vector<2x128xf32>,
    return
  }
  func.func @transform_0(%arg0: i32) -> (i32, i32) {
    %c0_i32 = arith.constant 0 : i32
    %c0_i32_0 = arith.constant 0 : i32
    return %arg0, %c0_i32 : i32, i32
  }
  func.func @transform_1(%arg0: i32) -> (i32, i32) {
    %c0_i32 = arith.constant 0 : i32
    %c0_i32_0 = arith.constant 0 : i32
    %c0_i32_1 = arith.constant 0 : i32
    return %c0_i32, %c0_i32_0 : i32, i32
  }
  func.func @transform_2(%arg0: i32) -> (i32, i32) {
    %c0_i32 = arith.constant 0 : i32
    %c0_i32_0 = arith.constant 0 : i32
    %c0_i32_1 = arith.constant 0 : i32
    return %c0_i32, %c0_i32_0 : i32, i32
  }
  func.func @transform_3(%arg0: i32) -> (i32, i32) {
    %c0_i32 = arith.constant 0 : i32
    %c0_i32_0 = arith.constant 0 : i32
    %c0_i32_1 = arith.constant 0 : i32
    return %c0_i32, %c0_i32_0 : i32, i32
  }
  func.func @transform_4(%arg0: i32) -> (i32, i32) {
    %c0_i32 = arith.constant 0 : i32
    %c0_i32_0 = arith.constant 0 : i32
    return %arg0, %c0_i32 : i32, i32
  }
}

</mosaic_0001>

<bundles_post_ra>
// kernel: qmatchboxnet_forward.1
= control target key start
LH: loop header
LB: loop body
LE: loop exit
PB: predicated region body
PF: predicated region fallthrough
CT: control target
= control target key end

     0   :  { %vm137_vm0 = vsmask.f32 2304  ;;  %v12261_v1 = vmov 0   ;;  %vm70_vm1 = vcmask 1043456   ;;  %vm15165_vm2 = vcmask 1042432   ;;  %s12263_s14 = smov 64   ;;  %s15159_s1 = inlined_call_operand.vmem [shape: bf16[5416,64], index: 1, kind: input, shape index: {}]   ;;  %s15160_s0 = inlined_call_operand.vmem [shape: f32[32,40], index: 0, kind: input, shape index: {}]   ;;  %s15161_s2 = inlined_call_operand.vmem [shape: bf16[2048,128], index: 2, kind: input, shape index: {}]   ;;  %s15162_s3 = inlined_call_operand.vmem [shape: f32[16,128], index: 3, kind: input, shape index: {}]   ;;  %s15163_s4 = inlined_call_operand.vmem [shape: f32[8,128], index: 4, kind: output, shape index: {}]  }
   0x1   :  { %v11757_v0 = vld [vmem:[%s15159_s1] sm:$0xff]   ;;  %21 = vst [vmem:[#allocation2 + $0xc] sm:$0xf] %v12261_v1  ;;  %25 = vst [vmem:[#allocation2 + $0x1c] sm:$0xf] %v12261_v1  ;;  %v11758_v2 = vld [vmem:[%s15159_s1 + $0x8] sm:$0xff]  }
   0x2   :  { %18 = vst [vmem:[#allocation2] sm:$0xf] %v12261_v1  ;;  %19 = vst [vmem:[#allocation2 + $0x4] sm:$0xf] %v12261_v1  ;;  %9914 = vmatprep.subr.bf16.mxu1 %v11757_v0  ;;  %v11759_v3 = vld [vmem:[%s15159_s1 + $0x10] ss:$0 sps:$4 sm:$0xff]  }
   0x3   :  { %20 = vst [vmem:[#allocation2 + $0x8] sm:$0xf] %v12261_v1  ;;  %22 = vst [vmem:[#allocation2 + $0x10] sm:$0xf] %v12261_v1  ;;  %9915 = vmatpush3.bf16.msra.mxu1 %v11757_v0  ;;  %v37_v4 = vld [vmem:[%s15160_s0] sm:$0xff]  ;;  %v38_v5 = vld [vmem:[%s15160_s0 + $0x8] sm:$0xff] }
   0x4   :  { %23 = vst [vmem:[#allocation2 + $0x14] sm:$0xf] %v12261_v1  ;;  %24 = vst [vmem:[#allocation2 + $0x18] sm:$0xf] %v12261_v1  ;;  %vm63_vm3 = vcmask 326656   ;;  %9916 = vmatprep.subr.bf16.mxu1 %v11758_v2  ;;  %v72_v7 = vsel %vm70_vm1, %v11759_v3, 0  ;;  %v46_v8 = vpack.c.bf16 %v38_v5, %v37_v4 }
   0x5   :  { %26 = vst [vmem:[#allocation2 + $0x20] sm:$0xf] %v12261_v1  ;;  %27 = vst [vmem:[#allocation2 + $0x24] sm:$0xf] %v12261_v1  ;;  %v39_v9 = vld [vmem:[%s15160_s0 + $0x10] sm:$0xff]  ;;  %v40_v10 = vld [vmem:[%s15160_s0 + $0x18] sm:$0xff] }
   0x6   :  { %28 = vst [vmem:[#allocation2 + $0x28] sm:$0xf] %v12261_v1  ;;  %29 = vst [vmem:[#allocation2 + $0x2c] sm:$0xf] %v12261_v1  ;;  %9920 = vmatprep.mubr.msk.bf16.mxu1 %vm63_vm3, %v46_v8  ;;  %v47_v15 = vpack.c.bf16 %v40_v10, %v39_v9  ;;  %vm130_vm5 = vcmask 1043459   ;;  %v11760_v30 = vld [vmem:[%s15159_s1 + $0x94] sm:$0xff]  }
   0x7   :  { %30 = vst [vmem:[#allocation2 + $0x30] sm:$0xf] %v12261_v1  ;;  %31 = vst [vmem:[#allocation2 + $0x34] sm:$0xf] %v12261_v1  ;;  %9917 = vmatpush3.bf16.msra.mxu1 %v11758_v2  ;;  %vm131_vm6 = vsmask.f32 7950 }
   0x8   :  { %32 = vst [vmem:[#allocation2 + $0x38] sm:$0xf] %v12261_v1  ;;  %33 = vst [vmem:[#allocation2 + $0x3c] sm:$0xf] %v12261_v1  ;;  %v139_v11 = vld [vmem:[#allocation2 + $0xc] sm:$0x7]  ;;  %11752 = vmatprep.subr.msk.bf16.mxu1 %vm70_vm1, %v11759_v3 }
   0x9   :  { %34 = vst [vmem:[#allocation2 + $0x40] sm:$0xf] %v12261_v1  ;;  %6872 = vst [vmem:[#allocation2 + $0x20] sm:$0xf] %v12261_v1  ;;  %v202_v12 = vld [vmem:[#allocation2 + $0x1c] sm:$0x7] }
   0xa   :  { %6873 = vst [vmem:[#allocation2 + $0x24] sm:$0x3] %v12261_v1  ;;  %6905 = vst [vmem:[#allocation2 + $0x24] sm:$0xc] %v12261_v1  ;;  %v133_v26 = vld [vmem:[#allocation2 + $0x8] sm:$0x8] }
   0xb   :  { %6906 = vst [vmem:[#allocation2 + $0x28] sm:$0xf] %v12261_v1  ;;  %6907 = vst [vmem:[#allocation2 + $0x2c] sm:$0xf] %v12261_v1  ;;  %9919 = vmatpush3.bf16.msra.mxu1 %v72_v7  ;;  %v199_v27 = vld [vmem:[#allocation2 + $0x18] sm:$0x8] }
   0xc   :  { %6908 = vst [vmem:[#allocation2 + $0x30] sm:$0xf] %v12261_v1  ;;  %6909 = vst [vmem:[#allocation2 + $0x38] sm:$0x8] %v12261_v1  ;;  %vm124_vm8 = vcmask 1043457   ;;  %v12262_v31 = vmov 0.0  }
   0xd   :  { %6910 = vst [vmem:[#allocation2 + $0x3c] sm:$0xf] %v12261_v1  ;;  %6911 = vst [vmem:[#allocation2 + $0x40] sm:$0xf] %v12261_v1  ;;  %vm125_vm9 = vsmask.f32 7942  ;;  %9924 = vmatprep.subr.bf16.mxu1 %v12262_v31 }
   0xe   :  { %vm12333_vm4 = vmand %vm15165_vm2, %vm137_vm0  ;;  %9921 = vmatmul.mubr.msk.bf16.vlgmr.msra.gmra.mrb[0].mxu1 %vm63_vm3, %v47_v15  ;;  %v127_v33 = vld [vmem:[#allocation2] sm:$0xe]  ;;  %v11762_v36 = vld [vmem:[%s15159_s1 + $0xa4] sm:$0xff]   ;;  %vm149_vm11 = vcmask 519168   ;;  %vm152_vm12 = vsmask.f32 3328 }
   0xf   :  { %v140_v13 = vsel %vm12333_vm4, 0, %v139_v11  ;;  %v203_v14 = vsel %vm12333_vm4, 0, %v202_v12  ;;  %vm12366_vm7 = vmand %vm130_vm5, %vm131_vm6  ;;  %9925 = vmatpush3.bf16.msra.mxu1 %v11760_v30  ;;  %v11761_v34 = vld [vmem:[%s15159_s1 + $0x9c] sm:$0xff]   ;;  %v196_v37 = vld [vmem:[#allocation2 + $0x10] sm:$0xe]  ;;  %vm12264_vm15 = vmmov 0  }
  0x10   :  { %141 = vst [vmem:[#allocation2 + $0xc] sm:$0x7] %v140_v13  ;;  %204 = vst [vmem:[#allocation2 + $0x1c] sm:$0x7] %v203_v14  ;;  %v134_v28 = vsel %vm12366_vm7, 0, %v133_v26  ;;  %v200_v29 = vsel %vm12366_vm7, 0, %v199_v27  ;;  %9926 = vmatprep.subr.bf16.mxu1 %v12262_v31  ;;  %9940 = vmatprep.mubr.msk.bf16.mxu1 %vm12264_vm15, %v12262_v31 }
  0x11   :  { %135 = vst [vmem:[#allocation2 + $0x8] sm:$0x8] %v134_v28  ;;  %201 = vst [vmem:[#allocation2 + $0x18] sm:$0x8] %v200_v29  ;;  %v11763_v39 = vld [vmem:[%s15159_s1 + $0xac] sm:$0xff]   ;;  %v11764_v43 = vld [vmem:[%s15159_s1 + $0xb4] sm:$0xff]  }
  0x12   :  { %vm12378_vm10 = vmand %vm124_vm8, %vm125_vm9  ;;  %vm153_vm13 = vsmask.f32 7440  ;;  %v11765_v60 = vld [vmem:[%s15159_s1 + $0xbc] sm:$0xff]   ;;  %v11766_v8 = vld [vmem:[%s15159_s1 + $0xc4] sm:$0xff]   ;;  %vm15164_vm3 = vcmask 1043971   ;;  %vm188_vm5 = vcmask 1043968  }
  0x13   :  { %v128_v35 = vsel %vm12378_vm10, 0, %v127_v33  ;;  %9927 = vmatpush3.bf16.msra.mxu1 %v11761_v34  ;;  %v197_v38 = vsel %vm12378_vm10, 0, %v196_v37  ;;  %vm12413_vm14 = vmor %vm152_vm12, %vm153_vm13  ;;  %v11767_v13 = vld [vmem:[%s15159_s1 + $0xcc] sm:$0xff]   ;;  %vm3721_vm9 = vsmask.f32 7938  ;;  %v11969_v25 = vld [vmem:[%s15159_s1 + $0x234] sm:$0xff]  }
  0x14   :  { %129 = vst [vmem:[#allocation2] sm:$0xe] %v128_v35  ;;  %9928 = vmatprep.subr.bf16.mxu1 %v12262_v31  ;;  %198 = vst [vmem:[#allocation2 + $0x10] sm:$0xe] %v197_v38  ;;  %vm647_vm13 = vsmask.f32 7424 }
  0x15   :  { %vm12439_vm0 = vmand %vm70_vm1, %vm152_vm12 }
  0x16   :  { %vm12459_vm8 = vmand %vm188_vm5, %vm152_vm12  ;;  %vm474_vm12 = vsmask.f32 6400 }
  0x17   :  { %v12351_v16 = vld [vmem:[#allocation2 + $0xc] sm:$0xf]  ;;  %v12355_v18 = vld [vmem:[#allocation2 + $0x1c] sm:$0x1]  ;;  %9929 = vmatpush3.bf16.msra.mxu1 %v11762_v36 }
  0x18   :  { %v12353_v17 = vld [vmem:[#allocation2 + $0xc] sm:$0xf]  ;;  %v12357_v19 = vld [vmem:[#allocation2 + $0x1c] sm:$0x3]  ;;  %9930 = vmatprep.subr.bf16.mxu1 %v12262_v31 }
  0x19   :  { %v12359_v20 = vld [vmem:[#allocation2 + $0x1c] sm:$0x7]  ;;  %v1464_v21 = vld [vmem:[#allocation2 + $0xc] sm:$0x7] }
  0x1a   :  { %v1465_v22 = vsel %vm12333_vm4, 0, %v1464_v21  ;;  %v1479_v23 = vld [vmem:[#allocation2 + $0x1c] sm:$0x7] }
  0x1b   :  { %1466 = vst [vmem:[#allocation2 + $0xc] sm:$0x7] %v1465_v22  ;;  %v1480_v24 = vsel %vm12333_vm4, 0, %v1479_v23  ;;  %9931 = vmatpush3.bf16.msra.mxu1 %v11763_v39  ;;  %vm12451_vm4 = vmand %vm15164_vm3, %vm131_vm6  ;;  %v185_v28 = vld [vmem:[#allocation2] sm:$0x8]  ;;  %vm2595_vm3 = vcmask 1046528  }
  0x1c   :  { %1481 = vst [vmem:[#allocation2 + $0x1c] sm:$0x7] %v1480_v24  ;;  %9932 = vmatprep.subr.bf16.mxu1 %v12262_v31  ;;  %v242_v38 = vld [vmem:[#allocation2 + $0x10] sm:$0x8]  ;;  %vm326_vm6 = vsmask.f32 4352 }
  0x1f   :  { %9933 = vmatpush3.bf16.msra.mxu1 %v11764_v43 }
  0x20   :  { %9934 = vmatprep.subr.bf16.mxu1 %v12262_v31 }
  0x22   :  { %v3730_v22 = vld [vmem:[#allocation2 + $0xc] sm:$0xf] }
  0x23   :  { %9935 = vmatpush3.bf16.msra.mxu1 %v11765_v60  ;;  %v3731_v23 = vsel %vm12439_vm0, 0, %v3730_v22  ;;  %v12445_v24 = vld [vmem:[#allocation2 + $0xc] sm:$0xf] }
  0x24   :  { %9936 = vmatprep.subr.bf16.mxu1 %v12262_v31  ;;  %v12447_v26 = vld [vmem:[#allocation2 + $0xc] sm:$0xf] }
  0x25   :  { %3732 = vst [vmem:[#allocation2 + $0xc] sm:$0xf] %v3731_v23 }
  0x27   :  { %9937 = vmatpush3.bf16.msra.mxu1 %v11766_v8  ;;  %v11769_v8 = vld [vmem:[%s15159_s1 + $0x14] sm:$0xff]  }
  0x28   :  { %9938 = vmatprep.subr.bf16.mxu1 %v12262_v31 }
  0x2b   :  { %9939 = vmatpush3.bf16.msra.mxu1 %v11767_v13 }
  0x2c   :  { %9952 = vmatprep.subr.bf16.mxu1 %v12262_v31 }
  0xe1   :  { %v9922_v40 = vpop.f32.mrb[0].mxu1 }
  0xe2   :  { %v9305_v41 = vpack.c.bf16 %v9922_v40, %v9922_v40  ;;  %v108_v42 = vpop.f32.mrb[1].mxu1 }
  0xe3   :  { %v9303_v44 = vpack.c.bf16 %v108_v42, %v108_v42  ;;  %v9923_v45 = vpop.f32.mrb[2].mxu1 }
  0xe4   :  { %v218_v46 = vshrl.u32 %v9305_v41, 16  ;;  %v9306_v47 = vpack.c.bf16 %v9923_v45, %v9923_v45  ;;  %v111_v48 = vpop.f32.mrb[3].mxu1  ;;  %v215_v49 = vshll.u32 %v9305_v41, 16  ;;  %212 = vst.msk [vmem:[#allocation2 + $0x14] sm:$0xf] %vm149_vm11, %v9305_v41 }
  0xe5   :  { %v159_v50 = vshrl.u32 %v9303_v44, 16  ;;  %v9304_v51 = vpack.c.bf16 %v111_v48, %v111_v48  ;;  %v156_v52 = vshll.u32 %v9303_v44, 16  ;;  %150 = vst.msk [vmem:[#allocation2 + $0x4] sm:$0xf] %vm149_vm11, %v9303_v44 }
  0xe6   :  { %v220_v53 = vrot.slane %v218_v46, 4  ;;  %v224_v54 = vshll.u32 %v9306_v47, 16  ;;  %v217_v55 = vrot.slane %v215_v49, 5  ;;  %213 = vst.msk [vmem:[#allocation2 + $0x18] sm:$0xf] %vm149_vm11, %v9306_v47  ;;  %v228_v61 = vshrl.u32 %v9306_v47, 16 }
  0xe7   :  { %v165_v56 = vshll.u32 %v9304_v51, 16  ;;  %v169_v57 = vshrl.u32 %v9304_v51, 16  ;;  %v158_v58 = vrot.slane %v156_v52, 5  ;;  %v161_v59 = vrot.slane %v159_v50, 4  ;;  %151 = vst.msk [vmem:[#allocation2 + $0x8] sm:$0xf] %vm149_vm11, %v9304_v51 }
  0xe8   :  { %v221_v62 = vor.u32 %v220_v53, %v217_v55  ;;  %v226_v4 = vrot.slane %v224_v54, 5  ;;  %v230_v9 = vrot.slane %v228_v61, 4 }
  0xe9   :  { %v171_v63 = vrot.slane %v169_v57, 4  ;;  %174 = vrot.lane.b32.xlu0 %v158_v58, %s12263_s14  ;;  %v162_v0 = vor.u32 %v161_v59, %v158_v58  ;;  %v167_v3 = vrot.slane %v165_v56, 5 }
  0xea   :  { %v222_v5 = vrot.slane %v221_v62, 4  ;;  %v231_v14 = vor.u32 %v230_v9, %v226_v4 }
  0xeb   :  { %v163_v6 = vrot.slane %v162_v0, 4  ;;  %v172_v7 = vor.u32 %v171_v63, %v167_v3 }
  0xec   :  { %v227_v10 = vsel %vm12413_vm14, %v222_v5, %v226_v4  ;;  %v232_v15 = vrot.slane %v231_v14, 4  ;;  %v11770_v14 = vld [vmem:[%s15159_s1 + $0x1c] sm:$0xff]  }
  0xed   :  { %v168_v11 = vsel %vm12413_vm14, %v163_v6, %v167_v3  ;;  %v173_v12 = vrot.slane %v172_v7, 4  ;;  %v246_v47 = vld [vmem:[#allocation2 + $0x18] sm:$0xf] }
  0xee   :  { %176 = vrot.lane.b32.xlu1 %v168_v11, %s12263_s14  ;;  %v192_v36 = vld [vmem:[#allocation2 + $0x8] sm:$0xf] }
  0xef   :  { %178 = vrot.lane.b32.xlu0 %v173_v12, %s12263_s14 }
  0xf2   :  { %233 = vrot.lane.b32.xlu1 %v217_v55, %s12263_s14 }
  0xf3   :  { %235 = vrot.lane.b32.xlu0 %v227_v10, %s12263_s14 }
  0xf6   :  { %237 = vrot.lane.b32.xlu1 %v232_v15, %s12263_s14 }
 0x15b   :  { %v175_v29 = vpop.permute.xlu0 %174 }
 0x15c   :  { %v186_v30 = vsel %vm12451_vm4, %v175_v29, %v185_v28 }
 0x15d   :  { %187 = vst [vmem:[#allocation2] sm:$0x8] %v186_v30 }
 0x160   :  { %v177_v34 = vpop.permute.xlu1 %176 }
 0x161   :  { %189 = vst.msk [vmem:[#allocation2 + $0x4] sm:$0xf] %vm188_vm5, %v177_v34  ;;  %v179_v35 = vpop.permute.xlu0 %178  ;;  %v11771_v34 = vld [vmem:[%s15159_s1 + $0x24] sm:$0xff]  }
 0x162   :  { %v193_v37 = vsel %vm12459_vm8, %v179_v35, %v192_v36 }
 0x163   :  { %194 = vst [vmem:[#allocation2 + $0x8] sm:$0xf] %v193_v37 }
 0x164   :  { %v12466_v39 = vld [vmem:[#allocation2] sm:$0xe]  ;;  %v234_v42 = vpop.permute.xlu1 %233 }
 0x165   :  { %v12468_v40 = vld [vmem:[#allocation2] sm:$0xc]  ;;  %v243_v44 = vsel %vm12451_vm4, %v234_v42, %v242_v38  ;;  %v236_v45 = vpop.permute.xlu0 %235 }
 0x166   :  { %v1461_v41 = vld [vmem:[#allocation2] sm:$0xe]  ;;  %244 = vst [vmem:[#allocation2 + $0x10] sm:$0x8] %v243_v44  ;;  %245 = vst.msk [vmem:[#allocation2 + $0x14] sm:$0xf] %vm188_vm5, %v236_v45 }
 0x167   :  { %v1462_v43 = vsel %vm12378_vm10, 0, %v1461_v41  ;;  %v306_v46 = vld [vmem:[#allocation2] sm:$0x8] }
 0x168   :  { %1463 = vst [vmem:[#allocation2] sm:$0xe] %v1462_v43  ;;  %v238_v48 = vpop.permute.xlu1 %237  ;;  %v12475_v49 = vld [vmem:[#allocation2 + $0x4] sm:$0xf] }
 0x169   :  { %v247_v50 = vsel %vm12459_vm8, %v238_v48, %v246_v47  ;;  %v8731_v51 = vcombine.low %v306_v46, %v12475_v49 }
 0x16a   :  { %248 = vst [vmem:[#allocation2 + $0x18] sm:$0xf] %v247_v50  ;;  %v267_v52 = vld [vmem:[#allocation2 + $0x8] sm:$0xf] }
 0x16b   :  { %v8732_v53 = vcombine.low %v267_v52, %v12351_v16  ;;  %v328_v54 = vshrl.u32 %v8731_v51, 16  ;;  %v331_v55 = vshll.u32 %v8731_v51, 16 }
 0x16d   :  { %v269_v56 = vld [vmem:[#allocation2 + $0x10] sm:$0xf]  ;;  %v270_v60 = vld [vmem:[#allocation2 + $0x14] sm:$0xf]  ;;  %v12483_v61 = vshrl.u32 %v8732_v53, 16  ;;  %v330_v62 = vrot.slane %v328_v54, 3 }
 0x16e   :  { %v625_v57 = vld [vmem:[#allocation2 + $0x10] sm:$0xf]  ;;  %v333_v63 = vrot.slane %v331_v55, 4  ;;  %v12485_v0 = vshll.u32 %v8732_v53, 16  ;;  %v8733_v3 = vcombine.low %v269_v56, %v270_v60  ;;  %v11774_v56 = vld [vmem:[%s15159_s1 + $0x34] sm:$0xff]  }
 0x16f   :  { %v1476_v58 = vld [vmem:[#allocation2 + $0x10] sm:$0xe]  ;;  %v338_v4 = vrot.slane %v12483_v61, 3  ;;  %v8754_v35 = vcombine.low %v12353_v17, %v625_v57  ;;  %v797_v36 = vrot.slane %v12483_v61, 2  ;;  %v12553_v60 = vld [vmem:[#allocation2] sm:$0xc] }
 0x170   :  { %v1477_v59 = vsel %vm12378_vm10, 0, %v1476_v58  ;;  %v341_v16 = vrot.slane %v12485_v0, 4  ;;  %v12489_v5 = vshrl.u32 %v8733_v3, 16  ;;  %v12491_v6 = vshll.u32 %v8733_v3, 16  ;;  %vm12505_vm10 = vmand %vm70_vm1, %vm3721_vm9  ;;  %v11772_v17 = vld [vmem:[%s15159_s1 + $0x2c] sm:$0xff]  }
 0x171   :  { %1478 = vst [vmem:[#allocation2 + $0x10] sm:$0xe] %v1477_v59  ;;  %v334_v32 = vor.u32 %v333_v63, %v330_v62  ;;  %v11773_v12 = vld [vmem:[#allocation2 + $0x18] ss:$0 sps:$4 sm:$0xff]   ;;  %v798_v38 = vrot.slane %v12485_v0, 3  ;;  %v12531_v48 = vshll.u32 %v8754_v35, 16 }
 0x172   :  { %v342_v7 = vor.u32 %v341_v16, %v338_v4  ;;  %v347_v10 = vrot.slane %v12489_v5, 3  ;;  %v350_v11 = vrot.slane %v12491_v6, 4  ;;  %v354_v28 = vshrl.u32 %v11773_v12, 16  ;;  %v11789_v45 = vld [vmem:[#allocation2 + $0x14] sm:$0xff]   ;;  %v3723_v59 = vld [vmem:[#allocation2] sm:$0xf] }
 0x173   :  { %v357_v29 = vshll.u32 %v11773_v12, 16  ;;  %v801_v41 = vrot.slane %v12489_v5, 2  ;;  %v802_v46 = vrot.slane %v12491_v6, 3  ;;  %v12524_v47 = vor.u32 %v798_v38, %v797_v36  ;;  %v12560_v16 = vld [vmem:[#allocation2] sm:$0xe]  ;;  %v11777_v38 = vld [vmem:[%s15159_s1 + $0x4c] sm:$0xff]  }
 0x174   :  { %v343_v9 = vsel %vm326_vm6, %v334_v32, %v342_v7  ;;  %v351_v23 = vor.u32 %v350_v11, %v347_v10  ;;  %v356_v43 = vrot.slane %v354_v28, 3  ;;  %v12533_v50 = vshrl.u32 %v8754_v35, 16  ;;  %v12562_v32 = vld [vmem:[#allocation2] sm:$0x8] }
 0x175   :  { %9941 = vmatmul.mubr.bf16.vlgmr.msra.gmra.mrb[4].mxu1 %v343_v9  ;;  %v359_v44 = vrot.slane %v357_v29, 4  ;;  %v12535_v51 = vor.u32 %v802_v46, %v801_v41  ;;  %vm788_vm1 = vsmask.f32 5376  ;;  %v12538_v53 = vshll.u32 %v11789_v45, 16 }
 0x176   :  { %9953 = vmatpush3.bf16.msra.mxu1 %v11769_v8  ;;  %9944 = vmatprep.mubr.msk.bf16.mxu1 %vm12264_vm15, %v12262_v31  ;;  %v352_v42 = vsel %vm326_vm6, %v342_v7, %v351_v23  ;;  %v12540_v54 = vshrl.u32 %v11789_v45, 16  ;;  %v1111_v57 = vrot.slane %v12533_v50, 2  ;;  %v1112_v58 = vrot.slane %v12531_v48, 3  ;;  %v11775_v7 = vld [vmem:[%s15159_s1 + $0x3c] sm:$0xff]  }
 0x177   :  { %9954 = vmatprep.subr.bf16.mxu1 %v12262_v31  ;;  %v360_v52 = vor.u32 %v359_v44, %v356_v43  ;;  %v12545_v55 = vsel %vm788_vm1, %v12524_v47, %v12535_v51  ;;  %v1116_v4 = vrot.slane %v12538_v53, 3  ;;  %v8743_v8 = vcombine.low %v12466_v39, %v12475_v49 }
 0x178   :  { %v3777_v13 = vld [vmem:[#allocation2 + $0x10] sm:$0xf]  ;;  %v12556_v63 = vor.u32 %v1112_v58, %v1111_v57  ;;  %v1115_v3 = vrot.slane %v12540_v54, 2  ;;  %v3724_v11 = vsel %vm12505_vm10, 0, %v3723_v59  ;;  %v484_v35 = vrot.slane %v12485_v0, 2 }
 0x179   :  { %v3778_v22 = vsel %vm12505_vm10, 0, %v3777_v13  ;;  %v12512_v30 = vld [vmem:[#allocation2 + $0x10] sm:$0xf]  ;;  %v361_v62 = vsel %vm326_vm6, %v351_v23, %v360_v52  ;;  %3725 = vst [vmem:[#allocation2] sm:$0xf] %v3724_v11  ;;  %v479_v15 = vshll.u32 %v8743_v8, 16 }
 0x17a   :  { %9955 = vmatpush3.bf16.msra.mxu1 %v11770_v14  ;;  %v2411_v37 = vld [vmem:[#allocation2 + $0x10] sm:$0xf]  ;;  %v12571_v9 = vor.u32 %v1116_v4, %v1115_v3  ;;  %v476_v14 = vshrl.u32 %v8743_v8, 16  ;;  %v487_v45 = vrot.slane %v12489_v5, 1  ;;  %v488_v46 = vrot.slane %v12491_v6, 2  ;;  %v11779_v52 = vld [vmem:[%s15159_s1 + $0xdc] sm:$0xff]  }
 0x17b   :  { %9956 = vmatprep.subr.bf16.mxu1 %v12262_v31  ;;  %3779 = vst [vmem:[#allocation2 + $0x10] sm:$0xf] %v3778_v22  ;;  %v12574_v10 = vcombine.low %v12447_v26, %v2411_v37  ;;  %v11776_v26 = vld [vmem:[%s15159_s1 + $0x44] sm:$0xff]   ;;  %v11781_v3 = vld [vmem:[%s15159_s1 + $0xec] sm:$0xff]   ;;  %v11783_v8 = vld [vmem:[%s15159_s1 + $0xf4] sm:$0xff]   ;;  %vm1281_vm9 = vcmask 523264  }
 0x17c   :  { %v12582_v12 = vsel %vm788_vm1, %v12556_v63, %v12571_v9  ;;  %v478_v41 = vrot.slane %v476_v14, 1  ;;  %v11780_v5 = vld [vmem:[%s15159_s1 + $0xe4] sm:$0xff]   ;;  %vm1984_vm10 = vcmask 1045504  }
 0x17d   :  { %9945 = vmatmul.mubr.bf16.gmra.mrb[8].mxu1 %v352_v42  ;;  %v12585_v13 = vshll.u32 %v12574_v10, 16  ;;  %v12588_v39 = vshrl.u32 %v12574_v10, 16  ;;  %v481_v42 = vrot.slane %v479_v15, 2  ;;  %v622_v11 = vld [vmem:[#allocation2 + $0x4] sm:$0xf]  ;;  %v11784_v15 = vld [vmem:[%s15159_s1 + $0xfc] sm:$0xff]  }
 0x17e   :  { %9957 = vmatpush3.bf16.msra.mxu1 %v11771_v34  ;;  %9948 = vmatprep.mubr.msk.bf16.mxu1 %vm12264_vm15, %v12262_v31  ;;  %v483_v34 = vrot.slane %v12483_v61, 1  ;;  %v11778_v61 = vld [vmem:[%s15159_s1 + $0xd4] sm:$0xff]  }
 0x17f   :  { %9958 = vmatprep.subr.bf16.mxu1 %v12262_v31  ;;  %v3046_v22 = vrot.slane %v12585_v13, 3  ;;  %v3346_v23 = vrot.slane %v12585_v13, 4  ;;  %v3045_v28 = vrot.slane %v12588_v39, 2  ;;  %v3345_v29 = vrot.slane %v12588_v39, 3 }
 0x180   :  { %v485_v43 = vor.u32 %v484_v35, %v483_v34  ;;  %v482_v44 = vor.u32 %v481_v42, %v478_v41  ;;  %v11787_v41 = vld [vmem:[%s15159_s1 + $0x54] sm:$0xff]  }
 0x181   :  { %v12600_v36 = vor.u32 %v3046_v22, %v3045_v28  ;;  %v12602_v37 = vor.u32 %v3346_v23, %v3345_v29  ;;  %v11785_v23 = vld [vmem:[%s15159_s1 + $0x104] sm:$0xff]   ;;  %v11786_v29 = vld [vmem:[%s15159_s1 + $0x10c] sm:$0xff]  }
 0x182   :  { %9959 = vmatpush3.bf16.msra.mxu1 %v11772_v17  ;;  %v486_v0 = vsel %vm474_vm12, %v482_v44, %v485_v43  ;;  %v11782_v17 = vld [vmem:[#allocation2 + $0x18] ss:$0 sps:$4 sm:$0x33]  }
 0x183   :  { %9960 = vmatprep.subr.bf16.mxu1 %v12262_v31  ;;  %v492_v57 = vshrl.u32 %v11782_v17, 16  ;;  %v495_v58 = vshll.u32 %v11782_v17, 16 }
 0x185   :  { %9949 = vmatmul.mubr.bf16.gmra.mrb[12].mxu1 %v361_v62  ;;  %v494_v59 = vrot.slane %v492_v57, 1  ;;  %v497_v62 = vrot.slane %v495_v58, 2  ;;  %v11792_v57 = vld [vmem:[%s15159_s1 + $0x74] sm:$0xff]  }
 0x186   :  { %9961 = vmatpush3.bf16.msra.mxu1 %v11774_v56  ;;  %9968 = vmatprep.mubr.msk.bf16.mxu1 %vm12264_vm15, %v12262_v31  ;;  %v489_v56 = vor.u32 %v488_v46, %v487_v45  ;;  %v11790_v45 = vld [vmem:[%s15159_s1 + $0x64] sm:$0xff]  }
 0x187   :  { %9962 = vmatprep.subr.bf16.mxu1 %v12262_v31  ;;  %v498_v4 = vor.u32 %v497_v62, %v494_v59  ;;  %v11794_v59 = vld [vmem:[%s15159_s1 + $0x84] sm:$0xff]  }
 0x188   :  { %v490_v6 = vsel %vm474_vm12, %v485_v43, %v489_v56  ;;  %v11788_v43 = vld [vmem:[%s15159_s1 + $0x5c] sm:$0xff]  }
 0x18a   :  { %9963 = vmatpush3.bf16.msra.mxu1 %v11775_v7  ;;  %v12632_v7 = vld [vmem:[#allocation2 + $0x8] sm:$0xf] }
 0x18b   :  { %9964 = vmatprep.subr.bf16.mxu1 %v12262_v31  ;;  %v8753_v14 = vcombine.low %v622_v11, %v12632_v7 }
 0x18d   :  { %v651_v22 = vshll.u32 %v8753_v14, 16  ;;  %v649_v34 = vshrl.u32 %v8753_v14, 16  ;;  %v11800_v14 = vld [vmem:[#allocation2 + $0x18] ss:$0 sps:$4 sm:$0x77]  }
 0x18e   :  { %9965 = vmatpush3.bf16.msra.mxu1 %v11776_v26  ;;  %v499_v26 = vsel %vm474_vm12, %v489_v56, %v498_v4  ;;  %v11795_v4 = vld [vmem:[%s15159_s1 + $0x8c] sm:$0xff]  }
 0x18f   :  { %9966 = vmatprep.subr.bf16.mxu1 %v12262_v31  ;;  %v653_v28 = vrot.slane %v651_v22, 1  ;;  %v806_v22 = vshrl.u32 %v11800_v14, 16 }
 0x191   :  { %v654_v35 = vor.u32 %v653_v28, %v649_v34  ;;  %v11798_v28 = vld [vmem:[%s15159_s1 + $0x124] sm:$0xff]   ;;  %v11799_v34 = vld [vmem:[%s15159_s1 + $0x12c] sm:$0xff]  }
 0x192   :  { %9967 = vmatpush3.bf16.msra.mxu1 %v11777_v38  ;;  %v658_v38 = vrot.slane %v12531_v48, 1 }
 0x193   :  { %9980 = vmatprep.subr.bf16.mxu1 %v12262_v31 }
 0x194   :  { %v659_v42 = vsel %vm647_vm13, %v654_v35, %v658_v38  ;;  %v662_v44 = vor.u32 %v12533_v50, %v658_v38  ;;  %v11801_v38 = vld [vmem:[%s15159_s1 + $0x134] sm:$0xff]  }
 0x195   :  { %9969 = vmatmul.mubr.bf16.vlgmr.msra.gmra.mrb[4].mxu1 %v486_v0  ;;  %v8756_v0 = vcombine.low %v12355_v18, %v12355_v18 }
 0x196   :  { %9981 = vmatpush3.bf16.msra.mxu1 %v11778_v61  ;;  %9972 = vmatprep.mubr.msk.bf16.mxu1 %vm12264_vm15, %v12262_v31  ;;  %v666_v61 = vrot.slane %v12538_v53, 1 }
 0x197   :  { %9982 = vmatprep.subr.bf16.mxu1 %v12262_v31  ;;  %v672_v17 = vshll.u32 %v8756_v0, 16  ;;  %v952_v0 = vrot.slane %v12533_v50, 1  ;;  %v956_v50 = vrot.slane %v12540_v54, 1 }
 0x198   :  { %v667_v46 = vsel %vm647_vm13, %v662_v44, %v666_v61  ;;  %v670_v18 = vor.u32 %v12540_v54, %v666_v61  ;;  %v11803_v44 = vld [vmem:[%s15159_s1 + $0x144] sm:$0xff]  }
 0x199   :  { %v674_v56 = vrot.slane %v672_v17, 1 }
 0x19a   :  { %9983 = vmatpush3.bf16.msra.mxu1 %v11779_v52  ;;  %v11791_v52 = vld [vmem:[%s15159_s1 + $0x6c] sm:$0xff]  }
 0x19b   :  { %9984 = vmatprep.subr.bf16.mxu1 %v12262_v31  ;;  %v675_v58 = vsel %vm647_vm13, %v670_v18, %v674_v56 }
 0x19d   :  { %9973 = vmatmul.mubr.bf16.gmra.mrb[16].mxu1 %v490_v6  ;;  %v8765_v6 = vcombine.low %v12468_v40, %v12475_v49  ;;  %v11796_v49 = vld [vmem:[%s15159_s1 + $0x114] sm:$0xff]  }
 0x19e   :  { %9985 = vmatpush3.bf16.msra.mxu1 %v11780_v5  ;;  %9976 = vmatprep.mubr.msk.bf16.mxu1 %vm12264_vm15, %v12262_v31  ;;  %v11793_v5 = vld [vmem:[%s15159_s1 + $0x7c] sm:$0xff]  }
 0x19f   :  { %9986 = vmatprep.subr.bf16.mxu1 %v12262_v31  ;;  %v790_v62 = vshrl.u32 %v8765_v6, 16 }
 0x1a2   :  { %9987 = vmatpush3.bf16.msra.mxu1 %v11781_v3  ;;  %v793_v3 = vshll.u32 %v8765_v6, 16  ;;  %v11806_v6 = vld [vmem:[%s15159_s1 + $0x15c] sm:$0xff]  }
 0x1a3   :  { %9988 = vmatprep.subr.bf16.mxu1 %v12262_v31 }
 0x1a4   :  { %v795_v11 = vrot.slane %v793_v3, 3 }
 0x1a5   :  { %9977 = vmatmul.mubr.bf16.gmra.mrb[12].mxu1 %v499_v26 }
 0x1a6   :  { %9989 = vmatpush3.bf16.msra.mxu1 %v11783_v8  ;;  %9996 = vmatprep.mubr.msk.bf16.mxu1 %vm12264_vm15, %v12262_v31  ;;  %v792_v8 = vrot.slane %v790_v62, 2 }
 0x1a7   :  { %9990 = vmatprep.subr.bf16.mxu1 %v12262_v31 }
 0x1a8   :  { %v796_v40 = vor.u32 %v795_v11, %v792_v8  ;;  %v11808_v8 = vld [vmem:[%s15159_s1 + $0x16c] sm:$0xff]  }
 0x1aa   :  { %9991 = vmatpush3.bf16.msra.mxu1 %v11784_v15  ;;  %v800_v26 = vsel %vm788_vm1, %v796_v40, %v12524_v47  ;;  %v11797_v15 = vld [vmem:[%s15159_s1 + $0x11c] sm:$0xff]   ;;  %v808_v47 = vrot.slane %v806_v22, 2  ;;  %v11809_v40 = vld [vmem:[%s15159_s1 + $0x174] sm:$0xff]   ;;  %v11811_v22 = vld [vmem:[%s15159_s1 + $0x184] sm:$0xff]  }
 0x1ab   :  { %9992 = vmatprep.subr.bf16.mxu1 %v12262_v31 }
 0x1ae   :  { %9993 = vmatpush3.bf16.msra.mxu1 %v11785_v23  ;;  %v809_v23 = vshll.u32 %v11800_v14, 16  ;;  %v11810_v14 = vld [vmem:[%s15159_s1 + $0x17c] sm:$0xff]  }
 0x1af   :  { %9994 = vmatprep.subr.bf16.mxu1 %v12262_v31 }
 0x1b2   :  { %9995 = vmatpush3.bf16.msra.mxu1 %v11786_v29  ;;  %v811_v29 = vrot.slane %v809_v23, 3 }
 0x1b3   :  { %10008 = vmatprep.subr.bf16.mxu1 %v12262_v31 }
 0x1b4   :  { %v812_v35 = vor.u32 %v811_v29, %v808_v47  ;;  %v11812_v47 = vld [vmem:[%s15159_s1 + $0x18c] sm:$0xff]  }
 0x1b5   :  { %9997 = vmatmul.mubr.bf16.vlgmr.msra.gmra.mrb[4].mxu1 %v659_v42  ;;  %v11802_v42 = vld [vmem:[%s15159_s1 + $0x13c] sm:$0xff]  }
 0x1b6   :  { %10009 = vmatpush3.bf16.msra.mxu1 %v11787_v41  ;;  %10000 = vmatprep.mubr.msk.bf16.mxu1 %vm12264_vm15, %v12262_v31  ;;  %v936_v41 = vld [vmem:[#allocation2 + $0x4] sm:$0xe] }
 0x1b7   :  { %10010 = vmatprep.subr.bf16.mxu1 %v12262_v31 }
 0x1ba   :  { %10011 = vmatpush3.bf16.msra.mxu1 %v11788_v43  ;;  %v8775_v43 = vcombine.low %v936_v41, %v12632_v7 }
 0x1bb   :  { %10012 = vmatprep.subr.bf16.mxu1 %v12262_v31 }
 0x1bc   :  { %v948_v61 = vshll.u32 %v8775_v43, 16 }
 0x1bd   :  { %10001 = vmatmul.mubr.bf16.gmra.mrb[20].mxu1 %v667_v46  ;;  %v11804_v46 = vld [vmem:[%s15159_s1 + $0x14c] sm:$0xff]  }
 0x1be   :  { %10013 = vmatpush3.bf16.msra.mxu1 %v11790_v45  ;;  %10004 = vmatprep.mubr.msk.bf16.mxu1 %vm12264_vm15, %v12262_v31  ;;  %v953_v45 = vrot.slane %v12531_v48, 2 }
 0x1bf   :  { %10014 = vmatprep.subr.bf16.mxu1 %v12262_v31 }
 0x1c0   :  { %v954_v18 = vor.u32 %v953_v45, %v952_v0  ;;  %v11813_v45 = vld [vmem:[%s15161_s2] sm:$0xff]  }
 0x1c1   :  { %10092 = vmatprep.subr.bf16.mxu0 %v11813_v45 }
 0x1c2   :  { %10015 = vmatpush3.bf16.msra.mxu1 %v11791_v52  ;;  %v950_v52 = vrot.slane %v948_v61, 2  ;;  %10093 = vmatpush3.bf16.msra.mxu0 %v11813_v45  ;;  %v12856_v45 = vld [vmem:[#allocation2 + $0x1c] ss:$0 sps:$4 sm:$0xff]  }
 0x1c3   :  { %10016 = vmatprep.subr.bf16.mxu1 %v12262_v31 }
 0x1c5   :  { %10005 = vmatmul.mubr.bf16.gmra.mrb[12].mxu1 %v675_v58  ;;  %v957_v58 = vrot.slane %v12538_v53, 2  ;;  %v11807_v53 = vld [vmem:[%s15159_s1 + $0x164] sm:$0xff]  }
 0x1c6   :  { %10017 = vmatpush3.bf16.msra.mxu1 %v11792_v57  ;;  %10024 = vmatprep.mubr.msk.bf16.mxu1 %vm12264_vm15, %v12262_v31  ;;  %v11805_v57 = vld [vmem:[%s15159_s1 + $0x154] sm:$0xff]  }
 0x1c7   :  { %10018 = vmatprep.subr.bf16.mxu1 %v12262_v31 }
 0x1ca   :  { %10019 = vmatpush3.bf16.msra.mxu1 %v11793_v5  ;;  %v8776_v5 = vcombine.low %v12357_v19, %v12357_v19 }
 0x1cb   :  { %10020 = vmatprep.subr.bf16.mxu1 %v12262_v31 }
 0x1cc   :  { %v961_v62 = vshrl.u32 %v8776_v5, 16  ;;  %v964_v3 = vshll.u32 %v8776_v5, 16 }
 0x1ce   :  { %10021 = vmatpush3.bf16.msra.mxu1 %v11794_v59  ;;  %v958_v59 = vor.u32 %v957_v58, %v956_v50  ;;  %v963_v54 = vrot.slane %v961_v62, 1 }
 0x1cf   :  { %10022 = vmatprep.subr.bf16.mxu1 %v12262_v31 }
 0x1d0   :  { %v959_v19 = vsel %vm474_vm12, %v954_v18, %v958_v59 }
 0x1d2   :  { %10023 = vmatpush3.bf16.msra.mxu1 %v11795_v4  ;;  %v966_v4 = vrot.slane %v964_v3, 2 }
 0x1d3   :  { %10036 = vmatprep.subr.bf16.mxu1 %v12262_v31 }
 0x1d4   :  { %v967_v11 = vor.u32 %v966_v4, %v963_v54 }
 0x1d5   :  { %10025 = vmatmul.mubr.bf16.vlgmr.msra.gmra.mrb[4].mxu1 %v800_v26  ;;  %v1095_v26 = vld [vmem:[#allocation2 + $0x4] sm:$0xc] }
 0x1d6   :  { %10037 = vmatpush3.bf16.msra.mxu1 %v11796_v49  ;;  %10028 = vmatprep.mubr.msk.bf16.mxu1 %vm12264_vm15, %v12262_v31  ;;  %v968_v49 = vsel %vm474_vm12, %v958_v59, %v967_v11 }
 0x1d7   :  { %10038 = vmatprep.subr.bf16.mxu1 %v12262_v31 }
 0x1da   :  { %10039 = vmatpush3.bf16.msra.mxu1 %v11797_v15  ;;  %v8785_v15 = vcombine.low %v1095_v26, %v12632_v7 }
 0x1db   :  { %10040 = vmatprep.subr.bf16.mxu1 %v12262_v31 }
 0x1dc   :  { %v1104_v23 = vshrl.u32 %v8785_v15, 16 }
 0x1dd   :  { %10029 = vmatmul.mubr.bf16.gmra.mrb[24].mxu1 %v12545_v55  ;;  %v813_v55 = vsel %vm788_vm1, %v12535_v51, %v812_v35  ;;  %v945_v51 = vshrl.u32 %v8775_v43, 16 }
 0x1de   :  { %10041 = vmatpush3.bf16.msra.mxu1 %v11798_v28  ;;  %10032 = vmatprep.mubr.msk.bf16.mxu1 %vm12264_vm15, %v12262_v31  ;;  %v1107_v28 = vshll.u32 %v8785_v15, 16  ;;  %v1106_v29 = vrot.slane %v1104_v23, 2 }
 0x1df   :  { %10042 = vmatprep.subr.bf16.mxu1 %v12262_v31  ;;  %v947_v17 = vrot.slane %v945_v51, 1 }
 0x1e1   :  { %v951_v56 = vor.u32 %v950_v52, %v947_v17 }
 0x1e2   :  { %10043 = vmatpush3.bf16.msra.mxu1 %v11799_v34  ;;  %v1109_v34 = vrot.slane %v1107_v28, 3 }
 0x1e3   :  { %10044 = vmatprep.subr.bf16.mxu1 %v12262_v31  ;;  %v955_v48 = vsel %vm474_vm12, %v951_v56, %v954_v18  ;;  %v11815_v18 = vld [vmem:[%s15161_s2 + $0x10] sm:$0xff]   ;;  %v11816_v56 = vld [vmem:[%s15161_s2 + $0x18] sm:$0xff]  }
 0x1e4   :  { %v1110_v7 = vor.u32 %v1109_v34, %v1106_v29 }
 0x1e5   :  { %10033 = vmatmul.mubr.bf16.gmra.mrb[12].mxu1 %v813_v55 }
 0x1e6   :  { %10045 = vmatpush3.bf16.msra.mxu1 %v11801_v38  ;;  %10052 = vmatprep.mubr.msk.bf16.mxu1 %vm12264_vm15, %v12262_v31  ;;  %v1114_v35 = vsel %vm788_vm1, %v1110_v7, %v12556_v63  ;;  %v8786_v38 = vcombine.low %v12359_v20, %v12359_v20 }
 0x1e7   :  { %10046 = vmatprep.subr.bf16.mxu1 %v12262_v31 }
 0x1e8   :  { %v1120_v55 = vshrl.u32 %v8786_v38, 16  ;;  %v1123_v41 = vshll.u32 %v8786_v38, 16  ;;  %v11819_v38 = vld [vmem:[%s15159_s1 + $0x1e4] sm:$0xff]  }
 0x1ea   :  { %10047 = vmatpush3.bf16.msra.mxu1 %v11802_v42  ;;  %v1122_v42 = vrot.slane %v1120_v55, 2  ;;  %v1125_v43 = vrot.slane %v1123_v41, 3  ;;  %v11820_v55 = vld [vmem:[%s15159_s1 + $0x1ec] sm:$0xff]   ;;  %v11821_v41 = vld [vmem:[%s15159_s1 + $0x1f4] sm:$0xff]  }
 0x1eb   :  { %10048 = vmatprep.subr.bf16.mxu1 %v12262_v31 }
 0x1ee   :  { %10049 = vmatpush3.bf16.msra.mxu1 %v11803_v44  ;;  %v1126_v44 = vor.u32 %v1125_v43, %v1122_v42  ;;  %v11822_v42 = vld [vmem:[%s15159_s1 + $0x1fc] sm:$0xff]   ;;  %v11823_v43 = vld [vmem:[%s15159_s1 + $0x204] sm:$0xff]  }
 0x1ef   :  { %10050 = vmatprep.subr.bf16.mxu1 %v12262_v31 }
 0x1f0   :  { %v1127_v63 = vsel %vm788_vm1, %v12571_v9, %v1126_v44  ;;  %v11814_v9 = vld [vmem:[%s15161_s2 + $0x8] sm:$0xff]  }
 0x1f1   :  { %10094 = vmatprep.subr.bf16.mxu0 %v11814_v9  ;;  %v11824_v44 = vld [vmem:[%s15159_s1 + $0x20c] sm:$0xff]  }
 0x1f2   :  { %10051 = vmatpush3.bf16.msra.mxu1 %v11804_v46  ;;  %10095 = vmatpush3.bf16.msra.mxu0 %v11814_v9 }
 0x1f3   :  { %10064 = vmatprep.subr.bf16.mxu1 %v12262_v31  ;;  %10096 = vmatprep.subr.bf16.mxu0 %v11815_v18 }
 0x1f5   :  { %10053 = vmatmul.mubr.bf16.vlgmr.msra.gmra.mrb[4].mxu1 %v955_v48 }
 0x1f6   :  { %10065 = vmatpush3.bf16.msra.mxu1 %v11805_v57  ;;  %10056 = vmatprep.mubr.msk.bf16.mxu1 %vm12264_vm15, %v12262_v31  ;;  %v11817_v57 = vld [vmem:[%s15159_s1 + $0x1d4] sm:$0xff]  }
 0x1f7   :  { %10066 = vmatprep.subr.bf16.mxu1 %v12262_v31  ;;  %10097 = vmatpush3.bf16.msra.mxu0 %v11815_v18 }
 0x1f8   :  { %10098 = vmatprep.subr.bf16.mxu0 %v11816_v56 }
 0x1fa   :  { %10067 = vmatpush3.bf16.msra.mxu1 %v11806_v6 }
 0x1fb   :  { %10068 = vmatprep.subr.bf16.mxu1 %v12262_v31  ;;  %10099 = vmatpush3.bf16.msra.mxu0 %v11816_v56 }
 0x1fc   :  { %10104 = vmatprep.subr.bf16.mxu0 %v11817_v57 }
 0x1fd   :  { %10057 = vmatmul.mubr.bf16.gmra.mrb[28].mxu1 %v959_v19 }
 0x1fe   :  { %10069 = vmatpush3.bf16.msra.mxu1 %v11807_v53  ;;  %10060 = vmatprep.mubr.msk.bf16.mxu1 %vm12264_vm15, %v12262_v31 }
 0x1ff   :  { %10070 = vmatprep.subr.bf16.mxu1 %v12262_v31 }
 0x202   :  { %10071 = vmatpush3.bf16.msra.mxu1 %v11808_v8 }
 0x203   :  { %10072 = vmatprep.subr.bf16.mxu1 %v12262_v31 }
 0x205   :  { %10061 = vmatmul.mubr.bf16.gmra.mrb[12].mxu1 %v968_v49 }
 0x206   :  { %10073 = vmatpush3.bf16.msra.mxu1 %v11809_v40  ;;  %10080 = vmatprep.mubr.msk.bf16.mxu1 %vm12264_vm15, %v12262_v31 }
 0x207   :  { %10074 = vmatprep.subr.bf16.mxu1 %v12262_v31 }
 0x20a   :  { %10075 = vmatpush3.bf16.msra.mxu1 %v11810_v14 }
 0x20b   :  { %10076 = vmatprep.subr.bf16.mxu1 %v12262_v31 }
 0x20e   :  { %10077 = vmatpush3.bf16.msra.mxu1 %v11811_v22 }
 0x20f   :  { %10078 = vmatprep.subr.bf16.mxu1 %v12262_v31 }
 0x212   :  { %10079 = vmatpush3.bf16.msra.mxu1 %v11812_v47 }
 0x213   :  { %10488 = vmatprep.subr.bf16.mxu1 %v12262_v31 }
 0x215   :  { %10081 = vmatmul.mubr.bf16.vlgmr.msra.gmra.mrb[4].mxu1 %v1114_v35  ;;  %v11818_v35 = vld [vmem:[%s15159_s1 + $0x1dc] sm:$0xff]  }
 0x216   :  { %10084 = vmatprep.mubr.msk.bf16.mxu1 %vm12264_vm15, %v12262_v31 }
 0x21d   :  { %10085 = vmatmul.mubr.bf16.gmra.mrb[32].mxu1 %v12582_v12 }
 0x21e   :  { %10088 = vmatprep.mubr.msk.bf16.mxu1 %vm12264_vm15, %v12262_v31 }
 0x225   :  { %10089 = vmatmul.mubr.bf16.gmra.mrb[12].mxu1 %v1127_v63  ;;  %v3783_v63 = vld [vmem:[#allocation2 + $0x1c] sm:$0xf] }
 0x226   :  { %10504 = vmatprep.mubr.msk.bf16.mxu1 %vm12264_vm15, %v12262_v31 }
 0x250   :  { %v455_v20 = vpop.f32.mrb[8].mxu1 }
 0x251   :  { %v9946_v51 = vpop.f32.mrb[9].mxu1  ;;  %v3784_v20 = vsel %vm12439_vm0, 0, %v3783_v63  ;;  %vm1868_vm0 = vcmask 1044480  }
 0x252   :  { %v457_v61 = vpop.f32.mrb[10].mxu1  ;;  %v12850_v51 = vld [vmem:[#allocation2 + $0x1c] ss:$0 sps:$4 sm:$0x11]  }
 0x253   :  { %v9947_v0 = vpop.f32.mrb[11].mxu1  ;;  %v12852_v61 = vld [vmem:[#allocation2 + $0x1c] ss:$0 sps:$4 sm:$0x33]  }
 0x254   :  { %v12854_v0 = vld [vmem:[#allocation2 + $0x1c] ss:$0 sps:$4 sm:$0x77]  }
 0x255   :  { %3785 = vst [vmem:[#allocation2 + $0x1c] sm:$0xf] %v3784_v20 }
 0x270   :  { %v593_v12 = vpop.f32.mrb[16].mxu1 }
 0x271   :  { %v9974_v46 = vpop.f32.mrb[17].mxu1  ;;  %v8795_v12 = vld [vmem:[%s15162_s3] ss:$0 sm:$0xff] }
 0x272   :  { %v595_v17 = vpop.f32.mrb[18].mxu1 }
 0x273   :  { %v9975_v52 = vpop.f32.mrb[19].mxu1 }
 0x290   :  { %v769_v48 = vpop.f32.mrb[20].mxu1 }
 0x291   :  { %v10002_v50 = vpop.f32.mrb[21].mxu1 }
 0x292   :  { %v771_v58 = vpop.f32.mrb[22].mxu1 }
 0x293   :  { %v10003_v5 = vpop.f32.mrb[23].mxu1 }
 0x2b0   :  { %v907_v6 = vpop.f32.mrb[24].mxu1 }
 0x2b1   :  { %v10030_v59 = vpop.f32.mrb[25].mxu1 }
 0x2b2   :  { %v909_v62 = vpop.f32.mrb[26].mxu1 }
 0x2b3   :  { %v10031_v3 = vpop.f32.mrb[27].mxu1 }
 0x2d0   :  { %v1062_v53 = vpop.f32.mrb[28].mxu1 }
 0x2d1   :  { %v10058_v19 = vpop.f32.mrb[29].mxu1 }
 0x2d2   :  { %v1064_v54 = vpop.f32.mrb[30].mxu1 }
 0x2d3   :  { %v10059_v4 = vpop.f32.mrb[31].mxu1  ;;  %v11825_v54 = vld [vmem:[%s15161_s2 + $0xa0] sm:$0xff]  }
 0x2d4   :  { %v11826_v4 = vld [vmem:[%s15161_s2 + $0xa8] sm:$0xff]  }
 0x2e8   :  { %v1213_v8 = vpop.f32.mrb[4].mxu1 }
 0x2e9   :  { %v10082_v11 = vpop.f32.mrb[5].mxu1 }
 0x2ea   :  { %v1216_v40 = vpop.f32.mrb[6].mxu1 }
 0x2eb   :  { %v1250_v49 = vpack.c.bf16 %v1216_v40, %v1213_v8  ;;  %v10083_v26 = vpop.f32.mrb[7].mxu1  ;;  %v11827_v8 = vld [vmem:[%s15161_s2 + $0xb0] sm:$0xff]  }
 0x2ed   :  { %10100 = vmatprep.mubr.msk.bf16.mxu0 %vm1281_vm9, %v1250_v49 }
 0x2f0   :  { %v1221_v14 = vpop.f32.mrb[32].mxu1 }
 0x2f1   :  { %v10086_v15 = vpop.f32.mrb[33].mxu1 }
 0x2f2   :  { %v1223_v22 = vpop.f32.mrb[34].mxu1  ;;  %v11828_v15 = vld [vmem:[%s15161_s2 + $0xb8] sm:$0xff]  }
 0x2f3   :  { %v10087_v23 = vpop.f32.mrb[35].mxu1 }
 0x2f8   :  { %v1227_v28 = vpop.f32.mrb[12].mxu1 }
 0x2f9   :  { %v10090_v47 = vpop.f32.mrb[13].mxu1 }
 0x2fa   :  { %v1230_v29 = vpop.f32.mrb[14].mxu1 }
 0x2fb   :  { %v1251_v34 = vpack.c.bf16 %v1230_v29, %v1227_v28  ;;  %v10091_v7 = vpop.f32.mrb[15].mxu1 }
 0x2fd   :  { %10101 = vmatmul.mubr.msk.bf16.vlgmr.msra.gmra.mrb[0].mxu0 %vm1281_vm9, %v1251_v34  ;;  %v11829_v34 = vld [vmem:[%s15161_s2 + $0xc0] sm:$0xff]  }
 0x2fe   :  { %10105 = vmatpush3.bf16.msra.mxu0 %v11817_v57 }
 0x2ff   :  { %10106 = vmatprep.subr.bf16.mxu0 %v11818_v35 }
 0x302   :  { %10107 = vmatpush3.bf16.msra.mxu0 %v11818_v35 }
 0x303   :  { %10108 = vmatprep.subr.bf16.mxu0 %v11819_v38 }
 0x306   :  { %10109 = vmatpush3.bf16.msra.mxu0 %v11819_v38 }
 0x307   :  { %10110 = vmatprep.subr.bf16.mxu0 %v11820_v55 }
 0x30a   :  { %10111 = vmatpush3.bf16.msra.mxu0 %v11820_v55  ;;  %v11830_v55 = vld [vmem:[%s15161_s2 + $0xc8] sm:$0xff]  }
 0x30b   :  { %10112 = vmatprep.subr.bf16.mxu0 %v11821_v41 }
 0x30e   :  { %10113 = vmatpush3.bf16.msra.mxu0 %v11821_v41 }
 0x30f   :  { %10114 = vmatprep.subr.bf16.mxu0 %v11822_v42 }
 0x312   :  { %10115 = vmatpush3.bf16.msra.mxu0 %v11822_v42 }
 0x313   :  { %10116 = vmatprep.subr.bf16.mxu0 %v11823_v43 }
 0x316   :  { %10117 = vmatpush3.bf16.msra.mxu0 %v11823_v43 }
 0x317   :  { %10118 = vmatprep.subr.bf16.mxu0 %v11824_v44 }
 0x31a   :  { %10119 = vmatpush3.bf16.msra.mxu0 %v11824_v44 }
 0x31b   :  { %10124 = vmatprep.subr.bf16.mxu0 %v12262_v31 }
 0x3d0   :  { %v10102_v46 = vpop.f32.mrb[0].mxu0 }
 0x3d1   :  { %v1331_v9 = vadd.f32 %v10102_v46, %v8795_v12  ;;  %v1322_v17 = vpop.f32.mrb[1].mxu0 }
 0x3d2   :  { %v1323_v52 = vadd.f32 %v8795_v12, %v1322_v17  ;;  %v10103_v18 = vpop.f32.mrb[2].mxu0 }
 0x3d3   :  { %v1339_v21 = vmax.f32 %v1331_v9, 0.0  ;;  %v1334_v56 = vadd.f32 %v10103_v18, %v8795_v12  ;;  %v1325_v57 = vpop.f32.mrb[3].mxu0 }
 0x3d4   :  { %v1337_v48 = vmax.f32 %v1323_v52, 0.0  ;;  %v1326_v50 = vadd.f32 %v8795_v12, %v1325_v57  ;;  %v11831_v52 = vld [vmem:[%s15161_s2 + $0xd0] sm:$0xff]  }
 0x3d5   :  { %v9309_v58 = vpack.c.bf16 %v1339_v21, %v1339_v21  ;;  %v1340_v5 = vmax.f32 %v1334_v56, 0.0 }
 0x3d6   :  { %v9307_v6 = vpack.c.bf16 %v1337_v48, %v1337_v48  ;;  %v1338_v59 = vmax.f32 %v1326_v50, 0.0 }
 0x3d7   :  { %1489 = vst [vmem:[#allocation2 + $0x14] sm:$0xf] %v9309_v58  ;;  %v1358_v62 = vpack.c.bf16 %v1340_v5, %v1339_v21  ;;  %v9310_v3 = vpack.c.bf16 %v1340_v5, %v1340_v5 }
 0x3d8   :  { %1474 = vst [vmem:[#allocation2 + $0x4] sm:$0xf] %v9307_v6  ;;  %v1357_v53 = vpack.c.bf16 %v1338_v59, %v1337_v48  ;;  %v9308_v19 = vpack.c.bf16 %v1338_v59, %v1338_v59 }
 0x3d9   :  { %1490 = vst [vmem:[#allocation2 + $0x18] sm:$0xf] %v9310_v3 }
 0x3da   :  { %1475 = vst [vmem:[#allocation2 + $0x8] sm:$0xf] %v9308_v19  ;;  %10120 = vmatprep.mubr.bf16.mxu0 %v1357_v53 }
 0x3db   :  { %10121 = vmatmul.mubr.bf16.vlgmr.msra.gmra.mrb[4].mxu0 %v1358_v62  ;;  %v11832_v62 = vld [vmem:[%s15161_s2 + $0xd8] sm:$0xff]  }
 0x3dc   :  { %10125 = vmatpush3.bf16.msra.mxu0 %v11825_v54  ;;  %10140 = vmatprep.mubr.msk.bf16.mxu0 %vm12264_vm15, %v12262_v31 }
 0x3dd   :  { %10126 = vmatprep.subr.bf16.mxu0 %v12262_v31 }
 0x3de   :  { %v12886_v23 = vld [vmem:[#allocation2 + $0x14] sm:$0xf] }
 0x3df   :  { %v12890_v47 = vld [vmem:[#allocation2 + $0x4] sm:$0xf]  ;;  %v12903_v35 = vcombine.low %v12512_v30, %v12886_v23 }
 0x3e0   :  { %10127 = vmatpush3.bf16.msra.mxu0 %v11826_v4  ;;  %v3780_v49 = vld [vmem:[#allocation2 + $0x18] sm:$0x8]  ;;  %v8815_v38 = vcombine.low %v12553_v60, %v12890_v47 }
 0x3e1   :  { %v12873_v11 = vld [vmem:[#allocation2 + $0x8] sm:$0xf]  ;;  %10128 = vmatprep.subr.bf16.mxu0 %v12262_v31  ;;  %v3781_v22 = vsel %vm12366_vm7, 0, %v3780_v49  ;;  %v12888_v28 = vld [vmem:[#allocation2 + $0x14] sm:$0xff]   ;;  %v1872_v43 = vrot.slane %v12903_v35, 3  ;;  %v12921_v63 = vshrl.u32 %v12903_v35, 16 }
 0x3e2   :  { %v12875_v40 = vld [vmem:[#allocation2 + $0x8] sm:$0xf]  ;;  %v12892_v29 = vld [vmem:[#allocation2 + $0x18] sm:$0xf]  ;;  %v12899_v7 = vcombine.low %v12873_v11, %v12445_v24  ;;  %v12924_v60 = vshll.u32 %v12903_v35, 16  ;;  %v1985_v12 = vrot.slane %v8815_v38, 2 }
 0x3e3   :  { %v3726_v26 = vld [vmem:[#allocation2 + $0x8] sm:$0x8]  ;;  %3782 = vst [vmem:[#allocation2 + $0x18] sm:$0x8] %v3781_v22  ;;  %v1988_v9 = vrot.slane %v12903_v35, 2  ;;  %v1567_v17 = vshrl.u32 %v8815_v38, 16 }
 0x3e4   :  { %v3727_v14 = vsel %vm12366_vm7, 0, %v3726_v26  ;;  %10129 = vmatpush3.bf16.msra.mxu0 %v11827_v8  ;;  %v12912_v41 = vshrl.u32 %v12899_v7, 16  ;;  %v1870_v42 = vrot.slane %v12899_v7, 3  ;;  %v12918_v44 = vshll.u32 %v12899_v7, 16  ;;  %v11834_v49 = vld [vmem:[%s15161_s2 + $0x20] sm:$0xff]  }
 0x3e5   :  { %3728 = vst [vmem:[#allocation2 + $0x8] sm:$0x8] %v3727_v14  ;;  %10130 = vmatprep.subr.bf16.mxu0 %v12262_v31  ;;  %v1986_v46 = vrot.slane %v12899_v7, 2  ;;  %v1570_v18 = vshll.u32 %v8815_v38, 16  ;;  %v2132_v50 = vrot.slane %v12921_v63, 3  ;;  %v2133_v6 = vrot.slane %v12924_v60, 4 }
 0x3e6   :  { %v12931_v20 = vsel %vm1868_vm0, %v1870_v42, %v1872_v43  ;;  %v2128_v57 = vrot.slane %v12912_v41, 3  ;;  %v2129_v48 = vrot.slane %v12918_v44, 4  ;;  %v1577_v58 = vrot.slane %v12912_v41, 2  ;;  %v11858_v7 = vld [vmem:[%s15161_s2 + $0x78] sm:$0xff]  }
 0x3e7   :  { %v12939_v21 = vsel %vm1984_vm10, %v1985_v12, %v1986_v46  ;;  %v12944_v56 = vsel %vm1984_vm10, %v1986_v46, %v1988_v9  ;;  %v1580_v5 = vrot.slane %v12918_v44, 3  ;;  %v1569_v3 = vrot.slane %v1567_v17, 2 }
 0x3e8   :  { %10131 = vmatpush3.bf16.msra.mxu0 %v11828_v15  ;;  %v12953_v59 = vor.u32 %v2129_v48, %v2128_v57  ;;  %v1572_v53 = vrot.slane %v1570_v18, 3  ;;  %v12958_v19 = vor.u32 %v2133_v6, %v2132_v50  ;;  %v12970_v26 = vshll.u32 %v12888_v28, 16  ;;  %v12976_v15 = vld [vmem:[#allocation2 + $0x18] ss:$0 sps:$4 sm:$0x77]   ;;  %v11837_v48 = vld [vmem:[%s15161_s2 + $0x30] sm:$0xff]  }
 0x3e9   :  { %10132 = vmatprep.subr.bf16.mxu0 %v12262_v31  ;;  %v1581_v54 = vor.u32 %v1580_v5, %v1577_v58  ;;  %v12973_v14 = vshrl.u32 %v12888_v28, 16  ;;  %v1586_v38 = vrot.slane %v12921_v63, 2  ;;  %v1593_v17 = vshrl.u32 %v12976_v15, 16 }
 0x3ea   :  { %v12964_v4 = vsel %vm326_vm6, %v12953_v59, %v12958_v19  ;;  %v1573_v8 = vor.u32 %v1572_v53, %v1569_v3  ;;  %v3050_v46 = vrot.slane %v12970_v26, 3  ;;  %v3350_v3 = vrot.slane %v12970_v26, 4  ;;  %v11838_v53 = vld [vmem:[%s15161_s2 + $0x38] sm:$0xff]  }
 0x3eb   :  { %v3049_v12 = vrot.slane %v12973_v14, 2  ;;  %v1595_v58 = vrot.slane %v1593_v17, 2 }
 0x3ec   :  { %10133 = vmatpush3.bf16.msra.mxu0 %v11829_v34  ;;  %v1582_v22 = vsel %vm788_vm1, %v1573_v8, %v1581_v54  ;;  %v11835_v34 = vld [vmem:[%s15161_s2 + $0x28] sm:$0xff]  }
 0x3ed   :  { %10134 = vmatprep.subr.bf16.mxu0 %v12262_v31  ;;  %v12991_v18 = vor.u32 %v3050_v46, %v3049_v12  ;;  %v11842_v12 = vld [vmem:[%s15161_s2 + $0x50] sm:$0xff]  }
 0x3ef   :  { %v12999_v50 = vsel %vm788_vm1, %v12600_v36, %v12991_v18 }
 0x3f0   :  { %10135 = vmatpush3.bf16.msra.mxu0 %v11830_v55  ;;  %v1589_v55 = vrot.slane %v12924_v60, 3 }
 0x3f1   :  { %10136 = vmatprep.subr.bf16.mxu0 %v12262_v31 }
 0x3f2   :  { %v1590_v57 = vor.u32 %v1589_v55, %v1586_v38  ;;  %v11841_v38 = vld [vmem:[%s15161_s2 + $0x48] sm:$0xff]   ;;  %v8827_v55 = vcombine.low %v12560_v16, %v12890_v47  ;;  %v11843_v16 = vld [vmem:[%s15161_s2 + $0x58] sm:$0xff]  }
 0x3f4   :  { %10137 = vmatpush3.bf16.msra.mxu0 %v11831_v52  ;;  %v1596_v52 = vshll.u32 %v12976_v15, 16  ;;  %v1591_v5 = vsel %vm788_vm1, %v1581_v54, %v1590_v57  ;;  %v1716_v46 = vshrl.u32 %v8827_v55, 16  ;;  %v1719_v17 = vshll.u32 %v8827_v55, 16  ;;  %v11847_v55 = vld [vmem:[%s15161_s2 + $0xf0] sm:$0xff]  }
 0x3f5   :  { %10138 = vmatprep.subr.bf16.mxu0 %v12262_v31 }
 0x3f6   :  { %v1598_v6 = vrot.slane %v1596_v52, 3  ;;  %v1723_v52 = vrot.slane %v12912_v41, 1 }
 0x3f8   :  { %10139 = vmatpush3.bf16.msra.mxu0 %v11832_v62  ;;  %v3349_v62 = vrot.slane %v12973_v14, 3 }
 0x3f9   :  { %10152 = vmatprep.subr.bf16.mxu0 %v12262_v31 }
 0x3fa   :  { %v13010_v8 = vor.u32 %v3350_v3, %v3349_v62  ;;  %v11845_v62 = vld [vmem:[%s15161_s2 + $0xe0] sm:$0xff]   ;;  %v11846_v3 = vld [vmem:[%s15161_s2 + $0xe8] sm:$0xff]  }
 0x3fb   :  { %10141 = vmatmul.mubr.bf16.vlgmr.msra.gmra.mrb[8].mxu0 %v1582_v22  ;;  %v11840_v22 = vld [vmem:[%s15161_s2 + $0x40] sm:$0xff]  }
 0x3fc   :  { %10153 = vmatpush3.bf16.msra.mxu0 %v11834_v49  ;;  %10144 = vmatprep.mubr.msk.bf16.mxu0 %vm12264_vm15, %v12262_v31  ;;  %v1599_v49 = vor.u32 %v1598_v6, %v1595_v58  ;;  %v13016_v54 = vsel %vm326_vm6, %v12602_v37, %v13010_v8  ;;  %v1721_v58 = vrot.slane %v1719_v17, 2 }
 0x3fd   :  { %10154 = vmatprep.subr.bf16.mxu0 %v12262_v31 }
 0x400   :  { %10155 = vmatpush3.bf16.msra.mxu0 %v11835_v34  ;;  %v1600_v34 = vsel %vm788_vm1, %v1590_v57, %v1599_v49  ;;  %v1724_v57 = vrot.slane %v12918_v44, 2  ;;  %v13046_v44 = vld [vmem:[#allocation2 + $0x18] ss:$0 sps:$4 sm:$0x33]   ;;  %v1728_v49 = vrot.slane %v12924_v60, 2 }
 0x401   :  { %10156 = vmatprep.subr.bf16.mxu0 %v12262_v31  ;;  %v11848_v60 = vld [vmem:[%s15161_s2 + $0xf8] sm:$0xff]  }
 0x403   :  { %10145 = vmatmul.mubr.bf16.gmra.mrb[12].mxu0 %v1591_v5  ;;  %v1725_v5 = vor.u32 %v1724_v57, %v1723_v52  ;;  %v11850_v52 = vld [vmem:[%s15161_s2 + $0x100] sm:$0xff]  }
 0x404   :  { %10157 = vmatpush3.bf16.msra.mxu0 %v11837_v48  ;;  %10148 = vmatprep.mubr.msk.bf16.mxu0 %vm12264_vm15, %v12262_v31  ;;  %v1718_v48 = vrot.slane %v1716_v46, 1 }
 0x405   :  { %10158 = vmatprep.subr.bf16.mxu0 %v12262_v31 }
 0x406   :  { %v1722_v6 = vor.u32 %v1721_v58, %v1718_v48  ;;  %v11852_v48 = vld [vmem:[%s15161_s2 + $0x110] sm:$0xff]   ;;  %v11853_v58 = vld [vmem:[%s15161_s2 + $0x118] sm:$0xff]  }
 0x408   :  { %10159 = vmatpush3.bf16.msra.mxu0 %v11838_v53  ;;  %v1726_v41 = vsel %vm474_vm12, %v1722_v6, %v1725_v5  ;;  %v1727_v53 = vrot.slane %v12921_v63, 1 }
 0x409   :  { %10160 = vmatprep.subr.bf16.mxu0 %v12262_v31 }
 0x40b   :  { %10149 = vmatmul.mubr.bf16.gmra.mrb[16].mxu0 %v1600_v34  ;;  %v1735_v34 = vshll.u32 %v13046_v44, 16 }
 0x40c   :  { %10161 = vmatpush3.bf16.msra.mxu0 %v11840_v22  ;;  %10168 = vmatprep.mubr.msk.bf16.mxu0 %vm12264_vm15, %v12262_v31  ;;  %v1732_v22 = vshrl.u32 %v13046_v44, 16 }
 0x40d   :  { %10162 = vmatprep.subr.bf16.mxu0 %v12262_v31  ;;  %v1737_v63 = vrot.slane %v1735_v34, 2  ;;  %v11864_v34 = vld [vmem:[%s15161_s2 + $0x128] sm:$0xff]  }
 0x40e   :  { %v1734_v46 = vrot.slane %v1732_v22, 1  ;;  %v11863_v22 = vld [vmem:[%s15161_s2 + $0x120] sm:$0xff]  }
 0x410   :  { %10163 = vmatpush3.bf16.msra.mxu0 %v11841_v38  ;;  %v1729_v38 = vor.u32 %v1728_v49, %v1727_v53  ;;  %v1738_v17 = vor.u32 %v1737_v63, %v1734_v46  ;;  %v11859_v53 = vld [vmem:[%s15161_s2 + $0x80] sm:$0xff]   ;;  %v11860_v49 = vld [vmem:[%s15161_s2 + $0x88] sm:$0xff]   ;;  %v11870_v63 = vld [vmem:[%s15161_s2 + $0x158] sm:$0xff]  }
 0x411   :  { %10164 = vmatprep.subr.bf16.mxu0 %v12262_v31  ;;  %v11868_v46 = vld [vmem:[%s15161_s2 + $0x148] sm:$0xff]  }
 0x412   :  { %v1739_v57 = vsel %vm474_vm12, %v1729_v38, %v1738_v17 }
 0x414   :  { %10165 = vmatpush3.bf16.msra.mxu0 %v11842_v12  ;;  %v1730_v12 = vsel %vm474_vm12, %v1725_v5, %v1729_v38  ;;  %v13089_v5 = vcombine.low %v12562_v32, %v12890_v47  ;;  %v11856_v32 = vld [vmem:[%s15161_s2 + $0x68] sm:$0xff]   ;;  %v11865_v38 = vld [vmem:[%s15161_s2 + $0x130] sm:$0xff]  }
 0x415   :  { %10166 = vmatprep.subr.bf16.mxu0 %v12262_v31 }
 0x416   :  { %v1869_v6 = vrot.slane %v13089_v5, 3  ;;  %v2121_v35 = vshrl.u32 %v13089_v5, 16 }
 0x418   :  { %10167 = vmatpush3.bf16.msra.mxu0 %v11843_v16  ;;  %v11851_v16 = vld [vmem:[%s15161_s2 + $0x108] sm:$0xff]  }
 0x419   :  { %10180 = vmatprep.subr.bf16.mxu0 %v12262_v31 }
 0x41b   :  { %10169 = vmatmul.mubr.bf16.vlgmr.msra.gmra.mrb[8].mxu0 %v1726_v41  ;;  %v1871_v41 = vsel %vm1868_vm0, %v1869_v6, %v1870_v42  ;;  %v1874_v42 = vrot.slane %v12976_v15, 3  ;;  %v11861_v15 = vld [vmem:[%s15161_s2 + $0x90] sm:$0xff]  }
 0x41c   :  { %10181 = vmatpush3.bf16.msra.mxu0 %v11845_v62  ;;  %10172 = vmatprep.mubr.msk.bf16.mxu0 %vm12264_vm15, %v12262_v31  ;;  %v11855_v62 = vld [vmem:[%s15161_s2 + $0x60] sm:$0xff]  }
 0x41d   :  { %10182 = vmatprep.subr.bf16.mxu0 %v12262_v31 }
 0x420   :  { %10183 = vmatpush3.bf16.msra.mxu0 %v11846_v3  ;;  %v11857_v3 = vld [vmem:[%s15161_s2 + $0x70] sm:$0xff]  }
 0x421   :  { %10184 = vmatprep.subr.bf16.mxu0 %v12262_v31 }
 0x423   :  { %10173 = vmatmul.mubr.bf16.gmra.mrb[12].mxu0 %v1730_v12  ;;  %v11867_v12 = vld [vmem:[%s15161_s2 + $0x140] sm:$0xff]  }
 0x424   :  { %10185 = vmatpush3.bf16.msra.mxu0 %v11847_v55  ;;  %10176 = vmatprep.mubr.msk.bf16.mxu0 %vm12264_vm15, %v12262_v31  ;;  %v1990_v55 = vrot.slane %v13046_v44, 2  ;;  %v11869_v44 = vld [vmem:[%s15161_s2 + $0x150] sm:$0xff]  }
 0x425   :  { %10186 = vmatprep.subr.bf16.mxu0 %v12262_v31 }
 0x428   :  { %10187 = vmatpush3.bf16.msra.mxu0 %v11848_v60  ;;  %v2123_v60 = vrot.slane %v2121_v35, 3 }
 0x429   :  { %10188 = vmatprep.subr.bf16.mxu0 %v12262_v31 }
 0x42b   :  { %10177 = vmatmul.mubr.bf16.gmra.mrb[16].mxu0 %v1739_v57  ;;  %v11871_v57 = vld [vmem:[%s15161_s2 + $0x160] sm:$0xff]  }
 0x42c   :  { %10189 = vmatpush3.bf16.msra.mxu0 %v11850_v52  ;;  %10196 = vmatprep.mubr.msk.bf16.mxu0 %vm12264_vm15, %v12262_v31 }
 0x42d   :  { %10190 = vmatprep.subr.bf16.mxu0 %v12262_v31 }
 0x430   :  { %10191 = vmatpush3.bf16.msra.mxu0 %v11851_v16 }
 0x431   :  { %10192 = vmatprep.subr.bf16.mxu0 %v12262_v31 }
 0x434   :  { %10193 = vmatpush3.bf16.msra.mxu0 %v11852_v48  ;;  %v8854_v48 = vcombine.low %v12892_v29, %v12892_v29 }
 0x435   :  { %10194 = vmatprep.subr.bf16.mxu0 %v12262_v31 }
 0x436   :  { %v2140_v6 = vshll.u32 %v8854_v48, 16 }
 0x438   :  { %10195 = vmatpush3.bf16.msra.mxu0 %v11853_v58  ;;  %v11872_v58 = vld [vmem:[%s15161_s2 + $0x168] sm:$0xff]  }
 0x439   :  { %10208 = vmatprep.subr.bf16.mxu0 %v12262_v31 }
 0x43b   :  { %10197 = vmatmul.mubr.bf16.vlgmr.msra.gmra.mrb[8].mxu0 %v1871_v41  ;;  %v2142_v41 = vrot.slane %v2140_v6, 4  ;;  %v11893_v6 = vld [vmem:[%s15161_s2 + $0x1f8] sm:$0xff]  }
 0x43c   :  { %10209 = vmatpush3.bf16.msra.mxu0 %v11855_v62  ;;  %10200 = vmatprep.mubr.msk.bf16.mxu0 %vm12264_vm15, %v12262_v31 }
 0x43d   :  { %10210 = vmatprep.subr.bf16.mxu0 %v12262_v31 }
 0x440   :  { %10211 = vmatpush3.bf16.msra.mxu0 %v11856_v32  ;;  %v11874_v32 = vld [vmem:[%s15161_s2 + $0x178] sm:$0xff]  }
 0x441   :  { %10212 = vmatprep.subr.bf16.mxu0 %v12262_v31 }
 0x443   :  { %10201 = vmatmul.mubr.bf16.gmra.mrb[12].mxu0 %v12931_v20  ;;  %v1875_v20 = vsel %vm1868_vm0, %v1872_v43, %v1874_v42  ;;  %v11862_v43 = vld [vmem:[%s15161_s2 + $0x98] sm:$0xff]   ;;  %v11877_v42 = vld [vmem:[%s15161_s2 + $0x188] sm:$0xff]  }
 0x444   :  { %10213 = vmatpush3.bf16.msra.mxu0 %v11857_v3  ;;  %10204 = vmatprep.mubr.msk.bf16.mxu0 %vm12264_vm15, %v12262_v31 }
 0x445   :  { %10214 = vmatprep.subr.bf16.mxu0 %v12262_v31 }
 0x448   :  { %10215 = vmatpush3.bf16.msra.mxu0 %v11858_v7  ;;  %v11876_v7 = vld [vmem:[%s15161_s2 + $0x180] sm:$0xff]  }
 0x449   :  { %10216 = vmatprep.subr.bf16.mxu0 %v12262_v31 }
 0x44b   :  { %10205 = vmatmul.mubr.bf16.gmra.mrb[16].mxu0 %v1875_v20  ;;  %v11880_v20 = vld [vmem:[%s15161_s2 + $0x1a0] sm:$0xff]  }
 0x44c   :  { %10217 = vmatpush3.bf16.msra.mxu0 %v11859_v53  ;;  %10224 = vmatprep.mubr.msk.bf16.mxu0 %vm12264_vm15, %v12262_v31  ;;  %v11878_v53 = vld [vmem:[%s15161_s2 + $0x190] sm:$0xff]  }
 0x44d   :  { %10218 = vmatprep.subr.bf16.mxu0 %v12262_v31 }
 0x450   :  { %10219 = vmatpush3.bf16.msra.mxu0 %v11860_v49  ;;  %v8863_v49 = vcombine.low %v12890_v47, %v12873_v11  ;;  %v8864_v11 = vcombine.low %v12445_v24, %v12512_v30  ;;  %v11883_v47 = vld [vmem:[%s15161_s2 + $0x1b8] sm:$0xff]   ;;  %v8865_v24 = vcombine.low %v12886_v23, %v12892_v29  ;;  %v2408_v30 = vld [vmem:[#allocation2 + $0x4] sm:$0xf] }
 0x451   :  { %10220 = vmatprep.subr.bf16.mxu0 %v12262_v31 }
 0x454   :  { %10221 = vmatpush3.bf16.msra.mxu0 %v11861_v15  ;;  %v11881_v15 = vld [vmem:[%s15161_s2 + $0x1a8] sm:$0xff]  }
 0x455   :  { %10222 = vmatprep.subr.bf16.mxu0 %v12262_v31 }
 0x458   :  { %10223 = vmatpush3.bf16.msra.mxu0 %v11862_v43  ;;  %v11882_v43 = vld [vmem:[%s15161_s2 + $0x1b0] sm:$0xff]  }
 0x459   :  { %10236 = vmatprep.subr.bf16.mxu0 %v12262_v31 }
 0x45b   :  { %10225 = vmatmul.mubr.bf16.vlgmr.msra.gmra.mrb[8].mxu0 %v12939_v21  ;;  %v11866_v21 = vld [vmem:[%s15161_s2 + $0x138] sm:$0xff]  }
 0x45c   :  { %10237 = vmatpush3.bf16.msra.mxu0 %v11863_v22  ;;  %10228 = vmatprep.mubr.msk.bf16.mxu0 %vm12264_vm15, %v12262_v31  ;;  %v11885_v22 = vld [vmem:[%s15161_s2 + $0x1c0] sm:$0xff]  }
 0x45d   :  { %10238 = vmatprep.subr.bf16.mxu0 %v12262_v31 }
 0x460   :  { %10239 = vmatpush3.bf16.msra.mxu0 %v11864_v34  ;;  %v8874_v34 = vcombine.low %v2408_v30, %v12875_v40  ;;  %v2601_v30 = vrot.slane %v12850_v51, 1 }
 0x461   :  { %10240 = vmatprep.subr.bf16.mxu0 %v12262_v31 }
 0x462   :  { %v2434_v35 = vshrl.u32 %v8874_v34, 16 }
 0x463   :  { %10229 = vmatmul.mubr.bf16.gmra.mrb[12].mxu0 %v12944_v56  ;;  %v1991_v56 = vsel %vm1984_vm10, %v1988_v9, %v1990_v55  ;;  %v2124_v9 = vshll.u32 %v13089_v5, 16  ;;  %v2137_v5 = vshrl.u32 %v8854_v48, 16  ;;  %v2436_v55 = vshll.u32 %v8874_v34, 16  ;;  %v11892_v48 = vld [vmem:[%s15161_s2 + $0x1f0] sm:$0xff]   ;;  %v11903_v34 = vld [vmem:[%s15161_s2 + $0x240] sm:$0xff]  }
 0x464   :  { %10241 = vmatpush3.bf16.msra.mxu0 %v11865_v38  ;;  %10232 = vmatprep.mubr.msk.bf16.mxu0 %vm12264_vm15, %v12262_v31  ;;  %v11886_v38 = vld [vmem:[%s15161_s2 + $0x1c8] sm:$0xff]  }
 0x465   :  { %10242 = vmatprep.subr.bf16.mxu0 %v12262_v31  ;;  %v2126_v17 = vrot.slane %v2124_v9, 4  ;;  %v2139_v62 = vrot.slane %v2137_v5, 3  ;;  %v2457_v5 = vshll.u32 %v12850_v51, 16 }
 0x467   :  { %v2127_v52 = vor.u32 %v2126_v17, %v2123_v60  ;;  %v2143_v3 = vor.u32 %v2142_v41, %v2139_v62  ;;  %v11889_v60 = vld [vmem:[%s15161_s2 + $0x1e0] sm:$0xff]   ;;  %v2459_v62 = vrot.slane %v2457_v5, 1  ;;  %v2754_v5 = vshrl.u32 %v12852_v61, 16 }
 0x468   :  { %10243 = vmatpush3.bf16.msra.mxu0 %v11866_v21  ;;  %v11895_v41 = vld [vmem:[%s15161_s2 + $0x200] sm:$0xff]  }
 0x469   :  { %10244 = vmatprep.subr.bf16.mxu0 %v12262_v31  ;;  %v2131_v16 = vsel %vm326_vm6, %v2127_v52, %v12953_v59  ;;  %v11873_v59 = vld [vmem:[%s15161_s2 + $0x170] sm:$0xff]   ;;  %v11890_v52 = vld [vmem:[%s15161_s2 + $0x1e8] sm:$0xff]  }
 0x46b   :  { %10233 = vmatmul.mubr.bf16.gmra.mrb[16].mxu0 %v1991_v56 }
 0x46c   :  { %10245 = vmatpush3.bf16.msra.mxu0 %v11867_v12  ;;  %10252 = vmatprep.mubr.msk.bf16.mxu0 %vm12264_vm15, %v12262_v31  ;;  %v11887_v12 = vld [vmem:[%s15161_s2 + $0x1d0] sm:$0xff]  }
 0x46d   :  { %10246 = vmatprep.subr.bf16.mxu0 %v12262_v31 }
 0x470   :  { %10247 = vmatpush3.bf16.msra.mxu0 %v11868_v46  ;;  %v2438_v46 = vrot.slane %v2436_v55, 1  ;;  %v11904_v55 = vld [vmem:[%s15161_s2 + $0x248] sm:$0xff]  }
 0x471   :  { %10248 = vmatprep.subr.bf16.mxu0 %v12262_v31 }
 0x472   :  { %v2439_v9 = vor.u32 %v2438_v46, %v2434_v35  ;;  %v11905_v46 = vld [vmem:[%s15161_s2 + $0x250] sm:$0xff]  }
 0x474   :  { %10249 = vmatpush3.bf16.msra.mxu0 %v11869_v44  ;;  %v11888_v44 = vld [vmem:[%s15161_s2 + $0x1d8] sm:$0xff]  }
 0x475   :  { %10250 = vmatprep.subr.bf16.mxu0 %v12262_v31 }
 0x478   :  { %10251 = vmatpush3.bf16.msra.mxu0 %v11870_v63  ;;  %v2443_v63 = vrot.slane %v12585_v13, 1 }
 0x479   :  { %10264 = vmatprep.subr.bf16.mxu0 %v12262_v31 }
 0x47a   :  { %v2444_v17 = vsel %vm647_vm13, %v2439_v9, %v2443_v63  ;;  %v11906_v9 = vld [vmem:[%s15161_s2 + $0x258] sm:$0xff]  }
 0x47b   :  { %10253 = vmatmul.mubr.bf16.vlgmr.msra.gmra.mrb[8].mxu0 %v2131_v16  ;;  %v2447_v16 = vor.u32 %v12588_v39, %v2443_v63  ;;  %v2745_v63 = vrot.slane %v12588_v39, 1 }
 0x47c   :  { %10265 = vmatpush3.bf16.msra.mxu0 %v11871_v57  ;;  %10256 = vmatprep.mubr.msk.bf16.mxu0 %vm12264_vm15, %v12262_v31  ;;  %v2451_v57 = vrot.slane %v12970_v26, 1 }
 0x47d   :  { %10266 = vmatprep.subr.bf16.mxu0 %v12262_v31 }
 0x480   :  { %10267 = vmatpush3.bf16.msra.mxu0 %v11872_v58  ;;  %v2452_v58 = vsel %vm647_vm13, %v2447_v16, %v2451_v57 }
 0x481   :  { %10268 = vmatprep.subr.bf16.mxu0 %v12262_v31 }
 0x483   :  { %10257 = vmatmul.mubr.bf16.gmra.mrb[12].mxu0 %v12964_v4  ;;  %v2144_v4 = vsel %vm326_vm6, %v12958_v19, %v2143_v3  ;;  %v11879_v19 = vld [vmem:[%s15161_s2 + $0x198] sm:$0xff]   ;;  %v11896_v3 = vld [vmem:[%s15161_s2 + $0x208] sm:$0xff]  }
 0x484   :  { %10269 = vmatpush3.bf16.msra.mxu0 %v11873_v59  ;;  %10260 = vmatprep.mubr.msk.bf16.mxu0 %vm12264_vm15, %v12262_v31  ;;  %v2455_v59 = vor.u32 %v12973_v14, %v2451_v57  ;;  %v11907_v57 = vld [vmem:[%s15161_s2 + $0x260] sm:$0xff]  }
 0x485   :  { %10270 = vmatprep.subr.bf16.mxu0 %v12262_v31 }
 0x488   :  { %10271 = vmatpush3.bf16.msra.mxu0 %v11874_v32  ;;  %v2460_v32 = vsel %vm647_vm13, %v2455_v59, %v2459_v62  ;;  %v2756_v59 = vrot.slane %v2754_v5, 1 }
 0x489   :  { %10272 = vmatprep.subr.bf16.mxu0 %v12262_v31 }
 0x48b   :  { %10261 = vmatmul.mubr.bf16.gmra.mrb[16].mxu0 %v2144_v4  ;;  %v2591_v4 = vld [vmem:[#allocation2 + $0x4] sm:$0xe] }
 0x48c   :  { %10273 = vmatpush3.bf16.msra.mxu0 %v11876_v7  ;;  %10280 = vmatprep.mubr.msk.bf16.mxu0 %vm12264_vm15, %v12262_v31  ;;  %v11897_v7 = vld [vmem:[%s15161_s2 + $0x210] sm:$0xff]  }
 0x48d   :  { %10274 = vmatprep.subr.bf16.mxu0 %v12262_v31 }
 0x490   :  { %10275 = vmatpush3.bf16.msra.mxu0 %v11877_v42  ;;  %v8886_v42 = vcombine.low %v2591_v4, %v12875_v40  ;;  %v11942_v4 = vld [vmem:[%s15159_s1 + $0x194] sm:$0xff]  }
 0x491   :  { %10276 = vmatprep.subr.bf16.mxu0 %v12262_v31  ;;  %10489 = vmatpush3.bf16.msra.mxu1 %v11942_v4  ;;  %v11931_v4 = vld [vmem:[%s15161_s2 + $0x310] sm:$0xff]  }
 0x492   :  { %v2738_v51 = vshrl.u32 %v8886_v42, 16  ;;  %10490 = vmatprep.subr.bf16.mxu1 %v12262_v31 }
 0x494   :  { %10277 = vmatpush3.bf16.msra.mxu0 %v11878_v53  ;;  %v11898_v53 = vld [vmem:[%s15161_s2 + $0x218] sm:$0xff]  }
 0x495   :  { %10278 = vmatprep.subr.bf16.mxu0 %v12262_v31 }
 0x498   :  { %10279 = vmatpush3.bf16.msra.mxu0 %v11879_v19  ;;  %v2596_v19 = vrot.slane %v8886_v42, 1 }
 0x499   :  { %10292 = vmatprep.subr.bf16.mxu0 %v12262_v31 }
 0x49b   :  { %10281 = vmatmul.mubr.bf16.vlgmr.msra.gmra.mrb[8].mxu0 %v8863_v49  ;;  %v11899_v49 = vld [vmem:[%s15161_s2 + $0x220] sm:$0xff]  }
 0x49c   :  { %10293 = vmatpush3.bf16.msra.mxu0 %v11880_v20  ;;  %10284 = vmatprep.mubr.msk.bf16.mxu0 %vm12264_vm15, %v12262_v31  ;;  %v2597_v20 = vrot.slane %v12574_v10, 1 }
 0x49d   :  { %10294 = vmatprep.subr.bf16.mxu0 %v12262_v31 }
 0x4a0   :  { %10295 = vmatpush3.bf16.msra.mxu0 %v11881_v15  ;;  %v2598_v15 = vsel %vm2595_vm3, %v2596_v19, %v2597_v20  ;;  %v11914_v19 = vld [vmem:[%s15161_s2 + $0x290] sm:$0xff]  }
 0x4a1   :  { %10296 = vmatprep.subr.bf16.mxu0 %v12262_v31 }
 0x4a3   :  { %10285 = vmatmul.mubr.bf16.gmra.mrb[12].mxu0 %v8864_v11  ;;  %v2599_v11 = vrot.slane %v12888_v28, 1 }
 0x4a4   :  { %10297 = vmatpush3.bf16.msra.mxu0 %v11882_v43  ;;  %10288 = vmatprep.mubr.msk.bf16.mxu0 %vm12264_vm15, %v12262_v31  ;;  %v11900_v43 = vld [vmem:[%s15161_s2 + $0x228] sm:$0xff]  }
 0x4a5   :  { %10298 = vmatprep.subr.bf16.mxu0 %v12262_v31 }
 0x4a8   :  { %10299 = vmatpush3.bf16.msra.mxu0 %v11883_v47  ;;  %v11901_v47 = vld [vmem:[%s15161_s2 + $0x230] sm:$0xff]  }
 0x4a9   :  { %10300 = vmatprep.subr.bf16.mxu0 %v12262_v31 }
 0x4ab   :  { %10289 = vmatmul.mubr.bf16.gmra.mrb[16].mxu0 %v8865_v24  ;;  %v11902_v24 = vld [vmem:[%s15161_s2 + $0x238] sm:$0xff]  }
 0x4ac   :  { %10301 = vmatpush3.bf16.msra.mxu0 %v11885_v22  ;;  %10308 = vmatprep.mubr.msk.bf16.mxu0 %vm12264_vm15, %v12262_v31  ;;  %v2600_v22 = vsel %vm2595_vm3, %v2597_v20, %v2599_v11  ;;  %v2892_v20 = vld [vmem:[#allocation2 + $0x4] sm:$0xc] }
 0x4ad   :  { %10302 = vmatprep.subr.bf16.mxu0 %v12262_v31 }
 0x4ae   :  { %v13267_v21 = vpop.f32.mrb[4].mxu0 }
 0x4af   :  { %v13269_v23 = vpop.f32.mrb[5].mxu0 }
 0x4b0   :  { %10303 = vmatpush3.bf16.msra.mxu0 %v11886_v38  ;;  %v13271_v29 = vpop.f32.mrb[6].mxu0  ;;  %v2602_v38 = vsel %vm2595_vm3, %v2599_v11, %v2601_v30  ;;  %v11945_v11 = vld [vmem:[%s15159_s1 + $0x1ac] sm:$0xff]   ;;  %v11946_v30 = vld [vmem:[%s15159_s1 + $0x1b4] sm:$0xff]  }
 0x4b1   :  { %v13276_v56 = vpop.f32.mrb[7].mxu0  ;;  %10304 = vmatprep.subr.bf16.mxu0 %v12262_v31 }
 0x4b4   :  { %10305 = vmatpush3.bf16.msra.mxu0 %v11887_v12  ;;  %v2741_v12 = vshll.u32 %v8886_v42, 16  ;;  %v11913_v42 = vld [vmem:[%s15161_s2 + $0x288] sm:$0xff]  }
 0x4b5   :  { %10306 = vmatprep.subr.bf16.mxu0 %v12262_v31 }
 0x4b6   :  { %v2743_v35 = vrot.slane %v2741_v12, 2  ;;  %v11918_v12 = vld [vmem:[%s15161_s2 + $0x2b0] sm:$0xff]  }
 0x4b8   :  { %10307 = vmatpush3.bf16.msra.mxu0 %v11888_v44  ;;  %v2740_v44 = vrot.slane %v2738_v51, 1  ;;  %v2899_v51 = vrot.slane %v12888_v28, 2 }
 0x4b9   :  { %10320 = vmatprep.subr.bf16.mxu0 %v12262_v31 }
 0x4bb   :  { %10309 = vmatmul.mubr.bf16.vlgmr.msra.gmra.mrb[8].mxu0 %v2444_v17  ;;  %v2744_v17 = vor.u32 %v2743_v35, %v2740_v44  ;;  %v11919_v35 = vld [vmem:[%s15161_s2 + $0x2b8] sm:$0xff]  }
 0x4bc   :  { %10321 = vmatpush3.bf16.msra.mxu0 %v11889_v60  ;;  %10312 = vmatprep.mubr.msk.bf16.mxu0 %vm12264_vm15, %v12262_v31  ;;  %v2746_v60 = vrot.slane %v12585_v13, 2  ;;  %v11908_v13 = vld [vmem:[%s15161_s2 + $0x268] sm:$0xff]  }
 0x4bd   :  { %10322 = vmatprep.subr.bf16.mxu0 %v12262_v31 }
 0x4c0   :  { %10323 = vmatpush3.bf16.msra.mxu0 %v11890_v52  ;;  %v2747_v52 = vor.u32 %v2746_v60, %v2745_v63  ;;  %v11920_v63 = vld [vmem:[%s15161_s2 + $0x2c0] sm:$0xff]  }
 0x4c1   :  { %10324 = vmatprep.subr.bf16.mxu0 %v12262_v31 }
 0x4c2   :  { %v2748_v16 = vsel %vm474_vm12, %v2744_v17, %v2747_v52  ;;  %v11921_v17 = vld [vmem:[%s15161_s2 + $0x2c8] sm:$0xff]  }
 0x4c3   :  { %10313 = vmatmul.mubr.bf16.gmra.mrb[12].mxu0 %v2452_v58  ;;  %v2750_v58 = vrot.slane %v12970_v26, 2  ;;  %v11909_v26 = vld [vmem:[%s15161_s2 + $0x270] sm:$0xff]  }
 0x4c4   :  { %10325 = vmatpush3.bf16.msra.mxu0 %v11892_v48  ;;  %10316 = vmatprep.mubr.msk.bf16.mxu0 %vm12264_vm15, %v12262_v31  ;;  %v2749_v48 = vrot.slane %v12973_v14, 1 }
 0x4c5   :  { %10326 = vmatprep.subr.bf16.mxu0 %v12262_v31 }
 0x4c6   :  { %v2751_v39 = vor.u32 %v2750_v58, %v2749_v48  ;;  %v11923_v58 = vld [vmem:[%s15161_s2 + $0x2d8] sm:$0xff]  }
 0x4c8   :  { %10327 = vmatpush3.bf16.msra.mxu0 %v11893_v6  ;;  %v2757_v6 = vshll.u32 %v12852_v61, 16  ;;  %v2752_v14 = vsel %vm474_vm12, %v2747_v52, %v2751_v39 }
 0x4c9   :  { %10328 = vmatprep.subr.bf16.mxu0 %v12262_v31 }
 0x4ca   :  { %v2759_v62 = vrot.slane %v2757_v6, 2  ;;  %v11925_v6 = vld [vmem:[%s15161_s2 + $0x2e8] sm:$0xff]  }
 0x4cb   :  { %10317 = vmatmul.mubr.bf16.gmra.mrb[16].mxu0 %v2460_v32 }
 0x4cc   :  { %10329 = vmatpush3.bf16.msra.mxu0 %v11895_v41  ;;  %10336 = vmatprep.mubr.msk.bf16.mxu0 %vm12264_vm15, %v12262_v31  ;;  %v11910_v41 = vld [vmem:[%s15161_s2 + $0x278] sm:$0xff]   ;;  %v2760_v32 = vor.u32 %v2759_v62, %v2756_v59 }
 0x4cd   :  { %10330 = vmatprep.subr.bf16.mxu0 %v12262_v31 }
 0x4d0   :  { %10331 = vmatpush3.bf16.msra.mxu0 %v11896_v3  ;;  %v11912_v3 = vld [vmem:[%s15161_s2 + $0x280] sm:$0xff]  }
 0x4d1   :  { %10332 = vmatprep.subr.bf16.mxu0 %v12262_v31 }
 0x4d4   :  { %10333 = vmatpush3.bf16.msra.mxu0 %v11897_v7  ;;  %v2761_v7 = vsel %vm474_vm12, %v2751_v39, %v2760_v32  ;;  %v11924_v39 = vld [vmem:[%s15161_s2 + $0x2e0] sm:$0xff]  }
 0x4d5   :  { %10334 = vmatprep.subr.bf16.mxu0 %v12262_v31 }
 0x4d8   :  { %10335 = vmatpush3.bf16.msra.mxu0 %v11898_v53  ;;  %v11943_v53 = vld [vmem:[%s15159_s1 + $0x19c] sm:$0xff]  }
 0x4d9   :  { %10348 = vmatprep.subr.bf16.mxu0 %v12262_v31  ;;  %10491 = vmatpush3.bf16.msra.mxu1 %v11943_v53  ;;  %v11932_v53 = vld [vmem:[%s15161_s2 + $0x318] sm:$0xff]  }
 0x4da   :  { %10492 = vmatprep.subr.bf16.mxu1 %v12262_v31 }
 0x4db   :  { %10337 = vmatmul.mubr.bf16.vlgmr.msra.gmra.mrb[8].mxu0 %v2598_v15  ;;  %v8904_v15 = vcombine.low %v2892_v20, %v12875_v40  ;;  %v3197_v20 = vrot.slane %v12574_v10, 3 }
 0x4dc   :  { %10349 = vmatpush3.bf16.msra.mxu0 %v11899_v49  ;;  %10340 = vmatprep.mubr.msk.bf16.mxu0 %vm12264_vm15, %v12262_v31  ;;  %v11944_v49 = vld [vmem:[%s15159_s1 + $0x1a4] sm:$0xff]  }
 0x4dd   :  { %10350 = vmatprep.subr.bf16.mxu0 %v12262_v31  ;;  %10493 = vmatpush3.bf16.msra.mxu1 %v11944_v49  ;;  %v3041_v52 = vshll.u32 %v8904_v15, 16  ;;  %v11933_v49 = vld [vmem:[%s15161_s2 + $0x320] sm:$0xff]  }
 0x4de   :  { %10494 = vmatprep.subr.bf16.mxu1 %v12262_v31 }
 0x4df   :  { %v3043_v48 = vrot.slane %v3041_v52, 3 }
 0x4e0   :  { %10351 = vmatpush3.bf16.msra.mxu0 %v11900_v43  ;;  %v11915_v43 = vld [vmem:[%s15161_s2 + $0x298] sm:$0xff]  }
 0x4e1   :  { %10352 = vmatprep.subr.bf16.mxu0 %v12262_v31  ;;  %10495 = vmatpush3.bf16.msra.mxu1 %v11945_v11 }
 0x4e2   :  { %10496 = vmatprep.subr.bf16.mxu1 %v12262_v31 }
 0x4e3   :  { %10341 = vmatmul.mubr.bf16.gmra.mrb[12].mxu0 %v2600_v22  ;;  %v2897_v22 = vrot.slane %v12574_v10, 2  ;;  %v3199_v10 = vrot.slane %v12888_v28, 3  ;;  %v3201_v28 = vrot.slane %v12854_v0, 3 }
 0x4e4   :  { %10353 = vmatpush3.bf16.msra.mxu0 %v11901_v47  ;;  %10344 = vmatprep.mubr.msk.bf16.mxu0 %vm12264_vm15, %v12262_v31  ;;  %v2896_v47 = vrot.slane %v8904_v15, 2 }
 0x4e5   :  { %10354 = vmatprep.subr.bf16.mxu0 %v12262_v31  ;;  %10497 = vmatpush3.bf16.msra.mxu1 %v11946_v30  ;;  %v2900_v44 = vsel %vm1984_vm10, %v2897_v22, %v2899_v51  ;;  %v3200_v11 = vsel %vm1868_vm0, %v3197_v20, %v3199_v10  ;;  %v11938_v30 = vld [vmem:[%s15161_s2 + $0x348] sm:$0xff]  }
 0x4e6   :  { %10498 = vmatprep.subr.bf16.mxu1 %v12262_v31 }
 0x4e8   :  { %10355 = vmatpush3.bf16.msra.mxu0 %v11902_v24  ;;  %v11916_v24 = vld [vmem:[%s15161_s2 + $0x2a0] sm:$0xff]  }
 0x4e9   :  { %10356 = vmatprep.subr.bf16.mxu0 %v12262_v31 }
 0x4eb   :  { %10345 = vmatmul.mubr.bf16.gmra.mrb[16].mxu0 %v2602_v38  ;;  %v11917_v38 = vld [vmem:[%s15161_s2 + $0x2a8] sm:$0xff]  }
 0x4ec   :  { %10357 = vmatpush3.bf16.msra.mxu0 %v11903_v34  ;;  %10364 = vmatprep.mubr.msk.bf16.mxu0 %vm12264_vm15, %v12262_v31  ;;  %v2898_v34 = vsel %vm1984_vm10, %v2896_v47, %v2897_v22  ;;  %v11936_v47 = vld [vmem:[%s15161_s2 + $0x338] sm:$0xff]   ;;  %v11937_v22 = vld [vmem:[%s15161_s2 + $0x340] sm:$0xff]  }
 0x4ed   :  { %10358 = vmatprep.subr.bf16.mxu0 %v12262_v31 }
 0x4f0   :  { %10359 = vmatpush3.bf16.msra.mxu0 %v11904_v55  ;;  %v11947_v55 = vld [vmem:[%s15159_s1 + $0x1bc] sm:$0xff]  }
 0x4f1   :  { %10360 = vmatprep.subr.bf16.mxu0 %v12262_v31  ;;  %10499 = vmatpush3.bf16.msra.mxu1 %v11947_v55 }
 0x4f2   :  { %10500 = vmatprep.subr.bf16.mxu1 %v12262_v31 }
 0x4f4   :  { %10361 = vmatpush3.bf16.msra.mxu0 %v11905_v46  ;;  %v11948_v46 = vld [vmem:[%s15159_s1 + $0x1c4] sm:$0xff]  }
 0x4f5   :  { %10362 = vmatprep.subr.bf16.mxu0 %v12262_v31  ;;  %10501 = vmatpush3.bf16.msra.mxu1 %v11948_v46 }
 0x4f6   :  { %10502 = vmatprep.subr.bf16.mxu1 %v12262_v31 }
 0x4f8   :  { %10363 = vmatpush3.bf16.msra.mxu0 %v11906_v9  ;;  %v2901_v9 = vrot.slane %v12852_v61, 2  ;;  %v3038_v61 = vshrl.u32 %v8904_v15, 16 }
 0x4f9   :  { %10376 = vmatprep.subr.bf16.mxu0 %v12262_v31 }
 0x4fa   :  { %v2902_v60 = vsel %vm1984_vm10, %v2899_v51, %v2901_v9  ;;  %v3357_v9 = vshll.u32 %v12856_v45, 16 }
 0x4fb   :  { %10365 = vmatmul.mubr.bf16.vlgmr.msra.gmra.mrb[8].mxu0 %v2748_v16  ;;  %v3040_v16 = vrot.slane %v3038_v61, 2 }
 0x4fc   :  { %10377 = vmatpush3.bf16.msra.mxu0 %v11907_v57  ;;  %10368 = vmatprep.mubr.msk.bf16.mxu0 %vm12264_vm15, %v12262_v31  ;;  %v11922_v57 = vld [vmem:[%s15161_s2 + $0x2d0] sm:$0xff]  }
 0x4fd   :  { %10378 = vmatprep.subr.bf16.mxu0 %v12262_v31 }
 0x500   :  { %10379 = vmatpush3.bf16.msra.mxu0 %v11908_v13  ;;  %v3044_v13 = vor.u32 %v3043_v48, %v3040_v16 }
 0x501   :  { %10380 = vmatprep.subr.bf16.mxu0 %v12262_v31 }
 0x502   :  { %v3048_v5 = vsel %vm788_vm1, %v3044_v13, %v12600_v36  ;;  %v11926_v36 = vld [vmem:[%s15161_s2 + $0x2f0] sm:$0xff]  }
 0x503   :  { %10369 = vmatmul.mubr.bf16.gmra.mrb[12].mxu0 %v2752_v14  ;;  %v3057_v14 = vshll.u32 %v12854_v0, 16 }
 0x504   :  { %10381 = vmatpush3.bf16.msra.mxu0 %v11909_v26  ;;  %10372 = vmatprep.mubr.msk.bf16.mxu0 %vm12264_vm15, %v12262_v31  ;;  %v3054_v26 = vshrl.u32 %v12854_v0, 16 }
 0x505   :  { %10382 = vmatprep.subr.bf16.mxu0 %v12262_v31  ;;  %v3059_v62 = vrot.slane %v3057_v14, 3 }
 0x506   :  { %v3056_v59 = vrot.slane %v3054_v26, 2 }
 0x508   :  { %10383 = vmatpush3.bf16.msra.mxu0 %v11910_v41  ;;  %v11927_v41 = vld [vmem:[%s15161_s2 + $0x2f8] sm:$0xff]   ;;  %v3060_v32 = vor.u32 %v3059_v62, %v3056_v59 }
 0x509   :  { %10384 = vmatprep.subr.bf16.mxu0 %v12262_v31  ;;  %v11950_v59 = vld [vmem:[%s15159_s1 + $0x434] sm:$0xff]   ;;  %v11951_v62 = vld [vmem:[%s15159_s1 + $0x43c] sm:$0xff]  }
 0x50b   :  { %10373 = vmatmul.mubr.bf16.gmra.mrb[16].mxu0 %v2761_v7  ;;  %v11930_v7 = vld [vmem:[%s15161_s2 + $0x308] sm:$0xff]  }
 0x50c   :  { %10385 = vmatpush3.bf16.msra.mxu0 %v11912_v3  ;;  %10392 = vmatprep.mubr.msk.bf16.mxu0 %vm12264_vm15, %v12262_v31  ;;  %v11929_v3 = vld [vmem:[%s15161_s2 + $0x300] sm:$0xff]  }
 0x50d   :  { %10386 = vmatprep.subr.bf16.mxu0 %v12262_v31 }
 0x510   :  { %10387 = vmatpush3.bf16.msra.mxu0 %v11913_v42  ;;  %v3192_v42 = vld [vmem:[#allocation2 + $0x4] sm:$0x8] }
 0x511   :  { %10388 = vmatprep.subr.bf16.mxu0 %v12262_v31 }
 0x514   :  { %10389 = vmatpush3.bf16.msra.mxu0 %v11914_v19 }
 0x515   :  { %10390 = vmatprep.subr.bf16.mxu0 %v12262_v31 }
 0x518   :  { %10391 = vmatpush3.bf16.msra.mxu0 %v11915_v43  ;;  %v11935_v43 = vld [vmem:[%s15161_s2 + $0x330] sm:$0xff]  }
 0x519   :  { %10404 = vmatprep.subr.bf16.mxu0 %v12262_v31 }
 0x51b   :  { %10393 = vmatmul.mubr.bf16.vlgmr.msra.gmra.mrb[8].mxu0 %v2898_v34 }
 0x51c   :  { %10405 = vmatpush3.bf16.msra.mxu0 %v11916_v24  ;;  %10396 = vmatprep.mubr.msk.bf16.mxu0 %vm12264_vm15, %v12262_v31  ;;  %v3202_v24 = vsel %vm1868_vm0, %v3199_v10, %v3201_v28 }
 0x51d   :  { %10406 = vmatprep.subr.bf16.mxu0 %v12262_v31 }
 0x520   :  { %10407 = vmatpush3.bf16.msra.mxu0 %v11917_v38  ;;  %v11939_v38 = vld [vmem:[%s15161_s2 + $0x350] sm:$0xff]  }
 0x521   :  { %10408 = vmatprep.subr.bf16.mxu0 %v12262_v31 }
 0x523   :  { %10397 = vmatmul.mubr.bf16.gmra.mrb[12].mxu0 %v2900_v44 }
 0x524   :  { %10409 = vmatpush3.bf16.msra.mxu0 %v11918_v12  ;;  %10400 = vmatprep.mubr.msk.bf16.mxu0 %vm12264_vm15, %v12262_v31  ;;  %v11940_v12 = vld [vmem:[%s15161_s2 + $0x358] sm:$0xff]  }
 0x525   :  { %10410 = vmatprep.subr.bf16.mxu0 %v12262_v31 }
 0x528   :  { %10411 = vmatpush3.bf16.msra.mxu0 %v11919_v35  ;;  %v3354_v35 = vshrl.u32 %v12856_v45, 16 }
 0x529   :  { %10412 = vmatprep.subr.bf16.mxu0 %v12262_v31 }
 0x52b   :  { %10401 = vmatmul.mubr.bf16.gmra.mrb[16].mxu0 %v2902_v60  ;;  %v3359_v60 = vrot.slane %v3357_v9, 4 }
 0x52c   :  { %10413 = vmatpush3.bf16.msra.mxu0 %v11920_v63  ;;  %10420 = vmatprep.mubr.msk.bf16.mxu0 %vm12264_vm15, %v12262_v31  ;;  %v3356_v63 = vrot.slane %v3354_v35, 3 }
 0x52d   :  { %10414 = vmatprep.subr.bf16.mxu0 %v12262_v31 }
 0x530   :  { %10415 = vmatpush3.bf16.msra.mxu0 %v11921_v17  ;;  %v3360_v17 = vor.u32 %v3359_v60, %v3356_v63 }
 0x531   :  { %10416 = vmatprep.subr.bf16.mxu0 %v12262_v31 }
 0x532   :  { %v3361_v61 = vsel %vm326_vm6, %v13010_v8, %v3360_v17 }
 0x534   :  { %10417 = vmatpush3.bf16.msra.mxu0 %v11922_v57 }
 0x535   :  { %10418 = vmatprep.subr.bf16.mxu0 %v12262_v31 }
 0x538   :  { %10419 = vmatpush3.bf16.msra.mxu0 %v11923_v58 }
 0x539   :  { %10432 = vmatprep.subr.bf16.mxu0 %v12262_v31 }
 0x53b   :  { %10421 = vmatmul.mubr.bf16.vlgmr.msra.gmra.mrb[8].mxu0 %v3048_v5 }
 0x53c   :  { %10433 = vmatpush3.bf16.msra.mxu0 %v11924_v39  ;;  %10424 = vmatprep.mubr.msk.bf16.mxu0 %vm12264_vm15, %v12262_v31 }
 0x53d   :  { %10434 = vmatprep.subr.bf16.mxu0 %v12262_v31 }
 0x540   :  { %10435 = vmatpush3.bf16.msra.mxu0 %v11925_v6 }
 0x541   :  { %10436 = vmatprep.subr.bf16.mxu0 %v12262_v31 }
 0x543   :  { %10425 = vmatmul.mubr.bf16.gmra.mrb[12].mxu0 %v12999_v50  ;;  %v3061_v50 = vsel %vm788_vm1, %v12991_v18, %v3060_v32  ;;  %v8922_v18 = vcombine.low %v3192_v42, %v12875_v40  ;;  %v11934_v40 = vld [vmem:[%s15161_s2 + $0x328] sm:$0xff]   ;;  %v8802_v42 = vld [vmem:[%s15162_s3 + $0x2] ss:$0 sm:$0xff] }
 0x544   :  { %10437 = vmatpush3.bf16.msra.mxu0 %v11926_v36  ;;  %10428 = vmatprep.mubr.msk.bf16.mxu0 %vm12264_vm15, %v12262_v31  ;;  %v11953_v32 = vld [vmem:[%s15159_s1 + $0x44c] sm:$0xff]   ;;  %v1450_v28 = vadd.f32 %v8802_v42, %v13276_v56 }
 0x545   :  { %10438 = vmatprep.subr.bf16.mxu0 %v12262_v31  ;;  %v3196_v19 = vrot.slane %v8922_v18, 3  ;;  %v3338_v0 = vshrl.u32 %v8922_v18, 16  ;;  %v3341_v34 = vshll.u32 %v8922_v18, 16  ;;  %v8940_v18 = vld [vmem:[%s15162_s3 + $0x1] ss:$0 sm:$0xff] }
 0x547   :  { %v3198_v15 = vsel %vm1868_vm0, %v3196_v19, %v3197_v20  ;;  %v3340_v55 = vrot.slane %v3338_v0, 3  ;;  %v3343_v51 = vrot.slane %v3341_v34, 4  ;;  %v1447_v20 = vadd.f32 %v8802_v42, %v13269_v23  ;;  %v11957_v23 = vld [vmem:[%s15159_s1 + $0x2ac] sm:$0xff]  }
 0x548   :  { %10439 = vmatpush3.bf16.msra.mxu0 %v11927_v41  ;;  %v11952_v41 = vld [vmem:[%s15159_s1 + $0x444] sm:$0xff]  }
 0x549   :  { %10440 = vmatprep.subr.bf16.mxu0 %v12262_v31  ;;  %v3344_v46 = vor.u32 %v3343_v51, %v3340_v55 }
 0x54b   :  { %10429 = vmatmul.mubr.bf16.gmra.mrb[16].mxu0 %v3061_v50  ;;  %v3348_v44 = vsel %vm326_vm6, %v3344_v46, %v12602_v37  ;;  %v11949_v37 = vld [vmem:[%s15159_s1 + $0x1cc] sm:$0xff]   ;;  %v11955_v50 = vld [vmem:[%s15159_s1 + $0x29c] sm:$0xff]  }
 0x54c   :  { %10441 = vmatpush3.bf16.msra.mxu0 %v11929_v3  ;;  %10448 = vmatprep.mubr.msk.bf16.mxu0 %vm12264_vm15, %v12262_v31  ;;  %v11954_v3 = vld [vmem:[%s15159_s1 + $0x294] sm:$0xff]  }
 0x54d   :  { %10442 = vmatprep.subr.bf16.mxu0 %v12262_v31  ;;  %10503 = vmatpush3.bf16.msra.mxu1 %v11949_v37 }
 0x54e   :  { %10528 = vmatprep.subr.bf16.mxu1 %v12262_v31 }
 0x550   :  { %10443 = vmatpush3.bf16.msra.mxu0 %v11930_v7  ;;  %v3609_v7 = vlaneseq }
 0x551   :  { %10444 = vmatprep.subr.bf16.mxu0 %v12262_v31 }
 0x554   :  { %10445 = vmatpush3.bf16.msra.mxu0 %v11931_v4  ;;  %v3610_v4 = vshrl.u32 %v3609_v7, 7 }
 0x555   :  { %10446 = vmatprep.subr.bf16.mxu0 %v12262_v31 }
 0x558   :  { %10447 = vmatpush3.bf16.msra.mxu0 %v11932_v53  ;;  %v3611_v53 = vadd.s32 8, %v3610_v4 }
 0x559   :  { %10460 = vmatprep.subr.bf16.mxu0 %v12262_v31 }
 0x55a   :  { %vm3613_vm2 = vcmp.lt.s32.totalorder %v3611_v53, 14  ;;  %v11961_v53 = vld [vmem:[%s15159_s1 + $0x2cc] sm:$0xff]  }
 0x55b   :  { %10449 = vmatmul.mubr.bf16.vlgmr.msra.gmra.mrb[8].mxu0 %v3198_v15 }
 0x55c   :  { %10461 = vmatpush3.bf16.msra.mxu0 %v11933_v49  ;;  %10452 = vmatprep.mubr.msk.bf16.mxu0 %vm12264_vm15, %v12262_v31 }
 0x55d   :  { %10462 = vmatprep.subr.bf16.mxu0 %v12262_v31 }
 0x560   :  { %10463 = vmatpush3.bf16.msra.mxu0 %v11934_v40  ;;  %v11956_v40 = vld [vmem:[%s15159_s1 + $0x2a4] sm:$0xff]  }
 0x561   :  { %10464 = vmatprep.subr.bf16.mxu0 %v12262_v31 }
 0x563   :  { %10453 = vmatmul.mubr.bf16.gmra.mrb[12].mxu0 %v3200_v11 }
 0x564   :  { %10465 = vmatpush3.bf16.msra.mxu0 %v11935_v43  ;;  %10456 = vmatprep.mubr.msk.bf16.mxu0 %vm12264_vm15, %v12262_v31 }
 0x565   :  { %10466 = vmatprep.subr.bf16.mxu0 %v12262_v31 }
 0x568   :  { %10467 = vmatpush3.bf16.msra.mxu0 %v11936_v47 }
 0x569   :  { %10468 = vmatprep.subr.bf16.mxu0 %v12262_v31 }
 0x56b   :  { %10457 = vmatmul.mubr.bf16.gmra.mrb[16].mxu0 %v3202_v24 }
 0x56c   :  { %10469 = vmatpush3.bf16.msra.mxu0 %v11937_v22  ;;  %10476 = vmatprep.mubr.msk.bf16.mxu0 %vm12264_vm15, %v12262_v31 }
 0x56d   :  { %10470 = vmatprep.subr.bf16.mxu0 %v12262_v31 }
 0x570   :  { %10471 = vmatpush3.bf16.msra.mxu0 %v11938_v30 }
 0x571   :  { %10472 = vmatprep.subr.bf16.mxu0 %v12262_v31 }
 0x574   :  { %10473 = vmatpush3.bf16.msra.mxu0 %v11939_v38 }
 0x575   :  { %10474 = vmatprep.subr.bf16.mxu0 %v12262_v31 }
 0x578   :  { %10475 = vmatpush3.bf16.msra.mxu0 %v11940_v12 }
 0x579   :  { %10516 = vmatprep.subr.bf16.mxu0 %v11950_v59 }
 0x57b   :  { %10477 = vmatmul.mubr.bf16.vlgmr.msra.gmra.mrb[8].mxu0 %v3348_v44 }
 0x57c   :  { %10480 = vmatprep.mubr.msk.bf16.mxu0 %vm12264_vm15, %v12262_v31  ;;  %10517 = vmatpush3.bf16.msra.mxu0 %v11950_v59 }
 0x57d   :  { %10518 = vmatprep.subr.bf16.mxu0 %v11951_v62 }
 0x580   :  { %10519 = vmatpush3.bf16.msra.mxu0 %v11951_v62 }
 0x581   :  { %10520 = vmatprep.subr.bf16.mxu0 %v11952_v41 }
 0x583   :  { %10481 = vmatmul.mubr.bf16.gmra.mrb[12].mxu0 %v13016_v54 }
 0x584   :  { %10484 = vmatprep.mubr.msk.bf16.mxu0 %vm12264_vm15, %v12262_v31  ;;  %10521 = vmatpush3.bf16.msra.mxu0 %v11952_v41 }
 0x585   :  { %10522 = vmatprep.subr.bf16.mxu0 %v11953_v32 }
 0x588   :  { %10523 = vmatpush3.bf16.msra.mxu0 %v11953_v32  ;;  %v11960_v32 = vld [vmem:[%s15159_s1 + $0x2c4] sm:$0xff]  }
 0x589   :  { %10752 = vmatprep.subr.bf16.mxu0 %v12262_v31 }
 0x58b   :  { %10485 = vmatmul.mubr.bf16.gmra.mrb[16].mxu0 %v3361_v61 }
 0x64e   :  { %v3447_v45 = vpop.f32.mrb[8].mxu0 }
 0x64f   :  { %v10478_v52 = vpop.f32.mrb[9].mxu0 }
 0x650   :  { %v3450_v57 = vpop.f32.mrb[10].mxu0 }
 0x651   :  { %v3498_v16 = vpack.c.bf16 %v3450_v57, %v3447_v45  ;;  %v10479_v54 = vpop.f32.mrb[11].mxu0 }
 0x652   :  { %v11958_v54 = vld [vmem:[%s15159_s1 + $0x2b4] sm:$0xff]  }
 0x653   :  { %10505 = vmatmul.mubr.bf16.vlgmr.msra.gmra.mrb[36].mxu1 %v3498_v16 }
 0x654   :  { %10508 = vmatprep.mubr.msk.bf16.mxu1 %vm12264_vm15, %v12262_v31  ;;  %10529 = vmatpush3.bf16.msra.mxu1 %v11954_v3 }
 0x655   :  { %10530 = vmatprep.subr.bf16.mxu1 %v12262_v31 }
 0x656   :  { %v3455_v48 = vpop.f32.mrb[12].mxu0 }
 0x657   :  { %v10482_v58 = vpop.f32.mrb[13].mxu0 }
 0x658   :  { %v3458_v8 = vpop.f32.mrb[14].mxu0  ;;  %10531 = vmatpush3.bf16.msra.mxu1 %v11955_v50 }
 0x659   :  { %v3499_v13 = vpack.c.bf16 %v3458_v8, %v3455_v48  ;;  %v10483_v39 = vpop.f32.mrb[15].mxu0  ;;  %10532 = vmatprep.subr.bf16.mxu1 %v12262_v31  ;;  %v1455_v48 = vadd.f32 %v13267_v21, %v8802_v42  ;;  %v1458_v21 = vadd.f32 %v13271_v29, %v8802_v42 }
 0x65b   :  { %10509 = vmatmul.mubr.bf16.gmra.mrb[40].mxu1 %v3499_v13 }
 0x65c   :  { %10512 = vmatprep.mubr.msk.bf16.mxu1 %vm12264_vm15, %v12262_v31  ;;  %10533 = vmatpush3.bf16.msra.mxu1 %v11956_v40 }
 0x65d   :  { %10534 = vmatprep.subr.bf16.mxu1 %v12262_v31 }
 0x65e   :  { %v3463_v5 = vpop.f32.mrb[16].mxu0 }
 0x65f   :  { %v10486_v6 = vpop.f32.mrb[17].mxu0 }
 0x660   :  { %v3466_v26 = vpop.f32.mrb[18].mxu0  ;;  %10535 = vmatpush3.bf16.msra.mxu1 %v11957_v23  ;;  %v11959_v6 = vld [vmem:[%s15159_s1 + $0x2bc] sm:$0xff]  }
 0x661   :  { %v3500_v14 = vpack.c.bf16 %v3466_v26, %v3463_v5  ;;  %v10487_v36 = vpop.f32.mrb[19].mxu0  ;;  %10536 = vmatprep.subr.bf16.mxu1 %v12262_v31  ;;  %v13683_v23 = vld [vmem:[#allocation2 + $0x1c] ss:$0 sps:$4 sm:$0x77]  }
 0x663   :  { %10513 = vmatmul.mubr.bf16.gmra.mrb[44].mxu1 %v3500_v14 }
 0x664   :  { %10544 = vmatprep.mubr.msk.bf16.mxu1 %vm12264_vm15, %v12262_v31  ;;  %10537 = vmatpush3.bf16.msra.mxu1 %v11958_v54 }
 0x665   :  { %10538 = vmatprep.subr.bf16.mxu1 %v12262_v31 }
 0x668   :  { %10539 = vmatpush3.bf16.msra.mxu1 %v11959_v6 }
 0x669   :  { %10540 = vmatprep.subr.bf16.mxu1 %v12262_v31 }
 0x66c   :  { %10541 = vmatpush3.bf16.msra.mxu1 %v11960_v32 }
 0x66d   :  { %10542 = vmatprep.subr.bf16.mxu1 %v12262_v31 }
 0x670   :  { %10543 = vmatpush3.bf16.msra.mxu1 %v11961_v53  ;;  %v11965_v53 = vld [vmem:[%s15159_s1 + $0x21c] sm:$0xff]  }
 0x671   :  { %10556 = vmatprep.subr.bf16.mxu1 %v12262_v31 }
 0x726   :  { %v3588_v19 = vpop.f32.mrb[36].mxu1 }
 0x727   :  { %v3589_v49 = vadd.f32 %v8940_v18, %v3588_v19  ;;  %v10506_v15 = vpop.f32.mrb[37].mxu1 }
 0x728   :  { %v3591_v10 = vpop.f32.mrb[38].mxu1 }
 0x729   :  { %v3618_v43 = vadd.f32 %v3589_v49, %v1447_v20  ;;  %v3592_v11 = vadd.f32 %v8940_v18, %v3591_v10  ;;  %v10507_v47 = vpop.f32.mrb[39].mxu1 }
 0x72b   :  { %v3622_v22 = vmax.f32 %v3618_v43, 0.0  ;;  %v3615_v24 = vsel %vm3613_vm2, %v3592_v11, 0.0 }
 0x72c   :  { %v3619_v30 = vadd.f32 %v3615_v24, %v1450_v28  ;;  %v13681_v24 = vld [vmem:[#allocation2 + $0x1c] ss:$0 sps:$4 sm:$0x33]  }
 0x72d   :  { %v9311_v0 = vpack.c.bf16 %v3622_v22, %v3622_v22 }
 0x72e   :  { %v3623_v34 = vmax.f32 %v3619_v30, 0.0  ;;  %v3596_v38 = vpop.f32.mrb[40].mxu1  ;;  %v13685_v30 = vld [vmem:[#allocation2 + $0x1c] ss:$0 sps:$4 sm:$0x11]  }
 0x72f   :  { %3740 = vst.msk [vmem:[#allocation2 + $0x4] sm:$0xf] %vm149_vm11, %v9311_v0  ;;  %v10510_v55 = vpop.f32.mrb[41].mxu1  ;;  %v3743_v56 = vshll.u32 %v9311_v0, 16  ;;  %v3746_v51 = vshrl.u32 %v9311_v0, 16 }
 0x730   :  { %v3634_v12 = vpack.c.bf16 %v3623_v34, %v3622_v22  ;;  %v9312_v46 = vpack.c.bf16 %v3623_v34, %v3623_v34  ;;  %v3598_v44 = vpop.f32.mrb[42].mxu1  ;;  %v13687_v0 = vld [vmem:[#allocation2 + $0x1c] ss:$0 sps:$4 sm:$0xff]   ;;  %v3770_v34 = vld [vmem:[#allocation2] sm:$0x8] }
 0x731   :  { %v10511_v35 = vpop.f32.mrb[43].mxu1  ;;  %v3745_v9 = vrot.slane %v3743_v56, 5  ;;  %v3748_v63 = vrot.slane %v3746_v51, 4  ;;  %5415 = vst [vmem:[#allocation2 + $0x1c] sm:$0xf] %v12261_v1 }
 0x732   :  { %3741 = vst.msk [vmem:[#allocation2 + $0x8] sm:$0xf] %vm149_vm11, %v9312_v46  ;;  %10524 = vmatprep.mubr.msk.bf16.mxu0 %vm1281_vm9, %v3634_v12  ;;  %v3752_v60 = vshll.u32 %v9312_v46, 16  ;;  %v3756_v17 = vshrl.u32 %v9312_v46, 16 }
 0x733   :  { %3761 = vrot.lane.b32.xlu0 %v3745_v9, %s12263_s14  ;;  %v3749_v61 = vor.u32 %v3748_v63, %v3745_v9 }
 0x734   :  { %v3754_v37 = vrot.slane %v3752_v60, 5  ;;  %v3758_v45 = vrot.slane %v3756_v17, 4 }
 0x735   :  { %v3750_v52 = vrot.slane %v3749_v61, 4  ;;  %v3823_v61 = vld [vmem:[#allocation2 + $0x10] sm:$0x8] }
 0x736   :  { %v3602_v57 = vpop.f32.mrb[44].mxu1  ;;  %v3759_v16 = vor.u32 %v3758_v45, %v3754_v37 }
 0x737   :  { %v3603_v58 = vadd.f32 %v8940_v18, %v3602_v57  ;;  %v10514_v8 = vpop.f32.mrb[45].mxu1  ;;  %v3755_v13 = vsel %vm12413_vm14, %v3750_v52, %v3754_v37 }
 0x738   :  { %3763 = vrot.lane.b32.xlu0 %v3755_v13, %s12263_s14  ;;  %v3605_v39 = vpop.f32.mrb[46].mxu1  ;;  %v3760_v5 = vrot.slane %v3759_v16, 4 }
 0x739   :  { %v3620_v26 = vadd.f32 %v3603_v58, %v1455_v48  ;;  %v3606_v14 = vadd.f32 %v8940_v18, %v3605_v39  ;;  %v10515_v36 = vpop.f32.mrb[47].mxu1  ;;  %v3774_v12 = vld [vmem:[#allocation2 + $0x8] sm:$0xf] }
 0x73a   :  { %3765 = vrot.lane.b32.xlu1 %v3760_v5, %s12263_s14 }
 0x73b   :  { %v3624_v59 = vmax.f32 %v3620_v26, 0.0  ;;  %v3617_v62 = vsel %vm3613_vm2, %v3606_v14, 0.0  ;;  %vm6883_vm2 = vcmask 1046532  }
 0x73c   :  { %v3621_v41 = vadd.f32 %v3617_v62, %v1458_v21  ;;  %v11964_v62 = vld [vmem:[%s15159_s1 + $0x214] sm:$0xff]  }
 0x73d   :  { %v9313_v3 = vpack.c.bf16 %v3624_v59, %v3624_v59 }
 0x73e   :  { %v3625_v50 = vmax.f32 %v3621_v41, 0.0 }
 0x73f   :  { %3793 = vst.msk [vmem:[#allocation2 + $0x14] sm:$0xf] %vm149_vm11, %v9313_v3  ;;  %v3796_v4 = vshll.u32 %v9313_v3, 16  ;;  %v3799_v18 = vshrl.u32 %v9313_v3, 16 }
 0x740   :  { %v3635_v29 = vpack.c.bf16 %v3625_v50, %v3624_v59  ;;  %v9314_v42 = vpack.c.bf16 %v3625_v50, %v3625_v50 }
 0x741   :  { %v3798_v19 = vrot.slane %v3796_v4, 5  ;;  %v3801_v20 = vrot.slane %v3799_v18, 4 }
 0x742   :  { %3794 = vst.msk [vmem:[#allocation2 + $0x18] sm:$0xf] %vm149_vm11, %v9314_v42  ;;  %10525 = vmatmul.mubr.msk.bf16.vlgmr.msra.gmra.mrb[20].mxu0 %vm1281_vm9, %v3635_v29  ;;  %v3805_v49 = vshll.u32 %v9314_v42, 16  ;;  %v3809_v15 = vshrl.u32 %v9314_v42, 16 }
 0x743   :  { %3814 = vrot.lane.b32.xlu1 %v3798_v19, %s12263_s14  ;;  %v3802_v40 = vor.u32 %v3801_v20, %v3798_v19  ;;  %10760 = vmatprep.mubr.msk.bf16.mxu0 %vm12264_vm15, %v12262_v31 }
 0x744   :  { %v3807_v10 = vrot.slane %v3805_v49, 5  ;;  %v3811_v43 = vrot.slane %v3809_v15, 4  ;;  %v11966_v15 = vld [vmem:[%s15159_s1 + $0x224] sm:$0xff]  }
 0x745   :  { %v3803_v11 = vrot.slane %v3802_v40, 4 }
 0x746   :  { %v3812_v47 = vor.u32 %v3811_v43, %v3807_v10 }
 0x747   :  { %v3808_v28 = vsel %vm12413_vm14, %v3803_v11, %v3807_v10 }
 0x748   :  { %3816 = vrot.lane.b32.xlu0 %v3808_v28, %s12263_s14  ;;  %v3813_v22 = vrot.slane %v3812_v47, 4 }
 0x749   :  { %v3827_v3 = vld [vmem:[#allocation2 + $0x18] sm:$0xf] }
 0x74a   :  { %3818 = vrot.lane.b32.xlu1 %v3813_v22, %s12263_s14 }
 0x7a5   :  { %v3762_v38 = vpop.permute.xlu0 %3761 }
 0x7a6   :  { %v3771_v55 = vsel %vm12451_vm4, %v3762_v38, %v3770_v34  ;;  %v11967_v34 = vld [vmem:[%s15159_s1 + $0x22c] sm:$0xff]  }
 0x7a7   :  { %3772 = vst [vmem:[#allocation2] sm:$0x8] %v3771_v55 }
 0x7aa   :  { %v3764_v56 = vpop.permute.xlu0 %3763 }
 0x7ab   :  { %3773 = vst.msk [vmem:[#allocation2 + $0x4] sm:$0xf] %vm188_vm5, %v3764_v56 }
 0x7ac   :  { %v3766_v51 = vpop.permute.xlu1 %3765 }
 0x7ad   :  { %v3775_v46 = vsel %vm12459_vm8, %v3766_v51, %v3774_v12 }
 0x7ae   :  { %3776 = vst [vmem:[#allocation2 + $0x8] sm:$0xf] %v3775_v46  ;;  %v3887_v44 = vld [vmem:[#allocation2] sm:$0xc] }
 0x7af   :  { %v13695_v35 = vld [vmem:[#allocation2] sm:$0xf] }
 0x7b0   :  { %v13697_v9 = vld [vmem:[#allocation2] sm:$0x8] }
 0x7b1   :  { %v13699_v63 = vld [vmem:[#allocation2] sm:$0xe] }
 0x7b2   :  { %5362 = vst [vmem:[#allocation2] sm:$0xf] %v12261_v1  ;;  %v13702_v60 = vld [vmem:[#allocation2 + $0x4] sm:$0xf] }
 0x7b3   :  { %v8960_v17 = vcombine.low %v3887_v44, %v13702_v60 }
 0x7b5   :  { %v5363_v37 = vld [vmem:[#allocation2 + $0x8] sm:$0x8]  ;;  %v3815_v45 = vpop.permute.xlu1 %3814  ;;  %v3908_v57 = vshrl.u32 %v8960_v17, 16  ;;  %v3911_v48 = vshll.u32 %v8960_v17, 16 }
 0x7b6   :  { %v11963_v52 = vld [vmem:[#allocation2 + $0x8] sm:$0xff]   ;;  %v5364_v16 = vsel %vm12366_vm7, 0, %v5363_v37  ;;  %v3824_v54 = vsel %vm12451_vm4, %v3815_v45, %v3823_v61  ;;  %v8972_v45 = vcombine.low %v13695_v35, %v13702_v60 }
 0x7b7   :  { %v13709_v58 = vld [vmem:[#allocation2 + $0x8] sm:$0xf]  ;;  %3825 = vst [vmem:[#allocation2 + $0x10] sm:$0x8] %v3824_v54  ;;  %v3910_v8 = vrot.slane %v3908_v57, 2  ;;  %v13711_v13 = vshrl.u32 %v11963_v52, 16 }
 0x7b8   :  { %v13713_v39 = vshll.u32 %v11963_v52, 16  ;;  %5365 = vst [vmem:[#allocation2 + $0x8] sm:$0x8] %v5364_v16  ;;  %v3913_v5 = vrot.slane %v3911_v48, 3  ;;  %v11970_v57 = vld [vmem:[%s15159_s1 + $0x23c] sm:$0xff]   ;;  %v4059_v48 = vshll.u32 %v8972_v45, 16 }
 0x7b9   :  { %v3918_v6 = vrot.slane %v13711_v13, 2  ;;  %v4214_v36 = vrot.slane %v13711_v13, 3  ;;  %v4353_v50 = vrot.slane %v13711_v13, 1  ;;  %v5404_v2 = vld [vmem:[#allocation2] sm:$0x8] }
 0x7ba   :  { %v3921_v26 = vrot.slane %v13713_v39, 3  ;;  %v3817_v14 = vpop.permute.xlu0 %3816  ;;  %v3914_v21 = vor.u32 %v3913_v5, %v3910_v8  ;;  %v4215_v41 = vrot.slane %v13713_v39, 4  ;;  %v4354_v42 = vrot.slane %v13713_v39, 2 }
 0x7bb   :  { %3826 = vst.msk [vmem:[#allocation2 + $0x14] sm:$0xf] %vm188_vm5, %v3817_v14 }
 0x7bc   :  { %v3922_v59 = vor.u32 %v3921_v26, %v3918_v6  ;;  %v3819_v32 = vpop.permute.xlu1 %3818  ;;  %v13727_v29 = vor.u32 %v4215_v41, %v4214_v36  ;;  %v13736_v20 = vor.u32 %v4354_v42, %v4353_v50  ;;  %v11972_v26 = vld [vmem:[%s15159_s1 + $0x244] sm:$0xff]   ;;  %v4061_v36 = vrot.slane %v4059_v48, 1  ;;  %v11973_v41 = vld [vmem:[%s15159_s1 + $0x24c] sm:$0xff]  }
 0x7bd   :  { %v3828_v4 = vsel %vm12459_vm8, %v3819_v32, %v3827_v3  ;;  %v4057_v32 = vshrl.u32 %v8972_v45, 16 }
 0x7be   :  { %v3923_v18 = vsel %vm788_vm1, %v3914_v21, %v3922_v59  ;;  %3829 = vst [vmem:[#allocation2 + $0x18] sm:$0xf] %v3828_v4  ;;  %v12005_v19 = vld [vmem:[#allocation2 + $0xc] sm:$0xff]  }
 0x7bf   :  { %10545 = vmatmul.mubr.bf16.vlgmr.msra.gmra.mrb[48].mxu1 %v3923_v18  ;;  %5366 = vst [vmem:[#allocation2 + $0xc] sm:$0xf] %v12261_v1  ;;  %v13780_v8 = vshrl.u32 %v12005_v19, 16  ;;  %v13782_v5 = vshll.u32 %v12005_v19, 16  ;;  %v4062_v4 = vor.u32 %v4061_v36, %v4057_v32  ;;  %v4063_v18 = vrot.slane %v13713_v39, 1  ;;  %v11976_v39 = vld [vmem:[%s15159_s1 + $0x2dc] sm:$0xff]  }
 0x7c0   :  { %10557 = vmatpush3.bf16.msra.mxu1 %v11964_v62  ;;  %10548 = vmatprep.mubr.msk.bf16.mxu1 %vm12264_vm15, %v12262_v31  ;;  %v11988_v32 = vld [vmem:[%s15159_s1 + $0x26c] sm:$0xff]  }
 0x7c1   :  { %10558 = vmatprep.subr.bf16.mxu1 %v12262_v31  ;;  %v5019_v21 = vrot.slane %v13780_v8, 3 }
 0x7c2   :  { %v11968_v49 = vld [vmem:[#allocation2 + $0x10] sm:$0xff]  }
 0x7c3   :  { %5411 = vst [vmem:[#allocation2 + $0x10] sm:$0xf] %v12261_v1  ;;  %v13744_v40 = vshrl.u32 %v11968_v49, 16  ;;  %v13746_v10 = vshll.u32 %v11968_v49, 16  ;;  %v4064_v49 = vsel %vm647_vm13, %v4062_v4, %v4063_v18  ;;  %v11991_v4 = vld [vmem:[%s15159_s1 + $0x27c] sm:$0xff]  }
 0x7c4   :  { %10559 = vmatpush3.bf16.msra.mxu1 %v11965_v53  ;;  %v11975_v53 = vld [vmem:[%s15159_s1 + $0x2d4] sm:$0xff]  }
 0x7c5   :  { %10560 = vmatprep.subr.bf16.mxu1 %v12262_v31  ;;  %v5412_v43 = vld [vmem:[#allocation2 + $0x18] sm:$0x8]  ;;  %v3927_v11 = vrot.slane %v13744_v40, 2  ;;  %v3930_v47 = vrot.slane %v13746_v10, 3  ;;  %v13756_v51 = vld [vmem:[#allocation2 + $0x18] ss:$0 sps:$4 sm:$0xff]  }
 0x7c6   :  { %v11971_v28 = vld [vmem:[#allocation2 + $0x18] ss:$0 sps:$4 sm:$0x77]   ;;  %v5413_v22 = vsel %vm12366_vm7, 0, %v5412_v43  ;;  %v4357_v61 = vrot.slane %v13744_v40, 1  ;;  %v4358_v37 = vrot.slane %v13746_v10, 2 }
 0x7c7   :  { %v3931_v38 = vor.u32 %v3930_v47, %v3927_v11  ;;  %v3934_v55 = vshrl.u32 %v11971_v28, 16  ;;  %v3937_v56 = vshll.u32 %v11971_v28, 16  ;;  %v12008_v46 = vld [vmem:[#allocation2 + $0x14] sm:$0xff]   ;;  %v4065_v11 = vor.u32 %v4063_v18, %v13711_v13  ;;  %v11977_v47 = vld [vmem:[%s15159_s1 + $0x2e4] sm:$0xff]  }
 0x7c8   :  { %10561 = vmatpush3.bf16.msra.mxu1 %v11966_v15  ;;  %5414 = vst [vmem:[#allocation2 + $0x18] sm:$0x8] %v5413_v22  ;;  %v13769_v52 = vor.u32 %v4358_v37, %v4357_v61  ;;  %v13784_v35 = vshrl.u32 %v12008_v46, 16  ;;  %v13790_v14 = vshll.u32 %v12008_v46, 16  ;;  %v4066_v15 = vrot.slane %v13746_v10, 1  ;;  %v11983_v61 = vld [vmem:[%s15159_s1 + $0x30c] sm:$0xff]  }
 0x7c9   :  { %10562 = vmatprep.subr.bf16.mxu1 %v12262_v31  ;;  %v3932_v12 = vsel %vm788_vm1, %v3922_v59, %v3931_v38  ;;  %v3936_v44 = vrot.slane %v3934_v55, 2  ;;  %v3939_v17 = vrot.slane %v3937_v56, 3  ;;  %v5020_v59 = vrot.slane %v13782_v5, 4  ;;  %v11979_v43 = vld [vmem:[#allocation2 + $0x18] ss:$0 sps:$4 sm:$0x11]  }
 0x7ca   :  { %10549 = vmatmul.mubr.bf16.gmra.mrb[52].mxu1 %v3932_v12  ;;  %v13778_v54 = vsel %vm474_vm12, %v13736_v20, %v13769_v52  ;;  %v5023_v62 = vrot.slane %v13784_v35, 3  ;;  %v5024_v3 = vrot.slane %v13790_v14, 4  ;;  %v4067_v28 = vsel %vm647_vm13, %v4065_v11, %v4066_v15  ;;  %v11980_v55 = vld [vmem:[%s15159_s1 + $0x2f4] sm:$0xff]   ;;  %v11981_v12 = vld [vmem:[%s15159_s1 + $0x2fc] sm:$0xff]  }
 0x7cb   :  { %10552 = vmatprep.mubr.msk.bf16.mxu1 %vm12264_vm15, %v12262_v31  ;;  %v3940_v16 = vor.u32 %v3939_v17, %v3936_v44  ;;  %v13803_v50 = vor.u32 %v5020_v59, %v5019_v21  ;;  %v4070_v22 = vshll.u32 %v11979_v43, 16  ;;  %v4068_v13 = vor.u32 %v4066_v15, %v13744_v40 }
 0x7cc   :  { %10563 = vmatpush3.bf16.msra.mxu1 %v11967_v34  ;;  %v13806_v42 = vor.u32 %v5024_v3, %v5023_v62  ;;  %v11978_v34 = vld [vmem:[%s15159_s1 + $0x2ec] sm:$0xff]   ;;  %v8982_v46 = vcombine.low %v13697_v9, %v13702_v60  ;;  %v4218_v48 = vrot.slane %v13744_v40, 3  ;;  %v4223_v21 = vshrl.u32 %v13756_v51, 16  ;;  %v11987_v40 = vld [vmem:[%s15159_s1 + $0x264] sm:$0xff]   ;;  %v11990_v3 = vld [vmem:[%s15159_s1 + $0x274] sm:$0xff]  }
 0x7cd   :  { %10564 = vmatprep.subr.bf16.mxu1 %v12262_v31  ;;  %v3941_v6 = vsel %vm788_vm1, %v3931_v38, %v3940_v16  ;;  %v4072_v38 = vrot.slane %v4070_v22, 1  ;;  %v4226_v59 = vshll.u32 %v13756_v51, 16  ;;  %v8992_v18 = vcombine.low %v13699_v63, %v13702_v60  ;;  %v11993_v63 = vld [vmem:[%s15159_s1 + $0x28c] sm:$0xff]  }
 0x7ce   :  { %v13814_v19 = vsel %vm326_vm6, %v13803_v50, %v13806_v42  ;;  %v4207_v44 = vshrl.u32 %v8982_v46, 16  ;;  %v4210_v17 = vshll.u32 %v8982_v46, 16  ;;  %v4225_v62 = vrot.slane %v4223_v21, 3  ;;  %v11997_v46 = vld [vmem:[%s15159_s1 + $0x324] sm:$0xff]  }
 0x7cf   :  { %v4073_v56 = vsel %vm647_vm13, %v4068_v13, %v4072_v38  ;;  %v11999_v38 = vld [vmem:[#allocation2 + $0x18] ss:$0 sps:$4 sm:$0x33]   ;;  %vm15182_vm7 = vcmask 1042432  }
 0x7d0   :  { %10565 = vmatpush3.bf16.msra.mxu1 %v11969_v25  ;;  %v11982_v25 = vld [vmem:[%s15159_s1 + $0x304] sm:$0xff]   ;;  %v4209_v37 = vrot.slane %v4207_v44, 3  ;;  %v4212_v45 = vrot.slane %v4210_v17, 4  ;;  %v11998_v44 = vld [vmem:[%s15159_s1 + $0x32c] sm:$0xff]  }
 0x7d1   :  { %10566 = vmatprep.subr.bf16.mxu1 %v12262_v31 }
 0x7d2   :  { %10553 = vmatmul.mubr.bf16.gmra.mrb[56].mxu1 %v3941_v6  ;;  %v4213_v9 = vor.u32 %v4212_v45, %v4209_v37  ;;  %v4219_v6 = vrot.slane %v13746_v10, 4  ;;  %v4494_v37 = vld [vmem:[#allocation2 + $0x4] sm:$0xf]  ;;  %v12035_v45 = vld [vmem:[%s15159_s1 + $0x414] sm:$0xff]  }
 0x7d3   :  { %10572 = vmatprep.mubr.msk.bf16.mxu1 %vm12264_vm15, %v12262_v31  ;;  %10753 = vmatpush3.bf16.msra.mxu0 %v12035_v45 }
 0x7d4   :  { %10567 = vmatpush3.bf16.msra.mxu1 %v11970_v57  ;;  %v11985_v57 = vld [vmem:[%s15159_s1 + $0x254] sm:$0xff]   ;;  %v4217_v16 = vsel %vm326_vm6, %v4213_v9, %v13727_v29  ;;  %v4220_v36 = vor.u32 %v4219_v6, %v4218_v48  ;;  %v12001_v9 = vld [vmem:[%s15159_s1 + $0x33c] sm:$0xff]   ;;  %10754 = vmatprep.subr.bf16.mxu0 %v12262_v31  ;;  %v12037_v6 = vld [vmem:[%s15159_s1 + $0x424] sm:$0xff]  }
 0x7d5   :  { %10568 = vmatprep.subr.bf16.mxu1 %v12262_v31 }
 0x7d6   :  { %v4221_v10 = vsel %vm326_vm6, %v13727_v29, %v4220_v36 }
 0x7d8   :  { %10569 = vmatpush3.bf16.msra.mxu1 %v11972_v26  ;;  %v11986_v26 = vld [vmem:[%s15159_s1 + $0x25c] sm:$0xff]  }
 0x7d9   :  { %10570 = vmatprep.subr.bf16.mxu1 %v12262_v31 }
 0x7dc   :  { %10571 = vmatpush3.bf16.msra.mxu1 %v11973_v41  ;;  %v4228_v41 = vrot.slane %v4226_v59, 4  ;;  %v4529_v59 = vrot.slane %v13782_v5, 1 }
 0x7dd   :  { %10584 = vmatprep.subr.bf16.mxu1 %v12262_v31 }
 0x7de   :  { %v4229_v51 = vor.u32 %v4228_v41, %v4225_v62  ;;  %v12007_v41 = vld [vmem:[%s15159_s1 + $0x35c] sm:$0xff]  }
 0x7df   :  { %10573 = vmatmul.mubr.bf16.vlgmr.msra.gmra.mrb[48].mxu1 %v4064_v49  ;;  %v4346_v49 = vshrl.u32 %v8992_v18, 16 }
 0x7e0   :  { %10585 = vmatpush3.bf16.msra.mxu1 %v11975_v53  ;;  %10576 = vmatprep.mubr.msk.bf16.mxu1 %vm12264_vm15, %v12262_v31  ;;  %v4230_v29 = vsel %vm326_vm6, %v4220_v36, %v4229_v51  ;;  %v11992_v53 = vld [vmem:[%s15159_s1 + $0x284] sm:$0xff]   ;;  %v4533_v51 = vor.u32 %v13780_v8, %v4529_v59 }
 0x7e1   :  { %10586 = vmatprep.subr.bf16.mxu1 %v12262_v31  ;;  %v4348_v60 = vrot.slane %v4346_v49, 1 }
 0x7e4   :  { %10587 = vmatpush3.bf16.msra.mxu1 %v11976_v39  ;;  %v4349_v39 = vshll.u32 %v8992_v18, 16  ;;  %v12010_v18 = vld [vmem:[%s15159_s1 + $0x36c] sm:$0xff]  }
 0x7e5   :  { %10588 = vmatprep.subr.bf16.mxu1 %v12262_v31 }
 0x7e7   :  { %10577 = vmatmul.mubr.bf16.gmra.mrb[52].mxu1 %v4067_v28 }
 0x7e8   :  { %10589 = vmatpush3.bf16.msra.mxu1 %v11977_v47  ;;  %10580 = vmatprep.mubr.msk.bf16.mxu1 %vm12264_vm15, %v12262_v31  ;;  %v4351_v47 = vrot.slane %v4349_v39, 2  ;;  %v12012_v39 = vld [vmem:[%s15159_s1 + $0x374] sm:$0xff]  }
 0x7e9   :  { %10590 = vmatprep.subr.bf16.mxu1 %v12262_v31 }
 0x7ea   :  { %v4352_v22 = vor.u32 %v4351_v47, %v4348_v60  ;;  %v12013_v60 = vld [vmem:[%s15159_s1 + $0x37c] sm:$0xff]  }
 0x7ec   :  { %10591 = vmatpush3.bf16.msra.mxu1 %v11978_v34  ;;  %v11995_v34 = vld [vmem:[%s15159_s1 + $0x314] sm:$0xff]   ;;  %v4356_v13 = vsel %vm474_vm12, %v4352_v22, %v13736_v20  ;;  %v12014_v22 = vld [vmem:[%s15159_s1 + $0x384] sm:$0xff]  }
 0x7ed   :  { %10592 = vmatprep.subr.bf16.mxu1 %v12262_v31 }
 0x7ef   :  { %10581 = vmatmul.mubr.bf16.gmra.mrb[56].mxu1 %v4073_v56  ;;  %v4362_v56 = vshrl.u32 %v11999_v38, 16 }
 0x7f0   :  { %10593 = vmatpush3.bf16.msra.mxu1 %v11980_v55  ;;  %10600 = vmatprep.mubr.msk.bf16.mxu1 %vm12264_vm15, %v12262_v31  ;;  %v11996_v55 = vld [vmem:[%s15159_s1 + $0x31c] sm:$0xff]  }
 0x7f1   :  { %10594 = vmatprep.subr.bf16.mxu1 %v12262_v31  ;;  %v4364_v20 = vrot.slane %v4362_v56, 1  ;;  %v12015_v56 = vld [vmem:[%s15159_s1 + $0x38c] sm:$0xff]  }
 0x7f4   :  { %10595 = vmatpush3.bf16.msra.mxu1 %v11981_v12  ;;  %v4365_v12 = vshll.u32 %v11999_v38, 16  ;;  %v4693_v38 = vrot.slane %v13780_v8, 1 }
 0x7f5   :  { %10596 = vmatprep.subr.bf16.mxu1 %v12262_v31 }
 0x7f8   :  { %10597 = vmatpush3.bf16.msra.mxu1 %v11982_v25  ;;  %v4367_v25 = vrot.slane %v4365_v12, 2 }
 0x7f9   :  { %10598 = vmatprep.subr.bf16.mxu1 %v12262_v31 }
 0x7fa   :  { %v4368_v17 = vor.u32 %v4367_v25, %v4364_v20 }
 0x7fc   :  { %10599 = vmatpush3.bf16.msra.mxu1 %v11983_v61  ;;  %v12000_v61 = vld [vmem:[%s15159_s1 + $0x334] sm:$0xff]  }
 0x7fd   :  { %10612 = vmatprep.subr.bf16.mxu1 %v12262_v31 }
 0x7ff   :  { %10601 = vmatmul.mubr.bf16.vlgmr.msra.gmra.mrb[48].mxu1 %v4217_v16  ;;  %v12002_v16 = vld [vmem:[%s15159_s1 + $0x344] sm:$0xff]  }
 0x800   :  { %10613 = vmatpush3.bf16.msra.mxu1 %v11985_v57  ;;  %10604 = vmatprep.mubr.msk.bf16.mxu1 %vm12264_vm15, %v12262_v31  ;;  %v9002_v57 = vcombine.low %v4494_v37, %v13709_v58  ;;  %v12017_v37 = vld [vmem:[%s15159_s1 + $0x39c] sm:$0xff]  }
 0x801   :  { %10614 = vmatprep.subr.bf16.mxu1 %v12262_v31 }
 0x802   :  { %v4522_v48 = vshll.u32 %v9002_v57, 16  ;;  %v4520_v21 = vshrl.u32 %v9002_v57, 16  ;;  %v4705_v57 = vshll.u32 %v13681_v24, 16 }
 0x804   :  { %10615 = vmatpush3.bf16.msra.mxu1 %v11986_v26  ;;  %v12003_v26 = vld [vmem:[%s15159_s1 + $0x34c] sm:$0xff]   ;;  %v4524_v36 = vrot.slane %v4522_v48, 1 }
 0x805   :  { %10616 = vmatprep.subr.bf16.mxu1 %v12262_v31 }
 0x807   :  { %10605 = vmatmul.mubr.bf16.gmra.mrb[52].mxu1 %v4221_v10  ;;  %v12006_v10 = vld [vmem:[%s15159_s1 + $0x354] sm:$0xff]  }
 0x808   :  { %10617 = vmatpush3.bf16.msra.mxu1 %v11987_v40  ;;  %10608 = vmatprep.mubr.msk.bf16.mxu1 %vm12264_vm15, %v12262_v31  ;;  %v4525_v40 = vor.u32 %v4524_v36, %v4520_v21  ;;  %v12021_v36 = vld [vmem:[%s15159_s1 + $0x3b4] sm:$0xff]  }
 0x809   :  { %10618 = vmatprep.subr.bf16.mxu1 %v12262_v31 }
 0x80a   :  { %v4530_v62 = vsel %vm647_vm13, %v4525_v40, %v4529_v59  ;;  %v4840_v59 = vld [vmem:[#allocation2 + $0x4] sm:$0xc]  ;;  %v12022_v40 = vld [vmem:[%s15159_s1 + $0x3bc] sm:$0xff]  }
 0x80c   :  { %10619 = vmatpush3.bf16.msra.mxu1 %v11988_v32  ;;  %v4537_v32 = vrot.slane %v13790_v14, 1 }
 0x80d   :  { %10620 = vmatprep.subr.bf16.mxu1 %v12262_v31 }
 0x80f   :  { %10609 = vmatmul.mubr.bf16.gmra.mrb[56].mxu1 %v4230_v29  ;;  %v4538_v29 = vsel %vm647_vm13, %v4533_v51, %v4537_v32  ;;  %v4856_v51 = vrot.slane %v13780_v8, 2 }
 0x810   :  { %10621 = vmatpush3.bf16.msra.mxu1 %v11990_v3  ;;  %10628 = vmatprep.mubr.msk.bf16.mxu1 %vm12264_vm15, %v12262_v31  ;;  %v12009_v3 = vld [vmem:[%s15159_s1 + $0x364] sm:$0xff]  }
 0x811   :  { %10622 = vmatprep.subr.bf16.mxu1 %v12262_v31 }
 0x814   :  { %10623 = vmatpush3.bf16.msra.mxu1 %v11991_v4  ;;  %v4543_v4 = vshll.u32 %v13685_v30, 16 }
 0x815   :  { %10624 = vmatprep.subr.bf16.mxu1 %v12262_v31  ;;  %v13904_v15 = vpop.f32.mrb[20].mxu0 }
 0x816   :  { %v13906_v43 = vpop.f32.mrb[21].mxu0  ;;  %v4545_v49 = vrot.slane %v4543_v4, 1 }
 0x817   :  { %v13908_v11 = vpop.f32.mrb[22].mxu0 }
 0x818   :  { %10625 = vmatpush3.bf16.msra.mxu1 %v11992_v53  ;;  %v13913_v28 = vpop.f32.mrb[23].mxu0  ;;  %v4541_v53 = vor.u32 %v13784_v35, %v4537_v32 }
 0x819   :  { %10626 = vmatprep.subr.bf16.mxu1 %v12262_v31 }
 0x81a   :  { %v4546_v30 = vsel %vm647_vm13, %v4541_v53, %v4545_v49 }
 0x81c   :  { %10627 = vmatpush3.bf16.msra.mxu1 %v11993_v63  ;;  %v4677_v63 = vld [vmem:[#allocation2 + $0x4] sm:$0xe] }
 0x81d   :  { %10640 = vmatprep.subr.bf16.mxu1 %v12262_v31  ;;  %v9014_v47 = vcombine.low %v4677_v63, %v13709_v58  ;;  %v12026_v63 = vld [vmem:[%s15159_s1 + $0x3dc] sm:$0xff]  }
 0x81f   :  { %10629 = vmatmul.mubr.bf16.vlgmr.msra.gmra.mrb[48].mxu1 %v4356_v13  ;;  %v4689_v13 = vshll.u32 %v9014_v47, 16 }
 0x820   :  { %10641 = vmatpush3.bf16.msra.mxu1 %v11995_v34  ;;  %10632 = vmatprep.mubr.msk.bf16.mxu1 %vm12264_vm15, %v12262_v31  ;;  %v4686_v34 = vshrl.u32 %v9014_v47, 16  ;;  %v4865_v47 = vshrl.u32 %v13683_v23, 16 }
 0x821   :  { %10642 = vmatprep.subr.bf16.mxu1 %v12262_v31 }
 0x822   :  { %v4688_v12 = vrot.slane %v4686_v34, 1  ;;  %v4867_v34 = vrot.slane %v4865_v47, 2 }
 0x824   :  { %10643 = vmatpush3.bf16.msra.mxu1 %v11996_v55  ;;  %v4694_v55 = vrot.slane %v13782_v5, 2 }
 0x825   :  { %10644 = vmatprep.subr.bf16.mxu1 %v12262_v31 }
 0x826   :  { %v4695_v20 = vor.u32 %v4694_v55, %v4693_v38  ;;  %v12028_v38 = vld [vmem:[%s15159_s1 + $0x3ec] sm:$0xff]   ;;  %v12030_v55 = vld [vmem:[%s15159_s1 + $0x3f4] sm:$0xff]  }
 0x827   :  { %10633 = vmatmul.mubr.bf16.gmra.mrb[52].mxu1 %v13778_v54  ;;  %v4369_v54 = vsel %vm474_vm12, %v13769_v52, %v4368_v17  ;;  %v12036_v52 = vld [vmem:[%s15159_s1 + $0x41c] sm:$0xff]  }
 0x828   :  { %10645 = vmatpush3.bf16.msra.mxu1 %v11997_v46  ;;  %10636 = vmatprep.mubr.msk.bf16.mxu1 %vm12264_vm15, %v12262_v31  ;;  %v4691_v46 = vrot.slane %v4689_v13, 2 }
 0x829   :  { %10646 = vmatprep.subr.bf16.mxu1 %v12262_v31  ;;  %10755 = vmatpush3.bf16.msra.mxu0 %v12036_v52  ;;  %v12018_v52 = vld [vmem:[%s15159_s1 + $0x3a4] sm:$0xff]  }
 0x82a   :  { %10756 = vmatprep.subr.bf16.mxu0 %v12262_v31  ;;  %v4692_v25 = vor.u32 %v4691_v46, %v4688_v12  ;;  %v5003_v12 = vld [vmem:[#allocation2 + $0x4] sm:$0x8]  ;;  %v12031_v46 = vld [vmem:[%s15159_s1 + $0x3fc] sm:$0xff]  }
 0x82c   :  { %10647 = vmatpush3.bf16.msra.mxu1 %v11998_v44  ;;  %v12016_v44 = vld [vmem:[%s15159_s1 + $0x394] sm:$0xff]   ;;  %v4696_v17 = vsel %vm474_vm12, %v4692_v25, %v4695_v20  ;;  %v12032_v25 = vld [vmem:[%s15159_s1 + $0x404] sm:$0xff]  }
 0x82d   :  { %10648 = vmatprep.subr.bf16.mxu1 %v12262_v31  ;;  %10757 = vmatpush3.bf16.msra.mxu0 %v12037_v6  ;;  %v4707_v6 = vrot.slane %v4705_v57, 2  ;;  %v5031_v57 = vshll.u32 %v13687_v0, 16 }
 0x82e   :  { %10758 = vmatprep.subr.bf16.mxu0 %v12262_v31 }
 0x82f   :  { %10637 = vmatmul.mubr.bf16.gmra.mrb[56].mxu1 %v4369_v54  ;;  %v4698_v54 = vrot.slane %v13790_v14, 2 }
 0x830   :  { %10649 = vmatpush3.bf16.msra.mxu1 %v12000_v61  ;;  %10656 = vmatprep.mubr.msk.bf16.mxu1 %vm12264_vm15, %v12262_v31  ;;  %v4697_v61 = vrot.slane %v13784_v35, 1 }
 0x831   :  { %10650 = vmatprep.subr.bf16.mxu1 %v12262_v31 }
 0x832   :  { %v4699_v45 = vor.u32 %v4698_v54, %v4697_v61  ;;  %v12033_v61 = vld [vmem:[%s15159_s1 + $0x40c] sm:$0xff]  }
 0x834   :  { %10651 = vmatpush3.bf16.msra.mxu1 %v12001_v9  ;;  %v4702_v9 = vshrl.u32 %v13681_v24, 16 }
 0x835   :  { %10652 = vmatprep.subr.bf16.mxu1 %v12262_v31 }
 0x836   :  { %v4704_v48 = vrot.slane %v4702_v9, 1  ;;  %v5028_v9 = vshrl.u32 %v13687_v0, 16 }
 0x838   :  { %10653 = vmatpush3.bf16.msra.mxu1 %v12002_v16  ;;  %v4700_v16 = vsel %vm474_vm12, %v4695_v20, %v4699_v45  ;;  %v4708_v24 = vor.u32 %v4707_v6, %v4704_v48  ;;  %v9034_v20 = vcombine.low %v5003_v12, %v13709_v58 }
 0x839   :  { %10654 = vmatprep.subr.bf16.mxu1 %v12262_v31 }
 0x83a   :  { %v4709_v21 = vsel %vm474_vm12, %v4699_v45, %v4708_v24 }
 0x83c   :  { %10655 = vmatpush3.bf16.msra.mxu1 %v12003_v26  ;;  %v12019_v26 = vld [vmem:[%s15159_s1 + $0x3ac] sm:$0xff]  }
 0x83d   :  { %10668 = vmatprep.subr.bf16.mxu1 %v12262_v31 }
 0x83f   :  { %10657 = vmatmul.mubr.bf16.vlgmr.msra.gmra.mrb[48].mxu1 %v4530_v62  ;;  %v12023_v62 = vld [vmem:[%s15159_s1 + $0x3c4] sm:$0xff]  }
 0x840   :  { %10669 = vmatpush3.bf16.msra.mxu1 %v12006_v10  ;;  %10660 = vmatprep.mubr.msk.bf16.mxu1 %vm12264_vm15, %v12262_v31  ;;  %v9024_v10 = vcombine.low %v4840_v59, %v13709_v58 }
 0x841   :  { %10670 = vmatprep.subr.bf16.mxu1 %v12262_v31 }
 0x842   :  { %v4852_v32 = vshll.u32 %v9024_v10, 16 }
 0x844   :  { %10671 = vmatpush3.bf16.msra.mxu1 %v12007_v41  ;;  %v4849_v41 = vshrl.u32 %v9024_v10, 16 }
 0x845   :  { %10672 = vmatprep.subr.bf16.mxu1 %v12262_v31 }
 0x846   :  { %v4851_v4 = vrot.slane %v4849_v41, 2 }
 0x847   :  { %10661 = vmatmul.mubr.bf16.gmra.mrb[52].mxu1 %v4538_v29  ;;  %v12024_v29 = vld [vmem:[%s15159_s1 + $0x3cc] sm:$0xff]  }
 0x848   :  { %10673 = vmatpush3.bf16.msra.mxu1 %v12009_v3  ;;  %10664 = vmatprep.mubr.msk.bf16.mxu1 %vm12264_vm15, %v12262_v31  ;;  %v4857_v3 = vrot.slane %v13782_v5, 3  ;;  %v4860_v5 = vrot.slane %v13784_v35, 2  ;;  %v12027_v35 = vld [vmem:[%s15159_s1 + $0x3e4] sm:$0xff]  }
 0x849   :  { %10674 = vmatprep.subr.bf16.mxu1 %v12262_v31 }
 0x84a   :  { %v4858_v53 = vor.u32 %v4857_v3, %v4856_v51 }
 0x84c   :  { %10675 = vmatpush3.bf16.msra.mxu1 %v12010_v18  ;;  %v4854_v18 = vrot.slane %v4852_v32, 3 }
 0x84d   :  { %10676 = vmatprep.subr.bf16.mxu1 %v12262_v31 }
 0x84e   :  { %v4855_v49 = vor.u32 %v4854_v18, %v4851_v4  ;;  %v12040_v4 = vld [vmem:[%s15159_s1 + $0x6bc] sm:$0xff]   ;;  %v12041_v18 = vld [vmem:[%s15159_s1 + $0x6c4] sm:$0xff]  }
 0x84f   :  { %10665 = vmatmul.mubr.bf16.gmra.mrb[56].mxu1 %v4546_v30  ;;  %v4861_v30 = vrot.slane %v13790_v14, 3 }
 0x850   :  { %10677 = vmatpush3.bf16.msra.mxu1 %v12012_v39  ;;  %10684 = vmatprep.mubr.msk.bf16.mxu1 %vm12264_vm15, %v12262_v31  ;;  %v12025_v39 = vld [vmem:[%s15159_s1 + $0x3d4] sm:$0xff]   ;;  %v4859_v8 = vsel %vm788_vm1, %v4855_v49, %v4858_v53 }
 0x851   :  { %10678 = vmatprep.subr.bf16.mxu1 %v12262_v31  ;;  %v12043_v49 = vld [vmem:[%s15159_s1 + $0x4d4] sm:$0xff]  }
 0x854   :  { %10679 = vmatpush3.bf16.msra.mxu1 %v12013_v60  ;;  %v4862_v60 = vor.u32 %v4861_v30, %v4860_v5  ;;  %v8949_v5 = vld [vmem:[%s15162_s3 + $0x4] ss:$0 sm:$0xff]  ;;  %v9044_v30 = vld [vmem:[%s15162_s3 + $0x3] ss:$0 sm:$0xff] }
 0x855   :  { %10680 = vmatprep.subr.bf16.mxu1 %v12262_v31 }
 0x856   :  { %v4863_v14 = vsel %vm788_vm1, %v4858_v53, %v4862_v60  ;;  %v12042_v53 = vld [vmem:[%s15159_s1 + $0x6cc] sm:$0xff]  }
 0x858   :  { %10681 = vmatpush3.bf16.msra.mxu1 %v12014_v22  ;;  %v4868_v22 = vshll.u32 %v13683_v23, 16 }
 0x859   :  { %10682 = vmatprep.subr.bf16.mxu1 %v12262_v31 }
 0x85a   :  { %v4870_v13 = vrot.slane %v4868_v22, 3 }
 0x85c   :  { %10683 = vmatpush3.bf16.msra.mxu1 %v12015_v56  ;;  %v4871_v23 = vor.u32 %v4870_v13, %v4867_v34  ;;  %v3709_v34 = vadd.f32 %v8949_v5, %v13913_v28 }
 0x85d   :  { %10696 = vmatprep.subr.bf16.mxu1 %v12262_v31 }
 0x85e   :  { %v4872_v56 = vsel %vm788_vm1, %v4862_v60, %v4871_v23  ;;  %v3706_v60 = vadd.f32 %v8949_v5, %v13906_v43 }
 0x85f   :  { %10685 = vmatmul.mubr.bf16.vlgmr.msra.gmra.mrb[48].mxu1 %v4696_v17  ;;  %v5015_v17 = vshll.u32 %v9034_v20, 16 }
 0x860   :  { %10697 = vmatpush3.bf16.msra.mxu1 %v12016_v44  ;;  %10688 = vmatprep.mubr.msk.bf16.mxu1 %vm12264_vm15, %v12262_v31  ;;  %v5012_v44 = vshrl.u32 %v9034_v20, 16  ;;  %v12048_v20 = vld [vmem:[%s15159_s1 + $0x4fc] sm:$0xff]  }
 0x861   :  { %10698 = vmatprep.subr.bf16.mxu1 %v12262_v31 }
 0x862   :  { %v5014_v54 = vrot.slane %v5012_v44, 3 }
 0x864   :  { %10699 = vmatpush3.bf16.msra.mxu1 %v12017_v37  ;;  %v5017_v37 = vrot.slane %v5015_v17, 4 }
 0x865   :  { %10700 = vmatprep.subr.bf16.mxu1 %v12262_v31 }
 0x866   :  { %v5018_v58 = vor.u32 %v5017_v37, %v5014_v54 }
 0x867   :  { %10689 = vmatmul.mubr.bf16.gmra.mrb[52].mxu1 %v4700_v16  ;;  %v5033_v16 = vrot.slane %v5031_v57, 4 }
 0x868   :  { %10701 = vmatpush3.bf16.msra.mxu1 %v12018_v52  ;;  %10692 = vmatprep.mubr.msk.bf16.mxu1 %vm12264_vm15, %v12262_v31  ;;  %v5022_v45 = vsel %vm326_vm6, %v5018_v58, %v13803_v50  ;;  %v5030_v52 = vrot.slane %v5028_v9, 3  ;;  %v12038_v50 = vld [vmem:[%s15159_s1 + $0x42c] sm:$0xff]  }
 0x869   :  { %10702 = vmatprep.subr.bf16.mxu1 %v12262_v31  ;;  %10759 = vmatpush3.bf16.msra.mxu0 %v12038_v50 }
 0x86a   :  { %v5034_v48 = vor.u32 %v5033_v16, %v5030_v52  ;;  %v12049_v16 = vld [vmem:[%s15159_s1 + $0x504] sm:$0xff]  }
 0x86c   :  { %10703 = vmatpush3.bf16.msra.mxu1 %v12019_v26  ;;  %v5035_v6 = vsel %vm326_vm6, %v13806_v42, %v5034_v48 }
 0x86d   :  { %10704 = vmatprep.subr.bf16.mxu1 %v12262_v31 }
 0x86f   :  { %10693 = vmatmul.mubr.bf16.gmra.mrb[56].mxu1 %v4709_v21 }
 0x870   :  { %10705 = vmatpush3.bf16.msra.mxu1 %v12021_v36  ;;  %10712 = vmatprep.mubr.msk.bf16.mxu1 %vm12264_vm15, %v12262_v31 }
 0x871   :  { %10706 = vmatprep.subr.bf16.mxu1 %v12262_v31 }
 0x874   :  { %10707 = vmatpush3.bf16.msra.mxu1 %v12022_v40 }
 0x875   :  { %10708 = vmatprep.subr.bf16.mxu1 %v12262_v31 }
 0x878   :  { %10709 = vmatpush3.bf16.msra.mxu1 %v12023_v62 }
 0x879   :  { %10710 = vmatprep.subr.bf16.mxu1 %v12262_v31 }
 0x87c   :  { %10711 = vmatpush3.bf16.msra.mxu1 %v12024_v29  ;;  %v12039_v29 = vld [vmem:[%s15159_s1 + $0x6b4] sm:$0xff]  }
 0x87d   :  { %10724 = vmatprep.subr.bf16.mxu1 %v12262_v31  ;;  %10772 = vmatprep.subr.bf16.mxu0 %v12039_v29 }
 0x87f   :  { %10713 = vmatmul.mubr.bf16.vlgmr.msra.gmra.mrb[48].mxu1 %v4859_v8  ;;  %v12045_v8 = vld [vmem:[%s15159_s1 + $0x4e4] sm:$0xff]  }
 0x880   :  { %10725 = vmatpush3.bf16.msra.mxu1 %v12025_v39  ;;  %10716 = vmatprep.mubr.msk.bf16.mxu1 %vm12264_vm15, %v12262_v31  ;;  %v12044_v39 = vld [vmem:[%s15159_s1 + $0x4dc] sm:$0xff]  }
 0x881   :  { %10726 = vmatprep.subr.bf16.mxu1 %v12262_v31 }
 0x884   :  { %10727 = vmatpush3.bf16.msra.mxu1 %v12026_v63 }
 0x885   :  { %10728 = vmatprep.subr.bf16.mxu1 %v12262_v31 }
 0x887   :  { %10717 = vmatmul.mubr.bf16.gmra.mrb[52].mxu1 %v4863_v14 }
 0x888   :  { %10729 = vmatpush3.bf16.msra.mxu1 %v12027_v35  ;;  %10720 = vmatprep.mubr.msk.bf16.mxu1 %vm12264_vm15, %v12262_v31  ;;  %v12046_v35 = vld [vmem:[%s15159_s1 + $0x4ec] sm:$0xff]  }
 0x889   :  { %10730 = vmatprep.subr.bf16.mxu1 %v12262_v31 }
 0x88c   :  { %10731 = vmatpush3.bf16.msra.mxu1 %v12028_v38 }
 0x88d   :  { %10732 = vmatprep.subr.bf16.mxu1 %v12262_v31 }
 0x88f   :  { %10721 = vmatmul.mubr.bf16.gmra.mrb[56].mxu1 %v4872_v56 }
 0x890   :  { %10733 = vmatpush3.bf16.msra.mxu1 %v12030_v55  ;;  %10740 = vmatprep.mubr.msk.bf16.mxu1 %vm12264_vm15, %v12262_v31  ;;  %v12047_v55 = vld [vmem:[%s15159_s1 + $0x4f4] sm:$0xff]  }
 0x891   :  { %10734 = vmatprep.subr.bf16.mxu1 %v12262_v31 }
 0x894   :  { %10735 = vmatpush3.bf16.msra.mxu1 %v12031_v46 }
 0x895   :  { %10736 = vmatprep.subr.bf16.mxu1 %v12262_v31 }
 0x898   :  { %10737 = vmatpush3.bf16.msra.mxu1 %v12032_v25 }
 0x899   :  { %10738 = vmatprep.subr.bf16.mxu1 %v12262_v31 }
 0x89c   :  { %10739 = vmatpush3.bf16.msra.mxu1 %v12033_v61 }
 0x89d   :  { %10784 = vmatprep.subr.bf16.mxu1 %v12262_v31 }
 0x89f   :  { %10741 = vmatmul.mubr.bf16.vlgmr.msra.gmra.mrb[48].mxu1 %v5022_v45 }
 0x8a0   :  { %10744 = vmatprep.mubr.msk.bf16.mxu1 %vm12264_vm15, %v12262_v31  ;;  %10785 = vmatpush3.bf16.msra.mxu1 %v12043_v49 }
 0x8a1   :  { %10786 = vmatprep.subr.bf16.mxu1 %v12262_v31 }
 0x8a4   :  { %10787 = vmatpush3.bf16.msra.mxu1 %v12044_v39 }
 0x8a5   :  { %10788 = vmatprep.subr.bf16.mxu1 %v12262_v31 }
 0x8a7   :  { %10745 = vmatmul.mubr.bf16.gmra.mrb[52].mxu1 %v13814_v19 }
 0x8a8   :  { %10748 = vmatprep.mubr.msk.bf16.mxu1 %vm12264_vm15, %v12262_v31  ;;  %10789 = vmatpush3.bf16.msra.mxu1 %v12045_v8 }
 0x8a9   :  { %10790 = vmatprep.subr.bf16.mxu1 %v12262_v31 }
 0x8ac   :  { %10791 = vmatpush3.bf16.msra.mxu1 %v12046_v35 }
 0x8ad   :  { %10792 = vmatprep.subr.bf16.mxu1 %v12262_v31 }
 0x8af   :  { %10749 = vmatmul.mubr.bf16.gmra.mrb[56].mxu1 %v5035_v6 }
 0x8b0   :  { %10800 = vmatprep.mubr.msk.bf16.mxu1 %vm12264_vm15, %v12262_v31  ;;  %10793 = vmatpush3.bf16.msra.mxu1 %v12047_v55  ;;  %v14219_v55 = vld [vmem:[#allocation2 + $0x1c] sm:$0xf] }
 0x8b1   :  { %10794 = vmatprep.subr.bf16.mxu1 %v12262_v31 }
 0x8b4   :  { %10795 = vmatpush3.bf16.msra.mxu1 %v12048_v20 }
 0x8b5   :  { %10796 = vmatprep.subr.bf16.mxu1 %v12262_v31 }
 0x8b8   :  { %10797 = vmatpush3.bf16.msra.mxu1 %v12049_v16 }
 0x8b9   :  { %10798 = vmatprep.subr.bf16.mxu1 %v12262_v31 }
 0x972   :  { %v5121_v0 = vpop.f32.mrb[48].mxu1 }
 0x973   :  { %v10742_v26 = vpop.f32.mrb[49].mxu1 }
 0x974   :  { %v5124_v24 = vpop.f32.mrb[50].mxu1 }
 0x975   :  { %v5164_v19 = vpack.c.bf16 %v5124_v24, %v5121_v0  ;;  %v10743_v36 = vpop.f32.mrb[51].mxu1 }
 0x977   :  { %10761 = vmatmul.mubr.msk.bf16.vlgmr.msra.gmra.mrb[24].mxu0 %vm1281_vm9, %v5164_v19  ;;  %v3714_v19 = vadd.f32 %v13904_v15, %v8949_v5 }
 0x978   :  { %10764 = vmatprep.mubr.msk.bf16.mxu0 %vm12264_vm15, %v12262_v31  ;;  %10773 = vmatpush3.bf16.msra.mxu0 %v12039_v29 }
 0x979   :  { %10774 = vmatprep.subr.bf16.mxu0 %v12040_v4 }
 0x97a   :  { %v5129_v42 = vpop.f32.mrb[52].mxu1 }
 0x97b   :  { %v10746_v21 = vpop.f32.mrb[53].mxu1 }
 0x97c   :  { %v5132_v59 = vpop.f32.mrb[54].mxu1  ;;  %10775 = vmatpush3.bf16.msra.mxu0 %v12040_v4 }
 0x97d   :  { %v5165_v40 = vpack.c.bf16 %v5132_v59, %v5129_v42  ;;  %v10747_v10 = vpop.f32.mrb[55].mxu1  ;;  %10776 = vmatprep.subr.bf16.mxu0 %v12041_v18 }
 0x97f   :  { %10765 = vmatmul.mubr.msk.bf16.gmra.mrb[28].mxu0 %vm1281_vm9, %v5165_v40  ;;  %v12050_v40 = vld [vmem:[%s15159_s1 + $0x50c] sm:$0xff]  }
 0x980   :  { %10768 = vmatprep.mubr.msk.bf16.mxu0 %vm12264_vm15, %v12262_v31  ;;  %10777 = vmatpush3.bf16.msra.mxu0 %v12041_v18 }
 0x981   :  { %10778 = vmatprep.subr.bf16.mxu0 %v12042_v53  ;;  %10799 = vmatpush3.bf16.msra.mxu1 %v12050_v40 }
 0x982   :  { %v5137_v62 = vpop.f32.mrb[56].mxu1  ;;  %10812 = vmatprep.subr.bf16.mxu1 %v12262_v31 }
 0x983   :  { %v10750_v41 = vpop.f32.mrb[57].mxu1 }
 0x984   :  { %v5140_v32 = vpop.f32.mrb[58].mxu1  ;;  %10779 = vmatpush3.bf16.msra.mxu0 %v12042_v53 }
 0x985   :  { %v5166_v51 = vpack.c.bf16 %v5140_v32, %v5137_v62  ;;  %v10751_v3 = vpop.f32.mrb[59].mxu1  ;;  %11036 = vmatprep.subr.bf16.mxu0 %v12262_v31  ;;  %v3717_v62 = vadd.f32 %v13908_v11, %v8949_v5 }
 0x987   :  { %10769 = vmatmul.mubr.msk.bf16.gmra.mrb[32].mxu0 %vm1281_vm9, %v5166_v51 }
 0xa4a   :  { %v5239_v63 = vpop.f32.mrb[24].mxu0 }
 0xa4b   :  { %v5240_v47 = vadd.f32 %v9044_v30, %v5239_v63  ;;  %v10762_v22 = vpop.f32.mrb[25].mxu0 }
 0xa4c   :  { %v5242_v14 = vpop.f32.mrb[26].mxu0 }
 0xa4d   :  { %v5260_v13 = vadd.f32 %v5240_v47, %v3706_v60  ;;  %v5243_v38 = vadd.f32 %v9044_v30, %v5242_v14  ;;  %v10763_v23 = vpop.f32.mrb[27].mxu0 }
 0xa4e   :  { %v14217_v23 = vld [vmem:[#allocation2 + $0x1c] ss:$0 sps:$4 sm:$0x11]  }
 0xa4f   :  { %v5264_v43 = vmax.f32 %v5260_v13, 0.0  ;;  %v5261_v56 = vadd.f32 %v5243_v38, %v3709_v34  ;;  %v14212_v13 = vld [vmem:[#allocation2 + $0xc] sm:$0xf] }
 0xa50   :  { %v14214_v38 = vld [vmem:[#allocation2 + $0xc] sm:$0xf] }
 0xa51   :  { %v9315_v12 = vpack.c.bf16 %v5264_v43, %v5264_v43  ;;  %v5265_v46 = vmax.f32 %v5261_v56, 0.0  ;;  %6868 = vst [vmem:[#allocation2 + $0xc] sm:$0xf] %v12261_v1  ;;  %v14223_v56 = vld [vmem:[#allocation2 + $0x1c] ss:$0 sps:$4 sm:$0x77]  }
 0xa52   :  { %v5247_v28 = vpop.f32.mrb[28].mxu0 }
 0xa53   :  { %5374 = vst.msk [vmem:[#allocation2 + $0x4] sm:$0xf] %vm149_vm11, %v9315_v12  ;;  %v5276_v25 = vpack.c.bf16 %v5265_v46, %v5264_v43  ;;  %v9316_v44 = vpack.c.bf16 %v5265_v46, %v5265_v46  ;;  %v10766_v17 = vpop.f32.mrb[29].mxu0  ;;  %v5377_v61 = vshll.u32 %v9315_v12, 16  ;;  %v5380_v54 = vshrl.u32 %v9315_v12, 16 }
 0xa54   :  { %v5249_v37 = vpop.f32.mrb[30].mxu0  ;;  %v14221_v43 = vld [vmem:[#allocation2 + $0x1c] ss:$0 sps:$4 sm:$0x33]  }
 0xa55   :  { %5375 = vst.msk [vmem:[#allocation2 + $0x8] sm:$0xf] %vm149_vm11, %v9316_v44  ;;  %v10767_v58 = vpop.f32.mrb[31].mxu0  ;;  %10780 = vmatprep.mubr.msk.bf16.mxu0 %vm1281_vm9, %v5276_v25  ;;  %v5379_v45 = vrot.slane %v5377_v61, 5  ;;  %v5382_v9 = vrot.slane %v5380_v54, 4  ;;  %v5386_v57 = vshll.u32 %v9316_v44, 16 }
 0xa56   :  { %v5390_v52 = vshrl.u32 %v9316_v44, 16  ;;  %6871 = vst [vmem:[#allocation2 + $0x1c] sm:$0xf] %v12261_v1  ;;  %v5453_v58 = vld [vmem:[#allocation2 + $0x10] sm:$0x8] }
 0xa57   :  { %5395 = vrot.lane.b32.xlu0 %v5379_v45, %s12263_s14  ;;  %v5383_v48 = vor.u32 %v5382_v9, %v5379_v45  ;;  %v5388_v6 = vrot.slane %v5386_v57, 5 }
 0xa58   :  { %v5392_v50 = vrot.slane %v5390_v52, 4 }
 0xa59   :  { %v5384_v0 = vrot.slane %v5383_v48, 4 }
 0xa5a   :  { %v5393_v26 = vor.u32 %v5392_v50, %v5388_v6  ;;  %v5253_v24 = vpop.f32.mrb[32].mxu0 }
 0xa5b   :  { %v5254_v36 = vadd.f32 %v9044_v30, %v5253_v24  ;;  %v10770_v42 = vpop.f32.mrb[33].mxu0  ;;  %v5389_v21 = vsel %vm12413_vm14, %v5384_v0, %v5388_v6 }
 0xa5c   :  { %v5394_v59 = vrot.slane %v5393_v26, 4  ;;  %5397 = vrot.lane.b32.xlu0 %v5389_v21, %s12263_s14  ;;  %v5256_v10 = vpop.f32.mrb[34].mxu0  ;;  %v5408_v25 = vld [vmem:[#allocation2 + $0x8] sm:$0xf] }
 0xa5d   :  { %v5262_v41 = vadd.f32 %v5254_v36, %v3714_v19  ;;  %v5257_v32 = vadd.f32 %v9044_v30, %v5256_v10  ;;  %v10771_v15 = vpop.f32.mrb[35].mxu0 }
 0xa5e   :  { %5399 = vrot.lane.b32.xlu1 %v5394_v59, %s12263_s14 }
 0xa5f   :  { %v5266_v51 = vmax.f32 %v5262_v41, 0.0  ;;  %v5263_v3 = vadd.f32 %v5257_v32, %v3717_v62  ;;  %v12053_v41 = vld [vmem:[%s15159_s1 + $0x454] sm:$0xff]  }
 0xa61   :  { %v9317_v29 = vpack.c.bf16 %v5266_v51, %v5266_v51  ;;  %v5267_v4 = vmax.f32 %v5263_v3, 0.0 }
 0xa63   :  { %5423 = vst.msk [vmem:[#allocation2 + $0x14] sm:$0xf] %vm149_vm11, %v9317_v29  ;;  %v5277_v18 = vpack.c.bf16 %v5267_v4, %v5266_v51  ;;  %v9318_v53 = vpack.c.bf16 %v5267_v4, %v5267_v4  ;;  %v5426_v49 = vshll.u32 %v9317_v29, 16  ;;  %v5429_v39 = vshrl.u32 %v9317_v29, 16 }
 0xa65   :  { %5424 = vst.msk [vmem:[#allocation2 + $0x18] sm:$0xf] %vm149_vm11, %v9318_v53  ;;  %10781 = vmatmul.mubr.msk.bf16.vlgmr.msra.gmra.mrb[36].mxu0 %vm1281_vm9, %v5277_v18  ;;  %v5428_v11 = vrot.slane %v5426_v49, 5  ;;  %v5431_v8 = vrot.slane %v5429_v39, 4  ;;  %v5435_v5 = vshll.u32 %v9318_v53, 16  ;;  %v5439_v30 = vshrl.u32 %v9318_v53, 16 }
 0xa66   :  { %11044 = vmatprep.mubr.msk.bf16.mxu0 %vm12264_vm15, %v12262_v31  ;;  %v12054_v49 = vld [vmem:[%s15159_s1 + $0x45c] sm:$0xff]  }
 0xa67   :  { %5444 = vrot.lane.b32.xlu1 %v5428_v11, %s12263_s14  ;;  %v5432_v63 = vor.u32 %v5431_v8, %v5428_v11  ;;  %v5437_v60 = vrot.slane %v5435_v5, 5  ;;  %v5441_v47 = vrot.slane %v5439_v30, 4  ;;  %v12055_v8 = vld [vmem:[%s15159_s1 + $0x464] sm:$0xff]  }
 0xa69   :  { %v5433_v22 = vrot.slane %v5432_v63, 4  ;;  %v5442_v35 = vor.u32 %v5441_v47, %v5437_v60 }
 0xa6b   :  { %v5438_v14 = vsel %vm12413_vm14, %v5433_v22, %v5437_v60  ;;  %v5443_v34 = vrot.slane %v5442_v35, 4  ;;  %v12056_v22 = vld [vmem:[%s15159_s1 + $0x46c] sm:$0xff]   ;;  %vm14760_vm14 = vmor %vm15182_vm7, %vm6883_vm2 }
 0xa6c   :  { %5446 = vrot.lane.b32.xlu0 %v5438_v14, %s12263_s14  ;;  %v5457_v53 = vld [vmem:[#allocation2 + $0x18] sm:$0xf] }
 0xa6d   :  { %5448 = vrot.lane.b32.xlu1 %v5443_v34, %s12263_s14 }
 0xac9   :  { %v5396_v12 = vpop.permute.xlu0 %5395 }
 0xaca   :  { %v5405_v46 = vsel %vm12451_vm4, %v5396_v12, %v5404_v2  ;;  %v12058_v12 = vld [vmem:[%s15159_s1 + $0x474] sm:$0xff]  }
 0xacb   :  { %5406 = vst [vmem:[#allocation2] sm:$0x8] %v5405_v46 }
 0xace   :  { %v5398_v20 = vpop.permute.xlu0 %5397 }
 0xacf   :  { %5407 = vst.msk [vmem:[#allocation2 + $0x4] sm:$0xf] %vm188_vm5, %v5398_v20 }
 0xad0   :  { %v5400_v28 = vpop.permute.xlu1 %5399 }
 0xad1   :  { %v5409_v44 = vsel %vm12459_vm8, %v5400_v28, %v5408_v25 }
 0xad2   :  { %5410 = vst [vmem:[#allocation2 + $0x8] sm:$0xf] %v5409_v44  ;;  %v5516_v17 = vld [vmem:[#allocation2] sm:$0xc] }
 0xad3   :  { %v14231_v61 = vld [vmem:[#allocation2] sm:$0xf] }
 0xad4   :  { %v5778_v54 = vld [vmem:[#allocation2] sm:$0x8] }
 0xad5   :  { %v5498_v37 = vld [vmem:[#allocation2] sm:$0xe] }
 0xad6   :  { %6865 = vst [vmem:[#allocation2] sm:$0xc] %v12261_v1  ;;  %v14234_v45 = vld [vmem:[#allocation2 + $0x4] sm:$0xf] }
 0xad7   :  { %v9063_v9 = vcombine.low %v5516_v17, %v14234_v45  ;;  %v9084_v57 = vcombine.low %v5778_v54, %v14234_v45  ;;  %v9094_v52 = vcombine.low %v5498_v37, %v14234_v45  ;;  %v14239_v16 = vld [vmem:[#allocation2 + $0x4] sm:$0xe] }
 0xad8   :  { %v14241_v48 = vld [vmem:[#allocation2 + $0x4] sm:$0xc] }
 0xad9   :  { %v6481_v6 = vld [vmem:[#allocation2 + $0x4] sm:$0x8]  ;;  %v14243_v50 = vld [vmem:[#allocation2 + $0x8] sm:$0xf]  ;;  %v5445_v26 = vpop.permute.xlu1 %5444  ;;  %v5536_v19 = vrot.slane %v9063_v9, 2  ;;  %v5786_v36 = vrot.slane %v9084_v57, 3 }
 0xada   :  { %v14245_v0 = vld [vmem:[#allocation2 + $0x8] sm:$0xf]  ;;  %6866 = vst [vmem:[#allocation2 + $0x4] sm:$0xf] %v12261_v1  ;;  %v14250_v24 = vcombine.low %v14243_v50, %v14212_v13  ;;  %v5907_v42 = vrot.slane %v9094_v52, 1  ;;  %v5454_v21 = vsel %vm12451_vm4, %v5445_v26, %v5453_v58  ;;  %v9104_v59 = vcombine.low %v14234_v45, %v14243_v50  ;;  %v12059_v26 = vld [vmem:[%s15159_s1 + $0x47c] sm:$0xff]  }
 0xadb   :  { %6867 = vst [vmem:[#allocation2 + $0x8] sm:$0xf] %v12261_v1  ;;  %v9115_v40 = vcombine.low %v14239_v16, %v14245_v0  ;;  %v9127_v10 = vcombine.low %v14241_v48, %v14245_v0  ;;  %5455 = vst [vmem:[#allocation2 + $0x10] sm:$0x8] %v5454_v21  ;;  %v9137_v15 = vcombine.low %v6481_v6, %v14245_v0  ;;  %v6204_v9 = vrot.slane %v14217_v23, 1  ;;  %v12094_v50 = vld [vmem:[%s15159_s1 + $0x5b4] sm:$0xff]  }
 0xadc   :  { %v5537_v62 = vrot.slane %v14250_v24, 2  ;;  %v5787_v32 = vrot.slane %v14250_v24, 3  ;;  %v5908_v27 = vrot.slane %v14250_v24, 1  ;;  %v6349_v57 = vrot.slane %v14221_v43, 2  ;;  %v12103_v16 = vld [vmem:[%s15159_s1 + $0x5e4] sm:$0xff]  }
 0xadd   :  { %v6489_v30 = vrot.slane %v9137_v15, 3  ;;  %v6494_v6 = vrot.slane %v14223_v56, 3  ;;  %v12063_v15 = vld [vmem:[%s15159_s1 + $0x514] sm:$0xff]   ;;  %v12112_v48 = vld [vmem:[%s15159_s1 + $0x624] sm:$0xff]   ;;  %vm6902_vm4 = vcmask 1042944  }
 0xade   :  { %v5538_v51 = vsel %vm1984_vm10, %v5536_v19, %v5537_v62  ;;  %v14272_v3 = vsel %vm1868_vm0, %v5786_v36, %v5787_v32  ;;  %v14275_v29 = vsel %vm2595_vm3, %v5907_v42, %v5908_v27  ;;  %v5447_v4 = vpop.permute.xlu0 %5446 }
 0xadf   :  { %10801 = vmatmul.mubr.bf16.vlgmr.msra.gmra.mrb[60].mxu1 %v5538_v51  ;;  %5456 = vst.msk [vmem:[#allocation2 + $0x14] sm:$0xf] %vm188_vm5, %v5447_v4  ;;  %v5449_v18 = vpop.permute.xlu1 %5448  ;;  %v9075_v51 = vcombine.low %v14231_v61, %v14234_v45  ;;  %v12064_v4 = vld [vmem:[%s15159_s1 + $0x51c] sm:$0xff]   ;;  %v12066_v61 = vld [vmem:[%s15159_s1 + $0x52c] sm:$0xff]  }
 0xae0   :  { %10813 = vmatpush3.bf16.msra.mxu1 %v12053_v41  ;;  %10804 = vmatprep.mubr.msk.bf16.mxu1 %vm12264_vm15, %v12262_v31  ;;  %v5458_v39 = vsel %vm12459_vm8, %v5449_v18, %v5457_v53  ;;  %v12061_v41 = vld [vmem:[%s15159_s1 + $0x484] sm:$0xff]   ;;  %v12067_v53 = vld [vmem:[%s15159_s1 + $0x534] sm:$0xff]   ;;  %v12092_v45 = vld [vmem:[%s15159_s1 + $0x5ac] sm:$0xff]   ;;  %vm8703_vm8 = vcmask 1041408  }
 0xae1   :  { %10814 = vmatprep.subr.bf16.mxu1 %v12262_v31  ;;  %5459 = vst [vmem:[#allocation2 + $0x18] sm:$0xf] %v5458_v39  ;;  %v12065_v18 = vld [vmem:[%s15159_s1 + $0x524] sm:$0xff]  }
 0xae2   :  { %v14286_v11 = vld [vmem:[#allocation2 + $0x10] sm:$0xf]  ;;  %v12069_v39 = vld [vmem:[%s15159_s1 + $0x544] sm:$0xff]  }
 0xae3   :  { %v14293_v5 = vcombine.low %v14214_v38, %v14286_v11  ;;  %v14297_v63 = vld [vmem:[#allocation2 + $0x10] sm:$0xf] }
 0xae4   :  { %10815 = vmatpush3.bf16.msra.mxu1 %v12054_v49  ;;  %v12068_v49 = vld [vmem:[%s15159_s1 + $0x53c] sm:$0xff]  }
 0xae5   :  { %10816 = vmatprep.subr.bf16.mxu1 %v12262_v31  ;;  %v6490_v33 = vrot.slane %v14293_v5, 3 }
 0xae6   :  { %v14299_v60 = vld [vmem:[#allocation2 + $0x14] sm:$0xf] }
 0xae7   :  { %v14301_v47 = vld [vmem:[#allocation2 + $0x14] sm:$0xf]  ;;  %v14308_v35 = vcombine.low %v14297_v63, %v14299_v60  ;;  %v14312_v14 = vsel %vm1868_vm0, %v6489_v30, %v6490_v33 }
 0xae8   :  { %10817 = vmatpush3.bf16.msra.mxu1 %v12055_v8  ;;  %6869 = vst [vmem:[#allocation2 + $0x14] sm:$0x8] %v12261_v1  ;;  %v12060_v46 = vld [vmem:[#allocation2 + $0x18] ss:$0 sps:$4 sm:$0x33]   ;;  %v12070_v8 = vld [vmem:[%s15159_s1 + $0x54c] sm:$0xff]  }
 0xae9   :  { %10818 = vmatprep.subr.bf16.mxu1 %v12262_v31  ;;  %v5539_v34 = vrot.slane %v14308_v35, 2  ;;  %v5910_v2 = vrot.slane %v14308_v35, 1  ;;  %v14321_v28 = vld [vmem:[#allocation2 + $0x18] ss:$0 sps:$4 sm:$0x77]   ;;  %v5541_v52 = vrot.slane %v12060_v46, 2 }
 0xaea   :  { %v12084_v44 = vld [vmem:[#allocation2 + $0x18] ss:$0 sps:$4 sm:$0x11]   ;;  %v12078_v46 = vld [vmem:[%s15159_s1 + $0x4c4] sm:$0xff]  }
 0xaeb   :  { %v5540_v20 = vsel %vm1984_vm10, %v5537_v62, %v5539_v34  ;;  %v14324_v25 = vsel %vm2595_vm3, %v5908_v27, %v5910_v2  ;;  %v14327_v17 = vld [vmem:[#allocation2 + $0x18] sm:$0xf]  ;;  %v5912_v37 = vrot.slane %v12084_v44, 1  ;;  %v5542_v62 = vsel %vm1984_vm10, %v5539_v34, %v5541_v52  ;;  %v12062_v27 = vld [vmem:[%s15159_s1 + $0x48c] sm:$0xff]   ;;  %v12073_v34 = vld [vmem:[%s15159_s1 + $0x4a4] sm:$0xff]  }
 0xaec   :  { %10819 = vmatpush3.bf16.msra.mxu1 %v12056_v22  ;;  %v14329_v54 = vld [vmem:[#allocation2 + $0x18] sm:$0xf]  ;;  %v5789_v22 = vrot.slane %v14308_v35, 3  ;;  %v12081_v52 = vld [vmem:[%s15159_s1 + $0x55c] sm:$0xff]  }
 0xaed   :  { %10805 = vmatmul.mubr.bf16.gmra.mrb[64].mxu1 %v5540_v20  ;;  %10820 = vmatprep.subr.bf16.mxu1 %v12262_v31  ;;  %v14335_v58 = vcombine.low %v14301_v47, %v14329_v54  ;;  %6870 = vst [vmem:[#allocation2 + $0x18] sm:$0xf] %v12261_v1  ;;  %v14345_v19 = vsel %vm2595_vm3, %v5910_v2, %v5912_v37  ;;  %v12071_v30 = vld [vmem:[%s15159_s1 + $0x494] sm:$0xff]   ;;  %v12074_v2 = vld [vmem:[%s15159_s1 + $0x4ac] sm:$0xff]  }
 0xaee   :  { %10808 = vmatprep.mubr.msk.bf16.mxu1 %vm12264_vm15, %v12262_v31  ;;  %v12079_v20 = vld [vmem:[%s15159_s1 + $0x4cc] sm:$0xff]  }
 0xaef   :  { %v6202_v36 = vrot.slane %v14335_v58, 1  ;;  %v6347_v42 = vrot.slane %v14335_v58, 2  ;;  %v6492_v1 = vrot.slane %v14335_v58, 3  ;;  %v12116_v58 = vld [vmem:[%s15159_s1 + $0x63c] sm:$0xff]  }
 0xaf0   :  { %10821 = vmatpush3.bf16.msra.mxu1 %v12058_v12  ;;  %v12077_v12 = vld [vmem:[%s15159_s1 + $0x4bc] sm:$0xff]  }
 0xaf1   :  { %10822 = vmatprep.subr.bf16.mxu1 %v12262_v31  ;;  %v14354_v23 = vsel %vm2595_vm3, %v6202_v36, %v6204_v9  ;;  %v14359_v43 = vsel %vm1984_vm10, %v6347_v42, %v6349_v57  ;;  %v14362_v56 = vsel %vm1868_vm0, %v6490_v33, %v6492_v1  ;;  %v14365_v21 = vsel %vm1868_vm0, %v6492_v1, %v6494_v6  ;;  %v12072_v33 = vld [vmem:[%s15159_s1 + $0x49c] sm:$0xff]   ;;  %v12080_v57 = vld [vmem:[%s15159_s1 + $0x554] sm:$0xff]   ;;  %v12082_v6 = vld [vmem:[%s15159_s1 + $0x564] sm:$0xff]  }
 0xaf2   :  { %v12087_v1 = vld [vmem:[%s15159_s1 + $0x584] sm:$0xff]  }
 0xaf4   :  { %10823 = vmatpush3.bf16.msra.mxu1 %v12059_v26  ;;  %v12085_v26 = vld [vmem:[%s15159_s1 + $0x574] sm:$0xff]  }
 0xaf5   :  { %10809 = vmatmul.mubr.bf16.gmra.mrb[68].mxu1 %v5542_v62  ;;  %10824 = vmatprep.subr.bf16.mxu1 %v12262_v31  ;;  %v12089_v62 = vld [vmem:[%s15159_s1 + $0x594] sm:$0xff]  }
 0xaf6   :  { %10828 = vmatprep.mubr.msk.bf16.mxu1 %vm12264_vm15, %v12262_v31 }
 0xaf8   :  { %10825 = vmatpush3.bf16.msra.mxu1 %v12061_v41  ;;  %v12090_v41 = vld [vmem:[%s15159_s1 + $0x59c] sm:$0xff]  }
 0xaf9   :  { %10826 = vmatprep.subr.bf16.mxu1 %v12262_v31 }
 0xafc   :  { %10827 = vmatpush3.bf16.msra.mxu1 %v12062_v27  ;;  %v12091_v27 = vld [vmem:[%s15159_s1 + $0x5a4] sm:$0xff]  }
 0xafd   :  { %10840 = vmatprep.subr.bf16.mxu1 %v12262_v31 }
 0xaff   :  { %10829 = vmatmul.mubr.bf16.vlgmr.msra.gmra.mrb[60].mxu1 %v9075_v51  ;;  %v12130_v51 = vld [vmem:[%s15159_s1 + $0x6a4] sm:$0xff]  }
 0xb00   :  { %10841 = vmatpush3.bf16.msra.mxu1 %v12063_v15  ;;  %10832 = vmatprep.mubr.msk.bf16.mxu1 %vm12264_vm15, %v12262_v31  ;;  %v9105_v15 = vcombine.low %v14212_v13, %v14297_v63  ;;  %v9106_v13 = vcombine.low %v14299_v60, %v14327_v17  ;;  %v12095_v63 = vld [vmem:[%s15159_s1 + $0x5bc] sm:$0xff]   ;;  %v12096_v17 = vld [vmem:[%s15159_s1 + $0x5c4] sm:$0xff]  }
 0xb01   :  { %10842 = vmatprep.subr.bf16.mxu1 %v12262_v31  ;;  %v12129_v60 = vld [vmem:[%s15159_s1 + $0x69c] sm:$0xff]  }
 0xb04   :  { %10843 = vmatpush3.bf16.msra.mxu1 %v12064_v4  ;;  %v12097_v4 = vld [vmem:[%s15159_s1 + $0x5cc] sm:$0xff]  }
 0xb05   :  { %10844 = vmatprep.subr.bf16.mxu1 %v12262_v31 }
 0xb07   :  { %10833 = vmatmul.mubr.bf16.gmra.mrb[64].mxu1 %v14250_v24  ;;  %v12076_v24 = vld [vmem:[%s15159_s1 + $0x4b4] sm:$0xff]  }
 0xb08   :  { %10845 = vmatpush3.bf16.msra.mxu1 %v12065_v18  ;;  %10836 = vmatprep.mubr.msk.bf16.mxu1 %vm12264_vm15, %v12262_v31  ;;  %v6200_v18 = vrot.slane %v14293_v5, 1 }
 0xb09   :  { %10846 = vmatprep.subr.bf16.mxu1 %v12262_v31 }
 0xb0c   :  { %10847 = vmatpush3.bf16.msra.mxu1 %v12066_v61  ;;  %v6199_v61 = vrot.slane %v9115_v40, 1  ;;  %v6203_v40 = vsel %vm2595_vm3, %v6200_v18, %v6202_v36  ;;  %v12107_v36 = vld [vmem:[%s15159_s1 + $0x5fc] sm:$0xff]  }
 0xb0d   :  { %10848 = vmatprep.subr.bf16.mxu1 %v12262_v31 }
 0xb0f   :  { %10837 = vmatmul.mubr.bf16.gmra.mrb[68].mxu1 %v14308_v35  ;;  %v5791_v35 = vrot.slane %v14321_v28, 3 }
 0xb10   :  { %10849 = vmatpush3.bf16.msra.mxu1 %v12067_v53  ;;  %10856 = vmatprep.mubr.msk.bf16.mxu1 %vm12264_vm15, %v12262_v31  ;;  %v12100_v53 = vld [vmem:[%s15159_s1 + $0x5d4] sm:$0xff]  }
 0xb11   :  { %10850 = vmatprep.subr.bf16.mxu1 %v12262_v31 }
 0xb14   :  { %10851 = vmatpush3.bf16.msra.mxu1 %v12068_v49  ;;  %v6201_v49 = vsel %vm2595_vm3, %v6199_v61, %v6200_v18  ;;  %v12137_v18 = vld [vmem:[%s15159_s1 + $0x83c] sm:$0xff]   ;;  %vm15185_vm3 = vcmask 1043971  }
 0xb15   :  { %10852 = vmatprep.subr.bf16.mxu1 %v12262_v31 }
 0xb18   :  { %10853 = vmatpush3.bf16.msra.mxu1 %v12069_v39  ;;  %v12101_v39 = vld [vmem:[%s15159_s1 + $0x5dc] sm:$0xff]  }
 0xb19   :  { %10854 = vmatprep.subr.bf16.mxu1 %v12262_v31 }
 0xb1c   :  { %10855 = vmatpush3.bf16.msra.mxu1 %v12070_v8  ;;  %v12104_v8 = vld [vmem:[%s15159_s1 + $0x5ec] sm:$0xff]  }
 0xb1d   :  { %10868 = vmatprep.subr.bf16.mxu1 %v12262_v31 }
 0xb1f   :  { %10857 = vmatmul.mubr.bf16.vlgmr.msra.gmra.mrb[60].mxu1 %v14272_v3  ;;  %v5790_v3 = vsel %vm1868_vm0, %v5787_v32, %v5789_v22  ;;  %v5792_v32 = vsel %vm1868_vm0, %v5789_v22, %v5791_v35  ;;  %v6345_v22 = vrot.slane %v14293_v5, 2  ;;  %v12111_v35 = vld [vmem:[%s15159_s1 + $0x61c] sm:$0xff]   ;;  %v12113_v5 = vld [vmem:[%s15159_s1 + $0x62c] sm:$0xff]  }
 0xb20   :  { %10869 = vmatpush3.bf16.msra.mxu1 %v12071_v30  ;;  %10860 = vmatprep.mubr.msk.bf16.mxu1 %vm12264_vm15, %v12262_v31  ;;  %v12106_v30 = vld [vmem:[%s15159_s1 + $0x5f4] sm:$0xff]  }
 0xb21   :  { %10870 = vmatprep.subr.bf16.mxu1 %v12262_v31 }
 0xb24   :  { %10871 = vmatpush3.bf16.msra.mxu1 %v12072_v33  ;;  %v12108_v33 = vld [vmem:[%s15159_s1 + $0x604] sm:$0xff]  }
 0xb25   :  { %10872 = vmatprep.subr.bf16.mxu1 %v12262_v31 }
 0xb27   :  { %10861 = vmatmul.mubr.bf16.gmra.mrb[64].mxu1 %v5790_v3  ;;  %v12110_v3 = vld [vmem:[%s15159_s1 + $0x614] sm:$0xff]  }
 0xb28   :  { %10873 = vmatpush3.bf16.msra.mxu1 %v12073_v34  ;;  %10864 = vmatprep.mubr.msk.bf16.mxu1 %vm12264_vm15, %v12262_v31  ;;  %v6344_v34 = vrot.slane %v9127_v10, 2  ;;  %v6348_v10 = vsel %vm1984_vm10, %v6345_v22, %v6347_v42  ;;  %v12117_v42 = vld [vmem:[%s15159_s1 + $0x644] sm:$0xff]  }
 0xb29   :  { %10874 = vmatprep.subr.bf16.mxu1 %v12262_v31 }
 0xb2c   :  { %10875 = vmatpush3.bf16.msra.mxu1 %v12074_v2  ;;  %v6346_v2 = vsel %vm1984_vm10, %v6344_v34, %v6345_v22 }
 0xb2d   :  { %10876 = vmatprep.subr.bf16.mxu1 %v12262_v31 }
 0xb2f   :  { %10865 = vmatmul.mubr.bf16.gmra.mrb[68].mxu1 %v5792_v32  ;;  %v12119_v32 = vld [vmem:[%s15159_s1 + $0x654] sm:$0xff]  }
 0xb30   :  { %10877 = vmatpush3.bf16.msra.mxu1 %v12076_v24  ;;  %10884 = vmatprep.mubr.msk.bf16.mxu1 %vm12264_vm15, %v12262_v31  ;;  %v12115_v24 = vld [vmem:[%s15159_s1 + $0x634] sm:$0xff]  }
 0xb31   :  { %10878 = vmatprep.subr.bf16.mxu1 %v12262_v31 }
 0xb34   :  { %10879 = vmatpush3.bf16.msra.mxu1 %v12077_v12  ;;  %v12120_v12 = vld [vmem:[%s15159_s1 + $0x65c] sm:$0xff]  }
 0xb35   :  { %10880 = vmatprep.subr.bf16.mxu1 %v12262_v31 }
 0xb38   :  { %10881 = vmatpush3.bf16.msra.mxu1 %v12078_v46  ;;  %v14464_v28 = vpop.f32.mrb[36].mxu0  ;;  %v12121_v46 = vld [vmem:[%s15159_s1 + $0x664] sm:$0xff]  }
 0xb39   :  { %10882 = vmatprep.subr.bf16.mxu1 %v12262_v31  ;;  %v14467_v44 = vpop.f32.mrb[37].mxu0 }
 0xb3a   :  { %v14469_v37 = vpop.f32.mrb[38].mxu0 }
 0xb3b   :  { %v14471_v9 = vpop.f32.mrb[39].mxu0 }
 0xb3c   :  { %10883 = vmatpush3.bf16.msra.mxu1 %v12079_v20  ;;  %v12124_v20 = vld [vmem:[%s15159_s1 + $0x674] sm:$0xff]  }
 0xb3d   :  { %10896 = vmatprep.subr.bf16.mxu1 %v12262_v31 }
 0xb3f   :  { %10885 = vmatmul.mubr.bf16.vlgmr.msra.gmra.mrb[60].mxu1 %v14275_v29  ;;  %v12083_v29 = vld [vmem:[%s15159_s1 + $0x56c] sm:$0xff]  }
 0xb40   :  { %10897 = vmatpush3.bf16.msra.mxu1 %v12080_v57  ;;  %10888 = vmatprep.mubr.msk.bf16.mxu1 %vm12264_vm15, %v12262_v31  ;;  %v12126_v57 = vld [vmem:[%s15159_s1 + $0x684] sm:$0xff]  }
 0xb41   :  { %10898 = vmatprep.subr.bf16.mxu1 %v12262_v31 }
 0xb44   :  { %10899 = vmatpush3.bf16.msra.mxu1 %v12081_v52  ;;  %v9147_v52 = vcombine.low %v14245_v0, %v14214_v38 }
 0xb45   :  { %10900 = vmatprep.subr.bf16.mxu1 %v12262_v31 }
 0xb47   :  { %10889 = vmatmul.mubr.bf16.gmra.mrb[64].mxu1 %v14324_v25  ;;  %v12086_v25 = vld [vmem:[%s15159_s1 + $0x57c] sm:$0xff]  }
 0xb48   :  { %10901 = vmatpush3.bf16.msra.mxu1 %v12082_v6  ;;  %10892 = vmatprep.mubr.msk.bf16.mxu1 %vm12264_vm15, %v12262_v31  ;;  %v9148_v6 = vcombine.low %v14286_v11, %v14301_v47 }
 0xb49   :  { %10902 = vmatprep.subr.bf16.mxu1 %v12262_v31 }
 0xb4c   :  { %10903 = vmatpush3.bf16.msra.mxu1 %v12083_v29  ;;  %v9149_v29 = vcombine.low %v14329_v54, %v14219_v55 }
 0xb4d   :  { %10904 = vmatprep.subr.bf16.mxu1 %v12262_v31 }
 0xb4f   :  { %10893 = vmatmul.mubr.bf16.gmra.mrb[68].mxu1 %v14345_v19  ;;  %v12088_v19 = vld [vmem:[%s15159_s1 + $0x58c] sm:$0xff]  }
 0xb50   :  { %10905 = vmatpush3.bf16.msra.mxu1 %v12085_v26  ;;  %10912 = vmatprep.mubr.msk.bf16.mxu1 %vm12264_vm15, %v12262_v31  ;;  %v12131_v26 = vld [vmem:[%s15159_s1 + $0x6ac] sm:$0xff]  }
 0xb51   :  { %10906 = vmatprep.subr.bf16.mxu1 %v12262_v31 }
 0xb54   :  { %10907 = vmatpush3.bf16.msra.mxu1 %v12086_v25 }
 0xb55   :  { %10908 = vmatprep.subr.bf16.mxu1 %v12262_v31 }
 0xb58   :  { %10909 = vmatpush3.bf16.msra.mxu1 %v12087_v1 }
 0xb59   :  { %10910 = vmatprep.subr.bf16.mxu1 %v12262_v31 }
 0xb5c   :  { %10911 = vmatpush3.bf16.msra.mxu1 %v12088_v19 }
 0xb5d   :  { %10924 = vmatprep.subr.bf16.mxu1 %v12262_v31 }
 0xb5f   :  { %10913 = vmatmul.mubr.bf16.vlgmr.msra.gmra.mrb[60].mxu1 %v9104_v59  ;;  %v12128_v59 = vld [vmem:[%s15159_s1 + $0x694] sm:$0xff]  }
 0xb60   :  { %10925 = vmatpush3.bf16.msra.mxu1 %v12089_v62  ;;  %10916 = vmatprep.mubr.msk.bf16.mxu1 %vm12264_vm15, %v12262_v31 }
 0xb61   :  { %10926 = vmatprep.subr.bf16.mxu1 %v12262_v31  ;;  %11037 = vmatpush3.bf16.msra.mxu0 %v12128_v59  ;;  %v12133_v59 = vld [vmem:[%s15159_s1 + $0x81c] sm:$0xff]  }
 0xb62   :  { %11038 = vmatprep.subr.bf16.mxu0 %v12262_v31 }
 0xb64   :  { %10927 = vmatpush3.bf16.msra.mxu1 %v12090_v41 }
 0xb65   :  { %10928 = vmatprep.subr.bf16.mxu1 %v12262_v31  ;;  %11039 = vmatpush3.bf16.msra.mxu0 %v12129_v60  ;;  %v12135_v60 = vld [vmem:[%s15159_s1 + $0x82c] sm:$0xff]  }
 0xb66   :  { %11040 = vmatprep.subr.bf16.mxu0 %v12262_v31 }
 0xb67   :  { %10917 = vmatmul.mubr.bf16.gmra.mrb[64].mxu1 %v9105_v15 }
 0xb68   :  { %10929 = vmatpush3.bf16.msra.mxu1 %v12091_v27  ;;  %10920 = vmatprep.mubr.msk.bf16.mxu1 %vm12264_vm15, %v12262_v31 }
 0xb69   :  { %10930 = vmatprep.subr.bf16.mxu1 %v12262_v31  ;;  %11041 = vmatpush3.bf16.msra.mxu0 %v12130_v51  ;;  %v9052_v51 = vld [vmem:[%s15162_s3 + $0x6] ss:$0 sm:$0xff] }
 0xb6a   :  { %11042 = vmatprep.subr.bf16.mxu0 %v12262_v31 }
 0xb6c   :  { %10931 = vmatpush3.bf16.msra.mxu1 %v12092_v45 }
 0xb6d   :  { %10932 = vmatprep.subr.bf16.mxu1 %v12262_v31  ;;  %11043 = vmatpush3.bf16.msra.mxu0 %v12131_v26 }
 0xb6f   :  { %10921 = vmatmul.mubr.bf16.gmra.mrb[68].mxu1 %v9106_v13  ;;  %v12132_v13 = vld [vmem:[%s15159_s1 + $0x814] sm:$0xff]  }
 0xb70   :  { %10933 = vmatpush3.bf16.msra.mxu1 %v12094_v50  ;;  %10940 = vmatprep.mubr.msk.bf16.mxu1 %vm12264_vm15, %v12262_v31 }
 0xb71   :  { %10934 = vmatprep.subr.bf16.mxu1 %v12262_v31  ;;  %11056 = vmatprep.subr.bf16.mxu0 %v12132_v13 }
 0xb74   :  { %10935 = vmatpush3.bf16.msra.mxu1 %v12095_v63  ;;  %v12134_v63 = vld [vmem:[%s15159_s1 + $0x824] sm:$0xff]  }
 0xb75   :  { %10936 = vmatprep.subr.bf16.mxu1 %v12262_v31 }
 0xb78   :  { %10937 = vmatpush3.bf16.msra.mxu1 %v12096_v17  ;;  %v12136_v17 = vld [vmem:[%s15159_s1 + $0x834] sm:$0xff]  }
 0xb79   :  { %10938 = vmatprep.subr.bf16.mxu1 %v12262_v31 }
 0xb7c   :  { %10939 = vmatpush3.bf16.msra.mxu1 %v12097_v4  ;;  %v9158_v4 = vld [vmem:[%s15162_s3 + $0x5] ss:$0 sm:$0xff] }
 0xb7d   :  { %10952 = vmatprep.subr.bf16.mxu1 %v12262_v31 }
 0xb7f   :  { %10941 = vmatmul.mubr.bf16.vlgmr.msra.gmra.mrb[60].mxu1 %v6201_v49 }
 0xb80   :  { %10953 = vmatpush3.bf16.msra.mxu1 %v12100_v53  ;;  %10944 = vmatprep.mubr.msk.bf16.mxu1 %vm12264_vm15, %v12262_v31  ;;  %v5348_v53 = vadd.f32 %v9052_v51, %v14467_v44 }
 0xb81   :  { %10954 = vmatprep.subr.bf16.mxu1 %v12262_v31 }
 0xb84   :  { %10955 = vmatpush3.bf16.msra.mxu1 %v12101_v39 }
 0xb85   :  { %10956 = vmatprep.subr.bf16.mxu1 %v12262_v31 }
 0xb87   :  { %10945 = vmatmul.mubr.bf16.gmra.mrb[64].mxu1 %v6203_v40  ;;  %v12138_v40 = vld [vmem:[%s15159_s1 + $0x844] sm:$0xff]  }
 0xb88   :  { %10957 = vmatpush3.bf16.msra.mxu1 %v12103_v16  ;;  %10948 = vmatprep.mubr.msk.bf16.mxu1 %vm12264_vm15, %v12262_v31 }
 0xb89   :  { %10958 = vmatprep.subr.bf16.mxu1 %v12262_v31 }
 0xb8c   :  { %10959 = vmatpush3.bf16.msra.mxu1 %v12104_v8  ;;  %v12139_v8 = vld [vmem:[%s15159_s1 + $0x84c] sm:$0xff]  }
 0xb8d   :  { %10960 = vmatprep.subr.bf16.mxu1 %v12262_v31 }
 0xb8f   :  { %10949 = vmatmul.mubr.bf16.gmra.mrb[68].mxu1 %v14354_v23  ;;  %v12109_v23 = vld [vmem:[%s15159_s1 + $0x60c] sm:$0xff]  }
 0xb90   :  { %10961 = vmatpush3.bf16.msra.mxu1 %v12106_v30  ;;  %10968 = vmatprep.mubr.msk.bf16.mxu1 %vm12264_vm15, %v12262_v31  ;;  %v5351_v30 = vadd.f32 %v9052_v51, %v14471_v9  ;;  %v12154_v9 = vld [vmem:[%s15159_s1 + $0x7cc] sm:$0xff]  }
 0xb91   :  { %10962 = vmatprep.subr.bf16.mxu1 %v12262_v31 }
 0xb94   :  { %10963 = vmatpush3.bf16.msra.mxu1 %v12107_v36 }
 0xb95   :  { %10964 = vmatprep.subr.bf16.mxu1 %v12262_v31 }
 0xb98   :  { %10965 = vmatpush3.bf16.msra.mxu1 %v12108_v33 }
 0xb99   :  { %10966 = vmatprep.subr.bf16.mxu1 %v12262_v31 }
 0xb9c   :  { %10967 = vmatpush3.bf16.msra.mxu1 %v12109_v23 }
 0xb9d   :  { %10980 = vmatprep.subr.bf16.mxu1 %v12262_v31 }
 0xb9f   :  { %10969 = vmatmul.mubr.bf16.vlgmr.msra.gmra.mrb[60].mxu1 %v6346_v2 }
 0xba0   :  { %10981 = vmatpush3.bf16.msra.mxu1 %v12110_v3  ;;  %10972 = vmatprep.mubr.msk.bf16.mxu1 %vm12264_vm15, %v12262_v31 }
 0xba1   :  { %10982 = vmatprep.subr.bf16.mxu1 %v12262_v31 }
 0xba4   :  { %10983 = vmatpush3.bf16.msra.mxu1 %v12111_v35 }
 0xba5   :  { %10984 = vmatprep.subr.bf16.mxu1 %v12262_v31 }
 0xba7   :  { %10973 = vmatmul.mubr.bf16.gmra.mrb[64].mxu1 %v6348_v10 }
 0xba8   :  { %10985 = vmatpush3.bf16.msra.mxu1 %v12112_v48  ;;  %10976 = vmatprep.mubr.msk.bf16.mxu1 %vm12264_vm15, %v12262_v31 }
 0xba9   :  { %10986 = vmatprep.subr.bf16.mxu1 %v12262_v31 }
 0xbac   :  { %10987 = vmatpush3.bf16.msra.mxu1 %v12113_v5 }
 0xbad   :  { %10988 = vmatprep.subr.bf16.mxu1 %v12262_v31 }
 0xbaf   :  { %10977 = vmatmul.mubr.bf16.gmra.mrb[68].mxu1 %v14359_v43  ;;  %v12118_v43 = vld [vmem:[%s15159_s1 + $0x64c] sm:$0xff]  }
 0xbb0   :  { %10989 = vmatpush3.bf16.msra.mxu1 %v12115_v24  ;;  %10996 = vmatprep.mubr.msk.bf16.mxu1 %vm12264_vm15, %v12262_v31 }
 0xbb1   :  { %10990 = vmatprep.subr.bf16.mxu1 %v12262_v31 }
 0xbb4   :  { %10991 = vmatpush3.bf16.msra.mxu1 %v12116_v58 }
 0xbb5   :  { %10992 = vmatprep.subr.bf16.mxu1 %v12262_v31 }
 0xbb8   :  { %10993 = vmatpush3.bf16.msra.mxu1 %v12117_v42 }
 0xbb9   :  { %10994 = vmatprep.subr.bf16.mxu1 %v12262_v31 }
 0xbbc   :  { %10995 = vmatpush3.bf16.msra.mxu1 %v12118_v43  ;;  %v12143_v43 = vld [vmem:[%s15159_s1 + $0x794] sm:$0xff]  }
 0xbbd   :  { %11008 = vmatprep.subr.bf16.mxu1 %v12262_v31 }
 0xbbf   :  { %10997 = vmatmul.mubr.bf16.vlgmr.msra.gmra.mrb[60].mxu1 %v14312_v14  ;;  %v12122_v14 = vld [vmem:[%s15159_s1 + $0x66c] sm:$0xff]  }
 0xbc0   :  { %11009 = vmatpush3.bf16.msra.mxu1 %v12119_v32  ;;  %11000 = vmatprep.mubr.msk.bf16.mxu1 %vm12264_vm15, %v12262_v31 }
 0xbc1   :  { %11010 = vmatprep.subr.bf16.mxu1 %v12262_v31 }
 0xbc4   :  { %11011 = vmatpush3.bf16.msra.mxu1 %v12120_v12 }
 0xbc5   :  { %11012 = vmatprep.subr.bf16.mxu1 %v12262_v31 }
 0xbc7   :  { %11001 = vmatmul.mubr.bf16.gmra.mrb[64].mxu1 %v14362_v56  ;;  %v12125_v56 = vld [vmem:[%s15159_s1 + $0x67c] sm:$0xff]  }
 0xbc8   :  { %11013 = vmatpush3.bf16.msra.mxu1 %v12121_v46  ;;  %11004 = vmatprep.mubr.msk.bf16.mxu1 %vm12264_vm15, %v12262_v31 }
 0xbc9   :  { %11014 = vmatprep.subr.bf16.mxu1 %v12262_v31 }
 0xbcc   :  { %11015 = vmatpush3.bf16.msra.mxu1 %v12122_v14  ;;  %v5356_v14 = vadd.f32 %v14464_v28, %v9052_v51 }
 0xbcd   :  { %11016 = vmatprep.subr.bf16.mxu1 %v12262_v31 }
 0xbcf   :  { %11005 = vmatmul.mubr.bf16.gmra.mrb[68].mxu1 %v14365_v21  ;;  %v12127_v21 = vld [vmem:[%s15159_s1 + $0x68c] sm:$0xff]  }
 0xbd0   :  { %11017 = vmatpush3.bf16.msra.mxu1 %v12124_v20  ;;  %11024 = vmatprep.mubr.msk.bf16.mxu1 %vm12264_vm15, %v12262_v31 }
 0xbd1   :  { %11018 = vmatprep.subr.bf16.mxu1 %v12262_v31 }
 0xbd4   :  { %11019 = vmatpush3.bf16.msra.mxu1 %v12125_v56 }
 0xbd5   :  { %11020 = vmatprep.subr.bf16.mxu1 %v12262_v31 }
 0xbd8   :  { %11021 = vmatpush3.bf16.msra.mxu1 %v12126_v57 }
 0xbd9   :  { %11022 = vmatprep.subr.bf16.mxu1 %v12262_v31 }
 0xbdc   :  { %11023 = vmatpush3.bf16.msra.mxu1 %v12127_v21  ;;  %v5359_v21 = vadd.f32 %v14469_v37, %v9052_v51 }
 0xbdf   :  { %11025 = vmatmul.mubr.bf16.vlgmr.msra.gmra.mrb[60].mxu1 %v9147_v52 }
 0xbe0   :  { %11028 = vmatprep.mubr.msk.bf16.mxu1 %vm12264_vm15, %v12262_v31 }
 0xbe7   :  { %11029 = vmatmul.mubr.bf16.gmra.mrb[64].mxu1 %v9148_v6 }
 0xbe8   :  { %11032 = vmatprep.mubr.msk.bf16.mxu1 %vm12264_vm15, %v12262_v31 }
 0xbef   :  { %11033 = vmatmul.mubr.bf16.gmra.mrb[68].mxu1 %v9149_v29 }
 0xcb2   :  { %v6717_v38 = vpop.f32.mrb[60].mxu1 }
 0xcb3   :  { %v11026_v0 = vpop.f32.mrb[61].mxu1 }
 0xcb4   :  { %v6720_v25 = vpop.f32.mrb[62].mxu1 }
 0xcb5   :  { %v6760_v1 = vpack.c.bf16 %v6720_v25, %v6717_v38  ;;  %v11027_v19 = vpop.f32.mrb[63].mxu1 }
 0xcb7   :  { %11045 = vmatmul.mubr.msk.bf16.vlgmr.msra.gmra.mrb[40].mxu0 %vm1281_vm9, %v6760_v1 }
 0xcb8   :  { %11048 = vmatprep.mubr.msk.bf16.mxu0 %vm12264_vm15, %v12262_v31  ;;  %11057 = vmatpush3.bf16.msra.mxu0 %v12132_v13 }
 0xcb9   :  { %11058 = vmatprep.subr.bf16.mxu0 %v12133_v59 }
 0xcba   :  { %v6725_v11 = vpop.f32.mrb[64].mxu1 }
 0xcbb   :  { %v11030_v47 = vpop.f32.mrb[65].mxu1 }
 0xcbc   :  { %v6728_v62 = vpop.f32.mrb[66].mxu1  ;;  %11059 = vmatpush3.bf16.msra.mxu0 %v12133_v59 }
 0xcbd   :  { %v6761_v55 = vpack.c.bf16 %v6728_v62, %v6725_v11  ;;  %v11031_v54 = vpop.f32.mrb[67].mxu1  ;;  %11060 = vmatprep.subr.bf16.mxu0 %v12134_v63 }
 0xcbf   :  { %11049 = vmatmul.mubr.msk.bf16.gmra.mrb[44].mxu0 %vm1281_vm9, %v6761_v55 }
 0xcc0   :  { %11052 = vmatprep.mubr.msk.bf16.mxu0 %vm12264_vm15, %v12262_v31  ;;  %11061 = vmatpush3.bf16.msra.mxu0 %v12134_v63 }
 0xcc1   :  { %11062 = vmatprep.subr.bf16.mxu0 %v12135_v60 }
 0xcc2   :  { %v6733_v41 = vpop.f32.mrb[68].mxu1 }
 0xcc3   :  { %v11034_v27 = vpop.f32.mrb[69].mxu1 }
 0xcc4   :  { %v6736_v15 = vpop.f32.mrb[70].mxu1  ;;  %11063 = vmatpush3.bf16.msra.mxu0 %v12135_v60  ;;  %v6960_v27 = vld [vmem:[#allocation2 + $0x18] sm:$0xf] }
 0xcc5   :  { %v6762_v45 = vpack.c.bf16 %v6736_v15, %v6733_v41  ;;  %v11035_v50 = vpop.f32.mrb[71].mxu1  ;;  %11064 = vmatprep.subr.bf16.mxu0 %v12136_v17  ;;  %v14785_v41 = vld [vmem:[#allocation2 + $0x20] sm:$0xf]  ;;  %v6961_v15 = vld [vmem:[#allocation2 + $0x1c] sm:$0xf] }
 0xcc6   :  { %v9172_v60 = vcombine.low %v6961_v15, %v14785_v41 }
 0xcc7   :  { %11053 = vmatmul.mubr.msk.bf16.gmra.mrb[48].mxu0 %vm1281_vm9, %v6762_v45 }
 0xcc8   :  { %11065 = vmatpush3.bf16.msra.mxu0 %v12136_v17 }
 0xcc9   :  { %11066 = vmatprep.subr.bf16.mxu0 %v12137_v18 }
 0xccc   :  { %11067 = vmatpush3.bf16.msra.mxu0 %v12137_v18 }
 0xccd   :  { %11068 = vmatprep.subr.bf16.mxu0 %v12138_v40 }
 0xcd0   :  { %11069 = vmatpush3.bf16.msra.mxu0 %v12138_v40 }
 0xcd1   :  { %11070 = vmatprep.subr.bf16.mxu0 %v12139_v8 }
 0xcd4   :  { %11071 = vmatpush3.bf16.msra.mxu0 %v12139_v8 }
 0xcd5   :  { %11084 = vmatprep.subr.bf16.mxu0 %v12143_v43 }
 0xd8a   :  { %v6835_v61 = vpop.f32.mrb[40].mxu0 }
 0xd8b   :  { %v6836_v49 = vadd.f32 %v9158_v4, %v6835_v61  ;;  %v11046_v39 = vpop.f32.mrb[41].mxu0 }
 0xd8c   :  { %v6838_v16 = vpop.f32.mrb[42].mxu0  ;;  %v12146_v39 = vld [vmem:[%s15159_s1 + $0x7a4] sm:$0xff]  }
 0xd8d   :  { %v6856_v36 = vadd.f32 %v6836_v49, %v5348_v53  ;;  %v6839_v33 = vadd.f32 %v9158_v4, %v6838_v16  ;;  %v11047_v23 = vpop.f32.mrb[43].mxu0  ;;  %v6963_v53 = vld [vmem:[#allocation2 + $0x24] sm:$0xf]  ;;  %v6964_v49 = vld [vmem:[#allocation2 + $0x28] sm:$0xf] }
 0xd8e   :  { %v9173_v40 = vcombine.low %v6963_v53, %v6964_v49 }
 0xd8f   :  { %v6860_v22 = vmax.f32 %v6856_v36, 0.0  ;;  %v6857_v44 = vadd.f32 %v6839_v33, %v5351_v30  ;;  %v12148_v30 = vld [vmem:[%s15159_s1 + $0x7ac] sm:$0xff]  }
 0xd90   :  { %v6965_v36 = vld [vmem:[#allocation2 + $0x2c] sm:$0xf] }
 0xd91   :  { %v9319_v34 = vpack.c.bf16 %v6860_v22, %v6860_v22  ;;  %v6861_v3 = vmax.f32 %v6857_v44, 0.0  ;;  %v12150_v22 = vld [vmem:[%s15159_s1 + $0x7b4] sm:$0xff]   ;;  %v6956_v44 = vld [vmem:[#allocation2 + $0x8] sm:$0xf] }
 0xd92   :  { %v6843_v2 = vpop.f32.mrb[44].mxu0 }
 0xd93   :  { %6881 = vst.msk [vmem:[#allocation2 + $0x10] sm:$0xf] %vm149_vm11, %v9319_v34  ;;  %v9320_v35 = vpack.c.bf16 %v6861_v3, %v6861_v3  ;;  %v11050_v48 = vpop.f32.mrb[45].mxu0  ;;  %v6885_v10 = vrot.slane %v9319_v34, 5 }
 0xd94   :  { %v6845_v5 = vpop.f32.mrb[46].mxu0 }
 0xd95   :  { %v6887_v24 = vrot.slane %v9320_v35, 5  ;;  %6882 = vst.msk [vmem:[#allocation2 + $0x14] sm:$0xf] %vm149_vm11, %v9320_v35  ;;  %6890 = vrot.lane.b32.xlu0 %v6885_v10, %s12263_s14  ;;  %v6886_v58 = vrot.slane %v6885_v10, 4  ;;  %v11051_v42 = vpop.f32.mrb[47].mxu0  ;;  %v12152_v35 = vld [vmem:[%s15159_s1 + $0x7bc] sm:$0xff]  }
 0xd96   :  { %v12153_v5 = vld [vmem:[%s15159_s1 + $0x7c4] sm:$0xff]   ;;  %v12156_v42 = vld [vmem:[%s15159_s1 + $0x85c] sm:$0xff]  }
 0xd97   :  { %v6888_v32 = vsel %vm14760_vm14, %v6886_v58, %v6887_v24  ;;  %v6889_v12 = vrot.slane %v6887_v24, 4  ;;  %v12155_v24 = vld [vmem:[%s15159_s1 + $0x854] sm:$0xff]  }
 0xd98   :  { %6892 = vrot.lane.b32.xlu1 %v6888_v32, %s12263_s14  ;;  %v12158_v32 = vld [vmem:[%s15159_s1 + $0x864] sm:$0xff]  }
 0xd99   :  { %6894 = vrot.lane.b32.xlu0 %v6889_v12, %s12263_s14  ;;  %v14847_v12 = vcombine.low %v14785_v41, %v6963_v53 }
 0xd9a   :  { %v6849_v46 = vpop.f32.mrb[48].mxu0 }
 0xd9b   :  { %v6850_v20 = vadd.f32 %v9158_v4, %v6849_v46  ;;  %v11054_v56 = vpop.f32.mrb[49].mxu0  ;;  %v14849_v46 = vld [vmem:[#allocation2 + $0x18] sm:$0xf] }
 0xd9c   :  { %v6852_v57 = vpop.f32.mrb[50].mxu0 }
 0xd9d   :  { %v6858_v52 = vadd.f32 %v6850_v20, %v5356_v14  ;;  %v6853_v6 = vadd.f32 %v9158_v4, %v6852_v57  ;;  %v11055_v29 = vpop.f32.mrb[51].mxu0  ;;  %v12144_v4 = vld [vmem:[%s15159_s1 + $0x79c] sm:$0xff]   ;;  %v12159_v14 = vld [vmem:[%s15159_s1 + $0x86c] sm:$0xff]   ;;  %v14854_v20 = vcombine.low %v6964_v49, %v6965_v36 }
 0xd9e   :  { %v12176_v49 = vld [vmem:[%s15159_s1 + $0x7ec] sm:$0xff]  }
 0xd9f   :  { %v6862_v26 = vmax.f32 %v6858_v52, 0.0  ;;  %v6859_v38 = vadd.f32 %v6853_v6, %v5359_v21  ;;  %v12162_v52 = vld [vmem:[%s15159_s1 + $0x874] sm:$0xff]  }
 0xda1   :  { %v9321_v0 = vpack.c.bf16 %v6862_v26, %v6862_v26  ;;  %v6863_v25 = vmax.f32 %v6859_v38, 0.0  ;;  %v12166_v38 = vld [vmem:[%s15159_s1 + $0x87c] sm:$0xff]  }
 0xda3   :  { %6921 = vst.msk [vmem:[#allocation2 + $0x34] sm:$0xf] %vm149_vm11, %v9321_v0  ;;  %v9322_v1 = vpack.c.bf16 %v6863_v25, %v6863_v25  ;;  %v6923_v19 = vrot.slane %v9321_v0, 5  ;;  %v12167_v25 = vld [vmem:[%s15159_s1 + $0x884] sm:$0xff]  }
 0xda5   :  { %v6925_v11 = vrot.slane %v9322_v1, 5  ;;  %6922 = vst.msk [vmem:[#allocation2 + $0x38] sm:$0xf] %vm149_vm11, %v9322_v1  ;;  %6928 = vrot.lane.b32.xlu1 %v6923_v19, %s12263_s14  ;;  %v6924_v28 = vrot.slane %v6923_v19, 4  ;;  %vm15186_vm11 = vmmov %vm15185_vm3  ;;  %v14873_v1 = vld [vmem:[#allocation2 + $0x1c] sm:$0xf] }
 0xda6   :  { %v14875_v19 = vld [vmem:[#allocation2 + $0x20] sm:$0xf] }
 0xda7   :  { %v6926_v37 = vsel %vm14760_vm14, %v6924_v28, %v6925_v11  ;;  %v6927_v47 = vrot.slane %v6925_v11, 4  ;;  %v14877_v11 = vld [vmem:[#allocation2 + $0x24] sm:$0xf]  ;;  %v14879_v28 = vld [vmem:[#allocation2 + $0x28] sm:$0xf] }
 0xda8   :  { %6930 = vrot.lane.b32.xlu0 %v6926_v37, %s12263_s14  ;;  %v12168_v37 = vld [vmem:[%s15159_s1 + $0x88c] sm:$0xff]  }
 0xda9   :  { %6932 = vrot.lane.b32.xlu1 %v6927_v47, %s12263_s14  ;;  %v9200_v47 = vcombine.low %v14873_v1, %v14875_v19 }
 0xe07   :  { %v6891_v62 = vpop.permute.xlu0 %6890 }
 0xe08   :  { %6900 = vst.msk [vmem:[#allocation2 + $0xc] sm:$0x8] %vm15185_vm3, %v6891_v62  ;;  %v9201_v62 = vcombine.low %v14877_v11, %v14879_v28 }
 0xe0a   :  { %v6893_v55 = vpop.permute.xlu1 %6892  ;;  %v7355_v41 = vrot.slane %v9201_v62, 2 }
 0xe0b   :  { %6901 = vst.msk [vmem:[#allocation2 + $0x10] sm:$0xf] %vm188_vm5, %v6893_v55  ;;  %v6895_v54 = vpop.permute.xlu0 %6894  ;;  %v12170_v55 = vld [vmem:[%s15159_s1 + $0x7d4] sm:$0xff]  }
 0xe0c   :  { %6903 = vst.msk [vmem:[#allocation2 + $0x14] sm:$0x7] %vm6902_vm4, %v6895_v54  ;;  %v7353_v54 = vrot.slane %v9200_v47, 2 }
 0xe0f   :  { %v14787_v45 = vld [vmem:[#allocation2 + $0xc] sm:$0xf] }
 0xe10   :  { %v9184_v10 = vcombine.low %v6956_v44, %v14787_v45  ;;  %v7308_v56 = vld [vmem:[#allocation2 + $0xc] sm:$0xc] }
 0xe12   :  { %v6958_v50 = vld [vmem:[#allocation2 + $0x10] sm:$0xf] }
 0xe13   :  { %v14789_v13 = vld [vmem:[#allocation2 + $0x10] sm:$0xf]  ;;  %v6959_v59 = vld [vmem:[#allocation2 + $0x14] sm:$0xf]  ;;  %v9170_v63 = vcombine.low %v14787_v45, %v6958_v50 }
 0xe14   :  { %v14793_v17 = vld [vmem:[#allocation2 + $0x14] sm:$0xf]  ;;  %v9171_v51 = vcombine.low %v6959_v59, %v6960_v27  ;;  %v14834_v58 = vcombine.low %v6958_v50, %v6959_v59  ;;  %v9198_v57 = vcombine.low %v7308_v56, %v14789_v13  ;;  %v12171_v50 = vld [vmem:[%s15159_s1 + $0x7dc] sm:$0xff]   ;;  %v7356_v59 = vsel %vm1984_vm10, %v7353_v54, %v7355_v41 }
 0xe15   :  { %v9222_v18 = vcombine.low %v14789_v13, %v14793_v17  ;;  %11072 = vmatprep.mubr.bf16.mxu0 %v9170_v63  ;;  %v9199_v21 = vcombine.low %v14793_v17, %v14849_v46  ;;  %v9223_v13 = vcombine.low %v14849_v46, %v14873_v1  ;;  %v9224_v17 = vcombine.low %v14875_v19, %v14877_v11  ;;  %v14978_v1 = vld [vmem:[#allocation2 + $0x1c] sm:$0xf]  ;;  %v12197_v19 = vld [vmem:[%s15159_s1 + $0x8ec] sm:$0xff]  }
 0xe16   :  { %11073 = vmatmul.mubr.bf16.vlgmr.msra.gmra.mrb[52].mxu0 %v9171_v51  ;;  %v7350_v6 = vrot.slane %v9198_v57, 2  ;;  %v12185_v57 = vld [vmem:[%s15159_s1 + $0x8ac] sm:$0xff]  }
 0xe17   :  { %11085 = vmatpush3.bf16.msra.mxu0 %v12143_v43  ;;  %v6929_v61 = vpop.permute.xlu1 %6928  ;;  %11076 = vmatprep.mubr.bf16.mxu0 %v9172_v60  ;;  %v14839_v43 = vcombine.low %v6960_v27, %v6961_v15  ;;  %v7351_v29 = vrot.slane %v9199_v21, 2  ;;  %v14891_v27 = vld [vmem:[#allocation2 + $0x2c] sm:$0xf]  ;;  %v12186_v21 = vld [vmem:[%s15159_s1 + $0x8b4] sm:$0xff]  }
 0xe18   :  { %6937 = vst.msk [vmem:[#allocation2 + $0x30] sm:$0x8] %vm15186_vm11, %v6929_v61  ;;  %11086 = vmatprep.subr.bf16.mxu0 %v12144_v4  ;;  %v9225_v46 = vcombine.low %v14879_v28, %v14891_v27  ;;  %v12199_v28 = vld [vmem:[%s15159_s1 + $0x8f4] sm:$0xff]  }
 0xe19   :  { %v7352_v0 = vsel %vm1984_vm10, %v7350_v6, %v7351_v29  ;;  %v7354_v63 = vsel %vm1984_vm10, %v7351_v29, %v7353_v54  ;;  %v12190_v6 = vld [vmem:[%s15159_s1 + $0x8cc] sm:$0xff]   ;;  %v12191_v29 = vld [vmem:[%s15159_s1 + $0x8d4] sm:$0xff]   ;;  %v12203_v54 = vld [vmem:[%s15159_s1 + $0x8fc] sm:$0xff]  }
 0xe1a   :  { %v6931_v16 = vpop.permute.xlu0 %6930 }
 0xe1b   :  { %11087 = vmatpush3.bf16.msra.mxu0 %v12144_v4  ;;  %6938 = vst.msk [vmem:[#allocation2 + $0x34] sm:$0xf] %vm188_vm5, %v6931_v16  ;;  %v6933_v8 = vpop.permute.xlu1 %6932  ;;  %v12174_v4 = vld [vmem:[%s15159_s1 + $0x7e4] sm:$0xff]  }
 0xe1c   :  { %6939 = vst.msk [vmem:[#allocation2 + $0x38] sm:$0x7] %vm6902_vm4, %v6933_v8  ;;  %11088 = vmatprep.subr.bf16.mxu0 %v12146_v39  ;;  %v6983_v16 = vld [vmem:[#allocation2 + $0x8] sm:$0xc]  ;;  %v12177_v8 = vld [vmem:[%s15159_s1 + $0x7f4] sm:$0xff]  }
 0xe1e   :  { %11077 = vmatmul.mubr.bf16.gmra.mrb[56].mxu0 %v9173_v40 }
 0xe1f   :  { %11089 = vmatpush3.bf16.msra.mxu0 %v12146_v39  ;;  %v14809_v33 = vld [vmem:[#allocation2 + $0x30] sm:$0xf] }
 0xe20   :  { %11090 = vmatprep.subr.bf16.mxu0 %v12148_v30  ;;  %v9174_v23 = vcombine.low %v6965_v36, %v14809_v33  ;;  %v14815_v34 = vld [vmem:[#allocation2 + $0x30] sm:$0xf]  ;;  %v9189_v26 = vcombine.low %v14809_v33, %v14809_v33  ;;  %v7495_v36 = vrot.slane %v14834_v58, 2 }
 0xe21   :  { %v9202_v60 = vcombine.low %v14891_v27, %v14815_v34 }
 0xe22   :  { %11080 = vmatprep.mubr.bf16.mxu0 %v9174_v23  ;;  %v14817_v3 = vld [vmem:[#allocation2 + $0x34] sm:$0xf] }
 0xe23   :  { %11091 = vmatpush3.bf16.msra.mxu0 %v12148_v30  ;;  %v12151_v2 = vld [vmem:[#allocation2 + $0x34] ss:$0 sps:$4 sm:$0xff]   ;;  %v9226_v48 = vcombine.low %v14815_v34, %v14817_v3  ;;  %v7319_v15 = vld [vmem:[#allocation2 + $0x38] sm:$0x3]  ;;  %v7357_v61 = vrot.slane %v9202_v60, 2  ;;  %v9212_v30 = vcombine.low %v6983_v16, %v14787_v45  ;;  %v12180_v45 = vld [vmem:[%s15159_s1 + $0x80c] sm:$0xff]  }
 0xe24   :  { %11092 = vmatprep.subr.bf16.mxu0 %v12150_v22  ;;  %v9203_v51 = vcombine.low %v14817_v3, %v7319_v15  ;;  %v14996_v34 = vld [vmem:[#allocation2 + $0x20] sm:$0xf]  ;;  %v12204_v3 = vld [vmem:[%s15159_s1 + $0x904] sm:$0xff]  }
 0xe25   :  { %v7358_v39 = vsel %vm1984_vm10, %v7355_v41, %v7357_v61  ;;  %v7494_v23 = vrot.slane %v9212_v30, 2  ;;  %v7810_v15 = vld [vmem:[#allocation2 + $0x28] sm:$0xf]  ;;  %v12208_v16 = vld [vmem:[%s15159_s1 + $0x91c] sm:$0xff]  }
 0xe26   :  { %11081 = vmatmul.mubr.bf16.gmra.mrb[60].mxu0 %v12151_v2  ;;  %v7359_v53 = vrot.slane %v9203_v51, 2  ;;  %v12179_v2 = vld [vmem:[%s15159_s1 + $0x804] sm:$0xff]   ;;  %v12207_v51 = vld [vmem:[%s15159_s1 + $0x914] sm:$0xff]  }
 0xe27   :  { %11093 = vmatpush3.bf16.msra.mxu0 %v12150_v22  ;;  %11100 = vmatprep.mubr.bf16.mxu0 %v9184_v10  ;;  %v12178_v22 = vld [vmem:[%s15159_s1 + $0x7fc] sm:$0xff]   ;;  %v7496_v44 = vsel %vm1984_vm10, %v7494_v23, %v7495_v36  ;;  %v12181_v10 = vld [vmem:[%s15159_s1 + $0x894] sm:$0xff]   ;;  %v12211_v23 = vld [vmem:[%s15159_s1 + $0x924] sm:$0xff]  }
 0xe28   :  { %11094 = vmatprep.subr.bf16.mxu0 %v12152_v35  ;;  %v7360_v40 = vsel %vm1984_vm10, %v7357_v61, %v7359_v53  ;;  %v7813_v61 = vld [vmem:[#allocation2 + $0x34] sm:$0xf] }
 0xe2b   :  { %11095 = vmatpush3.bf16.msra.mxu0 %v12152_v35  ;;  %v7499_v35 = vrot.slane %v14847_v12, 2 }
 0xe2c   :  { %11096 = vmatprep.subr.bf16.mxu0 %v12153_v5 }
 0xe2f   :  { %11097 = vmatpush3.bf16.msra.mxu0 %v12153_v5  ;;  %v7497_v5 = vrot.slane %v14839_v43, 2 }
 0xe30   :  { %11098 = vmatprep.subr.bf16.mxu0 %v12154_v9 }
 0xe33   :  { %11099 = vmatpush3.bf16.msra.mxu0 %v12154_v9  ;;  %v6984_v9 = vld [vmem:[#allocation2 + $0x34] sm:$0x3] }
 0xe34   :  { %11112 = vmatprep.subr.bf16.mxu0 %v12155_v24 }
 0xe36   :  { %11101 = vmatmul.mubr.bf16.vlgmr.msra.gmra.mrb[52].mxu0 %v14834_v58  ;;  %v7500_v58 = vsel %vm1984_vm10, %v7497_v5, %v7499_v35 }
 0xe37   :  { %11113 = vmatpush3.bf16.msra.mxu0 %v12155_v24  ;;  %11104 = vmatprep.mubr.bf16.mxu0 %v14839_v43  ;;  %v12182_v24 = vld [vmem:[%s15159_s1 + $0x89c] sm:$0xff]   ;;  %v12183_v43 = vld [vmem:[%s15159_s1 + $0x8a4] sm:$0xff]  }
 0xe38   :  { %11114 = vmatprep.subr.bf16.mxu0 %v12156_v42 }
 0xe3b   :  { %11115 = vmatpush3.bf16.msra.mxu0 %v12156_v42  ;;  %v7498_v42 = vsel %vm1984_vm10, %v7495_v36, %v7497_v5  ;;  %v12216_v5 = vld [vmem:[%s15159_s1 + $0x93c] sm:$0xff]  }
 0xe3c   :  { %11116 = vmatprep.subr.bf16.mxu0 %v12158_v32 }
 0xe3e   :  { %11105 = vmatmul.mubr.bf16.gmra.mrb[64].mxu0 %v14847_v12  ;;  %v7501_v12 = vrot.slane %v14854_v20, 2 }
 0xe3f   :  { %11117 = vmatpush3.bf16.msra.mxu0 %v12158_v32  ;;  %11108 = vmatprep.mubr.bf16.mxu0 %v14854_v20  ;;  %v9213_v32 = vcombine.low %v14809_v33, %v6984_v9  ;;  %v12188_v20 = vld [vmem:[%s15159_s1 + $0x8bc] sm:$0xff]  }
 0xe40   :  { %11118 = vmatprep.subr.bf16.mxu0 %v12159_v14  ;;  %v7502_v56 = vsel %vm1984_vm10, %v7499_v35, %v7501_v12 }
 0xe43   :  { %11119 = vmatpush3.bf16.msra.mxu0 %v12159_v14  ;;  %v7503_v14 = vrot.slane %v9213_v32, 2  ;;  %v9251_v32 = vcombine.low %v14978_v1, %v14996_v34 }
 0xe44   :  { %11120 = vmatprep.subr.bf16.mxu0 %v12162_v52 }
 0xe45   :  { %v7504_v33 = vsel %vm1984_vm10, %v7501_v12, %v7503_v14  ;;  %v12220_v12 = vld [vmem:[%s15159_s1 + $0x95c] sm:$0xff]  }
 0xe46   :  { %11109 = vmatmul.mubr.bf16.gmra.mrb[60].mxu0 %v9189_v26  ;;  %v12195_v26 = vld [vmem:[%s15159_s1 + $0x8e4] sm:$0xff]  }
 0xe47   :  { %11121 = vmatpush3.bf16.msra.mxu0 %v12162_v52  ;;  %11128 = vmatprep.mubr.bf16.mxu0 %v7352_v0  ;;  %v12189_v52 = vld [vmem:[%s15159_s1 + $0x8c4] sm:$0xff]   ;;  %v7804_v0 = vld [vmem:[#allocation2 + $0x10] sm:$0xc] }
 0xe48   :  { %11122 = vmatprep.subr.bf16.mxu0 %v12166_v38 }
 0xe4b   :  { %11123 = vmatpush3.bf16.msra.mxu0 %v12166_v38  ;;  %v14974_v38 = vld [vmem:[#allocation2 + $0x18] sm:$0xf] }
 0xe4c   :  { %11124 = vmatprep.subr.bf16.mxu0 %v12167_v25 }
 0xe4f   :  { %11125 = vmatpush3.bf16.msra.mxu0 %v12167_v25  ;;  %v14976_v25 = vld [vmem:[#allocation2 + $0x14] sm:$0xf] }
 0xe50   :  { %11126 = vmatprep.subr.bf16.mxu0 %v12168_v37  ;;  %v9236_v11 = vcombine.low %v7804_v0, %v14976_v25  ;;  %v9250_v9 = vcombine.low %v14976_v25, %v14974_v38  ;;  %v12234_v0 = vld [vmem:[#allocation2 + $0x2c] sm:$0xff]  }
 0xe52   :  { %v7846_v47 = vrot.slane %v9236_v11, 2 }
 0xe53   :  { %11127 = vmatpush3.bf16.msra.mxu0 %v12168_v37  ;;  %v9237_v37 = vcombine.low %v14974_v38, %v14978_v1  ;;  %v12233_v38 = vld [vmem:[#allocation2 + $0x24] sm:$0xff]  }
 0xe54   :  { %11140 = vmatprep.subr.bf16.mxu0 %v12170_v55  ;;  %v8205_v25 = vrot.slane %v12233_v38, 2 }
 0xe55   :  { %v7847_v62 = vrot.slane %v9237_v37, 2 }
 0xe56   :  { %11129 = vmatmul.mubr.bf16.vlgmr.msra.gmra.mrb[52].mxu0 %v7354_v63 }
 0xe57   :  { %11141 = vmatpush3.bf16.msra.mxu0 %v12170_v55  ;;  %11132 = vmatprep.mubr.bf16.mxu0 %v7356_v59  ;;  %v12198_v55 = vld [vmem:[#allocation2 + $0x38] ss:$0 sps:$4 sm:$0xff]   ;;  %v7848_v41 = vsel %vm1984_vm10, %v7846_v47, %v7847_v62  ;;  %v15008_v59 = vld [vmem:[#allocation2 + $0x2c] sm:$0xf] }
 0xe58   :  { %11142 = vmatprep.subr.bf16.mxu0 %v12171_v50  ;;  %v9239_v63 = vcombine.low %v7810_v15, %v15008_v59 }
 0xe5b   :  { %11143 = vmatpush3.bf16.msra.mxu0 %v12171_v50  ;;  %v12205_v50 = vld [vmem:[%s15159_s1 + $0x90c] sm:$0xff]  }
 0xe5c   :  { %11144 = vmatprep.subr.bf16.mxu0 %v12174_v4 }
 0xe5e   :  { %11133 = vmatmul.mubr.bf16.gmra.mrb[68].mxu0 %v7358_v39  ;;  %v7815_v39 = vld [vmem:[#allocation2 + $0x3c] sm:$0x3] }
 0xe5f   :  { %11136 = vmatprep.mubr.bf16.mxu0 %v7360_v40  ;;  %11145 = vmatpush3.bf16.msra.mxu0 %v12174_v4  ;;  %v7851_v4 = vrot.slane %v9239_v63, 2 }
 0xe60   :  { %11146 = vmatprep.subr.bf16.mxu0 %v12176_v49 }
 0xe63   :  { %11147 = vmatpush3.bf16.msra.mxu0 %v12176_v49  ;;  %v7814_v49 = vld [vmem:[#allocation2 + $0x38] sm:$0xf] }
 0xe64   :  { %11148 = vmatprep.subr.bf16.mxu0 %v12177_v8  ;;  %v9241_v36 = vcombine.low %v7814_v49, %v7815_v39 }
 0xe66   :  { %11137 = vmatmul.mubr.bf16.gmra.mrb[60].mxu0 %v7359_v53 }
 0xe67   :  { %11149 = vmatpush3.bf16.msra.mxu0 %v12177_v8  ;;  %11156 = vmatprep.mubr.bf16.mxu0 %v7496_v44  ;;  %v7812_v8 = vld [vmem:[#allocation2 + $0x30] sm:$0xf]  ;;  %v7855_v44 = vrot.slane %v9241_v36, 2  ;;  %v12241_v36 = vld [vmem:[%s15161_s2 + $0x380] sm:$0xff]  }
 0xe68   :  { %11150 = vmatprep.subr.bf16.mxu0 %v12178_v22  ;;  %v9240_v30 = vcombine.low %v7812_v8, %v7813_v61 }
 0xe6b   :  { %11151 = vmatpush3.bf16.msra.mxu0 %v12178_v22  ;;  %v7853_v22 = vrot.slane %v9240_v30, 2  ;;  %v12240_v30 = vld [vmem:[%s15161_s2 + $0x378] sm:$0xff]  }
 0xe6c   :  { %11152 = vmatprep.subr.bf16.mxu0 %v12179_v2 }
 0xe6d   :  { %v7856_v35 = vsel %vm1984_vm10, %v7853_v22, %v7855_v44 }
 0xe6f   :  { %11153 = vmatpush3.bf16.msra.mxu0 %v12179_v2  ;;  %v12213_v2 = vld [vmem:[%s15159_s1 + $0x92c] sm:$0xff]  }
 0xe70   :  { %11154 = vmatprep.subr.bf16.mxu0 %v12180_v45 }
 0xe73   :  { %11155 = vmatpush3.bf16.msra.mxu0 %v12180_v45  ;;  %v7854_v45 = vsel %vm1984_vm10, %v7851_v4, %v7853_v22  ;;  %v12243_v22 = vld [vmem:[%s15161_s2 + $0x390] sm:$0xff]  }
 0xe74   :  { %11168 = vmatprep.subr.bf16.mxu0 %v12181_v10 }
 0xe76   :  { %11157 = vmatmul.mubr.bf16.vlgmr.msra.gmra.mrb[52].mxu0 %v7498_v42  ;;  %v12219_v42 = vld [vmem:[%s15159_s1 + $0x954] sm:$0xff]  }
 0xe77   :  { %11169 = vmatpush3.bf16.msra.mxu0 %v12181_v10  ;;  %11160 = vmatprep.mubr.bf16.mxu0 %v7500_v58  ;;  %v12214_v10 = vld [vmem:[%s15159_s1 + $0x934] sm:$0xff]   ;;  %v12218_v58 = vld [vmem:[%s15159_s1 + $0x94c] sm:$0xff]  }
 0xe78   :  { %11170 = vmatprep.subr.bf16.mxu0 %v12182_v24 }
 0xe7b   :  { %11171 = vmatpush3.bf16.msra.mxu0 %v12182_v24  ;;  %v12217_v24 = vld [vmem:[%s15159_s1 + $0x944] sm:$0xff]  }
 0xe7c   :  { %11172 = vmatprep.subr.bf16.mxu0 %v12183_v43 }
 0xe7e   :  { %11161 = vmatmul.mubr.bf16.gmra.mrb[72].mxu0 %v7502_v56  ;;  %v9253_v56 = vcombine.low %v15008_v59, %v7812_v8 }
 0xe7f   :  { %11164 = vmatprep.mubr.bf16.mxu0 %v7504_v33  ;;  %11173 = vmatpush3.bf16.msra.mxu0 %v12183_v43  ;;  %v9254_v33 = vcombine.low %v7813_v61, %v7814_v49  ;;  %v12237_v61 = vld [vmem:[%s15161_s2 + $0x360] sm:$0xff]  }
 0xe80   :  { %11174 = vmatprep.subr.bf16.mxu0 %v12185_v57  ;;  %11280 = vmatprep.subr.bf16.mxu1 %v12237_v61 }
 0xe81   :  { %11281 = vmatpush3.bf16.msra.mxu1 %v12237_v61  ;;  %v12254_v61 = vld [vmem:[%s15161_s2 + $0x3e8] sm:$0xff]  }
 0xe83   :  { %11175 = vmatpush3.bf16.msra.mxu0 %v12185_v57  ;;  %v12225_v57 = vld [vmem:[%s15159_s1 + $0x96c] sm:$0xff]  }
 0xe84   :  { %11176 = vmatprep.subr.bf16.mxu0 %v12186_v21 }
 0xe86   :  { %11165 = vmatmul.mubr.bf16.gmra.mrb[60].mxu0 %v7503_v14  ;;  %v12223_v14 = vld [vmem:[%s15159_s1 + $0x964] sm:$0xff]  }
 0xe87   :  { %11177 = vmatpush3.bf16.msra.mxu0 %v12186_v21  ;;  %11184 = vmatprep.mubr.bf16.mxu0 %v9222_v18  ;;  %v12192_v18 = vld [vmem:[%s15159_s1 + $0x8dc] sm:$0xff]   ;;  %v12228_v21 = vld [vmem:[#allocation2 + $0x14] sm:$0xfc]  }
 0xe88   :  { %11178 = vmatprep.subr.bf16.mxu0 %v12188_v20 }
 0xe8b   :  { %11179 = vmatpush3.bf16.msra.mxu0 %v12188_v20  ;;  %v12229_v20 = vld [vmem:[#allocation2 + $0x1c] sm:$0xff]  }
 0xe8c   :  { %11180 = vmatprep.subr.bf16.mxu0 %v12189_v52 }
 0xe8f   :  { %11181 = vmatpush3.bf16.msra.mxu0 %v12189_v52  ;;  %v12227_v52 = vld [vmem:[%s15159_s1 + $0x974] sm:$0xff]  }
 0xe90   :  { %11182 = vmatprep.subr.bf16.mxu0 %v12190_v6 }
 0xe93   :  { %11183 = vmatpush3.bf16.msra.mxu0 %v12190_v6  ;;  %v12226_v6 = vld [vmem:[#allocation2 + $0x3c] ss:$0 sps:$4 sm:$0xff]  }
 0xe94   :  { %11196 = vmatprep.subr.bf16.mxu0 %v12191_v29 }
 0xe96   :  { %11185 = vmatmul.mubr.bf16.vlgmr.msra.gmra.mrb[52].mxu0 %v9223_v13  ;;  %v8203_v13 = vrot.slane %v12229_v20, 2 }
 0xe97   :  { %11197 = vmatpush3.bf16.msra.mxu0 %v12191_v29  ;;  %11188 = vmatprep.mubr.bf16.mxu0 %v9224_v17  ;;  %v8202_v29 = vrot.slane %v12228_v21, 2  ;;  %v12230_v17 = vld [vmem:[%s15159_s1 + $0x97c] sm:$0xff]  }
 0xe98   :  { %11198 = vmatprep.subr.bf16.mxu0 %v12192_v18  ;;  %v8206_v37 = vsel %vm1984_vm10, %v8203_v13, %v8205_v25 }
 0xe9b   :  { %11199 = vmatpush3.bf16.msra.mxu0 %v12192_v18  ;;  %v8204_v18 = vsel %vm1984_vm10, %v8202_v29, %v8203_v13 }
 0xe9c   :  { %11200 = vmatprep.subr.bf16.mxu0 %v12195_v26 }
 0xe9e   :  { %11189 = vmatmul.mubr.bf16.gmra.mrb[76].mxu0 %v9225_v46  ;;  %v12232_v46 = vld [vmem:[%s15159_s1 + $0x98c] sm:$0xff]  }
 0xe9f   :  { %11192 = vmatprep.mubr.bf16.mxu0 %v9226_v48  ;;  %11201 = vmatpush3.bf16.msra.mxu0 %v12195_v26  ;;  %v15001_v48 = vld [vmem:[#allocation2 + $0x24] sm:$0xf] }
 0xea0   :  { %11202 = vmatprep.subr.bf16.mxu0 %v12197_v19  ;;  %v9238_v27 = vcombine.low %v14996_v34, %v15001_v48  ;;  %v9252_v43 = vcombine.low %v15001_v48, %v7810_v15  ;;  %v12231_v26 = vld [vmem:[%s15159_s1 + $0x984] sm:$0xff]  }
 0xea2   :  { %v7849_v60 = vrot.slane %v9238_v27, 2 }
 0xea3   :  { %11203 = vmatpush3.bf16.msra.mxu0 %v12197_v19  ;;  %v8207_v19 = vrot.slane %v12234_v0, 2 }
 0xea4   :  { %11204 = vmatprep.subr.bf16.mxu0 %v12199_v28  ;;  %v7850_v53 = vsel %vm1984_vm10, %v7847_v62, %v7849_v60  ;;  %v7852_v40 = vsel %vm1984_vm10, %v7849_v60, %v7851_v4  ;;  %v12235_v62 = vld [vmem:[#allocation2 + $0x34] sm:$0xff]  }
 0xea6   :  { %11193 = vmatmul.mubr.bf16.gmra.mrb[60].mxu0 %v12198_v55  ;;  %v8208_v55 = vsel %vm1984_vm10, %v8205_v25, %v8207_v19  ;;  %v12247_v25 = vld [vmem:[%s15161_s2 + $0x3b0] sm:$0xff]  }
 0xea7   :  { %11205 = vmatpush3.bf16.msra.mxu0 %v12199_v28  ;;  %11212 = vmatprep.mubr.bf16.mxu0 %v7848_v41  ;;  %v8209_v41 = vrot.slane %v12235_v62, 2 }
 0xea8   :  { %11206 = vmatprep.subr.bf16.mxu0 %v12203_v54 }
 0xeab   :  { %11207 = vmatpush3.bf16.msra.mxu0 %v12203_v54  ;;  %v12236_v54 = vld [vmem:[#allocation2 + $0x3c] sm:$0x3f]  }
 0xeac   :  { %11208 = vmatprep.subr.bf16.mxu0 %v12204_v3  ;;  %v8211_v34 = vrot.slane %v12236_v54, 2 }
 0xeae   :  { %v8212_v48 = vsel %vm1984_vm10, %v8209_v41, %v8211_v34 }
 0xeaf   :  { %11209 = vmatpush3.bf16.msra.mxu0 %v12204_v3  ;;  %v8210_v3 = vsel %vm1984_vm10, %v8207_v19, %v8209_v41  ;;  %v12249_v19 = vld [vmem:[%s15161_s2 + $0x3c0] sm:$0xff]  }
 0xeb0   :  { %11210 = vmatprep.subr.bf16.mxu0 %v12205_v50 }
 0xeb3   :  { %11211 = vmatpush3.bf16.msra.mxu0 %v12205_v50 }
 0xeb4   :  { %11224 = vmatprep.subr.bf16.mxu0 %v12207_v51 }
 0xeb6   :  { %11213 = vmatmul.mubr.bf16.vlgmr.msra.gmra.mrb[52].mxu0 %v7850_v53  ;;  %v12238_v53 = vld [vmem:[%s15161_s2 + $0x368] sm:$0xff]  }
 0xeb7   :  { %11225 = vmatpush3.bf16.msra.mxu0 %v12207_v51  ;;  %11216 = vmatprep.mubr.bf16.mxu0 %v7852_v40 }
 0xeb8   :  { %11226 = vmatprep.subr.bf16.mxu0 %v12208_v16  ;;  %11282 = vmatprep.subr.bf16.mxu1 %v12238_v53 }
 0xeb9   :  { %11283 = vmatpush3.bf16.msra.mxu1 %v12238_v53  ;;  %v12255_v53 = vld [vmem:[%s15161_s2 + $0x3f0] sm:$0xff]  }
 0xebb   :  { %11227 = vmatpush3.bf16.msra.mxu0 %v12208_v16  ;;  %v12239_v16 = vld [vmem:[%s15161_s2 + $0x370] sm:$0xff]  }
 0xebc   :  { %11228 = vmatprep.subr.bf16.mxu0 %v12211_v23  ;;  %11284 = vmatprep.subr.bf16.mxu1 %v12239_v16 }
 0xebd   :  { %11285 = vmatpush3.bf16.msra.mxu1 %v12239_v16 }
 0xebe   :  { %11217 = vmatmul.mubr.bf16.gmra.mrb[80].mxu0 %v7854_v45  ;;  %11286 = vmatprep.subr.bf16.mxu1 %v12240_v30  ;;  %v12246_v45 = vld [vmem:[%s15161_s2 + $0x3a8] sm:$0xff]  }
 0xebf   :  { %11220 = vmatprep.mubr.bf16.mxu0 %v7856_v35  ;;  %11229 = vmatpush3.bf16.msra.mxu0 %v12211_v23  ;;  %v12242_v23 = vld [vmem:[%s15161_s2 + $0x388] sm:$0xff]  }
 0xec0   :  { %11230 = vmatprep.subr.bf16.mxu0 %v12213_v2 }
 0xec1   :  { %11287 = vmatpush3.bf16.msra.mxu1 %v12240_v30 }
 0xec2   :  { %11312 = vmatprep.subr.bf16.mxu1 %v12262_v31 }
 0xec3   :  { %11231 = vmatpush3.bf16.msra.mxu0 %v12213_v2  ;;  %v12245_v2 = vld [vmem:[%s15161_s2 + $0x3a0] sm:$0xff]  }
 0xec4   :  { %11232 = vmatprep.subr.bf16.mxu0 %v12214_v10 }
 0xec6   :  { %11221 = vmatmul.mubr.bf16.gmra.mrb[60].mxu0 %v7855_v44  ;;  %v12244_v44 = vld [vmem:[%s15161_s2 + $0x398] sm:$0xff]  }
 0xec7   :  { %11233 = vmatpush3.bf16.msra.mxu0 %v12214_v10  ;;  %11240 = vmatprep.mubr.bf16.mxu0 %v9250_v9 }
 0xec8   :  { %11234 = vmatprep.subr.bf16.mxu0 %v12216_v5 }
 0xecb   :  { %11235 = vmatpush3.bf16.msra.mxu0 %v12216_v5 }
 0xecc   :  { %11236 = vmatprep.subr.bf16.mxu0 %v12217_v24 }
 0xecf   :  { %11237 = vmatpush3.bf16.msra.mxu0 %v12217_v24 }
 0xed0   :  { %11238 = vmatprep.subr.bf16.mxu0 %v12218_v58 }
 0xed3   :  { %11239 = vmatpush3.bf16.msra.mxu0 %v12218_v58 }
 0xed4   :  { %11252 = vmatprep.subr.bf16.mxu0 %v12219_v42 }
 0xed6   :  { %11241 = vmatmul.mubr.bf16.vlgmr.msra.gmra.mrb[52].mxu0 %v9251_v32 }
 0xed7   :  { %11253 = vmatpush3.bf16.msra.mxu0 %v12219_v42  ;;  %11244 = vmatprep.mubr.bf16.mxu0 %v9252_v43 }
 0xed8   :  { %11254 = vmatprep.subr.bf16.mxu0 %v12220_v12 }
 0xedb   :  { %11255 = vmatpush3.bf16.msra.mxu0 %v12220_v12 }
 0xedc   :  { %11256 = vmatprep.subr.bf16.mxu0 %v12223_v14 }
 0xede   :  { %11245 = vmatmul.mubr.bf16.gmra.mrb[84].mxu0 %v9253_v56 }
 0xedf   :  { %11248 = vmatprep.mubr.bf16.mxu0 %v9254_v33  ;;  %11257 = vmatpush3.bf16.msra.mxu0 %v12223_v14 }
 0xee0   :  { %11258 = vmatprep.subr.bf16.mxu0 %v12225_v57 }
 0xee3   :  { %11259 = vmatpush3.bf16.msra.mxu0 %v12225_v57 }
 0xee4   :  { %11260 = vmatprep.subr.bf16.mxu0 %v12227_v52 }
 0xee6   :  { %11249 = vmatmul.mubr.bf16.gmra.mrb[60].mxu0 %v12226_v6 }
 0xee7   :  { %11261 = vmatpush3.bf16.msra.mxu0 %v12227_v52  ;;  %11268 = vmatprep.mubr.bf16.mxu0 %v8204_v18 }
 0xee8   :  { %11262 = vmatprep.subr.bf16.mxu0 %v12230_v17 }
 0xeeb   :  { %11263 = vmatpush3.bf16.msra.mxu0 %v12230_v17 }
 0xeec   :  { %11264 = vmatprep.subr.bf16.mxu0 %v12231_v26 }
 0xeef   :  { %11265 = vmatpush3.bf16.msra.mxu0 %v12231_v26 }
 0xef0   :  { %11266 = vmatprep.subr.bf16.mxu0 %v12232_v46 }
 0xef1   :  { %v11078_v1 = vpop.f32.mrb[56].mxu0 }
 0xef2   :  { %v7132_v11 = vpop.f32.mrb[57].mxu0  ;;  %v12248_v1 = vld [vmem:[%s15161_s2 + $0x3b8] sm:$0xff]  }
 0xef3   :  { %11267 = vmatpush3.bf16.msra.mxu0 %v12232_v46  ;;  %v11079_v28 = vpop.f32.mrb[58].mxu0  ;;  %v9278_v11 = vld [vmem:[%s15162_s3 + $0x7] ss:$0 sm:$0xff] }
 0xef4   :  { %v7134_v47 = vpop.f32.mrb[59].mxu0  ;;  %11292 = vmatprep.subr.bf16.mxu0 %v12241_v36 }
 0xef6   :  { %11269 = vmatmul.mubr.bf16.vlgmr.msra.gmra.mrb[52].mxu0 %v8206_v37 }
 0xef7   :  { %11272 = vmatprep.mubr.bf16.mxu0 %v8208_v55  ;;  %11293 = vmatpush3.bf16.msra.mxu0 %v12241_v36 }
 0xef8   :  { %11294 = vmatprep.subr.bf16.mxu0 %v12242_v23 }
 0xefb   :  { %11295 = vmatpush3.bf16.msra.mxu0 %v12242_v23 }
 0xefc   :  { %11296 = vmatprep.subr.bf16.mxu0 %v12243_v22 }
 0xefe   :  { %11273 = vmatmul.mubr.bf16.gmra.mrb[88].mxu0 %v8210_v3 }
 0xeff   :  { %11276 = vmatprep.mubr.bf16.mxu0 %v8212_v48  ;;  %11297 = vmatpush3.bf16.msra.mxu0 %v12243_v22 }
 0xf00   :  { %11298 = vmatprep.subr.bf16.mxu0 %v12244_v44 }
 0xf03   :  { %11299 = vmatpush3.bf16.msra.mxu0 %v12244_v44 }
 0xf04   :  { %11300 = vmatprep.subr.bf16.mxu0 %v12245_v2 }
 0xf06   :  { %11277 = vmatmul.mubr.bf16.gmra.mrb[60].mxu0 %v8211_v34 }
 0xf07   :  { %11301 = vmatpush3.bf16.msra.mxu0 %v12245_v2 }
 0xf08   :  { %11302 = vmatprep.subr.bf16.mxu0 %v12246_v45 }
 0xf0b   :  { %11303 = vmatpush3.bf16.msra.mxu0 %v12246_v45 }
 0xf0c   :  { %11304 = vmatprep.subr.bf16.mxu0 %v12247_v25 }
 0xf0f   :  { %11305 = vmatpush3.bf16.msra.mxu0 %v12247_v25 }
 0xf10   :  { %11306 = vmatprep.subr.bf16.mxu0 %v12248_v1 }
 0xf11   :  { %v11106_v27 = vpop.f32.mrb[64].mxu0 }
 0xf12   :  { %v7267_v15 = vpop.f32.mrb[65].mxu0 }
 0xf13   :  { %v11107_v50 = vpop.f32.mrb[66].mxu0  ;;  %11307 = vmatpush3.bf16.msra.mxu0 %v12248_v1 }
 0xf14   :  { %v7269_v59 = vpop.f32.mrb[67].mxu0 }
 0xf31   :  { %v11134_v63 = vpop.f32.mrb[68].mxu0 }
 0xf32   :  { %v7463_v60 = vpop.f32.mrb[69].mxu0  ;;  %v12250_v63 = vld [vmem:[%s15161_s2 + $0x3c8] sm:$0xff]  }
 0xf33   :  { %v11135_v51 = vpop.f32.mrb[70].mxu0  ;;  %v12251_v60 = vld [vmem:[%s15161_s2 + $0x3d0] sm:$0xff]  }
 0xf34   :  { %v7465_v4 = vpop.f32.mrb[71].mxu0  ;;  %v12252_v51 = vld [vmem:[%s15161_s2 + $0x3d8] sm:$0xff]  }
 0xf35   :  { %v12253_v4 = vld [vmem:[%s15161_s2 + $0x3e0] sm:$0xff]  }
 0xf51   :  { %v11162_v49 = vpop.f32.mrb[72].mxu0 }
 0xf52   :  { %v7607_v39 = vpop.f32.mrb[73].mxu0  ;;  %v12256_v49 = vld [vmem:[%s15161_s2 + $0x3f8] sm:$0xff]  }
 0xf53   :  { %v11163_v40 = vpop.f32.mrb[74].mxu0  ;;  %v9285_v39 = vld [vmem:[%s15162_s3 + $0x8] ss:$0 sm:$0xff] }
 0xf54   :  { %v7609_v8 = vpop.f32.mrb[75].mxu0 }
 0xf71   :  { %v11190_v35 = vpop.f32.mrb[76].mxu0 }
 0xf72   :  { %v7759_v10 = vpop.f32.mrb[77].mxu0 }
 0xf73   :  { %v11191_v5 = vpop.f32.mrb[78].mxu0 }
 0xf74   :  { %v7761_v9 = vpop.f32.mrb[79].mxu0 }
 0xf91   :  { %v11218_v24 = vpop.f32.mrb[80].mxu0 }
 0xf92   :  { %v7959_v58 = vpop.f32.mrb[81].mxu0 }
 0xf93   :  { %v11219_v42 = vpop.f32.mrb[82].mxu0 }
 0xf94   :  { %v7961_v32 = vpop.f32.mrb[83].mxu0 }
 0xfb1   :  { %v11246_v43 = vpop.f32.mrb[84].mxu0 }
 0xfb2   :  { %v8115_v12 = vpop.f32.mrb[85].mxu0 }
 0xfb3   :  { %v11247_v14 = vpop.f32.mrb[86].mxu0 }
 0xfb4   :  { %v8117_v56 = vpop.f32.mrb[87].mxu0 }
 0xfc9   :  { %v11270_v57 = vpop.f32.mrb[52].mxu0 }
 0xfca   :  { %v8301_v33 = vpop.f32.mrb[53].mxu0 }
 0xfcb   :  { %v11271_v21 = vpop.f32.mrb[54].mxu0 }
 0xfcc   :  { %v8304_v20 = vpop.f32.mrb[55].mxu0 }
 0xfcd   :  { %v8356_v52 = vpack.c.bf16 %v8304_v20, %v8301_v33 }
 0xfcf   :  { %11288 = vmatprep.mubr.msk.bf16.mxu1 %vm1281_vm9, %v8356_v52 }
 0xfd1   :  { %v11274_v6 = vpop.f32.mrb[88].mxu0 }
 0xfd2   :  { %v8315_v29 = vpop.f32.mrb[89].mxu0 }
 0xfd3   :  { %v11275_v13 = vpop.f32.mrb[90].mxu0 }
 0xfd4   :  { %v8317_v17 = vpop.f32.mrb[91].mxu0  ;;  %v8700_v13 = vand.u32 127, %v3609_v7 }
 0xfd5   :  { %v9294_v17 = vld [vmem:[%s15162_s3 + $0x9] ss:$0 sm:$0xff] }
 0xfd6   :  { %vm8701_vm5 = vcmp.lt.s32.totalorder %v8700_v13, 35 }
 0xfd9   :  { %v11278_v18 = vpop.f32.mrb[60].mxu0 }
 0xfda   :  { %v8327_v26 = vpop.f32.mrb[61].mxu0 }
 0xfdb   :  { %v11279_v46 = vpop.f32.mrb[62].mxu0 }
 0xfdc   :  { %v8329_v38 = vpop.f32.mrb[63].mxu0 }
 0xfdd   :  { %v8357_v0 = vpack.c.bf16 %v11278_v18, %v8329_v38 }
 0xfdf   :  { %11289 = vmatmul.mubr.msk.bf16.vlgmr.msra.gmra.mrb[72].mxu1 %vm1281_vm9, %v8357_v0 }
 0xfe0   :  { %11328 = vmatprep.mubr.msk.bf16.mxu1 %vm12264_vm15, %v12262_v31  ;;  %11313 = vmatpush3.bf16.msra.mxu1 %v12249_v19  ;;  %vm8587_vm15 = vcmask 1040384  }
 0xfe1   :  { %11314 = vmatprep.subr.bf16.mxu1 %v12262_v31 }
 0xfe4   :  { %11315 = vmatpush3.bf16.msra.mxu1 %v12250_v63 }
 0xfe5   :  { %11316 = vmatprep.subr.bf16.mxu1 %v12262_v31 }
 0xfe8   :  { %11317 = vmatpush3.bf16.msra.mxu1 %v12251_v60 }
 0xfe9   :  { %11318 = vmatprep.subr.bf16.mxu1 %v12262_v31 }
 0xfec   :  { %11319 = vmatpush3.bf16.msra.mxu1 %v12252_v51 }
 0xfed   :  { %11320 = vmatprep.subr.bf16.mxu1 %v12262_v31 }
 0xff0   :  { %11321 = vmatpush3.bf16.msra.mxu1 %v12253_v4 }
 0xff1   :  { %11322 = vmatprep.subr.bf16.mxu1 %v12262_v31 }
 0xff4   :  { %11323 = vmatpush3.bf16.msra.mxu1 %v12254_v61 }
 0xff5   :  { %11324 = vmatprep.subr.bf16.mxu1 %v12262_v31 }
 0xff8   :  { %11325 = vmatpush3.bf16.msra.mxu1 %v12255_v53 }
 0xff9   :  { %11326 = vmatprep.subr.bf16.mxu1 %v12262_v31 }
 0xffc   :  { %11327 = vmatpush3.bf16.msra.mxu1 %v12256_v49 }
0x10b2   :  { %v11290_v37 = vpop.f32.mrb[72].mxu1 }
0x10b3   :  { %v8436_v28 = vadd.f32 %v11290_v37, %v9278_v11  ;;  %v8427_v47 = vpop.f32.mrb[73].mxu1 }
0x10b4   :  { %v8428_v62 = vadd.f32 %v9278_v11, %v8427_v47  ;;  %v11291_v55 = vpop.f32.mrb[74].mxu1 }
0x10b5   :  { %v8439_v54 = vadd.f32 %v11291_v55, %v9278_v11  ;;  %v8430_v41 = vpop.f32.mrb[75].mxu1  ;;  %v8444_v3 = vmax.f32 %v8436_v28, 0.0 }
0x10b6   :  { %v8431_v34 = vadd.f32 %v9278_v11, %v8430_v41  ;;  %v8442_v27 = vmax.f32 %v8428_v62, 0.0 }
0x10b7   :  { %v8445_v48 = vmax.f32 %v8439_v54, 0.0 }
0x10b8   :  { %v8443_v15 = vmax.f32 %v8431_v34, 0.0 }
0x10b9   :  { %v8463_v50 = vpack.c.bf16 %v8445_v48, %v8444_v3 }
0x10ba   :  { %v8462_v59 = vpack.c.bf16 %v8443_v15, %v8442_v27 }
0x10bc   :  { %11308 = vmatprep.mubr.bf16.mxu0 %v8462_v59 }
0x10bd   :  { %11309 = vmatmul.mubr.bf16.vlgmr.msra.gmra.mrb[92].mxu0 %v8463_v50 }
0x1190   :  { %v11310_v16 = vpop.f32.mrb[92].mxu0 }
0x1191   :  { %v8560_v40 = vadd.f32 %v11310_v16, %v9285_v39  ;;  %v8551_v8 = vpop.f32.mrb[93].mxu0 }
0x1192   :  { %v8552_v30 = vadd.f32 %v9285_v39, %v8551_v8  ;;  %v11311_v36 = vpop.f32.mrb[94].mxu0 }
0x1193   :  { %v8563_v23 = vadd.f32 %v11311_v36, %v9285_v39  ;;  %v8554_v22 = vpop.f32.mrb[95].mxu0  ;;  %v8568_v2 = vmax.f32 %v8560_v40, 0.0 }
0x1194   :  { %v8555_v44 = vadd.f32 %v9285_v39, %v8554_v22  ;;  %v8566_v35 = vmax.f32 %v8552_v30, 0.0 }
0x1195   :  { %v8569_v45 = vmax.f32 %v8563_v23, 0.0 }
0x1196   :  { %v8567_v10 = vmax.f32 %v8555_v44, 0.0 }
0x1197   :  { %v8579_v5 = vadd.f32 %v8569_v45, %v8568_v2 }
0x1198   :  { %v8570_v9 = vadd.f32 %v8567_v10, %v8566_v35 }
0x1199   :  { %v8580_v31 = vrot.slane %v8579_v5, 4 }
0x119a   :  { %v8571_v24 = vrot.slane %v8570_v9, 4 }
0x119b   :  { %v8581_v58 = vadd.f32 %v8580_v31, %v8579_v5 }
0x119c   :  { %v8572_v42 = vadd.f32 %v8571_v24, %v8570_v9 }
0x119d   :  { %v8582_v32 = vrot.slane %v8581_v58, 2 }
0x119e   :  { %v8573_v43 = vrot.slane %v8572_v42, 2 }
0x119f   :  { %v8583_v12 = vadd.f32 %v8582_v32, %v8581_v58 }
0x11a0   :  { %v8574_v14 = vadd.f32 %v8573_v43, %v8572_v42 }
0x11a1   :  { %v8584_v56 = vrot.slane %v8583_v12, 1 }
0x11a2   :  { %v8575_v57 = vrot.slane %v8574_v14, 1 }
0x11a3   :  { %v8585_v33 = vadd.f32 %v8584_v56, %v8583_v12 }
0x11a4   :  { %v8576_v21 = vadd.f32 %v8575_v57, %v8574_v14 }
0x11a5   :  { %v8586_v20 = vmul.f32 0.0625, %v8585_v33 }
0x11a6   :  { %v8578_v52 = vmul.f32 0.0625, %v8576_v21 }
0x11a8   :  { %v8588_v6 = vsel %vm8587_vm15, %v8578_v52, %v8586_v20 }
0x11a9   :  { %v8605_v29 = vpack.c.bf16 %v8588_v6, %v8588_v6 }
0x11ab   :  { %11329 = vmatmul.mubr.bf16.vlgmr.msra.gmra.mrb[76].mxu1 %v8605_v29 }
0x127e   :  { %v8693_v18 = vpop.f32.mrb[76].mxu1 }
0x127f   :  { %v8694_v26 = vadd.f32 %v9294_v17, %v8693_v18  ;;  %v11330_v46 = vpop.f32.mrb[77].mxu1 }
0x1280   :  { %v8696_v38 = vpop.f32.mrb[78].mxu1 }
0x1281   :  { %v11331_v0 = vpop.f32.mrb[79].mxu1  ;;  %v8702_v25 = vsel %vm8701_vm5, %v8694_v26, -inf }
0x1282   :  { %v8704_v1 = vsel %vm8703_vm8, %v8702_v25, -inf }
0x1283   :  { %8705 = vmax.xlane.f32.xlu0 %v8704_v1 }
0x1310   :  { %v8706_v19 = vpop.xlane.xlu0 %8705 }
0x1311   :  { %v8707_v11 = vsub.f32 %v8694_v26, %v8706_v19 }
0x1313   :  { %v8708_v37 = vmul.f32 1.442695, %v8707_v11 }
0x1315   :  { %12257 = vpow2.f32 %v8708_v37 }
0x131f   :  { %v12258_v28 = vpop.eup %12257 }
0x1320   :  { %v8710_v7 = vsel %vm8701_vm5, %v12258_v28, 0.0 }
0x1321   :  { %v8711_v47 = vsel %vm8703_vm8, %v8710_v7, 0.0 }
0x1322   :  { %8712 = vadd.xlane.f32.xlu1 %v8711_v47 }
0x13af   :  { %v8713_v62 = vpop.xlane.xlu1 %8712 }
0x13b0   :  { %12259 = vlog2.f32 %v8713_v62 }
0x13ba   :  { %v12260_v55 = vpop.eup %12259 }
0x13bb   :  { %v8715_v54 = vmul.f32 0.6931472, %v12260_v55 }
0x13bd   :  { %v8716_v41 = vsub.f32 %v8707_v11, %v8715_v54 }
0x13bf   :  { %8717 = vst [vmem:[%s15163_s4] sm:$0x3] %v8716_v41 }

</bundles_post_ra>
